<compile_context>
chip_gen: v6e
topology: v6e:2x2x1
jax: 0.10.0
libtpu: 0.0.40
codegen_flags: <defaults>
</compile_context>

<pallas_src>
import functools
import math

import numpy as np

import jax
import jax.numpy as jnp
from jax.experimental import pallas as pl
from jax.experimental.pallas import tpu as pltpu


def _round_up(x, m):
    return ((x + m - 1) // m) * m


@functools.lru_cache(maxsize=None)
def _vmem_limit_bytes():
    """Per-generation scoped-VMEM limit: roughly half of physical VMEM."""
    cap = None
    try:
        cap = getattr(pltpu.get_tpu_info(), "vmem_capacity_bytes", None)
    except Exception:  # pragma: no cover - portability guard
        cap = None
    if not cap:
        return 32 * 1024 * 1024            # safe even on v7x (64 MiB physical)
    return int(min(max(cap // 2, 32 * 1024 * 1024), 96 * 1024 * 1024))


def _cpad(c):
    """Pad a channel count to a lane multiple (>=128) for lane-dense I/O."""
    return max(_round_up(c, 128), 128)


# ----------------------------------------------------------------------------
# Host-built constants (exact, f32): interior mask & adaptive-avg-pool matrix.
# ----------------------------------------------------------------------------
@functools.lru_cache(maxsize=None)
def _interior_mask(H, W):
    # 1.0 at interior positions of the zero-padded (H+2, W+2) grid, else 0.
    Hp, Wp = H + 2, W + 2
    L = Hp * Wp
    Lr = _round_up(L, 16)
    m = np.zeros((Lr, 1), np.float32)
    for r in range(1, Hp - 1):
        m[r * Wp + 1:r * Wp + 1 + W, 0] = 1.0
    return jnp.asarray(m)


@functools.lru_cache(maxsize=None)
def _pool_matrix(H, W):
    # (49, Lr) averaging matrix acting on the padded-flattened feature map.
    Hp, Wp = H + 2, W + 2
    Lr = _round_up(Hp * Wp, 16)
    P = np.zeros((49, Lr), np.float32)
    for i in range(7):
        hs, he = (i * H) // 7, -((-(i + 1) * H) // 7)
        for j in range(7):
            ws, we = (j * W) // 7, -((-(j + 1) * W) // 7)
            inv = 1.0 / float((he - hs) * (we - ws))
            for h in range(hs, he):
                for w in range(ws, we):
                    P[i * 7 + j, (h + 1) * Wp + (w + 1)] = inv
    return jnp.asarray(P)


# ----------------------------------------------------------------------------
# Fused VGG "layer": conv3x3 -> conv3x3 -> BN(eval) -> ReLU  [-> avgpool(7,7)]
# ----------------------------------------------------------------------------
def _layer_kernel(xe_ref, w1_ref, b1_ref, w2_ref, b2_ref, scale_ref, shift_ref,
                  mask_ref, *rest, Wp, Lr, pad_a, fuse_pool):
    # xe_ref : (1, Lext, Cin_p) bf16  padded-flattened activation (zero halos)
    # w{1,2} : (9*Ck_p, Cout_p) bf16  3x3 taps folded along the leading dim
    # mask   : (Lr, 1)          f32   1.0 on interior positions, 0.0 elsewhere
    # rest   : [pool]  out  x32_scratch  mid_scratch
    if fuse_pool:
        p_ref, o_ref, x32_ref, mid_ref = rest
    else:
        o_ref, x32_ref, mid_ref = rest

    Lext = x32_ref.shape[0]
    off0 = pad_a - (Wp + 1)
    starts = tuple(off0 + ky * Wp + kx for ky in range(3) for kx in range(3))

    def conv3x3(src_ref, w_ref):
        # 9 shifted (Lr, Ck) @ (Ck, Cout) bf16 MXU matmuls, f32 accumulation.
        kc = w_ref.shape[0] // 9
        acc = jnp.zeros((Lr, w_ref.shape[1]), jnp.float32)
        for t, s in enumerate(starts):
            acc = acc + jnp.dot(
                src_ref[s:s + Lr, :].astype(jnp.bfloat16),
                w_ref[t * kc:(t + 1) * kc, :],
                preferred_element_type=jnp.float32)
        return acc

    mask = mask_ref[...]                                     # (Lr, 1) f32

    # Stage the bf16 HBM tile as f32 once so the halo-shifted slices use the
    # proven f32 (sublane-unaligned) path.
    x32_ref[...] = xe_ref[0].astype(jnp.float32)

    # ---- conv1 (+bias); zero the border ring -> acts as conv2's padding ----
    y1 = (conv3x3(x32_ref, w1_ref) + b1_ref[...]) * mask

    C1 = mid_ref.shape[1]
    mid_ref[...] = jnp.concatenate(
        [jnp.zeros((pad_a, C1), jnp.float32), y1,
         jnp.zeros((Lext - pad_a - Lr, C1), jnp.float32)], axis=0)

    # ---- conv2 (+bias) -> BatchNorm2d (inference affine) -> ReLU -----------
    y2 = conv3x3(mid_ref, w2_ref) + b2_ref[...]
    y2 = jnp.maximum(y2 * scale_ref[...] + shift_ref[...], 0.0) * mask

    if fuse_pool:
        # AdaptiveAvgPool2d((7,7)) fused as one (49, Lr) @ (Lr, C2) matmul.
        o_ref[0] = jnp.dot(p_ref[...], y2, preferred_element_type=jnp.float32)
    else:
        # Emit in the padded-flattened layout the next layer consumes directly
        # (zero halos + border ring); single lane-dense, aligned full store.
        C2 = o_ref.shape[2]
        full = jnp.concatenate(
            [jnp.zeros((pad_a, C2), jnp.float32), y2,
             jnp.zeros((Lext - pad_a - Lr, C2), jnp.float32)], axis=0)
        o_ref[0] = full.astype(o_ref.dtype)


def layer_forward(xe, w1, b1, w2, b2, scale, shift, mask, pool_mat, *,
                  Wp, Lr, pad_a, Lext):
    # xe: (N, Lext, Cin_p) bf16 padded-flattened activation.
    N, _, cin_p = xe.shape
    c1_p = w1.shape[1]
    c2_p = w2.shape[1]
    fuse_pool = pool_mat is not None

    kernel = functools.partial(_layer_kernel, Wp=Wp, Lr=Lr, pad_a=pad_a,
                               fuse_pool=fuse_pool)
    in_specs = [
        pl.BlockSpec((1, Lext, cin_p), lambda n: (n, 0, 0)),
        pl.BlockSpec((9 * cin_p, c1_p), lambda n: (0, 0)),
        pl.BlockSpec((1, c1_p), lambda n: (0, 0)),
        pl.BlockSpec((9 * c1_p, c2_p), lambda n: (0, 0)),
        pl.BlockSpec((1, c2_p), lambda n: (0, 0)),
        pl.BlockSpec((1, c2_p), lambda n: (0, 0)),
        pl.BlockSpec((1, c2_p), lambda n: (0, 0)),
        pl.BlockSpec((Lr, 1), lambda n: (0, 0)),
    ]
    args = [xe, w1, b1, w2, b2, scale, shift, mask]
    if fuse_pool:
        in_specs.append(pl.BlockSpec((49, Lr), lambda n: (0, 0)))
        args.append(pool_mat)
        out_shape = jax.ShapeDtypeStruct((N, 49, c2_p), jnp.float32)
        out_spec = pl.BlockSpec((1, 49, c2_p), lambda n: (n, 0, 0))
    else:
        out_shape = jax.ShapeDtypeStruct((N, Lext, c2_p), jnp.bfloat16)
        out_spec = pl.BlockSpec((1, Lext, c2_p), lambda n: (n, 0, 0))

    return pl.pallas_call(
        kernel,
        out_shape=out_shape,
        grid=(N,),
        in_specs=in_specs,
        out_specs=out_spec,
        scratch_shapes=[pltpu.VMEM((Lext, cin_p), jnp.float32),
                        pltpu.VMEM((Lext, c1_p), jnp.float32)],
        compiler_params=pltpu.CompilerParams(
            dimension_semantics=("parallel",),
            vmem_limit_bytes=_vmem_limit_bytes()),
    )(*args)


# ----------------------------------------------------------------------------
# Classifier: three K-tiled Linear kernels (bias + optional ReLU fused).
# ----------------------------------------------------------------------------
def _linear_kernel(x_ref, w_ref, b_ref, o_ref, acc_ref, *, relu):
    k = pl.program_id(1)

    @pl.when(k == 0)
    def _():
        acc_ref[...] = jnp.zeros_like(acc_ref)

    acc_ref[...] += jnp.dot(x_ref[...], w_ref[...],
                            preferred_element_type=jnp.float32)

    @pl.when(k == pl.num_programs(1) - 1)
    def _():
        h = acc_ref[...] + b_ref[...]
        if relu:
            h = jnp.maximum(h, 0.0)
        o_ref[...] = h


def linear_forward(x, w, b, *, relu, tk_max=1024, tn_max=512):
    # x: (B, K) float; w: (K, N) bf16 (streamed in K tiles); b: (1, N) f32.
    B, K = x.shape
    N = w.shape[1]
    if K > tk_max:
        tk = tk_max
        Kp = _round_up(K, tk)
    else:
        tk = Kp = _round_up(K, 128)
    tn = tn_max if (N > tn_max and N % tn_max == 0) else N
    nt, kt = N // tn, Kp // tk

    xb = x.astype(jnp.bfloat16)
    if Kp != K:
        xb = jnp.pad(xb, ((0, 0), (0, Kp - K)))
        w = jnp.pad(w, ((0, Kp - K), (0, 0)))

    return pl.pallas_call(
        functools.partial(_linear_kernel, relu=relu),
        out_shape=jax.ShapeDtypeStruct((B, N), jnp.float32),
        grid=(nt, kt),
        in_specs=[
            pl.BlockSpec((B, tk), lambda n, k: (0, k)),
            pl.BlockSpec((tk, tn), lambda n, k: (k, n)),
            pl.BlockSpec((1, tn), lambda n, k: (0, n)),
        ],
        out_specs=pl.BlockSpec((B, tn), lambda n, k: (0, n)),
        scratch_shapes=[pltpu.VMEM((B, tn), jnp.float32)],
        compiler_params=pltpu.CompilerParams(
            dimension_semantics=("parallel", "arbitrary"),
            vmem_limit_bytes=_vmem_limit_bytes()),
    )(xb, w, b)


# ----------------------------------------------------------------------------
# Parameter init (matches VGG._initialize_weights; channel dims padded to 128)
# ----------------------------------------------------------------------------
def init_vgg_params(key, in_channels, feature_cfg, hidden, num_classes):
    eps = 1e-5

    def fold_conv(w, cin_p, cout_p):
        # OIHW -> (ky, kx, Cin, Cout), zero-pad channels to lane multiples,
        # fold taps into the leading dim -> (9*Cin_p, Cout_p) bf16.
        w = jnp.transpose(w, (2, 3, 1, 0))
        w = jnp.pad(w, ((0, 0), (0, 0),
                        (0, cin_p - w.shape[2]), (0, cout_p - w.shape[3])))
        return w.reshape(9 * cin_p, cout_p).astype(jnp.bfloat16)

    feats = []
    c_in = in_channels
    for (c1, c2) in feature_cfg:
        key, k1, k2 = jax.random.split(key, 3)
        cin_p, c1_p, c2_p = _cpad(c_in), _cpad(c1), _cpad(c2)
        # Conv2d kaiming_normal_(fan_out, relu): std = sqrt(2 / (Cout*9))
        w1 = jax.random.normal(k1, (c1, c_in, 3, 3), jnp.float32) \
            * math.sqrt(2.0 / (c1 * 9))
        w2 = jax.random.normal(k2, (c2, c1, 3, 3), jnp.float32) \
            * math.sqrt(2.0 / (c2 * 9))
        b1 = jnp.zeros((1, c1_p), jnp.float32)
        b2 = jnp.zeros((1, c2_p), jnp.float32)
        # BatchNorm2d (inference): gamma=1, beta=0, mean=0, var=1
        scale = jnp.full((1, c2_p), 1.0 / math.sqrt(1.0 + eps), jnp.float32)
        shift = jnp.zeros((1, c2_p), jnp.float32)
        feats.append((fold_conv(w1, cin_p, c1_p), b1,
                      fold_conv(w2, c1_p, c2_p), b2, scale, shift))
        c_in = c2

    c_last, c_last_p = c_in, _cpad(c_in)
    din = c_last * 49
    key, k1, k2, k3 = jax.random.split(key, 4)
    # nn.Linear: weight ~ N(0, 0.01), bias 0 (stored transposed (Din, Dout)).
    lw1 = jax.random.normal(k1, (din, hidden), jnp.float32) * 0.01
    # channel-major flatten over the padded channel count: real channels are
    # the first c_last, so the padded rows are appended (and zero).
    lw1 = jnp.pad(lw1, ((0, (c_last_p - c_last) * 49), (0, 0)))
    lw2 = jax.random.normal(k2, (hidden, hidden), jnp.float32) * 0.01
    lw3 = jax.random.normal(k3, (hidden, num_classes), jnp.float32) * 0.01
    classifier = (lw1.astype(jnp.bfloat16), jnp.zeros((1, hidden), jnp.float32),
                  lw2.astype(jnp.bfloat16), jnp.zeros((1, hidden), jnp.float32),
                  lw3.astype(jnp.bfloat16),
                  jnp.zeros((1, num_classes), jnp.float32))
    return feats, classifier


# ----------------------------------------------------------------------------
# VGG.forward (return_rate=False path)
# ----------------------------------------------------------------------------
def vgg_forward(x_nchw, feature_params, classifier_params):
    # TODO(synk): return_rate=True / RD_fn branch not implemented (external fn).
    # TODO(synk): nn.Dropout treated as identity (inference mode).
    N, Cin, H, W = x_nchw.shape
    Hp, Wp = H + 2, W + 2
    L = Hp * Wp
    Lr = _round_up(L, 16)
    pad_a = _round_up(Wp + 1, 16)
    Lext = 2 * pad_a + Lr
    cin_p = feature_params[0][0].shape[0] // 9

    # One-time host glue: NCHW -> padded-flattened bf16 layout (zero border
    # ring, zero channel pad, aligned zero halos).  Every layer thereafter
    # consumes/produces this layout directly (no inter-layer round trips).
    x = jnp.transpose(x_nchw, (0, 2, 3, 1)).astype(jnp.float32)
    xp = jnp.pad(x, ((0, 0), (1, 1), (1, 1), (0, 0)))
    xf = xp.reshape(N, L, Cin)
    xe = jnp.pad(xf, ((0, 0), (pad_a, Lext - pad_a - L),
                      (0, cin_p - Cin))).astype(jnp.bfloat16)

    mask = _interior_mask(H, W)          # (Lr, 1) f32, exact
    pool_mat = _pool_matrix(H, W)        # (49, Lr) f32, exact

    n_layers = len(feature_params)
    for li, (w1, b1, w2, b2, scale, shift) in enumerate(feature_params):
        last = (li == n_layers - 1)
        xe = layer_forward(xe, w1, b1, w2, b2, scale, shift, mask,
                           pool_mat if last else None,
                           Wp=Wp, Lr=Lr, pad_a=pad_a, Lext=Lext)

    # xe is now the fused-pool output (N, 49, C_last_p) f32.
    # torch.flatten(x, 1) on NCHW => channel-major flatten.
    feat = jnp.transpose(xe, (0, 2, 1)).reshape(N, -1)

    lw1, lb1, lw2, lb2, lw3, lb3 = classifier_params
    h = linear_forward(feat, lw1, lb1, relu=True)
    h = linear_forward(h, lw2, lb2, relu=True)
    return linear_forward(h, lw3, lb3, relu=False)


if __name__ == "__main__":
    key = jax.random.PRNGKey(0)
    kx, kp = jax.random.split(key)

    # Small VGG-like config: two `layer` blocks (layer.forward never applies
    # its MaxPool2d, so the spatial size stays 14x14 until the adaptive pool).
    in_channels = 3
    feature_cfg = [(8, 16), (16, 32)]   # (params[0], params[1]) per layer
    hidden = 64                         # scaled-down stand-in for 4096
    num_classes = 10

    x = jax.random.normal(kx, (2, in_channels, 14, 14), jnp.float32)  # NCHW
    feats, classifier = init_vgg_params(kp, in_channels, feature_cfg,
                                        hidden, num_classes)

    fwd = jax.jit(vgg_forward)
    out = fwd(x, feats, classifier)
    out = jax.block_until_ready(out)
    assert out.shape == (2, num_classes)
    assert bool(jnp.all(jnp.isfinite(out)))
    print("KERNEL_OK")
</pallas_src>

<mosaic_0001>
module attributes {stable_mosaic.version = 11 : i64} {
  func.func @_layer_kernel(%arg0: i32, %arg1: memref<1x320x128xbf16, #tpu.memory_space<vmem>>, %arg2: memref<1152x128xbf16, #tpu.memory_space<vmem>>, %arg3: memref<1x128xf32, #tpu.memory_space<vmem>>, %arg4: memref<1152x128xbf16, #tpu.memory_space<vmem>>, %arg5: memref<1x128xf32, #tpu.memory_space<vmem>>, %arg6: memref<1x128xf32, #tpu.memory_space<vmem>>, %arg7: memref<1x128xf32, #tpu.memory_space<vmem>>, %arg8: memref<256x1xf32, #tpu.memory_space<vmem>>, %arg9: memref<1x320x128xbf16, #tpu.memory_space<vmem>>, %arg10: memref<320x128xf32, #tpu.memory_space<vmem>>, %arg11: memref<320x128xf32, #tpu.memory_space<vmem>>) attributes {dimension_semantics = [#tpu.dimension_semantics<parallel>], iteration_bounds = array<i64: 2>, scalar_prefetch = 0 : i64, scratch_operands = 2 : i64, tpu.core_type = #tpu.core_type<tc>, window_params = [{transform_indices = @transform_0, window_bounds = array<i64: 1, 320, 128>}, {pipeline_mode = #tpu.pipeline_mode<synchronous>, transform_indices = @transform_1, window_bounds = array<i64: 1152, 128>}, {pipeline_mode = #tpu.pipeline_mode<synchronous>, transform_indices = @transform_2, window_bounds = array<i64: 1, 128>}, {pipeline_mode = #tpu.pipeline_mode<synchronous>, transform_indices = @transform_3, window_bounds = array<i64: 1152, 128>}, {pipeline_mode = #tpu.pipeline_mode<synchronous>, transform_indices = @transform_4, window_bounds = array<i64: 1, 128>}, {pipeline_mode = #tpu.pipeline_mode<synchronous>, transform_indices = @transform_5, window_bounds = array<i64: 1, 128>}, {pipeline_mode = #tpu.pipeline_mode<synchronous>, transform_indices = @transform_6, window_bounds = array<i64: 1, 128>}, {pipeline_mode = #tpu.pipeline_mode<synchronous>, transform_indices = @transform_7, window_bounds = array<i64: 256, 1>}, {transform_indices = @transform_8, window_bounds = array<i64: 1, 320, 128>}]} {
    %c0 = arith.constant 0 : index
    %c0_0 = arith.constant 0 : index
    %0 = vector.load %arg8[%c0, %c0_0] : memref<256x1xf32, #tpu.memory_space<vmem>>, vector<256x1xf32>
    %c0_1 = arith.constant 0 : index
    %c0_2 = arith.constant 0 : index
    %c0_3 = arith.constant 0 : index
    %1 = vector.load %arg1[%c0_1, %c0_2, %c0_3] : memref<1x320x128xbf16, #tpu.memory_space<vmem>>, vector<1x320x128xbf16>
    %2 = vector.shape_cast %1 : vector<1x320x128xbf16> to vector<320x128xbf16>
    %3 = arith.extf %2 : vector<320x128xbf16> to vector<320x128xf32>
    %c0_4 = arith.constant 0 : index
    %c0_5 = arith.constant 0 : index
    %4 = vector.load %arg10[%c0_4, %c0_5] : memref<320x128xf32, #tpu.memory_space<vmem>>, vector<320x128xf32>
    tpu.vector_store %arg10[%c0_4, %c0_5], %3 {strides = array<i32>} : memref<320x128xf32, #tpu.memory_space<vmem>>, vector<320x128xf32>,
    %cst = arith.constant 0.000000e+00 : f32
    %5 = vector.broadcast %cst : f32 to vector<256x128xf32>
    %c15 = arith.constant 15 : index
    %c0_6 = arith.constant 0 : index
    %6 = vector.load %arg10[%c15, %c0_6] : memref<320x128xf32, #tpu.memory_space<vmem>>, vector<256x128xf32>
    %7 = arith.truncf %6 : vector<256x128xf32> to vector<256x128xbf16>
    %c0_7 = arith.constant 0 : index
    %c0_8 = arith.constant 0 : index
    %8 = vector.load %arg2[%c0_7, %c0_8] : memref<1152x128xbf16, #tpu.memory_space<vmem>>, vector<128x128xbf16>
    %cst_9 = arith.constant dense<0.000000e+00> : vector<256x128xf32>
    %9 = tpu.matmul %7, %8, %cst_9 {dimension_numbers = #tpu.dot_dimension_numbers<[1], [0], [0], [1], [0, 0, 1, 1], [], []>} : vector<256x128xbf16>, vector<128x128xbf16>, vector<256x128xf32> -> vector<256x128xf32>
    %10 = arith.addf %5, %9 : vector<256x128xf32>
    %c16 = arith.constant 16 : index
    %c0_10 = arith.constant 0 : index
    %11 = vector.load %arg10[%c16, %c0_10] : memref<320x128xf32, #tpu.memory_space<vmem>>, vector<256x128xf32>
    %12 = arith.truncf %11 : vector<256x128xf32> to vector<256x128xbf16>
    %c128 = arith.constant 128 : index
    %c0_11 = arith.constant 0 : index
    %13 = vector.load %arg2[%c128, %c0_11] : memref<1152x128xbf16, #tpu.memory_space<vmem>>, vector<128x128xbf16>
    %cst_12 = arith.constant dense<0.000000e+00> : vector<256x128xf32>
    %14 = tpu.matmul %12, %13, %cst_12 {dimension_numbers = #tpu.dot_dimension_numbers<[1], [0], [0], [1], [0, 0, 1, 1], [], []>} : vector<256x128xbf16>, vector<128x128xbf16>, vector<256x128xf32> -> vector<256x128xf32>
    %15 = arith.addf %10, %14 : vector<256x128xf32>
    %c17 = arith.constant 17 : index
    %c0_13 = arith.constant 0 : index
    %16 = vector.load %arg10[%c17, %c0_13] : memref<320x128xf32, #tpu.memory_space<vmem>>, vector<256x128xf32>
    %17 = arith.truncf %16 : vector<256x128xf32> to vector<256x128xbf16>
    %c256 = arith.constant 256 : index
    %c0_14 = arith.constant 0 : index
    %18 = vector.load %arg2[%c256, %c0_14] : memref<1152x128xbf16, #tpu.memory_space<vmem>>, vector<128x128xbf16>
    %cst_15 = arith.constant dense<0.000000e+00> : vector<256x128xf32>
    %19 = tpu.matmul %17, %18, %cst_15 {dimension_numbers = #tpu.dot_dimension_numbers<[1], [0], [0], [1], [0, 0, 1, 1], [], []>} : vector<256x128xbf16>, vector<128x128xbf16>, vector<256x128xf32> -> vector<256x128xf32>
    %20 = arith.addf %15, %19 : vector<256x128xf32>
    %c31 = arith.constant 31 : index
    %c0_16 = arith.constant 0 : index
    %21 = vector.load %arg10[%c31, %c0_16] : memref<320x128xf32, #tpu.memory_space<vmem>>, vector<256x128xf32>
    %22 = arith.truncf %21 : vector<256x128xf32> to vector<256x128xbf16>
    %c384 = arith.constant 384 : index
    %c0_17 = arith.constant 0 : index
    %23 = vector.load %arg2[%c384, %c0_17] : memref<1152x128xbf16, #tpu.memory_space<vmem>>, vector<128x128xbf16>
    %cst_18 = arith.constant dense<0.000000e+00> : vector<256x128xf32>
    %24 = tpu.matmul %22, %23, %cst_18 {dimension_numbers = #tpu.dot_dimension_numbers<[1], [0], [0], [1], [0, 0, 1, 1], [], []>} : vector<256x128xbf16>, vector<128x128xbf16>, vector<256x128xf32> -> vector<256x128xf32>
    %25 = arith.addf %20, %24 : vector<256x128xf32>
    %c32 = arith.constant 32 : index
    %c0_19 = arith.constant 0 : index
    %26 = vector.load %arg10[%c32, %c0_19] : memref<320x128xf32, #tpu.memory_space<vmem>>, vector<256x128xf32>
    %27 = arith.truncf %26 : vector<256x128xf32> to vector<256x128xbf16>
    %c512 = arith.constant 512 : index
    %c0_20 = arith.constant 0 : index
    %28 = vector.load %arg2[%c512, %c0_20] : memref<1152x128xbf16, #tpu.memory_space<vmem>>, vector<128x128xbf16>
    %cst_21 = arith.constant dense<0.000000e+00> : vector<256x128xf32>
    %29 = tpu.matmul %27, %28, %cst_21 {dimension_numbers = #tpu.dot_dimension_numbers<[1], [0], [0], [1], [0, 0, 1, 1], [], []>} : vector<256x128xbf16>, vector<128x128xbf16>, vector<256x128xf32> -> vector<256x128xf32>
    %30 = arith.addf %25, %29 : vector<256x128xf32>
    %c33 = arith.constant 33 : index
    %c0_22 = arith.constant 0 : index
    %31 = vector.load %arg10[%c33, %c0_22] : memref<320x128xf32, #tpu.memory_space<vmem>>, vector<256x128xf32>
    %32 = arith.truncf %31 : vector<256x128xf32> to vector<256x128xbf16>
    %c640 = arith.constant 640 : index
    %c0_23 = arith.constant 0 : index
    %33 = vector.load %arg2[%c640, %c0_23] : memref<1152x128xbf16, #tpu.memory_space<vmem>>, vector<128x128xbf16>
    %cst_24 = arith.constant dense<0.000000e+00> : vector<256x128xf32>
    %34 = tpu.matmul %32, %33, %cst_24 {dimension_numbers = #tpu.dot_dimension_numbers<[1], [0], [0], [1], [0, 0, 1, 1], [], []>} : vector<256x128xbf16>, vector<128x128xbf16>, vector<256x128xf32> -> vector<256x128xf32>
    %35 = arith.addf %30, %34 : vector<256x128xf32>
    %c47 = arith.constant 47 : index
    %c0_25 = arith.constant 0 : index
    %36 = vector.load %arg10[%c47, %c0_25] : memref<320x128xf32, #tpu.memory_space<vmem>>, vector<256x128xf32>
    %37 = arith.truncf %36 : vector<256x128xf32> to vector<256x128xbf16>
    %c768 = arith.constant 768 : index
    %c0_26 = arith.constant 0 : index
    %38 = vector.load %arg2[%c768, %c0_26] : memref<1152x128xbf16, #tpu.memory_space<vmem>>, vector<128x128xbf16>
    %cst_27 = arith.constant dense<0.000000e+00> : vector<256x128xf32>
    %39 = tpu.matmul %37, %38, %cst_27 {dimension_numbers = #tpu.dot_dimension_numbers<[1], [0], [0], [1], [0, 0, 1, 1], [], []>} : vector<256x128xbf16>, vector<128x128xbf16>, vector<256x128xf32> -> vector<256x128xf32>
    %40 = arith.addf %35, %39 : vector<256x128xf32>
    %c48 = arith.constant 48 : index
    %c0_28 = arith.constant 0 : index
    %41 = vector.load %arg10[%c48, %c0_28] : memref<320x128xf32, #tpu.memory_space<vmem>>, vector<256x128xf32>
    %42 = arith.truncf %41 : vector<256x128xf32> to vector<256x128xbf16>
    %c896 = arith.constant 896 : index
    %c0_29 = arith.constant 0 : index
    %43 = vector.load %arg2[%c896, %c0_29] : memref<1152x128xbf16, #tpu.memory_space<vmem>>, vector<128x128xbf16>
    %cst_30 = arith.constant dense<0.000000e+00> : vector<256x128xf32>
    %44 = tpu.matmul %42, %43, %cst_30 {dimension_numbers = #tpu.dot_dimension_numbers<[1], [0], [0], [1], [0, 0, 1, 1], [], []>} : vector<256x128xbf16>, vector<128x128xbf16>, vector<256x128xf32> -> vector<256x128xf32>
    %45 = arith.addf %40, %44 : vector<256x128xf32>
    %c49 = arith.constant 49 : index
    %c0_31 = arith.constant 0 : index
    %46 = vector.load %arg10[%c49, %c0_31] : memref<320x128xf32, #tpu.memory_space<vmem>>, vector<256x128xf32>
    %47 = arith.truncf %46 : vector<256x128xf32> to vector<256x128xbf16>
    %c1024 = arith.constant 1024 : index
    %c0_32 = arith.constant 0 : index
    %48 = vector.load %arg2[%c1024, %c0_32] : memref<1152x128xbf16, #tpu.memory_space<vmem>>, vector<128x128xbf16>
    %cst_33 = arith.constant dense<0.000000e+00> : vector<256x128xf32>
    %49 = tpu.matmul %47, %48, %cst_33 {dimension_numbers = #tpu.dot_dimension_numbers<[1], [0], [0], [1], [0, 0, 1, 1], [], []>} : vector<256x128xbf16>, vector<128x128xbf16>, vector<256x128xf32> -> vector<256x128xf32>
    %50 = arith.addf %45, %49 : vector<256x128xf32>
    %c0_34 = arith.constant 0 : index
    %c0_35 = arith.constant 0 : index
    %51 = vector.load %arg3[%c0_34, %c0_35] : memref<1x128xf32, #tpu.memory_space<vmem>>, vector<1x128xf32>
    %52 = vector.broadcast %51 : vector<1x128xf32> to vector<256x128xf32>
    %53 = arith.addf %50, %52 : vector<256x128xf32>
    %54 = vector.broadcast %0 : vector<256x1xf32> to vector<256x128xf32>
    %55 = arith.mulf %53, %54 : vector<256x128xf32>
    %cst_36 = arith.constant 0.000000e+00 : f32
    %56 = vector.broadcast %cst_36 : f32 to vector<32x128xf32>
    %cst_37 = arith.constant 0.000000e+00 : f32
    %57 = vector.broadcast %cst_37 : f32 to vector<32x128xf32>
    %58 = tpu.concatenate %56, %55, %57 in 0 : vector<32x128xf32>, vector<256x128xf32>, vector<32x128xf32> -> vector<320x128xf32>
    %c0_38 = arith.constant 0 : index
    %c0_39 = arith.constant 0 : index
    %59 = vector.load %arg11[%c0_38, %c0_39] : memref<320x128xf32, #tpu.memory_space<vmem>>, vector<320x128xf32>
    tpu.vector_store %arg11[%c0_38, %c0_39], %58 {strides = array<i32>} : memref<320x128xf32, #tpu.memory_space<vmem>>, vector<320x128xf32>,
    %cst_40 = arith.constant 0.000000e+00 : f32
    %60 = vector.broadcast %cst_40 : f32 to vector<256x128xf32>
    %c15_41 = arith.constant 15 : index
    %c0_42 = arith.constant 0 : index
    %61 = vector.load %arg11[%c15_41, %c0_42] : memref<320x128xf32, #tpu.memory_space<vmem>>, vector<256x128xf32>
    %62 = arith.truncf %61 : vector<256x128xf32> to vector<256x128xbf16>
    %c0_43 = arith.constant 0 : index
    %c0_44 = arith.constant 0 : index
    %63 = vector.load %arg4[%c0_43, %c0_44] : memref<1152x128xbf16, #tpu.memory_space<vmem>>, vector<128x128xbf16>
    %cst_45 = arith.constant dense<0.000000e+00> : vector<256x128xf32>
    %64 = tpu.matmul %62, %63, %cst_45 {dimension_numbers = #tpu.dot_dimension_numbers<[1], [0], [0], [1], [0, 0, 1, 1], [], []>} : vector<256x128xbf16>, vector<128x128xbf16>, vector<256x128xf32> -> vector<256x128xf32>
    %65 = arith.addf %60, %64 : vector<256x128xf32>
    %c16_46 = arith.constant 16 : index
    %c0_47 = arith.constant 0 : index
    %66 = vector.load %arg11[%c16_46, %c0_47] : memref<320x128xf32, #tpu.memory_space<vmem>>, vector<256x128xf32>
    %67 = arith.truncf %66 : vector<256x128xf32> to vector<256x128xbf16>
    %c128_48 = arith.constant 128 : index
    %c0_49 = arith.constant 0 : index
    %68 = vector.load %arg4[%c128_48, %c0_49] : memref<1152x128xbf16, #tpu.memory_space<vmem>>, vector<128x128xbf16>
    %cst_50 = arith.constant dense<0.000000e+00> : vector<256x128xf32>
    %69 = tpu.matmul %67, %68, %cst_50 {dimension_numbers = #tpu.dot_dimension_numbers<[1], [0], [0], [1], [0, 0, 1, 1], [], []>} : vector<256x128xbf16>, vector<128x128xbf16>, vector<256x128xf32> -> vector<256x128xf32>
    %70 = arith.addf %65, %69 : vector<256x128xf32>
    %c17_51 = arith.constant 17 : index
    %c0_52 = arith.constant 0 : index
    %71 = vector.load %arg11[%c17_51, %c0_52] : memref<320x128xf32, #tpu.memory_space<vmem>>, vector<256x128xf32>
    %72 = arith.truncf %71 : vector<256x128xf32> to vector<256x128xbf16>
    %c256_53 = arith.constant 256 : index
    %c0_54 = arith.constant 0 : index
    %73 = vector.load %arg4[%c256_53, %c0_54] : memref<1152x128xbf16, #tpu.memory_space<vmem>>, vector<128x128xbf16>
    %cst_55 = arith.constant dense<0.000000e+00> : vector<256x128xf32>
    %74 = tpu.matmul %72, %73, %cst_55 {dimension_numbers = #tpu.dot_dimension_numbers<[1], [0], [0], [1], [0, 0, 1, 1], [], []>} : vector<256x128xbf16>, vector<128x128xbf16>, vector<256x128xf32> -> vector<256x128xf32>
    %75 = arith.addf %70, %74 : vector<256x128xf32>
    %c31_56 = arith.constant 31 : index
    %c0_57 = arith.constant 0 : index
    %76 = vector.load %arg11[%c31_56, %c0_57] : memref<320x128xf32, #tpu.memory_space<vmem>>, vector<256x128xf32>
    %77 = arith.truncf %76 : vector<256x128xf32> to vector<256x128xbf16>
    %c384_58 = arith.constant 384 : index
    %c0_59 = arith.constant 0 : index
    %78 = vector.load %arg4[%c384_58, %c0_59] : memref<1152x128xbf16, #tpu.memory_space<vmem>>, vector<128x128xbf16>
    %cst_60 = arith.constant dense<0.000000e+00> : vector<256x128xf32>
    %79 = tpu.matmul %77, %78, %cst_60 {dimension_numbers = #tpu.dot_dimension_numbers<[1], [0], [0], [1], [0, 0, 1, 1], [], []>} : vector<256x128xbf16>, vector<128x128xbf16>, vector<256x128xf32> -> vector<256x128xf32>
    %80 = arith.addf %75, %79 : vector<256x128xf32>
    %c32_61 = arith.constant 32 : index
    %c0_62 = arith.constant 0 : index
    %81 = vector.load %arg11[%c32_61, %c0_62] : memref<320x128xf32, #tpu.memory_space<vmem>>, vector<256x128xf32>
    %82 = arith.truncf %81 : vector<256x128xf32> to vector<256x128xbf16>
    %c512_63 = arith.constant 512 : index
    %c0_64 = arith.constant 0 : index
    %83 = vector.load %arg4[%c512_63, %c0_64] : memref<1152x128xbf16, #tpu.memory_space<vmem>>, vector<128x128xbf16>
    %cst_65 = arith.constant dense<0.000000e+00> : vector<256x128xf32>
    %84 = tpu.matmul %82, %83, %cst_65 {dimension_numbers = #tpu.dot_dimension_numbers<[1], [0], [0], [1], [0, 0, 1, 1], [], []>} : vector<256x128xbf16>, vector<128x128xbf16>, vector<256x128xf32> -> vector<256x128xf32>
    %85 = arith.addf %80, %84 : vector<256x128xf32>
    %c33_66 = arith.constant 33 : index
    %c0_67 = arith.constant 0 : index
    %86 = vector.load %arg11[%c33_66, %c0_67] : memref<320x128xf32, #tpu.memory_space<vmem>>, vector<256x128xf32>
    %87 = arith.truncf %86 : vector<256x128xf32> to vector<256x128xbf16>
    %c640_68 = arith.constant 640 : index
    %c0_69 = arith.constant 0 : index
    %88 = vector.load %arg4[%c640_68, %c0_69] : memref<1152x128xbf16, #tpu.memory_space<vmem>>, vector<128x128xbf16>
    %cst_70 = arith.constant dense<0.000000e+00> : vector<256x128xf32>
    %89 = tpu.matmul %87, %88, %cst_70 {dimension_numbers = #tpu.dot_dimension_numbers<[1], [0], [0], [1], [0, 0, 1, 1], [], []>} : vector<256x128xbf16>, vector<128x128xbf16>, vector<256x128xf32> -> vector<256x128xf32>
    %90 = arith.addf %85, %89 : vector<256x128xf32>
    %c47_71 = arith.constant 47 : index
    %c0_72 = arith.constant 0 : index
    %91 = vector.load %arg11[%c47_71, %c0_72] : memref<320x128xf32, #tpu.memory_space<vmem>>, vector<256x128xf32>
    %92 = arith.truncf %91 : vector<256x128xf32> to vector<256x128xbf16>
    %c768_73 = arith.constant 768 : index
    %c0_74 = arith.constant 0 : index
    %93 = vector.load %arg4[%c768_73, %c0_74] : memref<1152x128xbf16, #tpu.memory_space<vmem>>, vector<128x128xbf16>
    %cst_75 = arith.constant dense<0.000000e+00> : vector<256x128xf32>
    %94 = tpu.matmul %92, %93, %cst_75 {dimension_numbers = #tpu.dot_dimension_numbers<[1], [0], [0], [1], [0, 0, 1, 1], [], []>} : vector<256x128xbf16>, vector<128x128xbf16>, vector<256x128xf32> -> vector<256x128xf32>
    %95 = arith.addf %90, %94 : vector<256x128xf32>
    %c48_76 = arith.constant 48 : index
    %c0_77 = arith.constant 0 : index
    %96 = vector.load %arg11[%c48_76, %c0_77] : memref<320x128xf32, #tpu.memory_space<vmem>>, vector<256x128xf32>
    %97 = arith.truncf %96 : vector<256x128xf32> to vector<256x128xbf16>
    %c896_78 = arith.constant 896 : index
    %c0_79 = arith.constant 0 : index
    %98 = vector.load %arg4[%c896_78, %c0_79] : memref<1152x128xbf16, #tpu.memory_space<vmem>>, vector<128x128xbf16>
    %cst_80 = arith.constant dense<0.000000e+00> : vector<256x128xf32>
    %99 = tpu.matmul %97, %98, %cst_80 {dimension_numbers = #tpu.dot_dimension_numbers<[1], [0], [0], [1], [0, 0, 1, 1], [], []>} : vector<256x128xbf16>, vector<128x128xbf16>, vector<256x128xf32> -> vector<256x128xf32>
    %100 = arith.addf %95, %99 : vector<256x128xf32>
    %c49_81 = arith.constant 49 : index
    %c0_82 = arith.constant 0 : index
    %101 = vector.load %arg11[%c49_81, %c0_82] : memref<320x128xf32, #tpu.memory_space<vmem>>, vector<256x128xf32>
    %102 = arith.truncf %101 : vector<256x128xf32> to vector<256x128xbf16>
    %c1024_83 = arith.constant 1024 : index
    %c0_84 = arith.constant 0 : index
    %103 = vector.load %arg4[%c1024_83, %c0_84] : memref<1152x128xbf16, #tpu.memory_space<vmem>>, vector<128x128xbf16>
    %cst_85 = arith.constant dense<0.000000e+00> : vector<256x128xf32>
    %104 = tpu.matmul %102, %103, %cst_85 {dimension_numbers = #tpu.dot_dimension_numbers<[1], [0], [0], [1], [0, 0, 1, 1], [], []>} : vector<256x128xbf16>, vector<128x128xbf16>, vector<256x128xf32> -> vector<256x128xf32>
    %105 = arith.addf %100, %104 : vector<256x128xf32>
    %c0_86 = arith.constant 0 : index
    %c0_87 = arith.constant 0 : index
    %106 = vector.load %arg5[%c0_86, %c0_87] : memref<1x128xf32, #tpu.memory_space<vmem>>, vector<1x128xf32>
    %107 = vector.broadcast %106 : vector<1x128xf32> to vector<256x128xf32>
    %108 = arith.addf %105, %107 : vector<256x128xf32>
    %c0_88 = arith.constant 0 : index
    %c0_89 = arith.constant 0 : index
    %109 = vector.load %arg6[%c0_88, %c0_89] : memref<1x128xf32, #tpu.memory_space<vmem>>, vector<1x128xf32>
    %110 = vector.broadcast %109 : vector<1x128xf32> to vector<256x128xf32>
    %111 = arith.mulf %108, %110 : vector<256x128xf32>
    %c0_90 = arith.constant 0 : index
    %c0_91 = arith.constant 0 : index
    %112 = vector.load %arg7[%c0_90, %c0_91] : memref<1x128xf32, #tpu.memory_space<vmem>>, vector<1x128xf32>
    %113 = vector.broadcast %112 : vector<1x128xf32> to vector<256x128xf32>
    %114 = arith.addf %111, %113 : vector<256x128xf32>
    %cst_92 = arith.constant 0.000000e+00 : f32
    %115 = vector.broadcast %cst_92 : f32 to vector<256x128xf32>
    %116 = arith.maximumf %114, %115 : vector<256x128xf32>
    %117 = vector.broadcast %0 : vector<256x1xf32> to vector<256x128xf32>
    %118 = arith.mulf %116, %117 : vector<256x128xf32>
    %cst_93 = arith.constant 0.000000e+00 : f32
    %119 = vector.broadcast %cst_93 : f32 to vector<32x128xf32>
    %cst_94 = arith.constant 0.000000e+00 : f32
    %120 = vector.broadcast %cst_94 : f32 to vector<32x128xf32>
    %121 = tpu.concatenate %119, %118, %120 in 0 : vector<32x128xf32>, vector<256x128xf32>, vector<32x128xf32> -> vector<320x128xf32>
    %122 = arith.truncf %121 : vector<320x128xf32> to vector<320x128xbf16>
    %c0_95 = arith.constant 0 : index
    %c0_96 = arith.constant 0 : index
    %c0_97 = arith.constant 0 : index
    %123 = vector.load %arg9[%c0_95, %c0_96, %c0_97] : memref<1x320x128xbf16, #tpu.memory_space<vmem>>, vector<1x320x128xbf16>
    %124 = vector.shape_cast %123 : vector<1x320x128xbf16> to vector<320x128xbf16>
    %125 = vector.shape_cast %122 : vector<320x128xbf16> to vector<1x320x128xbf16>
    tpu.vector_store %arg9[%c0_95, %c0_96, %c0_97], %125 {strides = array<i32>} : memref<1x320x128xbf16, #tpu.memory_space<vmem>>, vector<1x320x128xbf16>,
    return
  }
  func.func @transform_0(%arg0: i32) -> (i32, i32, i32) {
    %c0_i32 = arith.constant 0 : i32
    %c0_i32_0 = arith.constant 0 : i32
    %c0_i32_1 = arith.constant 0 : i32
    return %arg0, %c0_i32, %c0_i32_0 : i32, i32, i32
  }
  func.func @transform_1(%arg0: i32) -> (i32, i32) {
    %c0_i32 = arith.constant 0 : i32
    %c0_i32_0 = arith.constant 0 : i32
    %c0_i32_1 = arith.constant 0 : i32
    return %c0_i32, %c0_i32_0 : i32, i32
  }
  func.func @transform_2(%arg0: i32) -> (i32, i32) {
    %c0_i32 = arith.constant 0 : i32
    %c0_i32_0 = arith.constant 0 : i32
    %c0_i32_1 = arith.constant 0 : i32
    return %c0_i32, %c0_i32_0 : i32, i32
  }
  func.func @transform_3(%arg0: i32) -> (i32, i32) {
    %c0_i32 = arith.constant 0 : i32
    %c0_i32_0 = arith.constant 0 : i32
    %c0_i32_1 = arith.constant 0 : i32
    return %c0_i32, %c0_i32_0 : i32, i32
  }
  func.func @transform_4(%arg0: i32) -> (i32, i32) {
    %c0_i32 = arith.constant 0 : i32
    %c0_i32_0 = arith.constant 0 : i32
    %c0_i32_1 = arith.constant 0 : i32
    return %c0_i32, %c0_i32_0 : i32, i32
  }
  func.func @transform_5(%arg0: i32) -> (i32, i32) {
    %c0_i32 = arith.constant 0 : i32
    %c0_i32_0 = arith.constant 0 : i32
    %c0_i32_1 = arith.constant 0 : i32
    return %c0_i32, %c0_i32_0 : i32, i32
  }
  func.func @transform_6(%arg0: i32) -> (i32, i32) {
    %c0_i32 = arith.constant 0 : i32
    %c0_i32_0 = arith.constant 0 : i32
    %c0_i32_1 = arith.constant 0 : i32
    return %c0_i32, %c0_i32_0 : i32, i32
  }
  func.func @transform_7(%arg0: i32) -> (i32, i32) {
    %c0_i32 = arith.constant 0 : i32
    %c0_i32_0 = arith.constant 0 : i32
    %c0_i32_1 = arith.constant 0 : i32
    return %c0_i32, %c0_i32_0 : i32, i32
  }
  func.func @transform_8(%arg0: i32) -> (i32, i32, i32) {
    %c0_i32 = arith.constant 0 : i32
    %c0_i32_0 = arith.constant 0 : i32
    %c0_i32_1 = arith.constant 0 : i32
    return %arg0, %c0_i32, %c0_i32_0 : i32, i32, i32
  }
}

module attributes {stable_mosaic.version = 11 : i64} {
  func.func @_layer_kernel(%arg0: i32, %arg1: memref<1x320x128xbf16, #tpu.memory_space<vmem>>, %arg2: memref<1152x128xbf16, #tpu.memory_space<vmem>>, %arg3: memref<1x128xf32, #tpu.memory_space<vmem>>, %arg4: memref<1152x128xbf16, #tpu.memory_space<vmem>>, %arg5: memref<1x128xf32, #tpu.memory_space<vmem>>, %arg6: memref<1x128xf32, #tpu.memory_space<vmem>>, %arg7: memref<1x128xf32, #tpu.memory_space<vmem>>, %arg8: memref<256x1xf32, #tpu.memory_space<vmem>>, %arg9: memref<49x256xf32, #tpu.memory_space<vmem>>, %arg10: memref<1x49x128xf32, #tpu.memory_space<vmem>>, %arg11: memref<320x128xf32, #tpu.memory_space<vmem>>, %arg12: memref<320x128xf32, #tpu.memory_space<vmem>>) attributes {dimension_semantics = [#tpu.dimension_semantics<parallel>], iteration_bounds = array<i64: 2>, scalar_prefetch = 0 : i64, scratch_operands = 2 : i64, tpu.core_type = #tpu.core_type<tc>, window_params = [{transform_indices = @transform_0, window_bounds = array<i64: 1, 320, 128>}, {pipeline_mode = #tpu.pipeline_mode<synchronous>, transform_indices = @transform_1, window_bounds = array<i64: 1152, 128>}, {pipeline_mode = #tpu.pipeline_mode<synchronous>, transform_indices = @transform_2, window_bounds = array<i64: 1, 128>}, {pipeline_mode = #tpu.pipeline_mode<synchronous>, transform_indices = @transform_3, window_bounds = array<i64: 1152, 128>}, {pipeline_mode = #tpu.pipeline_mode<synchronous>, transform_indices = @transform_4, window_bounds = array<i64: 1, 128>}, {pipeline_mode = #tpu.pipeline_mode<synchronous>, transform_indices = @transform_5, window_bounds = array<i64: 1, 128>}, {pipeline_mode = #tpu.pipeline_mode<synchronous>, transform_indices = @transform_6, window_bounds = array<i64: 1, 128>}, {pipeline_mode = #tpu.pipeline_mode<synchronous>, transform_indices = @transform_7, window_bounds = array<i64: 256, 1>}, {pipeline_mode = #tpu.pipeline_mode<synchronous>, transform_indices = @transform_8, window_bounds = array<i64: 49, 256>}, {transform_indices = @transform_9, window_bounds = array<i64: 1, 49, 128>}]} {
    %c0 = arith.constant 0 : index
    %c0_0 = arith.constant 0 : index
    %0 = vector.load %arg8[%c0, %c0_0] : memref<256x1xf32, #tpu.memory_space<vmem>>, vector<256x1xf32>
    %c0_1 = arith.constant 0 : index
    %c0_2 = arith.constant 0 : index
    %c0_3 = arith.constant 0 : index
    %1 = vector.load %arg1[%c0_1, %c0_2, %c0_3] : memref<1x320x128xbf16, #tpu.memory_space<vmem>>, vector<1x320x128xbf16>
    %2 = vector.shape_cast %1 : vector<1x320x128xbf16> to vector<320x128xbf16>
    %3 = arith.extf %2 : vector<320x128xbf16> to vector<320x128xf32>
    %c0_4 = arith.constant 0 : index
    %c0_5 = arith.constant 0 : index
    %4 = vector.load %arg11[%c0_4, %c0_5] : memref<320x128xf32, #tpu.memory_space<vmem>>, vector<320x128xf32>
    tpu.vector_store %arg11[%c0_4, %c0_5], %3 {strides = array<i32>} : memref<320x128xf32, #tpu.memory_space<vmem>>, vector<320x128xf32>,
    %cst = arith.constant 0.000000e+00 : f32
    %5 = vector.broadcast %cst : f32 to vector<256x128xf32>
    %c15 = arith.constant 15 : index
    %c0_6 = arith.constant 0 : index
    %6 = vector.load %arg11[%c15, %c0_6] : memref<320x128xf32, #tpu.memory_space<vmem>>, vector<256x128xf32>
    %7 = arith.truncf %6 : vector<256x128xf32> to vector<256x128xbf16>
    %c0_7 = arith.constant 0 : index
    %c0_8 = arith.constant 0 : index
    %8 = vector.load %arg2[%c0_7, %c0_8] : memref<1152x128xbf16, #tpu.memory_space<vmem>>, vector<128x128xbf16>
    %cst_9 = arith.constant dense<0.000000e+00> : vector<256x128xf32>
    %9 = tpu.matmul %7, %8, %cst_9 {dimension_numbers = #tpu.dot_dimension_numbers<[1], [0], [0], [1], [0, 0, 1, 1], [], []>} : vector<256x128xbf16>, vector<128x128xbf16>, vector<256x128xf32> -> vector<256x128xf32>
    %10 = arith.addf %5, %9 : vector<256x128xf32>
    %c16 = arith.constant 16 : index
    %c0_10 = arith.constant 0 : index
    %11 = vector.load %arg11[%c16, %c0_10] : memref<320x128xf32, #tpu.memory_space<vmem>>, vector<256x128xf32>
    %12 = arith.truncf %11 : vector<256x128xf32> to vector<256x128xbf16>
    %c128 = arith.constant 128 : index
    %c0_11 = arith.constant 0 : index
    %13 = vector.load %arg2[%c128, %c0_11] : memref<1152x128xbf16, #tpu.memory_space<vmem>>, vector<128x128xbf16>
    %cst_12 = arith.constant dense<0.000000e+00> : vector<256x128xf32>
    %14 = tpu.matmul %12, %13, %cst_12 {dimension_numbers = #tpu.dot_dimension_numbers<[1], [0], [0], [1], [0, 0, 1, 1], [], []>} : vector<256x128xbf16>, vector<128x128xbf16>, vector<256x128xf32> -> vector<256x128xf32>
    %15 = arith.addf %10, %14 : vector<256x128xf32>
    %c17 = arith.constant 17 : index
    %c0_13 = arith.constant 0 : index
    %16 = vector.load %arg11[%c17, %c0_13] : memref<320x128xf32, #tpu.memory_space<vmem>>, vector<256x128xf32>
    %17 = arith.truncf %16 : vector<256x128xf32> to vector<256x128xbf16>
    %c256 = arith.constant 256 : index
    %c0_14 = arith.constant 0 : index
    %18 = vector.load %arg2[%c256, %c0_14] : memref<1152x128xbf16, #tpu.memory_space<vmem>>, vector<128x128xbf16>
    %cst_15 = arith.constant dense<0.000000e+00> : vector<256x128xf32>
    %19 = tpu.matmul %17, %18, %cst_15 {dimension_numbers = #tpu.dot_dimension_numbers<[1], [0], [0], [1], [0, 0, 1, 1], [], []>} : vector<256x128xbf16>, vector<128x128xbf16>, vector<256x128xf32> -> vector<256x128xf32>
    %20 = arith.addf %15, %19 : vector<256x128xf32>
    %c31 = arith.constant 31 : index
    %c0_16 = arith.constant 0 : index
    %21 = vector.load %arg11[%c31, %c0_16] : memref<320x128xf32, #tpu.memory_space<vmem>>, vector<256x128xf32>
    %22 = arith.truncf %21 : vector<256x128xf32> to vector<256x128xbf16>
    %c384 = arith.constant 384 : index
    %c0_17 = arith.constant 0 : index
    %23 = vector.load %arg2[%c384, %c0_17] : memref<1152x128xbf16, #tpu.memory_space<vmem>>, vector<128x128xbf16>
    %cst_18 = arith.constant dense<0.000000e+00> : vector<256x128xf32>
    %24 = tpu.matmul %22, %23, %cst_18 {dimension_numbers = #tpu.dot_dimension_numbers<[1], [0], [0], [1], [0, 0, 1, 1], [], []>} : vector<256x128xbf16>, vector<128x128xbf16>, vector<256x128xf32> -> vector<256x128xf32>
    %25 = arith.addf %20, %24 : vector<256x128xf32>
    %c32 = arith.constant 32 : index
    %c0_19 = arith.constant 0 : index
    %26 = vector.load %arg11[%c32, %c0_19] : memref<320x128xf32, #tpu.memory_space<vmem>>, vector<256x128xf32>
    %27 = arith.truncf %26 : vector<256x128xf32> to vector<256x128xbf16>
    %c512 = arith.constant 512 : index
    %c0_20 = arith.constant 0 : index
    %28 = vector.load %arg2[%c512, %c0_20] : memref<1152x128xbf16, #tpu.memory_space<vmem>>, vector<128x128xbf16>
    %cst_21 = arith.constant dense<0.000000e+00> : vector<256x128xf32>
    %29 = tpu.matmul %27, %28, %cst_21 {dimension_numbers = #tpu.dot_dimension_numbers<[1], [0], [0], [1], [0, 0, 1, 1], [], []>} : vector<256x128xbf16>, vector<128x128xbf16>, vector<256x128xf32> -> vector<256x128xf32>
    %30 = arith.addf %25, %29 : vector<256x128xf32>
    %c33 = arith.constant 33 : index
    %c0_22 = arith.constant 0 : index
    %31 = vector.load %arg11[%c33, %c0_22] : memref<320x128xf32, #tpu.memory_space<vmem>>, vector<256x128xf32>
    %32 = arith.truncf %31 : vector<256x128xf32> to vector<256x128xbf16>
    %c640 = arith.constant 640 : index
    %c0_23 = arith.constant 0 : index
    %33 = vector.load %arg2[%c640, %c0_23] : memref<1152x128xbf16, #tpu.memory_space<vmem>>, vector<128x128xbf16>
    %cst_24 = arith.constant dense<0.000000e+00> : vector<256x128xf32>
    %34 = tpu.matmul %32, %33, %cst_24 {dimension_numbers = #tpu.dot_dimension_numbers<[1], [0], [0], [1], [0, 0, 1, 1], [], []>} : vector<256x128xbf16>, vector<128x128xbf16>, vector<256x128xf32> -> vector<256x128xf32>
    %35 = arith.addf %30, %34 : vector<256x128xf32>
    %c47 = arith.constant 47 : index
    %c0_25 = arith.constant 0 : index
    %36 = vector.load %arg11[%c47, %c0_25] : memref<320x128xf32, #tpu.memory_space<vmem>>, vector<256x128xf32>
    %37 = arith.truncf %36 : vector<256x128xf32> to vector<256x128xbf16>
    %c768 = arith.constant 768 : index
    %c0_26 = arith.constant 0 : index
    %38 = vector.load %arg2[%c768, %c0_26] : memref<1152x128xbf16, #tpu.memory_space<vmem>>, vector<128x128xbf16>
    %cst_27 = arith.constant dense<0.000000e+00> : vector<256x128xf32>
    %39 = tpu.matmul %37, %38, %cst_27 {dimension_numbers = #tpu.dot_dimension_numbers<[1], [0], [0], [1], [0, 0, 1, 1], [], []>} : vector<256x128xbf16>, vector<128x128xbf16>, vector<256x128xf32> -> vector<256x128xf32>
    %40 = arith.addf %35, %39 : vector<256x128xf32>
    %c48 = arith.constant 48 : index
    %c0_28 = arith.constant 0 : index
    %41 = vector.load %arg11[%c48, %c0_28] : memref<320x128xf32, #tpu.memory_space<vmem>>, vector<256x128xf32>
    %42 = arith.truncf %41 : vector<256x128xf32> to vector<256x128xbf16>
    %c896 = arith.constant 896 : index
    %c0_29 = arith.constant 0 : index
    %43 = vector.load %arg2[%c896, %c0_29] : memref<1152x128xbf16, #tpu.memory_space<vmem>>, vector<128x128xbf16>
    %cst_30 = arith.constant dense<0.000000e+00> : vector<256x128xf32>
    %44 = tpu.matmul %42, %43, %cst_30 {dimension_numbers = #tpu.dot_dimension_numbers<[1], [0], [0], [1], [0, 0, 1, 1], [], []>} : vector<256x128xbf16>, vector<128x128xbf16>, vector<256x128xf32> -> vector<256x128xf32>
    %45 = arith.addf %40, %44 : vector<256x128xf32>
    %c49 = arith.constant 49 : index
    %c0_31 = arith.constant 0 : index
    %46 = vector.load %arg11[%c49, %c0_31] : memref<320x128xf32, #tpu.memory_space<vmem>>, vector<256x128xf32>
    %47 = arith.truncf %46 : vector<256x128xf32> to vector<256x128xbf16>
    %c1024 = arith.constant 1024 : index
    %c0_32 = arith.constant 0 : index
    %48 = vector.load %arg2[%c1024, %c0_32] : memref<1152x128xbf16, #tpu.memory_space<vmem>>, vector<128x128xbf16>
    %cst_33 = arith.constant dense<0.000000e+00> : vector<256x128xf32>
    %49 = tpu.matmul %47, %48, %cst_33 {dimension_numbers = #tpu.dot_dimension_numbers<[1], [0], [0], [1], [0, 0, 1, 1], [], []>} : vector<256x128xbf16>, vector<128x128xbf16>, vector<256x128xf32> -> vector<256x128xf32>
    %50 = arith.addf %45, %49 : vector<256x128xf32>
    %c0_34 = arith.constant 0 : index
    %c0_35 = arith.constant 0 : index
    %51 = vector.load %arg3[%c0_34, %c0_35] : memref<1x128xf32, #tpu.memory_space<vmem>>, vector<1x128xf32>
    %52 = vector.broadcast %51 : vector<1x128xf32> to vector<256x128xf32>
    %53 = arith.addf %50, %52 : vector<256x128xf32>
    %54 = vector.broadcast %0 : vector<256x1xf32> to vector<256x128xf32>
    %55 = arith.mulf %53, %54 : vector<256x128xf32>
    %cst_36 = arith.constant 0.000000e+00 : f32
    %56 = vector.broadcast %cst_36 : f32 to vector<32x128xf32>
    %cst_37 = arith.constant 0.000000e+00 : f32
    %57 = vector.broadcast %cst_37 : f32 to vector<32x128xf32>
    %58 = tpu.concatenate %56, %55, %57 in 0 : vector<32x128xf32>, vector<256x128xf32>, vector<32x128xf32> -> vector<320x128xf32>
    %c0_38 = arith.constant 0 : index
    %c0_39 = arith.constant 0 : index
    %59 = vector.load %arg12[%c0_38, %c0_39] : memref<320x128xf32, #tpu.memory_space<vmem>>, vector<320x128xf32>
    tpu.vector_store %arg12[%c0_38, %c0_39], %58 {strides = array<i32>} : memref<320x128xf32, #tpu.memory_space<vmem>>, vector<320x128xf32>,
    %cst_40 = arith.constant 0.000000e+00 : f32
    %60 = vector.broadcast %cst_40 : f32 to vector<256x128xf32>
    %c15_41 = arith.constant 15 : index
    %c0_42 = arith.constant 0 : index
    %61 = vector.load %arg12[%c15_41, %c0_42] : memref<320x128xf32, #tpu.memory_space<vmem>>, vector<256x128xf32>
    %62 = arith.truncf %61 : vector<256x128xf32> to vector<256x128xbf16>
    %c0_43 = arith.constant 0 : index
    %c0_44 = arith.constant 0 : index
    %63 = vector.load %arg4[%c0_43, %c0_44] : memref<1152x128xbf16, #tpu.memory_space<vmem>>, vector<128x128xbf16>
    %cst_45 = arith.constant dense<0.000000e+00> : vector<256x128xf32>
    %64 = tpu.matmul %62, %63, %cst_45 {dimension_numbers = #tpu.dot_dimension_numbers<[1], [0], [0], [1], [0, 0, 1, 1], [], []>} : vector<256x128xbf16>, vector<128x128xbf16>, vector<256x128xf32> -> vector<256x128xf32>
    %65 = arith.addf %60, %64 : vector<256x128xf32>
    %c16_46 = arith.constant 16 : index
    %c0_47 = arith.constant 0 : index
    %66 = vector.load %arg12[%c16_46, %c0_47] : memref<320x128xf32, #tpu.memory_space<vmem>>, vector<256x128xf32>
    %67 = arith.truncf %66 : vector<256x128xf32> to vector<256x128xbf16>
    %c128_48 = arith.constant 128 : index
    %c0_49 = arith.constant 0 : index
    %68 = vector.load %arg4[%c128_48, %c0_49] : memref<1152x128xbf16, #tpu.memory_space<vmem>>, vector<128x128xbf16>
    %cst_50 = arith.constant dense<0.000000e+00> : vector<256x128xf32>
    %69 = tpu.matmul %67, %68, %cst_50 {dimension_numbers = #tpu.dot_dimension_numbers<[1], [0], [0], [1], [0, 0, 1, 1], [], []>} : vector<256x128xbf16>, vector<128x128xbf16>, vector<256x128xf32> -> vector<256x128xf32>
    %70 = arith.addf %65, %69 : vector<256x128xf32>
    %c17_51 = arith.constant 17 : index
    %c0_52 = arith.constant 0 : index
    %71 = vector.load %arg12[%c17_51, %c0_52] : memref<320x128xf32, #tpu.memory_space<vmem>>, vector<256x128xf32>
    %72 = arith.truncf %71 : vector<256x128xf32> to vector<256x128xbf16>
    %c256_53 = arith.constant 256 : index
    %c0_54 = arith.constant 0 : index
    %73 = vector.load %arg4[%c256_53, %c0_54] : memref<1152x128xbf16, #tpu.memory_space<vmem>>, vector<128x128xbf16>
    %cst_55 = arith.constant dense<0.000000e+00> : vector<256x128xf32>
    %74 = tpu.matmul %72, %73, %cst_55 {dimension_numbers = #tpu.dot_dimension_numbers<[1], [0], [0], [1], [0, 0, 1, 1], [], []>} : vector<256x128xbf16>, vector<128x128xbf16>, vector<256x128xf32> -> vector<256x128xf32>
    %75 = arith.addf %70, %74 : vector<256x128xf32>
    %c31_56 = arith.constant 31 : index
    %c0_57 = arith.constant 0 : index
    %76 = vector.load %arg12[%c31_56, %c0_57] : memref<320x128xf32, #tpu.memory_space<vmem>>, vector<256x128xf32>
    %77 = arith.truncf %76 : vector<256x128xf32> to vector<256x128xbf16>
    %c384_58 = arith.constant 384 : index
    %c0_59 = arith.constant 0 : index
    %78 = vector.load %arg4[%c384_58, %c0_59] : memref<1152x128xbf16, #tpu.memory_space<vmem>>, vector<128x128xbf16>
    %cst_60 = arith.constant dense<0.000000e+00> : vector<256x128xf32>
    %79 = tpu.matmul %77, %78, %cst_60 {dimension_numbers = #tpu.dot_dimension_numbers<[1], [0], [0], [1], [0, 0, 1, 1], [], []>} : vector<256x128xbf16>, vector<128x128xbf16>, vector<256x128xf32> -> vector<256x128xf32>
    %80 = arith.addf %75, %79 : vector<256x128xf32>
    %c32_61 = arith.constant 32 : index
    %c0_62 = arith.constant 0 : index
    %81 = vector.load %arg12[%c32_61, %c0_62] : memref<320x128xf32, #tpu.memory_space<vmem>>, vector<256x128xf32>
    %82 = arith.truncf %81 : vector<256x128xf32> to vector<256x128xbf16>
    %c512_63 = arith.constant 512 : index
    %c0_64 = arith.constant 0 : index
    %83 = vector.load %arg4[%c512_63, %c0_64] : memref<1152x128xbf16, #tpu.memory_space<vmem>>, vector<128x128xbf16>
    %cst_65 = arith.constant dense<0.000000e+00> : vector<256x128xf32>
    %84 = tpu.matmul %82, %83, %cst_65 {dimension_numbers = #tpu.dot_dimension_numbers<[1], [0], [0], [1], [0, 0, 1, 1], [], []>} : vector<256x128xbf16>, vector<128x128xbf16>, vector<256x128xf32> -> vector<256x128xf32>
    %85 = arith.addf %80, %84 : vector<256x128xf32>
    %c33_66 = arith.constant 33 : index
    %c0_67 = arith.constant 0 : index
    %86 = vector.load %arg12[%c33_66, %c0_67] : memref<320x128xf32, #tpu.memory_space<vmem>>, vector<256x128xf32>
    %87 = arith.truncf %86 : vector<256x128xf32> to vector<256x128xbf16>
    %c640_68 = arith.constant 640 : index
    %c0_69 = arith.constant 0 : index
    %88 = vector.load %arg4[%c640_68, %c0_69] : memref<1152x128xbf16, #tpu.memory_space<vmem>>, vector<128x128xbf16>
    %cst_70 = arith.constant dense<0.000000e+00> : vector<256x128xf32>
    %89 = tpu.matmul %87, %88, %cst_70 {dimension_numbers = #tpu.dot_dimension_numbers<[1], [0], [0], [1], [0, 0, 1, 1], [], []>} : vector<256x128xbf16>, vector<128x128xbf16>, vector<256x128xf32> -> vector<256x128xf32>
    %90 = arith.addf %85, %89 : vector<256x128xf32>
    %c47_71 = arith.constant 47 : index
    %c0_72 = arith.constant 0 : index
    %91 = vector.load %arg12[%c47_71, %c0_72] : memref<320x128xf32, #tpu.memory_space<vmem>>, vector<256x128xf32>
    %92 = arith.truncf %91 : vector<256x128xf32> to vector<256x128xbf16>
    %c768_73 = arith.constant 768 : index
    %c0_74 = arith.constant 0 : index
    %93 = vector.load %arg4[%c768_73, %c0_74] : memref<1152x128xbf16, #tpu.memory_space<vmem>>, vector<128x128xbf16>
    %cst_75 = arith.constant dense<0.000000e+00> : vector<256x128xf32>
    %94 = tpu.matmul %92, %93, %cst_75 {dimension_numbers = #tpu.dot_dimension_numbers<[1], [0], [0], [1], [0, 0, 1, 1], [], []>} : vector<256x128xbf16>, vector<128x128xbf16>, vector<256x128xf32> -> vector<256x128xf32>
    %95 = arith.addf %90, %94 : vector<256x128xf32>
    %c48_76 = arith.constant 48 : index
    %c0_77 = arith.constant 0 : index
    %96 = vector.load %arg12[%c48_76, %c0_77] : memref<320x128xf32, #tpu.memory_space<vmem>>, vector<256x128xf32>
    %97 = arith.truncf %96 : vector<256x128xf32> to vector<256x128xbf16>
    %c896_78 = arith.constant 896 : index
    %c0_79 = arith.constant 0 : index
    %98 = vector.load %arg4[%c896_78, %c0_79] : memref<1152x128xbf16, #tpu.memory_space<vmem>>, vector<128x128xbf16>
    %cst_80 = arith.constant dense<0.000000e+00> : vector<256x128xf32>
    %99 = tpu.matmul %97, %98, %cst_80 {dimension_numbers = #tpu.dot_dimension_numbers<[1], [0], [0], [1], [0, 0, 1, 1], [], []>} : vector<256x128xbf16>, vector<128x128xbf16>, vector<256x128xf32> -> vector<256x128xf32>
    %100 = arith.addf %95, %99 : vector<256x128xf32>
    %c49_81 = arith.constant 49 : index
    %c0_82 = arith.constant 0 : index
    %101 = vector.load %arg12[%c49_81, %c0_82] : memref<320x128xf32, #tpu.memory_space<vmem>>, vector<256x128xf32>
    %102 = arith.truncf %101 : vector<256x128xf32> to vector<256x128xbf16>
    %c1024_83 = arith.constant 1024 : index
    %c0_84 = arith.constant 0 : index
    %103 = vector.load %arg4[%c1024_83, %c0_84] : memref<1152x128xbf16, #tpu.memory_space<vmem>>, vector<128x128xbf16>
    %cst_85 = arith.constant dense<0.000000e+00> : vector<256x128xf32>
    %104 = tpu.matmul %102, %103, %cst_85 {dimension_numbers = #tpu.dot_dimension_numbers<[1], [0], [0], [1], [0, 0, 1, 1], [], []>} : vector<256x128xbf16>, vector<128x128xbf16>, vector<256x128xf32> -> vector<256x128xf32>
    %105 = arith.addf %100, %104 : vector<256x128xf32>
    %c0_86 = arith.constant 0 : index
    %c0_87 = arith.constant 0 : index
    %106 = vector.load %arg5[%c0_86, %c0_87] : memref<1x128xf32, #tpu.memory_space<vmem>>, vector<1x128xf32>
    %107 = vector.broadcast %106 : vector<1x128xf32> to vector<256x128xf32>
    %108 = arith.addf %105, %107 : vector<256x128xf32>
    %c0_88 = arith.constant 0 : index
    %c0_89 = arith.constant 0 : index
    %109 = vector.load %arg6[%c0_88, %c0_89] : memref<1x128xf32, #tpu.memory_space<vmem>>, vector<1x128xf32>
    %110 = vector.broadcast %109 : vector<1x128xf32> to vector<256x128xf32>
    %111 = arith.mulf %108, %110 : vector<256x128xf32>
    %c0_90 = arith.constant 0 : index
    %c0_91 = arith.constant 0 : index
    %112 = vector.load %arg7[%c0_90, %c0_91] : memref<1x128xf32, #tpu.memory_space<vmem>>, vector<1x128xf32>
    %113 = vector.broadcast %112 : vector<1x128xf32> to vector<256x128xf32>
    %114 = arith.addf %111, %113 : vector<256x128xf32>
    %cst_92 = arith.constant 0.000000e+00 : f32
    %115 = vector.broadcast %cst_92 : f32 to vector<256x128xf32>
    %116 = arith.maximumf %114, %115 : vector<256x128xf32>
    %117 = vector.broadcast %0 : vector<256x1xf32> to vector<256x128xf32>
    %118 = arith.mulf %116, %117 : vector<256x128xf32>
    %c0_93 = arith.constant 0 : index
    %c0_94 = arith.constant 0 : index
    %119 = vector.load %arg9[%c0_93, %c0_94] : memref<49x256xf32, #tpu.memory_space<vmem>>, vector<49x256xf32>
    %cst_95 = arith.constant dense<0.000000e+00> : vector<49x128xf32>
    %120 = tpu.matmul %119, %118, %cst_95 {dimension_numbers = #tpu.dot_dimension_numbers<[1], [0], [0], [1], [0, 0, 1, 1], [], []>} : vector<49x256xf32>, vector<256x128xf32>, vector<49x128xf32> -> vector<49x128xf32>
    %c0_96 = arith.constant 0 : index
    %c0_97 = arith.constant 0 : index
    %c0_98 = arith.constant 0 : index
    %121 = vector.load %arg10[%c0_96, %c0_97, %c0_98] : memref<1x49x128xf32, #tpu.memory_space<vmem>>, vector<1x49x128xf32>
    %122 = vector.shape_cast %121 : vector<1x49x128xf32> to vector<49x128xf32>
    %123 = vector.shape_cast %120 : vector<49x128xf32> to vector<1x49x128xf32>
    tpu.vector_store %arg10[%c0_96, %c0_97, %c0_98], %123 {strides = array<i32>} : memref<1x49x128xf32, #tpu.memory_space<vmem>>, vector<1x49x128xf32>,
    return
  }
  func.func @transform_0(%arg0: i32) -> (i32, i32, i32) {
    %c0_i32 = arith.constant 0 : i32
    %c0_i32_0 = arith.constant 0 : i32
    %c0_i32_1 = arith.constant 0 : i32
    return %arg0, %c0_i32, %c0_i32_0 : i32, i32, i32
  }
  func.func @transform_1(%arg0: i32) -> (i32, i32) {
    %c0_i32 = arith.constant 0 : i32
    %c0_i32_0 = arith.constant 0 : i32
    %c0_i32_1 = arith.constant 0 : i32
    return %c0_i32, %c0_i32_0 : i32, i32
  }
  func.func @transform_2(%arg0: i32) -> (i32, i32) {
    %c0_i32 = arith.constant 0 : i32
    %c0_i32_0 = arith.constant 0 : i32
    %c0_i32_1 = arith.constant 0 : i32
    return %c0_i32, %c0_i32_0 : i32, i32
  }
  func.func @transform_3(%arg0: i32) -> (i32, i32) {
    %c0_i32 = arith.constant 0 : i32
    %c0_i32_0 = arith.constant 0 : i32
    %c0_i32_1 = arith.constant 0 : i32
    return %c0_i32, %c0_i32_0 : i32, i32
  }
  func.func @transform_4(%arg0: i32) -> (i32, i32) {
    %c0_i32 = arith.constant 0 : i32
    %c0_i32_0 = arith.constant 0 : i32
    %c0_i32_1 = arith.constant 0 : i32
    return %c0_i32, %c0_i32_0 : i32, i32
  }
  func.func @transform_5(%arg0: i32) -> (i32, i32) {
    %c0_i32 = arith.constant 0 : i32
    %c0_i32_0 = arith.constant 0 : i32
    %c0_i32_1 = arith.constant 0 : i32
    return %c0_i32, %c0_i32_0 : i32, i32
  }
  func.func @transform_6(%arg0: i32) -> (i32, i32) {
    %c0_i32 = arith.constant 0 : i32
    %c0_i32_0 = arith.constant 0 : i32
    %c0_i32_1 = arith.constant 0 : i32
    return %c0_i32, %c0_i32_0 : i32, i32
  }
  func.func @transform_7(%arg0: i32) -> (i32, i32) {
    %c0_i32 = arith.constant 0 : i32
    %c0_i32_0 = arith.constant 0 : i32
    %c0_i32_1 = arith.constant 0 : i32
    return %c0_i32, %c0_i32_0 : i32, i32
  }
  func.func @transform_8(%arg0: i32) -> (i32, i32) {
    %c0_i32 = arith.constant 0 : i32
    %c0_i32_0 = arith.constant 0 : i32
    %c0_i32_1 = arith.constant 0 : i32
    return %c0_i32, %c0_i32_0 : i32, i32
  }
  func.func @transform_9(%arg0: i32) -> (i32, i32, i32) {
    %c0_i32 = arith.constant 0 : i32
    %c0_i32_0 = arith.constant 0 : i32
    %c0_i32_1 = arith.constant 0 : i32
    return %arg0, %c0_i32, %c0_i32_0 : i32, i32, i32
  }
}

module attributes {stable_mosaic.version = 11 : i64} {
  func.func @_linear_kernel(%arg0: i32, %arg1: i32, %arg2: memref<2x1024xbf16, #tpu.memory_space<vmem>>, %arg3: memref<1024x64xbf16, #tpu.memory_space<vmem>>, %arg4: memref<1x64xf32, #tpu.memory_space<vmem>>, %arg5: memref<2x64xf32, #tpu.memory_space<vmem>>, %arg6: memref<2x64xf32, #tpu.memory_space<vmem>>) attributes {dimension_semantics = [#tpu.dimension_semantics<parallel>, #tpu.dimension_semantics<arbitrary>], iteration_bounds = array<i64: 1, 7>, scalar_prefetch = 0 : i64, scratch_operands = 1 : i64, tpu.core_type = #tpu.core_type<tc>, window_params = [{transform_indices = @transform_0, window_bounds = array<i64: 2, 1024>}, {transform_indices = @transform_1, window_bounds = array<i64: 1024, 64>}, {transform_indices = @transform_2, window_bounds = array<i64: 1, 64>}, {transform_indices = @transform_3, window_bounds = array<i64: 2, 64>}]} {
    %c0_i32 = arith.constant 0 : i32
    %0 = arith.cmpi eq, %arg1, %c0_i32 : i32
    %1 = arith.extui %0 : i1 to i32
    %c0_i32_0 = arith.constant 0 : i32
    %2 = arith.cmpi ne, %1, %c0_i32_0 : i32
    scf.if %2 {
      %cst_9 = arith.constant 0.000000e+00 : f32
      %12 = vector.broadcast %cst_9 : f32 to vector<2x64xf32>
      %c0_10 = arith.constant 0 : index
      %c0_11 = arith.constant 0 : index
      %13 = vector.load %arg6[%c0_10, %c0_11] : memref<2x64xf32, #tpu.memory_space<vmem>>, vector<2x64xf32>
      tpu.vector_store %arg6[%c0_10, %c0_11], %12 {strides = array<i32>} : memref<2x64xf32, #tpu.memory_space<vmem>>, vector<2x64xf32>,
    } else {
    }
    %c0 = arith.constant 0 : index
    %c0_1 = arith.constant 0 : index
    %3 = vector.load %arg6[%c0, %c0_1] : memref<2x64xf32, #tpu.memory_space<vmem>>, vector<2x64xf32>
    %c0_2 = arith.constant 0 : index
    %c0_3 = arith.constant 0 : index
    %4 = vector.load %arg2[%c0_2, %c0_3] : memref<2x1024xbf16, #tpu.memory_space<vmem>>, vector<2x1024xbf16>
    %c0_4 = arith.constant 0 : index
    %c0_5 = arith.constant 0 : index
    %5 = vector.load %arg3[%c0_4, %c0_5] : memref<1024x64xbf16, #tpu.memory_space<vmem>>, vector<1024x64xbf16>
    %cst = arith.constant dense<0.000000e+00> : vector<2x64xf32>
    %6 = tpu.matmul %4, %5, %cst {dimension_numbers = #tpu.dot_dimension_numbers<[1], [0], [0], [1], [0, 0, 1, 1], [], []>} : vector<2x1024xbf16>, vector<1024x64xbf16>, vector<2x64xf32> -> vector<2x64xf32>
    %7 = arith.addf %3, %6 : vector<2x64xf32>
    %c0_6 = arith.constant 0 : index
    %c0_7 = arith.constant 0 : index
    %8 = vector.load %arg6[%c0_6, %c0_7] : memref<2x64xf32, #tpu.memory_space<vmem>>, vector<2x64xf32>
    tpu.vector_store %arg6[%c0_6, %c0_7], %7 {strides = array<i32>} : memref<2x64xf32, #tpu.memory_space<vmem>>, vector<2x64xf32>,
    %c6_i32 = arith.constant 6 : i32
    %9 = arith.cmpi eq, %arg1, %c6_i32 : i32
    %10 = arith.extui %9 : i1 to i32
    %c0_i32_8 = arith.constant 0 : i32
    %11 = arith.cmpi ne, %10, %c0_i32_8 : i32
    scf.if %11 {
      %c0_9 = arith.constant 0 : index
      %c0_10 = arith.constant 0 : index
      %12 = vector.load %arg6[%c0_9, %c0_10] : memref<2x64xf32, #tpu.memory_space<vmem>>, vector<2x64xf32>
      %c0_11 = arith.constant 0 : index
      %c0_12 = arith.constant 0 : index
      %13 = vector.load %arg4[%c0_11, %c0_12] : memref<1x64xf32, #tpu.memory_space<vmem>>, vector<1x64xf32>
      %14 = vector.broadcast %13 : vector<1x64xf32> to vector<2x64xf32>
      %15 = arith.addf %12, %14 : vector<2x64xf32>
      %cst_13 = arith.constant 0.000000e+00 : f32
      %16 = vector.broadcast %cst_13 : f32 to vector<2x64xf32>
      %17 = arith.maximumf %15, %16 : vector<2x64xf32>
      %c0_14 = arith.constant 0 : index
      %c0_15 = arith.constant 0 : index
      %18 = vector.load %arg5[%c0_14, %c0_15] : memref<2x64xf32, #tpu.memory_space<vmem>>, vector<2x64xf32>
      tpu.vector_store %arg5[%c0_14, %c0_15], %17 {strides = array<i32>} : memref<2x64xf32, #tpu.memory_space<vmem>>, vector<2x64xf32>,
    } else {
    }
    return
  }
  func.func @transform_0(%arg0: i32, %arg1: i32) -> (i32, i32) {
    %c0_i32 = arith.constant 0 : i32
    %c0_i32_0 = arith.constant 0 : i32
    return %c0_i32, %arg1 : i32, i32
  }
  func.func @transform_1(%arg0: i32, %arg1: i32) -> (i32, i32) {
    %c0_i32 = arith.constant 0 : i32
    return %arg1, %arg0 : i32, i32
  }
  func.func @transform_2(%arg0: i32, %arg1: i32) -> (i32, i32) {
    %c0_i32 = arith.constant 0 : i32
    %c0_i32_0 = arith.constant 0 : i32
    return %c0_i32, %arg0 : i32, i32
  }
  func.func @transform_3(%arg0: i32, %arg1: i32) -> (i32, i32) {
    %c0_i32 = arith.constant 0 : i32
    %c0_i32_0 = arith.constant 0 : i32
    return %c0_i32, %arg0 : i32, i32
  }
}

module attributes {stable_mosaic.version = 11 : i64} {
  func.func @_linear_kernel(%arg0: i32, %arg1: i32, %arg2: memref<2x128xbf16, #tpu.memory_space<vmem>>, %arg3: memref<128x64xbf16, #tpu.memory_space<vmem>>, %arg4: memref<1x64xf32, #tpu.memory_space<vmem>>, %arg5: memref<2x64xf32, #tpu.memory_space<vmem>>, %arg6: memref<2x64xf32, #tpu.memory_space<vmem>>) attributes {dimension_semantics = [#tpu.dimension_semantics<parallel>, #tpu.dimension_semantics<arbitrary>], iteration_bounds = array<i64: 1, 1>, scalar_prefetch = 0 : i64, scratch_operands = 1 : i64, tpu.core_type = #tpu.core_type<tc>, window_params = [{transform_indices = @transform_0, window_bounds = array<i64: 2, 128>}, {transform_indices = @transform_1, window_bounds = array<i64: 128, 64>}, {transform_indices = @transform_2, window_bounds = array<i64: 1, 64>}, {transform_indices = @transform_3, window_bounds = array<i64: 2, 64>}]} {
    %c0_i32 = arith.constant 0 : i32
    %0 = arith.cmpi eq, %arg1, %c0_i32 : i32
    %1 = arith.extui %0 : i1 to i32
    %c0_i32_0 = arith.constant 0 : i32
    %2 = arith.cmpi ne, %1, %c0_i32_0 : i32
    scf.if %2 {
      %cst_10 = arith.constant 0.000000e+00 : f32
      %12 = vector.broadcast %cst_10 : f32 to vector<2x64xf32>
      %c0_11 = arith.constant 0 : index
      %c0_12 = arith.constant 0 : index
      %13 = vector.load %arg6[%c0_11, %c0_12] : memref<2x64xf32, #tpu.memory_space<vmem>>, vector<2x64xf32>
      tpu.vector_store %arg6[%c0_11, %c0_12], %12 {strides = array<i32>} : memref<2x64xf32, #tpu.memory_space<vmem>>, vector<2x64xf32>,
    } else {
    }
    %c0 = arith.constant 0 : index
    %c0_1 = arith.constant 0 : index
    %3 = vector.load %arg6[%c0, %c0_1] : memref<2x64xf32, #tpu.memory_space<vmem>>, vector<2x64xf32>
    %c0_2 = arith.constant 0 : index
    %c0_3 = arith.constant 0 : index
    %4 = vector.load %arg2[%c0_2, %c0_3] : memref<2x128xbf16, #tpu.memory_space<vmem>>, vector<2x128xbf16>
    %c0_4 = arith.constant 0 : index
    %c0_5 = arith.constant 0 : index
    %5 = vector.load %arg3[%c0_4, %c0_5] : memref<128x64xbf16, #tpu.memory_space<vmem>>, vector<128x64xbf16>
    %cst = arith.constant dense<0.000000e+00> : vector<2x64xf32>
    %6 = tpu.matmul %4, %5, %cst {dimension_numbers = #tpu.dot_dimension_numbers<[1], [0], [0], [1], [0, 0, 1, 1], [], []>} : vector<2x128xbf16>, vector<128x64xbf16>, vector<2x64xf32> -> vector<2x64xf32>
    %7 = arith.addf %3, %6 : vector<2x64xf32>
    %c0_6 = arith.constant 0 : index
    %c0_7 = arith.constant 0 : index
    %8 = vector.load %arg6[%c0_6, %c0_7] : memref<2x64xf32, #tpu.memory_space<vmem>>, vector<2x64xf32>
    tpu.vector_store %arg6[%c0_6, %c0_7], %7 {strides = array<i32>} : memref<2x64xf32, #tpu.memory_space<vmem>>, vector<2x64xf32>,
    %c0_i32_8 = arith.constant 0 : i32
    %9 = arith.cmpi eq, %arg1, %c0_i32_8 : i32
    %10 = arith.extui %9 : i1 to i32
    %c0_i32_9 = arith.constant 0 : i32
    %11 = arith.cmpi ne, %10, %c0_i32_9 : i32
    scf.if %11 {
      %c0_10 = arith.constant 0 : index
      %c0_11 = arith.constant 0 : index
      %12 = vector.load %arg6[%c0_10, %c0_11] : memref<2x64xf32, #tpu.memory_space<vmem>>, vector<2x64xf32>
      %c0_12 = arith.constant 0 : index
      %c0_13 = arith.constant 0 : index
      %13 = vector.load %arg4[%c0_12, %c0_13] : memref<1x64xf32, #tpu.memory_space<vmem>>, vector<1x64xf32>
      %14 = vector.broadcast %13 : vector<1x64xf32> to vector<2x64xf32>
      %15 = arith.addf %12, %14 : vector<2x64xf32>
      %cst_14 = arith.constant 0.000000e+00 : f32
      %16 = vector.broadcast %cst_14 : f32 to vector<2x64xf32>
      %17 = arith.maximumf %15, %16 : vector<2x64xf32>
      %c0_15 = arith.constant 0 : index
      %c0_16 = arith.constant 0 : index
      %18 = vector.load %arg5[%c0_15, %c0_16] : memref<2x64xf32, #tpu.memory_space<vmem>>, vector<2x64xf32>
      tpu.vector_store %arg5[%c0_15, %c0_16], %17 {strides = array<i32>} : memref<2x64xf32, #tpu.memory_space<vmem>>, vector<2x64xf32>,
    } else {
    }
    return
  }
  func.func @transform_0(%arg0: i32, %arg1: i32) -> (i32, i32) {
    %c0_i32 = arith.constant 0 : i32
    %c0_i32_0 = arith.constant 0 : i32
    return %c0_i32, %arg1 : i32, i32
  }
  func.func @transform_1(%arg0: i32, %arg1: i32) -> (i32, i32) {
    %c0_i32 = arith.constant 0 : i32
    return %arg1, %arg0 : i32, i32
  }
  func.func @transform_2(%arg0: i32, %arg1: i32) -> (i32, i32) {
    %c0_i32 = arith.constant 0 : i32
    %c0_i32_0 = arith.constant 0 : i32
    return %c0_i32, %arg0 : i32, i32
  }
  func.func @transform_3(%arg0: i32, %arg1: i32) -> (i32, i32) {
    %c0_i32 = arith.constant 0 : i32
    %c0_i32_0 = arith.constant 0 : i32
    return %c0_i32, %arg0 : i32, i32
  }
}

module attributes {stable_mosaic.version = 11 : i64} {
  func.func @_linear_kernel(%arg0: i32, %arg1: i32, %arg2: memref<2x128xbf16, #tpu.memory_space<vmem>>, %arg3: memref<128x10xbf16, #tpu.memory_space<vmem>>, %arg4: memref<1x10xf32, #tpu.memory_space<vmem>>, %arg5: memref<2x10xf32, #tpu.memory_space<vmem>>, %arg6: memref<2x10xf32, #tpu.memory_space<vmem>>) attributes {dimension_semantics = [#tpu.dimension_semantics<parallel>, #tpu.dimension_semantics<arbitrary>], iteration_bounds = array<i64: 1, 1>, scalar_prefetch = 0 : i64, scratch_operands = 1 : i64, tpu.core_type = #tpu.core_type<tc>, window_params = [{transform_indices = @transform_0, window_bounds = array<i64: 2, 128>}, {transform_indices = @transform_1, window_bounds = array<i64: 128, 10>}, {transform_indices = @transform_2, window_bounds = array<i64: 1, 10>}, {transform_indices = @transform_3, window_bounds = array<i64: 2, 10>}]} {
    %c0_i32 = arith.constant 0 : i32
    %0 = arith.cmpi eq, %arg1, %c0_i32 : i32
    %1 = arith.extui %0 : i1 to i32
    %c0_i32_0 = arith.constant 0 : i32
    %2 = arith.cmpi ne, %1, %c0_i32_0 : i32
    scf.if %2 {
      %cst_10 = arith.constant 0.000000e+00 : f32
      %12 = vector.broadcast %cst_10 : f32 to vector<2x10xf32>
      %c0_11 = arith.constant 0 : index
      %c0_12 = arith.constant 0 : index
      %13 = vector.load %arg6[%c0_11, %c0_12] : memref<2x10xf32, #tpu.memory_space<vmem>>, vector<2x10xf32>
      tpu.vector_store %arg6[%c0_11, %c0_12], %12 {strides = array<i32>} : memref<2x10xf32, #tpu.memory_space<vmem>>, vector<2x10xf32>,
    } else {
    }
    %c0 = arith.constant 0 : index
    %c0_1 = arith.constant 0 : index
    %3 = vector.load %arg6[%c0, %c0_1] : memref<2x10xf32, #tpu.memory_space<vmem>>, vector<2x10xf32>
    %c0_2 = arith.constant 0 : index
    %c0_3 = arith.constant 0 : index
    %4 = vector.load %arg2[%c0_2, %c0_3] : memref<2x128xbf16, #tpu.memory_space<vmem>>, vector<2x128xbf16>
    %c0_4 = arith.constant 0 : index
    %c0_5 = arith.constant 0 : index
    %5 = vector.load %arg3[%c0_4, %c0_5] : memref<128x10xbf16, #tpu.memory_space<vmem>>, vector<128x10xbf16>
    %cst = arith.constant dense<0.000000e+00> : vector<2x10xf32>
    %6 = tpu.matmul %4, %5, %cst {dimension_numbers = #tpu.dot_dimension_numbers<[1], [0], [0], [1], [0, 0, 1, 1], [], []>} : vector<2x128xbf16>, vector<128x10xbf16>, vector<2x10xf32> -> vector<2x10xf32>
    %7 = arith.addf %3, %6 : vector<2x10xf32>
    %c0_6 = arith.constant 0 : index
    %c0_7 = arith.constant 0 : index
    %8 = vector.load %arg6[%c0_6, %c0_7] : memref<2x10xf32, #tpu.memory_space<vmem>>, vector<2x10xf32>
    tpu.vector_store %arg6[%c0_6, %c0_7], %7 {strides = array<i32>} : memref<2x10xf32, #tpu.memory_space<vmem>>, vector<2x10xf32>,
    %c0_i32_8 = arith.constant 0 : i32
    %9 = arith.cmpi eq, %arg1, %c0_i32_8 : i32
    %10 = arith.extui %9 : i1 to i32
    %c0_i32_9 = arith.constant 0 : i32
    %11 = arith.cmpi ne, %10, %c0_i32_9 : i32
    scf.if %11 {
      %c0_10 = arith.constant 0 : index
      %c0_11 = arith.constant 0 : index
      %12 = vector.load %arg6[%c0_10, %c0_11] : memref<2x10xf32, #tpu.memory_space<vmem>>, vector<2x10xf32>
      %c0_12 = arith.constant 0 : index
      %c0_13 = arith.constant 0 : index
      %13 = vector.load %arg4[%c0_12, %c0_13] : memref<1x10xf32, #tpu.memory_space<vmem>>, vector<1x10xf32>
      %14 = vector.broadcast %13 : vector<1x10xf32> to vector<2x10xf32>
      %15 = arith.addf %12, %14 : vector<2x10xf32>
      %c0_14 = arith.constant 0 : index
      %c0_15 = arith.constant 0 : index
      %16 = vector.load %arg5[%c0_14, %c0_15] : memref<2x10xf32, #tpu.memory_space<vmem>>, vector<2x10xf32>
      tpu.vector_store %arg5[%c0_14, %c0_15], %15 {strides = array<i32>} : memref<2x10xf32, #tpu.memory_space<vmem>>, vector<2x10xf32>,
    } else {
    }
    return
  }
  func.func @transform_0(%arg0: i32, %arg1: i32) -> (i32, i32) {
    %c0_i32 = arith.constant 0 : i32
    %c0_i32_0 = arith.constant 0 : i32
    return %c0_i32, %arg1 : i32, i32
  }
  func.func @transform_1(%arg0: i32, %arg1: i32) -> (i32, i32) {
    %c0_i32 = arith.constant 0 : i32
    return %arg1, %arg0 : i32, i32
  }
  func.func @transform_2(%arg0: i32, %arg1: i32) -> (i32, i32) {
    %c0_i32 = arith.constant 0 : i32
    %c0_i32_0 = arith.constant 0 : i32
    return %c0_i32, %arg0 : i32, i32
  }
  func.func @transform_3(%arg0: i32, %arg1: i32) -> (i32, i32) {
    %c0_i32 = arith.constant 0 : i32
    %c0_i32_0 = arith.constant 0 : i32
    return %c0_i32, %arg0 : i32, i32
  }
}

</mosaic_0001>

<bundles_post_ra>
// kernel: vgg_forward.8
= control target key start
LH: loop header
LB: loop body
LE: loop exit
PB: predicated region body
PF: predicated region fallthrough
CT: control target
= control target key end

     0   :  { %vm19_vm0 = vcmask 517120   ;;  %v196_v0 = vmov 0.0   ;;  %vm197_vm1 = vmmov 0   ;;  %s254_s1 = inlined_call_operand.vmem [shape: bf16[128,64], index: 1, kind: input, shape index: {}]   ;;  %s255_s0 = inlined_call_operand.vmem [shape: bf16[2,128], index: 0, kind: input, shape index: {}]   ;;  %s256_s2 = inlined_call_operand.vmem [shape: f32[1,64], index: 2, kind: input, shape index: {}]   ;;  %s257_s3 = inlined_call_operand.vmem [shape: f32[2,64], index: 3, kind: output, shape index: {}]  }
   0x1   :  { %166 = vmatprep.subr.bf16.mxu0 %v196_v0  ;;  %v188_v1 = vld [vmem:[%s254_s1 + $0x38] sm:$0xff]   ;;  %182 = vmatprep.mubr.msk.bf16.mxu0 %vm197_vm1, %v196_v0  ;;  %20 = vst.msk [vmem:[#allocation2] sm:$0x3] %vm19_vm0, %v196_v0  ;;  %v189_v2 = vld [vmem:[%s254_s1 + $0x30] sm:$0xff]   ;;  %v190_v3 = vld [vmem:[%s254_s1 + $0x28] sm:$0xff]  }
   0x2   :  { %167 = vmatpush3.bf16.msra.mxu0 %v188_v1  ;;  %v191_v4 = vld [vmem:[%s254_s1 + $0x20] sm:$0xff]   ;;  %v192_v5 = vld [vmem:[%s254_s1 + $0x18] sm:$0xff]   ;;  %v193_v6 = vld [vmem:[%s254_s1 + $0x10] sm:$0xff]  }
   0x3   :  { %168 = vmatprep.subr.bf16.mxu0 %v196_v0  ;;  %v194_v7 = vld [vmem:[%s254_s1 + $0x8] sm:$0xff]   ;;  %v195_v8 = vld [vmem:[%s254_s1] sm:$0xff]  }
   0x4   :  { %v22_v9 = vld [vmem:[%s255_s0] sm:$0x1] }
   0x5   :  { %v156_v16 = vld [vmem:[%s256_s2] ss:$0 sm:$0xff] }
   0x6   :  { %169 = vmatpush3.bf16.msra.mxu0 %v189_v2 }
   0x7   :  { %170 = vmatprep.subr.bf16.mxu0 %v196_v0 }
   0x8   :  { %v21_v10 = vld [vmem:[#allocation2] sm:$0x3] }
   0xa   :  { %171 = vmatpush3.bf16.msra.mxu0 %v190_v3 }
   0xb   :  { %172 = vmatprep.subr.bf16.mxu0 %v196_v0 }
   0xe   :  { %173 = vmatpush3.bf16.msra.mxu0 %v191_v4 }
   0xf   :  { %174 = vmatprep.subr.bf16.mxu0 %v196_v0 }
  0x12   :  { %175 = vmatpush3.bf16.msra.mxu0 %v192_v5 }
  0x13   :  { %176 = vmatprep.subr.bf16.mxu0 %v196_v0 }
  0x16   :  { %177 = vmatpush3.bf16.msra.mxu0 %v193_v6 }
  0x17   :  { %178 = vmatprep.subr.bf16.mxu0 %v196_v0 }
  0x1a   :  { %179 = vmatpush3.bf16.msra.mxu0 %v194_v7 }
  0x1b   :  { %180 = vmatprep.subr.bf16.mxu0 %v196_v0 }
  0x1e   :  { %181 = vmatpush3.bf16.msra.mxu0 %v195_v8 }
  0x21   :  { %183 = vmatmul.mubr.bf16.vlgmr.msra.gmra.mxu0 %v22_v9 }
  0xe1   :  { %v121_v11 = vpop.f32.mrf.mxu0 }
  0xe2   :  { %v127_v12 = vadd.f32 %v121_v11, %v21_v10 }
  0xe3   :  { %v184_v13 = vpop.f32.mrf.mxu0 }
  0xe4   :  { %129 = vst.msk [vmem:[#allocation2] sm:$0x3] %vm19_vm0, %v127_v12 }
  0xe5   :  { %v124_v14 = vpop.f32.mrf.mxu0 }
  0xe7   :  { %v185_v15 = vpop.f32.mrf.mxu0 }
  0xeb   :  { %v133_v17 = vld [vmem:[#allocation2] sm:$0x3] }
  0xec   :  { %v141_v18 = vadd.f32 %v156_v16, %v133_v17 }
  0xee   :  { %v142_v19 = vmax.f32 %v141_v18, 0.0 }
  0xf0   :  { %143 = vst.msk [vmem:[%s257_s3] sm:$0x3] %vm19_vm0, %v142_v19 }

// kernel: vgg_forward.7
= control target key start
LH: loop header
LB: loop body
LE: loop exit
PB: predicated region body
PF: predicated region fallthrough
CT: control target
= control target key end

     0   :  { %s1370_s12 = smov 0   ;;  %s1372_s13 = smov 0   ;;  %s1502_s0 = inlined_call_operand.vmem [shape: bf16[2,7168], index: 0, kind: input, shape index: {}]   ;;  %s1503_s1 = inlined_call_operand.vmem [shape: bf16[7168,64], index: 1, kind: input, shape index: {}]   ;;  %s1504_s2 = inlined_call_operand.vmem [shape: f32[1,64], index: 2, kind: input, shape index: {}]   ;;  %s1505_s3 = inlined_call_operand.vmem [shape: f32[2,64], index: 3, kind: output, shape index: {}]  }
   0x1   :  { %s1374_s14 = smov 0  }
   0x2 LB: > { %s22_s15 = sadd.s32 1, %s1342_s13  ;;  %p1071_p0 = scmp.ge.s32.totalorder %s1346_s14, 1  ;;  %s1346_s14 = sphi %s1374_s14, %s13_s14   ;;  %s1342_s13 = sphi %s1372_s13, %s1507_s13   ;;  %s1338_s12 = sphi %s1370_s12, %s1506_s12  }
   0x3   : > { %p23_p1 = scmp.ge.s32.totalorder %s22_s15, 7  ;;  %p173_p2 = scmp.lt.s32.totalorder %s1346_s14, 8 }
   0x5   : > { %s1509_s15 = smov (%p23_p1, %s22_s15), 0  ;;  %p174_p3 = pnand %p1071_p0, %p173_p2 }
   0x6   : > { %s1072_s16 = sshll.u32 (!%p174_p3), %s1338_s12, 3  ;;  %s1073_s17 = sshll.u32 (!%p174_p3), %s1338_s12, 7 }
   0x7   : > { %177 = sbr.rel (%p174_p3) target bundleno = 303 (0x12f), region = 32  ;;  %p207_p4 = scmp.lt.s32.totalorder (!%p174_p3), %s1072_s16, 55 }
   0x8   : > { %p212_p5 = scmp.lt.s32.totalorder (!%p174_p3), %s1073_s17, 895  ;;  %p1075_p6 = scmp.ne.s32.totalorder (!%p174_p3), %s1338_s12, 0 }
   0xc   : > { %s1511_s16 = smov (!%p207_p4, %s1072_s16), 55  ;;  %s1513_s17 = smov (!%p212_p5, %s1073_s17), 895 }
   0xd   : > { %s209_s20 = scalar_lea.vmem %s1502_s0, %s1511_s16  ;;  %s1074_s21 = sshll.u32 %s1513_s17, 2 }
   0xe   : > { %s1401_s24 = scalar_lea.vmem %s1503_s1, %s1074_s21  ;;  %231 = sbr.rel (%p1075_p6) target bundleno = 21 (0x15), region = 36 }
  0x13   : > { %vm232_vm0 = vcmask 517120   ;;  %v1348_v0 = vmov 0.0  }
  0x14   : > { %233 = vst.msk [vmem:[#allocation2] sm:$0x3] %vm232_vm0, %v1348_v0 }
  0x15 PF: > { %v1259_v1 = vld [vmem:[%s1401_s24 + $0x78] sm:$0xff]   ;;  %v1263_v5 = vld [vmem:[%s1401_s24 + $0x70] sm:$0xff]   ;;  %v1267_v9 = vld [vmem:[%s1401_s24 + $0x68] sm:$0xff]   ;;  %v369_v29 = vlaneseq  ;;  %v1349_v37 = vmov 1966171168   ;;  %vm967_vm1 = vcmask 517120  }
  0x16   : > { %v1260_v2 = vld [vmem:[%s1401_s24 + $0xf8] sm:$0xff]   ;;  %1145 = vmatprep.subr.bf16.mxu0 %v1259_v1  ;;  %v1264_v6 = vld [vmem:[%s1401_s24 + $0xf0] sm:$0xff]   ;;  %v1268_v10 = vld [vmem:[%s1401_s24 + $0xe8] sm:$0xff]   ;;  %v367_v38 = vunpack.c.l.s4 %v1349_v37  ;;  %p1140_p7 = scmp.ne.s32.totalorder %s1338_s12, 6 }
  0x17   : > { %v1261_v3 = vld [vmem:[%s1401_s24 + $0x38] sm:$0xff]   ;;  %1167 = vmatprep.subr.bf16.mxu1 %v1260_v2  ;;  %v1265_v7 = vld [vmem:[%s1401_s24 + $0x30] sm:$0xff]   ;;  %v1269_v11 = vld [vmem:[%s1401_s24 + $0x28] sm:$0xff]   ;;  %v370_v34 = vshrl.u32 %v369_v29, 7 }
  0x18   : > { %v1262_v4 = vld [vmem:[%s1401_s24 + $0xb8] sm:$0xff]   ;;  %1146 = vmatpush3.bf16.msra.mxu0 %v1261_v3  ;;  %v1266_v8 = vld [vmem:[%s1401_s24 + $0xb0] sm:$0xff]   ;;  %v1270_v12 = vld [vmem:[%s1401_s24 + $0xa8] sm:$0xff]   ;;  %v368_v41 = vunpack.c.0.s8 %v367_v38 }
  0x19   : > { %1168 = vmatpush3.bf16.msra.mxu1 %v1262_v4  ;;  %1147 = vmatprep.subr.bf16.mxu0 %v1263_v5  ;;  %v1271_v13 = vld [vmem:[%s1401_s24 + $0x60] sm:$0xff]   ;;  %v1275_v17 = vld [vmem:[%s1401_s24 + $0x58] sm:$0xff]   ;;  %v1279_v21 = vld [vmem:[%s1401_s24 + $0x50] sm:$0xff]  }
  0x1a   : > { %1169 = vmatprep.subr.bf16.mxu1 %v1264_v6  ;;  %v1272_v14 = vld [vmem:[%s1401_s24 + $0xe0] sm:$0xff]   ;;  %v1276_v18 = vld [vmem:[%s1401_s24 + $0xd8] sm:$0xff]   ;;  %v1280_v22 = vld [vmem:[%s1401_s24 + $0xd0] sm:$0xff]   ;;  %v1443_v42 = vsub.s32 %v368_v41, %v370_v34 }
  0x1b   : > { %v1273_v15 = vld [vmem:[%s1401_s24 + $0x20] sm:$0xff]   ;;  %v1277_v19 = vld [vmem:[%s1401_s24 + $0x18] sm:$0xff]   ;;  %v1281_v23 = vld [vmem:[%s1401_s24 + $0x10] sm:$0xff]  }
  0x1c   : > { %1148 = vmatpush3.bf16.msra.mxu0 %v1265_v7  ;;  %v1274_v16 = vld [vmem:[%s1401_s24 + $0xa0] sm:$0xff]   ;;  %v1278_v20 = vld [vmem:[%s1401_s24 + $0x98] sm:$0xff]   ;;  %v1282_v24 = vld [vmem:[%s1401_s24 + $0x90] sm:$0xff]  }
  0x1d   : > { %1170 = vmatpush3.bf16.msra.mxu1 %v1266_v8  ;;  %1149 = vmatprep.subr.bf16.mxu0 %v1267_v9  ;;  %v1283_v25 = vld [vmem:[%s1401_s24 + $0x48] sm:$0xff]   ;;  %v1287_v30 = vld [vmem:[%s1401_s24 + $0x40] sm:$0xff]   ;;  %v1292_v36 = vld [vmem:[%s1401_s24 + $0x178] sm:$0xff]  }
  0x1e   : > { %1171 = vmatprep.subr.bf16.mxu1 %v1268_v10  ;;  %v1284_v26 = vld [vmem:[%s1401_s24 + $0xc8] sm:$0xff]   ;;  %v1288_v31 = vld [vmem:[%s1401_s24 + $0xc0] sm:$0xff]   ;;  %v1293_v39 = vld [vmem:[%s1401_s24 + $0x1f8] sm:$0xff]  }
  0x1f   : > { %v1285_v27 = vld [vmem:[%s1401_s24 + $0x8] sm:$0xff]   ;;  %v1289_v32 = vld [vmem:[%s1401_s24] sm:$0xff]   ;;  %v1294_v49 = vld [vmem:[%s1401_s24 + $0x138] sm:$0xff]  }
  0x20   : > { %1150 = vmatpush3.bf16.msra.mxu0 %v1269_v11  ;;  %v1286_v28 = vld [vmem:[%s1401_s24 + $0x88] sm:$0xff]   ;;  %v1290_v33 = vld [vmem:[%s1401_s24 + $0x80] sm:$0xff]   ;;  %v1296_v52 = vld [vmem:[%s1401_s24 + $0x170] sm:$0xff]  }
  0x21   : > { %1172 = vmatpush3.bf16.msra.mxu1 %v1270_v12  ;;  %1151 = vmatprep.subr.bf16.mxu0 %v1271_v13  ;;  %v235_v35 = vld [vmem:[%s209_s20] sm:$0xff]  ;;  %v1295_v54 = vld [vmem:[%s1401_s24 + $0x1b8] sm:$0xff]   ;;  %v1297_v55 = vld [vmem:[%s1401_s24 + $0x1f0] sm:$0xff]  }
  0x22   : > { %1173 = vmatprep.subr.bf16.mxu1 %v1272_v14  ;;  %v365_v40 = vcombine.high %v235_v35, %v235_v35  ;;  %v372_v43 = vrot.slane %v235_v35, %v1443_v42  ;;  %v1298_v57 = vld [vmem:[%s1401_s24 + $0x130] sm:$0xff]   ;;  %v1300_v58 = vld [vmem:[%s1401_s24 + $0x168] sm:$0xff]   ;;  %v1304_v62 = vld [vmem:[%s1401_s24 + $0x160] sm:$0xff]  }
  0x23   : > { %v1299_v59 = vld [vmem:[%s1401_s24 + $0x1b0] sm:$0xff]   ;;  %v1301_v60 = vld [vmem:[%s1401_s24 + $0x1e8] sm:$0xff]   ;;  %v1305_v0 = vld [vmem:[%s1401_s24 + $0x1e0] sm:$0xff]  }
  0x24   : > { %1152 = vmatpush3.bf16.msra.mxu0 %v1273_v15  ;;  %v1447_v44 = vrot.slane %v365_v40, %v1443_v42  ;;  %v380_v45 = vcombine.high %v372_v43, %v372_v43  ;;  %v388_v46 = vrot.slane %v372_v43, %v1443_v42  ;;  %v1302_v61 = vld [vmem:[%s1401_s24 + $0x128] sm:$0xff]   ;;  %v1306_v1 = vld [vmem:[%s1401_s24 + $0x120] sm:$0xff]   ;;  %v1308_v2 = vld [vmem:[%s1401_s24 + $0x158] sm:$0xff]  }
  0x25   : > { %1174 = vmatpush3.bf16.msra.mxu1 %v1274_v16  ;;  %1153 = vmatprep.subr.bf16.mxu0 %v1275_v17  ;;  %v1303_v63 = vld [vmem:[%s1401_s24 + $0x1a8] sm:$0xff]   ;;  %v1307_v3 = vld [vmem:[%s1401_s24 + $0x1a0] sm:$0xff]   ;;  %v1309_v4 = vld [vmem:[%s1401_s24 + $0x1d8] sm:$0xff]  }
  0x26   : > { %1175 = vmatprep.subr.bf16.mxu1 %v1276_v18  ;;  %v381_v47 = vcombine.high %v1447_v44, %v1447_v44  ;;  %v402_v48 = vrot.slane %v380_v45, %v1443_v42  ;;  %v410_v51 = vcombine.high %v388_v46, %v388_v46  ;;  %v1310_v5 = vld [vmem:[%s1401_s24 + $0x118] sm:$0xff]   ;;  %v1312_v6 = vld [vmem:[%s1401_s24 + $0x150] sm:$0xff]   ;;  %v1316_v10 = vld [vmem:[%s1401_s24 + $0x148] sm:$0xff]   ;;  %v395_v18 = vrot.slane %v1447_v44, %v1443_v42 }
  0x27   : > { %v1311_v7 = vld [vmem:[%s1401_s24 + $0x198] sm:$0xff]   ;;  %v1313_v8 = vld [vmem:[%s1401_s24 + $0x1d0] sm:$0xff]   ;;  %v1317_v12 = vld [vmem:[%s1401_s24 + $0x1c8] sm:$0xff]  }
  0x28   : > { %1154 = vmatpush3.bf16.msra.mxu0 %v1277_v19  ;;  %v409_v50 = vrot.slane %v381_v47, %v1443_v42  ;;  %838 = vmatprep.mubr.bf16.mxu0 %v402_v48  ;;  %v412_v53 = vcombine.high %v402_v48, %v402_v48  ;;  %v1314_v9 = vld [vmem:[%s1401_s24 + $0x110] sm:$0xff]   ;;  %v1318_v13 = vld [vmem:[%s1401_s24 + $0x108] sm:$0xff]   ;;  %v1320_v14 = vld [vmem:[%s1401_s24 + $0x140] sm:$0xff]  }
  0x29   : > { %1176 = vmatpush3.bf16.msra.mxu1 %v1278_v20  ;;  %1155 = vmatprep.subr.bf16.mxu0 %v1279_v21  ;;  %v1315_v11 = vld [vmem:[%s1401_s24 + $0x190] sm:$0xff]   ;;  %v1319_v15 = vld [vmem:[%s1401_s24 + $0x188] sm:$0xff]   ;;  %v1321_v16 = vld [vmem:[%s1401_s24 + $0x1c0] sm:$0xff]   ;;  %v411_v20 = vcombine.high %v395_v18, %v395_v18 }
  0x2a   : > { %1177 = vmatprep.subr.bf16.mxu1 %v1280_v22  ;;  %v413_v56 = vcombine.high %v409_v50, %v409_v50  ;;  %878 = vmatprep.mubr.bf16.mxu1 %v412_v53  ;;  %v1322_v17 = vld [vmem:[%s1401_s24 + $0x100] sm:$0xff]  }
  0x2b   : > { %v1323_v19 = vld [vmem:[%s1401_s24 + $0x180] sm:$0xff]  }
  0x2c   : > { %1156 = vmatpush3.bf16.msra.mxu0 %v1281_v23  ;;  %v234_v40 = vld [vmem:[#allocation2] sm:$0x3] }
  0x2d   : > { %1178 = vmatpush3.bf16.msra.mxu1 %v1282_v24  ;;  %1157 = vmatprep.subr.bf16.mxu0 %v1283_v25 }
  0x2e   : > { %1179 = vmatprep.subr.bf16.mxu1 %v1284_v26 }
  0x30   : > { %1158 = vmatpush3.bf16.msra.mxu0 %v1285_v27 }
  0x31   : > { %1180 = vmatpush3.bf16.msra.mxu1 %v1286_v28  ;;  %1159 = vmatprep.subr.bf16.mxu0 %v1287_v30 }
  0x32   : > { %1181 = vmatprep.subr.bf16.mxu1 %v1288_v31 }
  0x34   : > { %1160 = vmatpush3.bf16.msra.mxu0 %v1289_v32 }
  0x35   : > { %1182 = vmatpush3.bf16.msra.mxu1 %v1290_v33  ;;  %1189 = vmatprep.subr.bf16.mxu0 %v1292_v36 }
  0x36   : > { %1211 = vmatprep.subr.bf16.mxu1 %v1293_v39 }
  0x37   : > { %839 = vmatmul.mubr.bf16.vlgmr.msra.gmra.mxu0 %v388_v46 }
  0x38   : > { %1190 = vmatpush3.bf16.msra.mxu0 %v1294_v49  ;;  %879 = vmatmul.mubr.bf16.vlgmr.msra.gmra.mxu1 %v410_v51 }
  0x39   : > { %1191 = vmatprep.subr.bf16.mxu0 %v1296_v52  ;;  %1212 = vmatpush3.bf16.msra.mxu1 %v1295_v54 }
  0x3a   : > { %918 = vmatprep.mubr.bf16.mxu0 %v409_v50  ;;  %1213 = vmatprep.subr.bf16.mxu1 %v1297_v55 }
  0x3b   : > { %958 = vmatprep.mubr.bf16.mxu1 %v413_v56 }
  0x3c   : > { %1192 = vmatpush3.bf16.msra.mxu0 %v1298_v57 }
  0x3d   : > { %1193 = vmatprep.subr.bf16.mxu0 %v1300_v58  ;;  %1214 = vmatpush3.bf16.msra.mxu1 %v1299_v59 }
  0x3e   : > { %1215 = vmatprep.subr.bf16.mxu1 %v1301_v60 }
  0x40   : > { %1194 = vmatpush3.bf16.msra.mxu0 %v1302_v61 }
  0x41   : > { %1195 = vmatprep.subr.bf16.mxu0 %v1304_v62  ;;  %1216 = vmatpush3.bf16.msra.mxu1 %v1303_v63 }
  0x42   : > { %1217 = vmatprep.subr.bf16.mxu1 %v1305_v0 }
  0x44   : > { %1196 = vmatpush3.bf16.msra.mxu0 %v1306_v1 }
  0x45   : > { %1197 = vmatprep.subr.bf16.mxu0 %v1308_v2  ;;  %1218 = vmatpush3.bf16.msra.mxu1 %v1307_v3 }
  0x46   : > { %1219 = vmatprep.subr.bf16.mxu1 %v1309_v4 }
  0x48   : > { %1198 = vmatpush3.bf16.msra.mxu0 %v1310_v5 }
  0x49   : > { %1199 = vmatprep.subr.bf16.mxu0 %v1312_v6  ;;  %1220 = vmatpush3.bf16.msra.mxu1 %v1311_v7 }
  0x4a   : > { %1221 = vmatprep.subr.bf16.mxu1 %v1313_v8 }
  0x4c   : > { %1200 = vmatpush3.bf16.msra.mxu0 %v1314_v9 }
  0x4d   : > { %1201 = vmatprep.subr.bf16.mxu0 %v1316_v10  ;;  %1222 = vmatpush3.bf16.msra.mxu1 %v1315_v11 }
  0x4e   : > { %1223 = vmatprep.subr.bf16.mxu1 %v1317_v12 }
  0x50   : > { %1202 = vmatpush3.bf16.msra.mxu0 %v1318_v13 }
  0x51   : > { %1203 = vmatprep.subr.bf16.mxu0 %v1320_v14  ;;  %1224 = vmatpush3.bf16.msra.mxu1 %v1319_v15 }
  0x52   : > { %1225 = vmatprep.subr.bf16.mxu1 %v1321_v16 }
  0x54   : > { %1204 = vmatpush3.bf16.msra.mxu0 %v1322_v17 }
  0x55   : > { %1226 = vmatpush3.bf16.msra.mxu1 %v1323_v19 }
  0x57   : > { %919 = vmatmul.mubr.bf16.vlgmr.msra.gmra.mxu0 %v395_v18 }
  0x58   : > { %959 = vmatmul.mubr.bf16.vlgmr.msra.gmra.mxu1 %v411_v20 }
  0xf7   : > { %v1161_v21 = vpop.f32.mrf.mxu0 }
  0xf8   : > { %v1183_v22 = vpop.f32.mrf.mxu1 }
  0xf9   : > { %v1162_v23 = vpop.f32.mrf.mxu0 }
  0xfa   : > { %v1184_v24 = vpop.f32.mrf.mxu1  ;;  %v1163_v29 = vadd.f32 %v1162_v23, %v1161_v21 }
  0xfb   : > { %v1164_v25 = vpop.f32.mrf.mxu0  ;;  %v1185_v30 = vadd.f32 %v1184_v24, %v1183_v22 }
  0xfc   : > { %v1186_v26 = vpop.f32.mrf.mxu1 }
  0xfd   : > { %v1165_v27 = vpop.f32.mrf.mxu0  ;;  %v881_v34 = vadd.f32 %v1185_v30, %v1163_v29 }
  0xfe   : > { %v1187_v28 = vpop.f32.mrf.mxu1 }
 0x117   : > { %v1205_v31 = vpop.f32.mrf.mxu0 }
 0x118   : > { %v1227_v32 = vpop.f32.mrf.mxu1 }
 0x119   : > { %v1206_v33 = vpop.f32.mrf.mxu0 }
 0x11a   : > { %v1207_v35 = vadd.f32 %v1206_v33, %v1205_v31  ;;  %v1228_v36 = vpop.f32.mrf.mxu1 }
 0x11b   : > { %v1208_v37 = vpop.f32.mrf.mxu0  ;;  %v1229_v39 = vadd.f32 %v1228_v36, %v1227_v32 }
 0x11c   : > { %v921_v38 = vadd.f32 %v1207_v35, %v881_v34  ;;  %v1230_v41 = vpop.f32.mrf.mxu1 }
 0x11d   : > { %v1209_v42 = vpop.f32.mrf.mxu0 }
 0x11e   : > { %v961_v43 = vadd.f32 %v1229_v39, %v921_v38  ;;  %v1231_v44 = vpop.f32.mrf.mxu1  ;;  %972 = sbr.rel (%p1140_p7) target bundleno = 303 (0x12f), region = 40 }
 0x120   : > { %v966_v45 = vadd.f32 %v961_v43, %v234_v40 }
 0x122   : > { %968 = vst.msk [vmem:[#allocation2] sm:$0x3] %vm967_vm1, %v966_v45 }
 0x123   : > { %v1141_v47 = vld [vmem:[%s1504_s2] ss:$0 sm:$0xff] }
 0x129   : > { %v973_v46 = vld [vmem:[#allocation2] sm:$0x3] }
 0x12a   : > { %v981_v48 = vadd.f32 %v1141_v47, %v973_v46 }
 0x12c   : > { %v982_v49 = vmax.f32 %v981_v48, 0.0 }
 0x12e   : > { %983 = vst.msk [vmem:[%s1505_s3] sm:$0x3] %vm967_vm1, %v982_v49 }
 0x12f PF: > { %s13_s14 = sadd.s32 1, %s1346_s14   ;;  %s1506_s12 = smov %s1342_s13 }
 0x130   : > { %p10_p8 = scmp.ge.s32.totalorder %s13_s14, 9   ;;  %s1507_s13 = smov %s1509_s15 }
 0x132   :  { %12 = sbr.rel (!%p10_p8) target bundleno = 2 (0x2), region = 76 }

// kernel: vgg_forward.9
= control target key start
LH: loop header
LB: loop body
LE: loop exit
PB: predicated region body
PF: predicated region fallthrough
CT: control target
= control target key end

     0   :  { %v229_v1 = vmov 0.0   ;;  %vm230_vm0 = vmmov 0   ;;  %vm20_vm1 = vcmask 74752   ;;  %s288_s0 = inlined_call_operand.vmem [shape: bf16[2,128], index: 0, kind: input, shape index: {}]   ;;  %s289_s1 = inlined_call_operand.vmem [shape: bf16[128,10], index: 1, kind: input, shape index: {}]   ;;  %s290_s2 = inlined_call_operand.vmem [shape: f32[1,10], index: 2, kind: input, shape index: {}]   ;;  %s291_s3 = inlined_call_operand.hbm [shape: f32[2,10], index: 3, kind: output, shape index: {}]  }
   0x1   :  { %v199_v0 = vld [vmem:[%s289_s1 + $0x38] sm:$0xff]   ;;  %176 = vmatprep.subr.bf16.mxu0 %v229_v1  ;;  %v200_v2 = vld [vmem:[%s289_s1 + $0x30] sm:$0xff]   ;;  %192 = vmatprep.mubr.msk.bf16.mxu0 %vm230_vm0, %v229_v1  ;;  %21 = vst.msk [vmem:[#allocation2] sm:$0x3] %vm20_vm1, %v229_v1  ;;  %v201_v3 = vld [vmem:[%s289_s1 + $0x28] sm:$0xff]  }
   0x2   :  { %177 = vmatpush3.bf16.msra.mxu0 %v199_v0 }
   0x3   :  { %178 = vmatprep.subr.bf16.mxu0 %v229_v1 }
   0x6   :  { %179 = vmatpush3.bf16.msra.mxu0 %v200_v2 }
   0x7   :  { %180 = vmatprep.subr.bf16.mxu0 %v229_v1 }
   0x8   :  { %8 = vsyncpa [#allocation4], 0  ;;  %v202_v4 = vld [vmem:[%s289_s1 + $0x20] sm:$0xff]   ;;  %v203_v5 = vld [vmem:[%s289_s1 + $0x18] sm:$0xff]  }
   0x9   :  { %v204_v6 = vld [vmem:[%s289_s1 + $0x10] sm:$0xff]   ;;  %v205_v7 = vld [vmem:[%s289_s1 + $0x8] sm:$0xff]   ;;  %v206_v8 = vld [vmem:[%s289_s1] sm:$0xff]   ;;  %s231_s1 = smov [#allocation3]  }
   0xa   :  { %181 = vmatpush3.bf16.msra.mxu0 %v201_v3  ;;  %v23_v9 = vld [vmem:[%s288_s0] sm:$0x1]  ;;  %s150_s5 = sshll.u32 %s231_s1, 4  ;;  %s151_s5 = int_to_ptr.vmem [resolvable:$true] %s150_s5 }
   0xb   :  { %182 = vmatprep.subr.bf16.mxu0 %v229_v1  ;;  %v22_v10 = vld [vmem:[#allocation2] sm:$0x3]  ;;  %s207_s0 = scalar_lea.vmem %s151_s5, 32  ;;  %p212_p1 = scmp.lt.s32.totalorder %s151_s5, %s151_s5 }
   0xc   :  { %v166_v16 = vld [vmem:[%s290_s2] ss:$0 sm:$0xff]  ;;  %p208_p0 = scmp.ne.s32.totalorder %s151_s5, %s207_s0  ;;  %p213_p2 = scmp.lt.s32.totalorder %s207_s0, %s207_s0 }
   0xe   :  { %183 = vmatpush3.bf16.msra.mxu0 %v202_v4  ;;  %p214_p3 = por %p213_p2, %p212_p1 }
   0xf   :  { %184 = vmatprep.subr.bf16.mxu0 %v229_v1 }
  0x10   :  { %p215_p4 = pnand %p214_p3, %p208_p0 }
  0x12   :  { %185 = vmatpush3.bf16.msra.mxu0 %v203_v5 }
  0x13   :  { %186 = vmatprep.subr.bf16.mxu0 %v229_v1 }
  0x16   :  { %187 = vmatpush3.bf16.msra.mxu0 %v204_v6 }
  0x17   :  { %188 = vmatprep.subr.bf16.mxu0 %v229_v1 }
  0x1a   :  { %189 = vmatpush3.bf16.msra.mxu0 %v205_v7 }
  0x1b   :  { %190 = vmatprep.subr.bf16.mxu0 %v229_v1 }
  0x1e   :  { %191 = vmatpush3.bf16.msra.mxu0 %v206_v8 }
  0x21   :  { %193 = vmatmul.mubr.bf16.vlgmr.msra.gmra.mxu0 %v23_v9 }
  0xe1   :  { %v122_v11 = vpop.f32.mrf.mxu0 }
  0xe2   :  { %v128_v12 = vadd.f32 %v122_v11, %v22_v10 }
  0xe3   :  { %v194_v13 = vpop.f32.mrf.mxu0 }
  0xe4   :  { %130 = vst.msk [vmem:[#allocation2] sm:$0x3] %vm20_vm1, %v128_v12 }
  0xe5   :  { %v125_v14 = vpop.f32.mrf.mxu0 }
  0xe7   :  { %v195_v15 = vpop.f32.mrf.mxu0 }
  0xeb   :  { %v134_v17 = vld [vmem:[#allocation2] sm:$0x3] }
  0xec   :  { %v142_v18 = vadd.f32 %v166_v16, %v134_v17 }
  0xee   :  { %143 = vst.msk [vmem:[#allocation3] sm:$0x3] %vm20_vm1, %v142_v18 }
  0xef   :  { %218 = shalt.err (!%p215_p4)
}
  0xf0   :  { %153 = dma.vmem_to_hbm [thread:$0]  %s151_s5, 32, %s291_s3, [#allocation4]  }
  0xf1   :  { %227 = dma.done.wait [#allocation4], 32  }
  0xf2   :  { %228 = vsyncadd [#allocation4], 4294967264 }
  0xf3   :  { %157 = vsyncpa [#allocation4], 1 }

// kernel: vgg_forward.5
= control target key start
LH: loop header
LB: loop body
LE: loop exit
PB: predicated region body
PF: predicated region fallthrough
CT: control target
= control target key end

     0   :  { %s8453_s27 = smov 0   ;;  %s10988_s0 = inlined_call_operand.vmem [shape: bf16[2,320,128], index: 0, kind: input, shape index: {}]   ;;  %s10989_s1 = inlined_call_operand.vmem [shape: bf16[1152,128], index: 1, kind: input, shape index: {}]   ;;  %s10990_s2 = inlined_call_operand.vmem [shape: f32[1,128], index: 2, kind: input, shape index: {}]   ;;  %s10991_s3 = inlined_call_operand.vmem [shape: bf16[1152,128], index: 3, kind: input, shape index: {}]   ;;  %s10992_s4 = inlined_call_operand.vmem [shape: f32[1,128], index: 4, kind: input, shape index: {}]   ;;  %s10993_s5 = inlined_call_operand.vmem [shape: f32[1,128], index: 5, kind: input, shape index: {}]   ;;  %s10994_s6 = inlined_call_operand.vmem [shape: f32[1,128], index: 6, kind: input, shape index: {}]   ;;  %s10995_s7 = inlined_call_operand.vmem [shape: f32[256,1], index: 7, kind: input, shape index: {}]   ;;  %s10996_s8 = inlined_call_operand.vmem [shape: bf16[2,320,128], index: 8, kind: output, shape index: {}]  }
   0x1 LB: > { %s6504_s28 = sadd.s32 4294967295, %s8403_s27   ;;  %p6508_p0 = scmp.ge.s32.totalorder %s8403_s27, 1  ;;  %s8403_s27 = sphi %s8453_s27, %s18_s27  }
   0x2   : > { %p262_p1 = scmp.lt.s32.totalorder %s8403_s27, 3 }
   0x4   : > { %p263_p2 = pnand %p6508_p0, %p262_p1 }
   0x6   : > { %266 = sbr.rel (%p263_p2) target bundleno = 1039 (0x40f), region = 52 }
   0xb   : > { %v8232_v0 = vld [vmem:[%s10989_s1 + $0x78] sm:$0xff]   ;;  %p296_p3 = scmp.lt.s32.totalorder %s6504_s28, 1  ;;  %v8234_v2 = vld [vmem:[%s10989_s1 + $0x70] sm:$0xff]   ;;  %v10997_v4 = vmov 0.0|0.0   ;;  %v8236_v7 = vld [vmem:[%s10989_s1 + $0x68] sm:$0xff]  }
   0xc   : > { %v8233_v1 = vld [vmem:[%s10989_s1 + $0x38] sm:$0xff]   ;;  %7354 = vmatprep.subr.bf16.mxu0 %v8232_v0  ;;  %v8235_v3 = vld [vmem:[%s10989_s1 + $0x30] sm:$0xff]   ;;  %v6659_v5 = vcombine.low %v10997_v4, %v10997_v4  ;;  %v6660_v6 = vcombine.high %v10997_v4, %v10997_v4  ;;  %v8237_v8 = vld [vmem:[%s10989_s1 + $0x28] sm:$0xff]  }
   0xd   : > { %s11322_s28 = smov (!%p296_p3, %s6504_s28), 1  ;;  %7402 = vmatprep.subr.bf16.mxu1 %v8233_v1  ;;  %7355 = vmatpush3.bf16.msra.mxu0 %v8232_v0  ;;  %v8238_v9 = vld [vmem:[%s10989_s1 + $0x60] sm:$0xff]   ;;  %v8240_v11 = vld [vmem:[%s10989_s1 + $0x58] sm:$0xff]   ;;  %v8242_v13 = vld [vmem:[%s10989_s1 + $0x50] sm:$0xff]  }
   0xe   : > { %7403 = vmatpush3.bf16.msra.mxu1 %v8233_v1  ;;  %7356 = vmatprep.subr.bf16.mxu0 %v8234_v2  ;;  %s8218_s17 = smul.u32 160, %s11322_s28  ;;  %v8239_v10 = vld [vmem:[%s10989_s1 + $0x20] sm:$0xff]   ;;  %v8241_v12 = vld [vmem:[%s10989_s1 + $0x18] sm:$0xff]   ;;  %v8243_v17 = vld [vmem:[%s10989_s1 + $0x10] sm:$0xff]  }
   0xf   : > { %7404 = vmatprep.subr.bf16.mxu1 %v8235_v3  ;;  %v8244_v28 = vld [vmem:[%s10989_s1 + $0x48] sm:$0xff]   ;;  %v8246_v39 = vld [vmem:[%s10989_s1 + $0x40] sm:$0xff]   ;;  %v8250_v55 = vld [vmem:[%s10989_s1 + $0xb8] sm:$0xff]  }
  0x10   : > { %s8489_s22 = scalar_lea.vmem %s10996_s8, %s8218_s17  ;;  %s8514_s12 = scalar_lea.vmem %s10988_s0, %s8218_s17  ;;  %v8245_v31 = vld [vmem:[%s10989_s1 + $0x8] sm:$0xff]   ;;  %v8247_v43 = vld [vmem:[%s10989_s1] sm:$0xff]   ;;  %v8263_v0 = vld [vmem:[%s10989_s1 + $0xf8] sm:$0xff]  }
  0x11   : > { %7357 = vmatpush3.bf16.msra.mxu0 %v8234_v2  ;;  %6409 = vst [vmem:[%s8489_s22] sm:$0xf] %v6659_v5  ;;  %6410 = vst [vmem:[%s8489_s22 + $0x4] sm:$0xf] %v6660_v6  ;;  %v6887_v14 = vld [vmem:[%s8514_s12 + $0x8] sm:$0xff]   ;;  %v6728_v16 = vld [vmem:[%s8514_s12] sm:$0xff]  }
  0x12   : > { %6411 = vst [vmem:[%s8489_s22 + $0x8] sm:$0xf] %v6659_v5  ;;  %6412 = vst [vmem:[%s8489_s22 + $0xc] sm:$0xf] %v6660_v6  ;;  %7405 = vmatpush3.bf16.msra.mxu1 %v8235_v3  ;;  %7358 = vmatprep.subr.bf16.mxu0 %v8236_v7  ;;  %v8248_v15 = vld [vmem:[%s8514_s12 + $0x8] sm:$0xff]  ;;  %v6733_v18 = vunpack.c.l.bf16 %v6887_v14  ;;  %v6734_v19 = vunpack.c.h.bf16 %v6887_v14  ;;  %v6730_v20 = vunpack.c.h.bf16 %v6728_v16  ;;  %v6888_v21 = vld [vmem:[%s8514_s12 + $0x10] sm:$0xff]  }
  0x13   : > { %6445 = vst [vmem:[%s8489_s22 + $0x90] sm:$0xf] %v6659_v5  ;;  %6446 = vst [vmem:[%s8489_s22 + $0x94] sm:$0xf] %v6660_v6  ;;  %7406 = vmatprep.subr.bf16.mxu1 %v8237_v8  ;;  %7370 = vmatprep.mubr.bf16.mxu0 %v8248_v15  ;;  %v6737_v22 = vunpack.c.l.bf16 %v6888_v21  ;;  %v6738_v23 = vunpack.c.h.bf16 %v6888_v21  ;;  %v6889_v24 = vld [vmem:[%s8514_s12 + $0x18] sm:$0xff]   ;;  %v6890_v27 = vld [vmem:[%s8514_s12 + $0x20] sm:$0xff]  }
  0x14   : > { %6447 = vst [vmem:[%s8489_s22 + $0x98] sm:$0xf] %v6659_v5  ;;  %6448 = vst [vmem:[%s8489_s22 + $0x9c] sm:$0xf] %v6660_v6  ;;  %v6741_v25 = vunpack.c.l.bf16 %v6889_v24  ;;  %v6742_v26 = vunpack.c.h.bf16 %v6889_v24  ;;  %v6745_v29 = vunpack.c.l.bf16 %v6890_v27  ;;  %v6746_v30 = vunpack.c.h.bf16 %v6890_v27  ;;  %v6891_v32 = vld [vmem:[%s8514_s12 + $0x28] sm:$0xff]   ;;  %v6892_v33 = vld [vmem:[%s8514_s12 + $0x30] sm:$0xff]  }
  0x15   : > { %7359 = vmatpush3.bf16.msra.mxu0 %v8236_v7  ;;  %421 = vst [vmem:[#allocation2 + $0x10] sm:$0xff] %v6733_v18  ;;  %422 = vst [vmem:[#allocation2 + $0x18] sm:$0xff] %v6734_v19  ;;  %v6749_v34 = vunpack.c.l.bf16 %v6891_v32  ;;  %v6750_v35 = vunpack.c.h.bf16 %v6891_v32  ;;  %v6753_v36 = vunpack.c.l.bf16 %v6892_v33  ;;  %v6754_v37 = vunpack.c.h.bf16 %v6892_v33  ;;  %v6893_v38 = vld [vmem:[%s8514_s12 + $0x38] sm:$0xff]   ;;  %v6894_v42 = vld [vmem:[%s8514_s12 + $0x40] sm:$0xff]  }
  0x16   : > { %7407 = vmatpush3.bf16.msra.mxu1 %v8237_v8  ;;  %7360 = vmatprep.subr.bf16.mxu0 %v8238_v9  ;;  %420 = vst [vmem:[#allocation2 + $0x8] sm:$0xff] %v6730_v20  ;;  %423 = vst [vmem:[#allocation2 + $0x20] sm:$0xff] %v6737_v22  ;;  %v6757_v40 = vunpack.c.l.bf16 %v6893_v38  ;;  %v6758_v41 = vunpack.c.h.bf16 %v6893_v38  ;;  %v6761_v44 = vunpack.c.l.bf16 %v6894_v42  ;;  %v6762_v45 = vunpack.c.h.bf16 %v6894_v42  ;;  %v6895_v46 = vld [vmem:[%s8514_s12 + $0x48] sm:$0xff]   ;;  %v6896_v52 = vld [vmem:[%s8514_s12 + $0x50] sm:$0xff]  }
  0x17   : > { %7408 = vmatprep.subr.bf16.mxu1 %v8239_v10  ;;  %424 = vst [vmem:[#allocation2 + $0x28] sm:$0xff] %v6738_v23  ;;  %425 = vst [vmem:[#allocation2 + $0x30] sm:$0xff] %v6741_v25  ;;  %v6765_v49 = vunpack.c.l.bf16 %v6895_v46  ;;  %v6766_v50 = vunpack.c.h.bf16 %v6895_v46  ;;  %v6769_v56 = vunpack.c.l.bf16 %v6896_v52  ;;  %v6770_v57 = vunpack.c.h.bf16 %v6896_v52  ;;  %v8550_v60 = vld [vmem:[%s8514_s12 + $0x10] sm:$0xff]  ;;  %v8251_v62 = vld [vmem:[%s8514_s12 + $0x18] sm:$0xff] }
  0x18   : > { %426 = vst [vmem:[#allocation2 + $0x38] sm:$0xff] %v6742_v26  ;;  %427 = vst [vmem:[#allocation2 + $0x40] sm:$0xff] %v6745_v29  ;;  %v8253_v1 = vld [vmem:[%s10989_s1 + $0xb0] sm:$0xff]   ;;  %v8256_v3 = vld [vmem:[%s10989_s1 + $0xa8] sm:$0xff]  }
  0x19   : > { %7361 = vmatpush3.bf16.msra.mxu0 %v8238_v9  ;;  %428 = vst [vmem:[#allocation2 + $0x48] sm:$0xff] %v6746_v30  ;;  %429 = vst [vmem:[#allocation2 + $0x50] sm:$0xff] %v6749_v34  ;;  %v8264_v5 = vld [vmem:[%s10989_s1 + $0xf0] sm:$0xff]   ;;  %v6897_v7 = vld [vmem:[%s8514_s12 + $0x58] sm:$0xff]  }
  0x1a   : > { %7409 = vmatpush3.bf16.msra.mxu1 %v8239_v10  ;;  %7362 = vmatprep.subr.bf16.mxu0 %v8240_v11  ;;  %430 = vst [vmem:[#allocation2 + $0x58] sm:$0xff] %v6750_v35  ;;  %431 = vst [vmem:[#allocation2 + $0x60] sm:$0xff] %v6753_v36  ;;  %v6898_v8 = vld [vmem:[%s8514_s12 + $0x60] sm:$0xff]   ;;  %v8254_v16 = vld [vmem:[%s8514_s12 + $0x28] sm:$0xff] }
  0x1b   : > { %7410 = vmatprep.subr.bf16.mxu1 %v8241_v12  ;;  %432 = vst [vmem:[#allocation2 + $0x68] sm:$0xff] %v6754_v37  ;;  %433 = vst [vmem:[#allocation2 + $0x70] sm:$0xff] %v6757_v40  ;;  %v8575_v9 = vld [vmem:[%s8514_s12 + $0x20] sm:$0xff]  ;;  %v6777_v14 = vunpack.c.l.bf16 %v6898_v8  ;;  %v6778_v15 = vunpack.c.h.bf16 %v6898_v8  ;;  %v8268_v18 = vld [vmem:[%s10989_s1 + $0xe8] sm:$0xff]  }
  0x1c   : > { %v460_v48 = vld [vmem:[#allocation2 + $0x17] sm:$0xff]  ;;  %434 = vst [vmem:[#allocation2 + $0x78] sm:$0xff] %v6758_v41  ;;  %435 = vst [vmem:[#allocation2 + $0x80] sm:$0xff] %v6761_v44  ;;  %v8259_v20 = vld [vmem:[%s10989_s1 + $0xa0] sm:$0xff]  }
  0x1d   : > { %7363 = vmatpush3.bf16.msra.mxu0 %v8240_v11  ;;  %v459_v47 = vld [vmem:[#allocation2 + $0xf] sm:$0xff]  ;;  %436 = vst [vmem:[#allocation2 + $0x88] sm:$0xff] %v6762_v45  ;;  %v461_v53 = vld [vmem:[#allocation2 + $0x1f] sm:$0xff]  ;;  %437 = vst [vmem:[#allocation2 + $0x90] sm:$0xff] %v6765_v49 }
  0x1e   : > { %7411 = vmatpush3.bf16.msra.mxu1 %v8241_v12  ;;  %7364 = vmatprep.subr.bf16.mxu0 %v8242_v13  ;;  %v491_v51 = vpack.c.bf16 %v460_v48, %v459_v47  ;;  %v462_v54 = vld [vmem:[#allocation2 + $0x27] sm:$0xff]  ;;  %438 = vst [vmem:[#allocation2 + $0x98] sm:$0xff] %v6766_v50  ;;  %v463_v58 = vld [vmem:[#allocation2 + $0x2f] sm:$0xff]  ;;  %439 = vst [vmem:[#allocation2 + $0xa0] sm:$0xff] %v6769_v56  ;;  %v6773_v12 = vunpack.c.l.bf16 %v6897_v7 }
  0x1f   : > { %7412 = vmatprep.subr.bf16.mxu1 %v8243_v17  ;;  %v464_v59 = vld [vmem:[#allocation2 + $0x37] sm:$0xff]  ;;  %440 = vst [vmem:[#allocation2 + $0xa8] sm:$0xff] %v6770_v57  ;;  %v8552_v61 = vpack.c.bf16 %v462_v54, %v461_v53  ;;  %v465_v2 = vld [vmem:[#allocation2 + $0x3f] sm:$0xff]  ;;  %443 = vst [vmem:[#allocation2 + $0xc0] sm:$0xff] %v6777_v14 }
  0x20   : > { %7418 = vmatprep.mubr.bf16.mxu1 %v491_v51  ;;  %v8555_v63 = vpack.c.bf16 %v464_v59, %v463_v58  ;;  %v466_v6 = vld [vmem:[#allocation2 + $0x47] sm:$0xff]  ;;  %v467_v10 = vld [vmem:[#allocation2 + $0x4f] sm:$0xff]  ;;  %441 = vst [vmem:[#allocation2 + $0xb0] sm:$0xff] %v6773_v12  ;;  %444 = vst [vmem:[#allocation2 + $0xc8] sm:$0xff] %v6778_v15 }
  0x21   : > { %7365 = vmatpush3.bf16.msra.mxu0 %v8242_v13  ;;  %v468_v11 = vld [vmem:[#allocation2 + $0x57] sm:$0xff]  ;;  %v6774_v13 = vunpack.c.h.bf16 %v6897_v7  ;;  %v6899_v21 = vld [vmem:[%s8514_s12 + $0x68] sm:$0xff]   ;;  %v8269_v23 = vld [vmem:[%s10989_s1 + $0xe0] sm:$0xff]  }
  0x22   : > { %7413 = vmatpush3.bf16.msra.mxu1 %v8243_v17  ;;  %7366 = vmatprep.subr.bf16.mxu0 %v8244_v28  ;;  %v8578_v17 = vpack.c.bf16 %v466_v6, %v465_v2  ;;  %v8583_v19 = vpack.c.bf16 %v468_v11, %v467_v10  ;;  %v6900_v22 = vld [vmem:[%s8514_s12 + $0x70] sm:$0xff]   ;;  %v6781_v24 = vunpack.c.l.bf16 %v6899_v21  ;;  %v6782_v25 = vunpack.c.h.bf16 %v6899_v21  ;;  %v8262_v29 = vld [vmem:[%s10989_s1 + $0x98] sm:$0xff]   ;;  %v470_v30 = vld [vmem:[#allocation2 + $0x67] sm:$0xff] }
  0x23   : > { %7414 = vmatprep.subr.bf16.mxu1 %v8245_v31  ;;  %442 = vst [vmem:[#allocation2 + $0xb8] sm:$0xff] %v6774_v13  ;;  %v6785_v26 = vunpack.c.l.bf16 %v6900_v22  ;;  %v6786_v27 = vunpack.c.h.bf16 %v6900_v22  ;;  %v472_v32 = vld [vmem:[#allocation2 + $0x77] sm:$0xff]  ;;  %v6902_v40 = vld [vmem:[%s8514_s12 + $0x80] sm:$0xff]   ;;  %v8272_v50 = vld [vmem:[%s10989_s1 + $0x88] sm:$0xff]  }
  0x24   : > { %445 = vst [vmem:[#allocation2 + $0xd0] sm:$0xff] %v6781_v24  ;;  %446 = vst [vmem:[#allocation2 + $0xd8] sm:$0xff] %v6782_v25  ;;  %v6901_v33 = vld [vmem:[%s8514_s12 + $0x78] sm:$0xff]   ;;  %v8601_v34 = vld [vmem:[%s8514_s12 + $0x30] sm:$0xff]  ;;  %v6793_v42 = vunpack.c.l.bf16 %v6902_v40 }
  0x25   : > { %7367 = vmatpush3.bf16.msra.mxu0 %v8244_v28  ;;  %v469_v28 = vld [vmem:[#allocation2 + $0x5f] sm:$0xff]  ;;  %447 = vst [vmem:[#allocation2 + $0xe0] sm:$0xff] %v6785_v26  ;;  %448 = vst [vmem:[#allocation2 + $0xe8] sm:$0xff] %v6786_v27  ;;  %v6789_v36 = vunpack.c.l.bf16 %v6901_v33  ;;  %v6790_v37 = vunpack.c.h.bf16 %v6901_v33  ;;  %v8267_v44 = vld [vmem:[%s10989_s1 + $0x90] sm:$0xff]  }
  0x26   : > { %7415 = vmatpush3.bf16.msra.mxu1 %v8245_v31  ;;  %7368 = vmatprep.subr.bf16.mxu0 %v8246_v39  ;;  %v471_v31 = vld [vmem:[#allocation2 + $0x6f] sm:$0xff]  ;;  %v8273_v35 = vld [vmem:[%s10989_s1 + $0xd8] sm:$0xff]   ;;  %v8606_v38 = vpack.c.bf16 %v470_v30, %v469_v28  ;;  %451 = vst [vmem:[#allocation2 + $0x100] sm:$0xff] %v6793_v42  ;;  %v474_v47 = vld [vmem:[#allocation2 + $0x87] sm:$0xff] }
  0x27   : > { %7416 = vmatprep.subr.bf16.mxu1 %v8247_v43  ;;  %v8612_v41 = vpack.c.bf16 %v472_v32, %v471_v31  ;;  %449 = vst [vmem:[#allocation2 + $0xf0] sm:$0xff] %v6789_v36  ;;  %450 = vst [vmem:[#allocation2 + $0xf8] sm:$0xff] %v6790_v37  ;;  %v8274_v45 = vld [vmem:[%s10989_s1 + $0xd0] sm:$0xff]   ;;  %v473_v46 = vld [vmem:[#allocation2 + $0x7f] sm:$0xff] }
  0x28   : > { %v475_v48 = vld [vmem:[#allocation2 + $0x8f] sm:$0xff]  ;;  %v476_v49 = vld [vmem:[#allocation2 + $0x97] sm:$0xff]  ;;  %v8628_v51 = vld [vmem:[%s8514_s12 + $0x40] sm:$0xff]  ;;  %v8633_v53 = vpack.c.bf16 %v474_v47, %v473_v46 }
  0x29   : > { %7369 = vmatpush3.bf16.msra.mxu0 %v8246_v39  ;;  %v8609_v39 = vld [vmem:[%s8514_s12 + $0x38] sm:$0xff]  ;;  %v8278_v52 = vld [vmem:[%s10989_s1 + $0xc8] sm:$0xff]   ;;  %v8277_v56 = vld [vmem:[%s10989_s1 + $0x80] sm:$0xff]  }
  0x2a   : > { %7417 = vmatpush3.bf16.msra.mxu1 %v8247_v43  ;;  %7450 = vmatprep.subr.bf16.mxu0 %v8250_v55  ;;  %v6794_v43 = vunpack.c.h.bf16 %v6902_v40  ;;  %v8636_v54 = vld [vmem:[%s8514_s12 + $0x48] sm:$0xff]  ;;  %v8279_v57 = vld [vmem:[%s10989_s1 + $0xc0] sm:$0xff]   ;;  %v8656_v2 = vld [vmem:[%s8514_s12 + $0x50] sm:$0xff] }
  0x2b   : > { %7498 = vmatprep.subr.bf16.mxu1 %v8263_v0  ;;  %v477_v58 = vld [vmem:[#allocation2 + $0x9f] sm:$0xff]  ;;  %v478_v59 = vld [vmem:[#allocation2 + $0xa7] sm:$0xff]  ;;  %v483_v11 = vld [vmem:[#allocation2 + $0xcf] sm:$0xff] }
  0x2c   : > { %7371 = vmatmul.mubr.bf16.vlgmr.msra.gmra.mxu0 %v8550_v60  ;;  %452 = vst [vmem:[#allocation2 + $0x108] sm:$0xff] %v6794_v43  ;;  %v8670_v7 = vld [vmem:[%s10989_s1 + $0x178] sm:$0xff]   ;;  %v482_v10 = vld [vmem:[#allocation2 + $0xc7] sm:$0xff]  ;;  %v8692_v26 = vld [vmem:[%s8514_s12 + $0x70] sm:$0xff] }
  0x2d   : > { %7419 = vmatmul.mubr.bf16.vlgmr.msra.gmra.mxu1 %v8552_v61  ;;  %7451 = vmatpush3.bf16.msra.mxu0 %v8250_v55  ;;  %v8638_v55 = vpack.c.bf16 %v476_v49, %v475_v48  ;;  %v481_v8 = vld [vmem:[#allocation2 + $0xbf] sm:$0xff]  ;;  %v484_v12 = vld [vmem:[#allocation2 + $0xd7] sm:$0xff]  ;;  %v8682_v15 = vld [vmem:[%s8514_s12 + $0x68] sm:$0xff] }
  0x2e   : > { %7374 = vmatprep.mubr.bf16.mxu0 %v8251_v62  ;;  %7422 = vmatprep.mubr.bf16.mxu1 %v8555_v63  ;;  %v479_v62 = vld [vmem:[#allocation2 + $0xaf] sm:$0xff]  ;;  %v8677_v13 = vld [vmem:[%s8514_s12 + $0x60] sm:$0xff]  ;;  %v8679_v14 = vpack.c.bf16 %v482_v10, %v481_v8  ;;  %v8697_v28 = vld [vmem:[%s8514_s12 + $0x78] sm:$0xff] }
  0x2f   : > { %7452 = vmatprep.subr.bf16.mxu0 %v8253_v1  ;;  %7499 = vmatpush3.bf16.msra.mxu1 %v8263_v0  ;;  %v480_v0 = vld [vmem:[#allocation2 + $0xb7] sm:$0xff]  ;;  %v487_v21 = vld [vmem:[#allocation2 + $0xef] sm:$0xff]  ;;  %v489_v32 = vld [vmem:[#allocation2 + $0xff] sm:$0xff] }
  0x30   : > { %7500 = vmatprep.subr.bf16.mxu1 %v8264_v5  ;;  %v8663_v6 = vpack.c.bf16 %v480_v0, %v479_v62  ;;  %v6903_v22 = vld [vmem:[%s8514_s12 + $0x88] sm:$0xff]   ;;  %v1005_v30 = vld [vmem:[#allocation2 + $0x11] sm:$0xff]  ;;  %v1006_v31 = vld [vmem:[#allocation2 + $0x19] sm:$0xff] }
  0x31   : > { %7453 = vmatpush3.bf16.msra.mxu0 %v8253_v1  ;;  %v8653_v1 = vld [vmem:[%s10989_s1 + $0x138] sm:$0xff]   ;;  %v6797_v24 = vunpack.c.l.bf16 %v6903_v22  ;;  %v6798_v25 = vunpack.c.h.bf16 %v6903_v22  ;;  %v1037_v37 = vpack.c.bf16 %v1006_v31, %v1005_v30  ;;  %v1007_v40 = vld [vmem:[#allocation2 + $0x21] sm:$0xff]  ;;  %v1008_v42 = vld [vmem:[#allocation2 + $0x29] sm:$0xff] }
  0x32   : > { %7454 = vmatprep.subr.bf16.mxu0 %v8256_v3  ;;  %v1009_v43 = vld [vmem:[#allocation2 + $0x31] sm:$0xff]  ;;  %v8288_v62 = vld [vmem:[%s10989_s1 + $0x168] sm:$0xff]   ;;  %v8283_v10 = vld [vmem:[%s10989_s1 + $0x120] sm:$0xff]  }
  0x33   : > { %7501 = vmatpush3.bf16.msra.mxu1 %v8264_v5  ;;  %v8661_v5 = vld [vmem:[%s8514_s12 + $0x58] sm:$0xff]  ;;  %453 = vst [vmem:[#allocation2 + $0x110] sm:$0xff] %v6797_v24  ;;  %454 = vst [vmem:[#allocation2 + $0x118] sm:$0xff] %v6798_v25  ;;  %v490_v33 = vld [vmem:[#allocation2 + $0x107] sm:$0xff] }
  0x34   : > { %7375 = vmatmul.mubr.bf16.gmra.mxu0 %v8575_v9  ;;  %7502 = vmatprep.subr.bf16.mxu1 %v8268_v18  ;;  %v8708_v36 = vpack.c.bf16 %v490_v33, %v489_v32  ;;  %v6904_v46 = vld [vmem:[%s8514_s12 + $0x90] sm:$0xff]   ;;  %v1022_v24 = vld [vmem:[#allocation2 + $0x99] sm:$0xff]  ;;  %v8290_v30 = vld [vmem:[%s10989_s1 + $0x108] sm:$0xff]  }
  0x35   : > { %7423 = vmatmul.mubr.bf16.gmra.mxu1 %v8578_v17  ;;  %7378 = vmatprep.mubr.bf16.mxu0 %v8254_v16  ;;  %v8684_v16 = vpack.c.bf16 %v484_v12, %v483_v11  ;;  %v8281_v48 = vld [vmem:[%s10989_s1 + $0x130] sm:$0xff]   ;;  %v6801_v49 = vunpack.c.l.bf16 %v6904_v46  ;;  %v8289_v11 = vld [vmem:[%s10989_s1 + $0x160] sm:$0xff]   ;;  %v8284_v12 = vld [vmem:[%s10989_s1 + $0x118] sm:$0xff]  }
  0x36   : > { %7426 = vmatprep.mubr.bf16.mxu1 %v8583_v19  ;;  %7455 = vmatpush3.bf16.msra.mxu0 %v8256_v3  ;;  %v8658_v3 = vpack.c.bf16 %v478_v59, %v477_v58  ;;  %v1014_v58 = vld [vmem:[#allocation2 + $0x59] sm:$0xff]  ;;  %v8282_v59 = vld [vmem:[%s10989_s1 + $0x128] sm:$0xff]   ;;  %v8292_v25 = vld [vmem:[%s10989_s1 + $0x150] sm:$0xff]  }
  0x37   : > { %7456 = vmatprep.subr.bf16.mxu0 %v8259_v20  ;;  %7503 = vmatpush3.bf16.msra.mxu1 %v8268_v18  ;;  %v485_v18 = vld [vmem:[#allocation2 + $0xdf] sm:$0xff]  ;;  %455 = vst [vmem:[#allocation2 + $0x120] sm:$0xff] %v6801_v49  ;;  %v1016_v8 = vld [vmem:[#allocation2 + $0x69] sm:$0xff] }
  0x38   : > { %7504 = vmatprep.subr.bf16.mxu1 %v8269_v23  ;;  %v1020_v22 = vld [vmem:[#allocation2 + $0x89] sm:$0xff] }
  0x39   : > { %v8294_v31 = vld [vmem:[%s10989_s1 + $0x148] sm:$0xff]  }
  0x3a   : > { %7457 = vmatpush3.bf16.msra.mxu0 %v8259_v20  ;;  %v486_v20 = vld [vmem:[#allocation2 + $0xe7] sm:$0xff] }
  0x3b   : > { %7458 = vmatprep.subr.bf16.mxu0 %v8262_v29  ;;  %7505 = vmatpush3.bf16.msra.mxu1 %v8269_v23  ;;  %v488_v23 = vld [vmem:[#allocation2 + $0xf7] sm:$0xff]  ;;  %v8694_v27 = vpack.c.bf16 %v486_v20, %v485_v18 }
  0x3c   : > { %7379 = vmatmul.mubr.bf16.gmra.mxu0 %v8601_v34  ;;  %7506 = vmatprep.subr.bf16.mxu1 %v8273_v35  ;;  %v8291_v18 = vld [vmem:[%s10989_s1 + $0x158] sm:$0xff]  }
  0x3d   : > { %7427 = vmatmul.mubr.bf16.gmra.mxu1 %v8606_v38  ;;  %7382 = vmatprep.mubr.bf16.mxu0 %v8609_v39 }
  0x3e   : > { %7430 = vmatprep.mubr.bf16.mxu1 %v8612_v41  ;;  %7459 = vmatpush3.bf16.msra.mxu0 %v8262_v29  ;;  %v8699_v29 = vpack.c.bf16 %v488_v23, %v487_v21  ;;  %v1021_v23 = vld [vmem:[#allocation2 + $0x91] sm:$0xff] }
  0x3f   : > { %7460 = vmatprep.subr.bf16.mxu0 %v8267_v44  ;;  %7507 = vmatpush3.bf16.msra.mxu1 %v8273_v35  ;;  %v8706_v35 = vld [vmem:[%s8514_s12 + $0x80] sm:$0xff]  ;;  %v8778_v33 = vpack.c.bf16 %v1022_v24, %v1021_v23  ;;  %v8901_v23 = vld [vmem:[%s10989_s1 + $0x238] sm:$0xff]   ;;  %v312_v24 = vld [vmem:[%s10995_s7 + $0x28] sm:$0xff] }
  0x40   : > { %7508 = vmatprep.subr.bf16.mxu1 %v8274_v45 }
  0x42   : > { %7461 = vmatpush3.bf16.msra.mxu0 %v8267_v44  ;;  %v1010_v44 = vld [vmem:[#allocation2 + $0x39] sm:$0xff] }
  0x43   : > { %7462 = vmatprep.subr.bf16.mxu0 %v8272_v50  ;;  %7509 = vmatpush3.bf16.msra.mxu1 %v8274_v45  ;;  %v8713_v45 = vpack.c.bf16 %v1008_v42, %v1007_v40  ;;  %v8716_v47 = vpack.c.bf16 %v1010_v44, %v1009_v43  ;;  %v1025_v40 = vld [vmem:[#allocation2 + $0xb1] sm:$0xff]  ;;  %v1026_v42 = vld [vmem:[#allocation2 + $0xb9] sm:$0xff] }
  0x44   : > { %7383 = vmatmul.mubr.bf16.gmra.mxu0 %v8628_v51  ;;  %7510 = vmatprep.subr.bf16.mxu1 %v8278_v52  ;;  %v8295_v43 = vld [vmem:[%s10989_s1 + $0x140] sm:$0xff]   ;;  %v8296_v44 = vld [vmem:[%s10989_s1 + $0x1b8] sm:$0xff]   ;;  %v8798_v49 = vpack.c.bf16 %v1026_v42, %v1025_v40  ;;  %v2225_v42 = vld [vmem:[#allocation2 + $0x2f] sm:$0xff] }
  0x45   : > { %7431 = vmatmul.mubr.bf16.gmra.mxu1 %v8633_v53  ;;  %7386 = vmatprep.mubr.bf16.mxu0 %v8636_v54  ;;  %v1951_v40 = vld [vmem:[#allocation2 + $0x119] sm:$0xff] }
  0x46   : > { %7434 = vmatprep.mubr.bf16.mxu1 %v8638_v55  ;;  %7463 = vmatpush3.bf16.msra.mxu0 %v8272_v50  ;;  %v6802_v50 = vunpack.c.h.bf16 %v6904_v46  ;;  %v8301_v46 = vld [vmem:[%s10989_s1 + $0x1f8] sm:$0xff]  }
  0x47   : > { %7464 = vmatprep.subr.bf16.mxu0 %v8277_v56  ;;  %7511 = vmatpush3.bf16.msra.mxu1 %v8278_v52  ;;  %v1011_v52 = vld [vmem:[#allocation2 + $0x41] sm:$0xff] }
  0x48   : > { %7512 = vmatprep.subr.bf16.mxu1 %v8279_v57  ;;  %456 = vst [vmem:[#allocation2 + $0x128] sm:$0xff] %v6802_v50  ;;  %v1028_v50 = vld [vmem:[#allocation2 + $0xc9] sm:$0xff] }
  0x4a   : > { %7465 = vmatpush3.bf16.msra.mxu0 %v8277_v56  ;;  %v1012_v56 = vld [vmem:[#allocation2 + $0x49] sm:$0xff] }
  0x4b   : > { %7513 = vmatpush3.bf16.msra.mxu1 %v8279_v57  ;;  %7546 = vmatprep.subr.bf16.mxu0 %v8653_v1  ;;  %v1013_v57 = vld [vmem:[#allocation2 + $0x51] sm:$0xff]  ;;  %v8736_v0 = vpack.c.bf16 %v1012_v56, %v1011_v52  ;;  %v1030_v52 = vld [vmem:[#allocation2 + $0xd9] sm:$0xff] }
  0x4c   : > { %7387 = vmatmul.mubr.bf16.gmra.mxu0 %v8656_v2  ;;  %7594 = vmatprep.subr.bf16.mxu1 %v8670_v7 }
  0x4d   : > { %7435 = vmatmul.mubr.bf16.gmra.mxu1 %v8658_v3  ;;  %7390 = vmatprep.mubr.bf16.mxu0 %v8661_v5 }
  0x4e   : > { %7438 = vmatprep.mubr.bf16.mxu1 %v8663_v6 }
  0x54   : > { %7391 = vmatmul.mubr.bf16.gmra.mxu0 %v8677_v13 }
  0x55   : > { %7439 = vmatmul.mubr.bf16.gmra.mxu1 %v8679_v14  ;;  %7394 = vmatprep.mubr.bf16.mxu0 %v8682_v15 }
  0x56   : > { %7442 = vmatprep.mubr.bf16.mxu1 %v8684_v16 }
  0x5c   : > { %7395 = vmatmul.mubr.bf16.gmra.mxu0 %v8692_v26 }
  0x5d   : > { %7443 = vmatmul.mubr.bf16.gmra.mxu1 %v8694_v27  ;;  %7398 = vmatprep.mubr.bf16.mxu0 %v8697_v28 }
  0x5e   : > { %7446 = vmatprep.mubr.bf16.mxu1 %v8699_v29 }
  0x64   : > { %7399 = vmatmul.mubr.bf16.gmra.mxu0 %v8706_v35 }
  0x65   : > { %7447 = vmatmul.mubr.bf16.gmra.mxu1 %v8708_v36  ;;  %7466 = vmatprep.mubr.bf16.mxu0 %v1037_v37  ;;  %v1024_v37 = vld [vmem:[#allocation2 + $0xa9] sm:$0xff] }
  0x66   : > { %7514 = vmatprep.mubr.bf16.mxu1 %v8552_v61  ;;  %v8286_v61 = vld [vmem:[%s10989_s1 + $0x170] sm:$0xff]  }
  0x6c   : > { %7467 = vmatmul.mubr.bf16.vlgmr.msra.gmra.mxu0 %v8713_v45 }
  0x6d   : > { %7547 = vmatpush3.bf16.msra.mxu0 %v8653_v1  ;;  %7515 = vmatmul.mubr.bf16.vlgmr.msra.gmra.mxu1 %v8555_v63  ;;  %v8738_v63 = vpack.c.bf16 %v1014_v58, %v1013_v57  ;;  %v1015_v1 = vld [vmem:[#allocation2 + $0x61] sm:$0xff]  ;;  %v1032_v58 = vld [vmem:[#allocation2 + $0xe9] sm:$0xff] }
  0x6e   : > { %7470 = vmatprep.mubr.bf16.mxu0 %v8716_v47  ;;  %7548 = vmatprep.subr.bf16.mxu0 %v8281_v48  ;;  %v8756_v20 = vpack.c.bf16 %v1016_v8, %v1015_v1  ;;  %v1031_v57 = vld [vmem:[#allocation2 + $0xe1] sm:$0xff]  ;;  %v1036_v8 = vld [vmem:[#allocation2 + $0x109] sm:$0xff] }
  0x6f   : > { %7518 = vmatprep.mubr.bf16.mxu1 %v8578_v17  ;;  %7595 = vmatpush3.bf16.msra.mxu1 %v8670_v7  ;;  %v1017_v17 = vld [vmem:[#allocation2 + $0x71] sm:$0xff]  ;;  %v1018_v7 = vld [vmem:[#allocation2 + $0x79] sm:$0xff]  ;;  %v1035_v1 = vld [vmem:[#allocation2 + $0x101] sm:$0xff] }
  0x70   : > { %7596 = vmatprep.subr.bf16.mxu1 %v8286_v61  ;;  %v8758_v21 = vpack.c.bf16 %v1018_v7, %v1017_v17  ;;  %v8820_v17 = vpack.c.bf16 %v1036_v8, %v1035_v1  ;;  %v8394_v7 = vld [vmem:[%s8514_s12 + $0x18] sm:$0xff]  ;;  %v2534_v1 = vld [vmem:[#allocation2 + $0x50] sm:$0xff] }
  0x71   : > { %7549 = vmatpush3.bf16.msra.mxu0 %v8281_v48  ;;  %v2535_v8 = vld [vmem:[#allocation2 + $0x58] sm:$0xff] }
  0x72   : > { %7550 = vmatprep.subr.bf16.mxu0 %v8282_v59 }
  0x73   : > { %7597 = vmatpush3.bf16.msra.mxu1 %v8286_v61 }
  0x74   : > { %7471 = vmatmul.mubr.bf16.gmra.mxu0 %v8736_v0  ;;  %7598 = vmatprep.subr.bf16.mxu1 %v8288_v62 }
  0x75   : > { %7519 = vmatmul.mubr.bf16.gmra.mxu1 %v8583_v19  ;;  %7474 = vmatprep.mubr.bf16.mxu0 %v8738_v63  ;;  %v1019_v19 = vld [vmem:[#allocation2 + $0x81] sm:$0xff] }
  0x76   : > { %7522 = vmatprep.mubr.bf16.mxu1 %v8606_v38  ;;  %7551 = vmatpush3.bf16.msra.mxu0 %v8282_v59  ;;  %v8287_v38 = vld [vmem:[%s10989_s1 + $0x110] sm:$0xff]   ;;  %v8776_v32 = vpack.c.bf16 %v1020_v22, %v1019_v19  ;;  %v8310_v19 = vld [vmem:[%s10989_s1 + $0x180] sm:$0xff]  }
  0x77   : > { %7552 = vmatprep.subr.bf16.mxu0 %v8283_v10  ;;  %7599 = vmatpush3.bf16.msra.mxu1 %v8288_v62  ;;  %v1033_v59 = vld [vmem:[#allocation2 + $0xf1] sm:$0xff]  ;;  %v8812_v62 = vpack.c.bf16 %v1032_v58, %v1031_v57  ;;  %v8312_v22 = vld [vmem:[%s10989_s1 + $0x1c0] sm:$0xff]   ;;  %v2533_v58 = vld [vmem:[#allocation2 + $0x48] sm:$0xff] }
  0x78   : > { %7600 = vmatprep.subr.bf16.mxu1 %v8289_v11  ;;  %v2532_v57 = vld [vmem:[#allocation2 + $0x40] sm:$0xff] }
  0x7a   : > { %7553 = vmatpush3.bf16.msra.mxu0 %v8283_v10  ;;  %v1340_v10 = vld [vmem:[#allocation2 + $0x10f] sm:$0xff] }
  0x7b   : > { %7554 = vmatprep.subr.bf16.mxu0 %v8284_v12  ;;  %7601 = vmatpush3.bf16.msra.mxu1 %v8289_v11  ;;  %v8298_v11 = vld [vmem:[%s10989_s1 + $0x1a8] sm:$0xff]  }
  0x7c   : > { %7475 = vmatmul.mubr.bf16.gmra.mxu0 %v8756_v20  ;;  %7602 = vmatprep.subr.bf16.mxu1 %v8291_v18 }
  0x7d   : > { %7523 = vmatmul.mubr.bf16.gmra.mxu1 %v8612_v41  ;;  %7478 = vmatprep.mubr.bf16.mxu0 %v8758_v21  ;;  %v1023_v41 = vld [vmem:[#allocation2 + $0xa1] sm:$0xff] }
  0x7e   : > { %7526 = vmatprep.mubr.bf16.mxu1 %v8633_v53  ;;  %7555 = vmatpush3.bf16.msra.mxu0 %v8284_v12  ;;  %v8293_v53 = vld [vmem:[%s10989_s1 + $0x100] sm:$0xff]   ;;  %v8796_v48 = vpack.c.bf16 %v1024_v37, %v1023_v41  ;;  %v8307_v12 = vld [vmem:[%s10989_s1 + $0x1d8] sm:$0xff]  }
  0x7f   : > { %7556 = vmatprep.subr.bf16.mxu0 %v8287_v38  ;;  %7603 = vmatpush3.bf16.msra.mxu1 %v8291_v18  ;;  %v307_v18 = vld [vmem:[%s10995_s7] sm:$0xff]  ;;  %v1950_v37 = vld [vmem:[#allocation2 + $0x111] sm:$0xff] }
  0x80   : > { %7604 = vmatprep.subr.bf16.mxu1 %v8292_v25 }
  0x82   : > { %7557 = vmatpush3.bf16.msra.mxu0 %v8287_v38  ;;  %v308_v38 = vld [vmem:[%s10995_s7 + $0x8] sm:$0xff] }
  0x83   : > { %7558 = vmatprep.subr.bf16.mxu0 %v8290_v30  ;;  %7605 = vmatpush3.bf16.msra.mxu1 %v8292_v25  ;;  %v313_v25 = vld [vmem:[%s10995_s7 + $0x30] sm:$0xff] }
  0x84   : > { %7479 = vmatmul.mubr.bf16.gmra.mxu0 %v8776_v32  ;;  %7606 = vmatprep.subr.bf16.mxu1 %v8294_v31 }
  0x85   : > { %7527 = vmatmul.mubr.bf16.gmra.mxu1 %v8638_v55  ;;  %7482 = vmatprep.mubr.bf16.mxu0 %v8778_v33  ;;  %v1027_v55 = vld [vmem:[#allocation2 + $0xc1] sm:$0xff] }
  0x86   : > { %7530 = vmatprep.mubr.bf16.mxu1 %v8658_v3  ;;  %7559 = vmatpush3.bf16.msra.mxu0 %v8290_v30  ;;  %v1029_v3 = vld [vmem:[#allocation2 + $0xd1] sm:$0xff]  ;;  %v8804_v61 = vpack.c.bf16 %v1028_v50, %v1027_v55  ;;  %v323_v55 = vld [vmem:[%s10995_s7 + $0x80] sm:$0xff] }
  0x87   : > { %7560 = vmatprep.subr.bf16.mxu0 %v8293_v53  ;;  %7607 = vmatpush3.bf16.msra.mxu1 %v8294_v31  ;;  %v8806_v56 = vpack.c.bf16 %v1030_v52, %v1029_v3  ;;  %v314_v30 = vld [vmem:[%s10995_s7 + $0x38] sm:$0xff]  ;;  %v317_v31 = vld [vmem:[%s10995_s7 + $0x50] sm:$0xff]  ;;  %v324_v3 = vld [vmem:[%s10995_s7 + $0x88] sm:$0xff] }
  0x88   : > { %7608 = vmatprep.subr.bf16.mxu1 %v8295_v43  ;;  %v2227_v52 = vld [vmem:[#allocation2 + $0x3f] sm:$0xff] }
  0x8a   : > { %7561 = vmatpush3.bf16.msra.mxu0 %v8293_v53  ;;  %v321_v53 = vld [vmem:[%s10995_s7 + $0x70] sm:$0xff] }
  0x8b   : > { %7609 = vmatpush3.bf16.msra.mxu1 %v8295_v43  ;;  %7642 = vmatprep.subr.bf16.mxu0 %v8296_v44  ;;  %v2226_v43 = vld [vmem:[#allocation2 + $0x37] sm:$0xff] }
  0x8c   : > { %7483 = vmatmul.mubr.bf16.gmra.mxu0 %v8796_v48  ;;  %7690 = vmatprep.subr.bf16.mxu1 %v8301_v46 }
  0x8d   : > { %7531 = vmatmul.mubr.bf16.gmra.mxu1 %v8663_v6  ;;  %7486 = vmatprep.mubr.bf16.mxu0 %v8798_v49  ;;  %v1034_v6 = vld [vmem:[#allocation2 + $0xf9] sm:$0xff] }
  0x8e   : > { %7534 = vmatprep.mubr.bf16.mxu1 %v8679_v14  ;;  %v8814_v14 = vpack.c.bf16 %v1034_v6, %v1033_v59  ;;  %v2229_v59 = vld [vmem:[#allocation2 + $0x4f] sm:$0xff]  ;;  %v2230_v6 = vld [vmem:[#allocation2 + $0x57] sm:$0xff] }
  0x94   : > { %7487 = vmatmul.mubr.bf16.gmra.mxu0 %v8804_v61 }
  0x95   : > { %7535 = vmatmul.mubr.bf16.gmra.mxu1 %v8684_v16  ;;  %7490 = vmatprep.mubr.bf16.mxu0 %v8806_v56  ;;  %v1341_v16 = vld [vmem:[#allocation2 + $0x117] sm:$0xff] }
  0x96   : > { %7538 = vmatprep.mubr.bf16.mxu1 %v8694_v27  ;;  %v8822_v27 = vpack.c.bf16 %v1341_v16, %v1340_v10  ;;  %v2563_v10 = vpack.c.bf16 %v2533_v58, %v2532_v57  ;;  %v327_v16 = vld [vmem:[%s10995_s7 + $0xa0] sm:$0xff] }
  0x9c   : > { %7491 = vmatmul.mubr.bf16.gmra.mxu0 %v8812_v62 }
  0x9d   : > { %7539 = vmatmul.mubr.bf16.gmra.mxu1 %v8699_v29  ;;  %7494 = vmatprep.mubr.bf16.mxu0 %v8814_v14  ;;  %v8297_v29 = vld [vmem:[%s10989_s1 + $0x1b0] sm:$0xff]  }
  0x9e   : > { %7542 = vmatprep.mubr.bf16.mxu1 %v8708_v36  ;;  %v8302_v36 = vld [vmem:[%s10989_s1 + $0x1f0] sm:$0xff]  }
  0xa4   : > { %7495 = vmatmul.mubr.bf16.gmra.mxu0 %v8820_v17 }
  0xa5   : > { %7543 = vmatmul.mubr.bf16.gmra.mxu1 %v8822_v27  ;;  %7562 = vmatprep.mubr.bf16.mxu0 %v8550_v60  ;;  %v8304_v60 = vld [vmem:[%s10989_s1 + $0x1e8] sm:$0xff]  }
  0xa6   : > { %7610 = vmatprep.mubr.bf16.mxu1 %v8713_v45  ;;  %v8299_v45 = vld [vmem:[%s10989_s1 + $0x1a0] sm:$0xff]  }
  0xac   : > { %7563 = vmatmul.mubr.bf16.vlgmr.msra.gmra.mxu0 %v8394_v7 }
  0xad   : > { %7643 = vmatpush3.bf16.msra.mxu0 %v8296_v44  ;;  %7611 = vmatmul.mubr.bf16.vlgmr.msra.gmra.mxu1 %v8716_v47  ;;  %v8305_v47 = vld [vmem:[%s10989_s1 + $0x1e0] sm:$0xff]   ;;  %v2530_v44 = vld [vmem:[#allocation2 + $0x30] sm:$0xff] }
  0xae   : > { %7566 = vmatprep.mubr.bf16.mxu0 %v8575_v9  ;;  %7644 = vmatprep.subr.bf16.mxu0 %v8297_v29  ;;  %v8395_v9 = vld [vmem:[%s8514_s12 + $0x28] sm:$0xff] }
  0xaf   : > { %7614 = vmatprep.mubr.bf16.mxu1 %v8736_v0  ;;  %7691 = vmatpush3.bf16.msra.mxu1 %v8301_v46  ;;  %v8300_v0 = vld [vmem:[%s10989_s1 + $0x198] sm:$0xff]  }
  0xb0   : > { %7692 = vmatprep.subr.bf16.mxu1 %v8302_v36  ;;  %v2531_v46 = vld [vmem:[#allocation2 + $0x38] sm:$0xff] }
  0xb1   : > { %7645 = vmatpush3.bf16.msra.mxu0 %v8297_v29  ;;  %v2562_v50 = vpack.c.bf16 %v2531_v46, %v2530_v44  ;;  %v8314_v29 = vld [vmem:[%s10989_s1 + $0x230] sm:$0xff]  }
  0xb2   : > { %7646 = vmatprep.subr.bf16.mxu0 %v8298_v11 }
  0xb3   : > { %7693 = vmatpush3.bf16.msra.mxu1 %v8302_v36  ;;  %v2564_v36 = vpack.c.bf16 %v2535_v8, %v2534_v1  ;;  %v335_v1 = vld [vmem:[%s10995_s7 + $0xe0] sm:$0xff] }
  0xb4   : > { %7567 = vmatmul.mubr.bf16.gmra.mxu0 %v8395_v9  ;;  %7694 = vmatprep.subr.bf16.mxu1 %v8304_v60  ;;  %v2536_v9 = vld [vmem:[#allocation2 + $0x60] sm:$0xff] }
  0xb5   : > { %7615 = vmatmul.mubr.bf16.gmra.mxu1 %v8738_v63  ;;  %7570 = vmatprep.mubr.bf16.mxu0 %v8601_v34  ;;  %v8303_v34 = vld [vmem:[%s10989_s1 + $0x190] sm:$0xff]  }
  0xb6   : > { %7618 = vmatprep.mubr.bf16.mxu1 %v8756_v20  ;;  %7647 = vmatpush3.bf16.msra.mxu0 %v8298_v11  ;;  %v8308_v63 = vld [vmem:[%s10989_s1 + $0x1d0] sm:$0xff]   ;;  %v2231_v11 = vld [vmem:[#allocation2 + $0x5f] sm:$0xff] }
  0xb7   : > { %7648 = vmatprep.subr.bf16.mxu0 %v8299_v45  ;;  %7695 = vmatpush3.bf16.msra.mxu1 %v8304_v60  ;;  %v309_v20 = vld [vmem:[%s10995_s7 + $0x10] sm:$0xff]  ;;  %v2232_v60 = vld [vmem:[#allocation2 + $0x67] sm:$0xff] }
  0xb8   : > { %7696 = vmatprep.subr.bf16.mxu1 %v8305_v47 }
  0xba   : > { %7649 = vmatpush3.bf16.msra.mxu0 %v8299_v45  ;;  %v328_v45 = vld [vmem:[%s10995_s7 + $0xa8] sm:$0xff] }
  0xbb   : > { %7650 = vmatprep.subr.bf16.mxu0 %v8300_v0  ;;  %7697 = vmatpush3.bf16.msra.mxu1 %v8305_v47 }
  0xbc   : > { %7571 = vmatmul.mubr.bf16.gmra.mxu0 %v8609_v39  ;;  %7698 = vmatprep.subr.bf16.mxu1 %v8307_v12  ;;  %v8306_v39 = vld [vmem:[%s10989_s1 + $0x188] sm:$0xff]  }
  0xbd   : > { %7619 = vmatmul.mubr.bf16.gmra.mxu1 %v8758_v21  ;;  %7574 = vmatprep.mubr.bf16.mxu0 %v8628_v51  ;;  %v8311_v51 = vld [vmem:[%s10989_s1 + $0x1c8] sm:$0xff]   ;;  %v8406_v21 = vmov 0  }
  0xbe   : > { %7622 = vmatprep.mubr.bf16.mxu1 %v8776_v32  ;;  %7651 = vmatpush3.bf16.msra.mxu0 %v8300_v0  ;;  %v318_v32 = vld [vmem:[%s10995_s7 + $0x58] sm:$0xff]  ;;  %v2537_v0 = vld [vmem:[#allocation2 + $0x68] sm:$0xff] }
  0xbf   : > { %7652 = vmatprep.subr.bf16.mxu0 %v8303_v34  ;;  %7699 = vmatpush3.bf16.msra.mxu1 %v8307_v12  ;;  %v329_v12 = vld [vmem:[%s10995_s7 + $0xb0] sm:$0xff] }
  0xc0   : > { %7700 = vmatprep.subr.bf16.mxu1 %v8308_v63  ;;  %8230 = vset.pattern.permute.xlu0 %v8406_v21 }
  0xc1   : > { %3181 = vperm.xlu0 %8230, %v307_v18   ;;  %8231 = vset.pattern.permute.xlu1 %v8406_v21  ;;  %v2233_v18 = vld [vmem:[#allocation2 + $0x6f] sm:$0xff] }
  0xc2   : > { %7653 = vmatpush3.bf16.msra.mxu0 %v8303_v34  ;;  %3191 = vperm.xlu1 %8231, %v309_v20   ;;  %v8315_v20 = vld [vmem:[%s10989_s1 + $0x228] sm:$0xff]   ;;  %v2538_v21 = vld [vmem:[#allocation2 + $0x70] sm:$0xff] }
  0xc3   : > { %7654 = vmatprep.subr.bf16.mxu0 %v8306_v39  ;;  %7701 = vmatpush3.bf16.msra.mxu1 %v8308_v63 }
  0xc4   : > { %7575 = vmatmul.mubr.bf16.gmra.mxu0 %v8636_v54  ;;  %7702 = vmatprep.subr.bf16.mxu1 %v8311_v51  ;;  %v310_v54 = vld [vmem:[%s10995_s7 + $0x18] sm:$0xff] }
  0xc5   : > { %7623 = vmatmul.mubr.bf16.gmra.mxu1 %v8778_v33  ;;  %7578 = vmatprep.mubr.bf16.mxu0 %v8656_v2  ;;  %v311_v2 = vld [vmem:[%s10995_s7 + $0x20] sm:$0xff]  ;;  %v6905_v33 = vld [vmem:[%s8514_s12 + $0x98] sm:$0xff]  }
  0xc6   : > { %7626 = vmatprep.mubr.bf16.mxu1 %v8796_v48  ;;  %7655 = vmatpush3.bf16.msra.mxu0 %v8306_v39  ;;  %v6805_v41 = vunpack.c.l.bf16 %v6905_v33  ;;  %v8954_v48 = vld [vmem:[%s8514_s12 + $0x88] sm:$0xff]  ;;  %v2234_v39 = vld [vmem:[#allocation2 + $0x77] sm:$0xff]  ;;  %v8316_v33 = vld [vmem:[%s10989_s1 + $0x220] sm:$0xff]  }
  0xc7   : > { %7656 = vmatprep.subr.bf16.mxu0 %v8310_v19  ;;  %7703 = vmatpush3.bf16.msra.mxu1 %v8311_v51 }
  0xc8   : > { %7704 = vmatprep.subr.bf16.mxu1 %v8312_v22  ;;  %3186 = vperm.xlu0 %8230, %v308_v38   ;;  %457 = vst [vmem:[#allocation2 + $0x130] sm:$0xff] %v6805_v41 }
  0xc9   : > { %3196 = vperm.xlu1 %8231, %v310_v54   ;;  %v2260_v54 = vpack.c.bf16 %v2232_v60, %v2231_v11  ;;  %v2239_v11 = vld [vmem:[#allocation2 + $0x9f] sm:$0xff]  ;;  %v336_v60 = vld [vmem:[%s10995_s7 + $0xe8] sm:$0xff] }
  0xca   : > { %7657 = vmatpush3.bf16.msra.mxu0 %v8310_v19  ;;  %v2539_v19 = vld [vmem:[#allocation2 + $0x78] sm:$0xff] }
  0xcb   : > { %7705 = vmatpush3.bf16.msra.mxu1 %v8312_v22  ;;  %7738 = vmatprep.subr.bf16.mxu0 %v8901_v23 }
  0xcc   : > { %7579 = vmatmul.mubr.bf16.gmra.mxu0 %v8661_v5  ;;  %3201 = vperm.xlu0 %8230, %v311_v2   ;;  %v315_v5 = vld [vmem:[%s10995_s7 + $0x40] sm:$0xff] }
  0xcd   : > { %7627 = vmatmul.mubr.bf16.gmra.mxu1 %v8798_v49  ;;  %7582 = vmatprep.mubr.bf16.mxu0 %v8677_v13  ;;  %v316_v13 = vld [vmem:[%s10995_s7 + $0x48] sm:$0xff]  ;;  %v2257_v49 = vpack.c.bf16 %v2226_v43, %v2225_v42  ;;  %v2540_v42 = vld [vmem:[#allocation2 + $0x80] sm:$0xff]  ;;  %v333_v43 = vld [vmem:[%s10995_s7 + $0xd0] sm:$0xff] }
  0xce   : > { %7630 = vmatprep.mubr.bf16.mxu1 %v8804_v61  ;;  %3206 = vperm.xlu1 %8231, %v312_v24   ;;  %v2228_v61 = vld [vmem:[#allocation2 + $0x47] sm:$0xff]  ;;  %v2565_v24 = vpack.c.bf16 %v2537_v0, %v2536_v9  ;;  %v337_v0 = vld [vmem:[%s10995_s7 + $0xf0] sm:$0xff] }
  0xcf   : > { %v2544_v9 = vld [vmem:[#allocation2 + $0xa0] sm:$0xff] }
  0xd0   : > { %3211 = vperm.xlu0 %8230, %v313_v25   ;;  %v2261_v25 = vpack.c.bf16 %v2234_v39, %v2233_v18  ;;  %v2545_v18 = vld [vmem:[#allocation2 + $0xa8] sm:$0xff] }
  0xd1   : > { %v2241_v39 = vld [vmem:[#allocation2 + $0xaf] sm:$0xff] }
  0xd2   : > { %3216 = vperm.xlu1 %8231, %v314_v30   ;;  %v331_v30 = vld [vmem:[%s10995_s7 + $0xc0] sm:$0xff] }
  0xd4   : > { %7583 = vmatmul.mubr.bf16.gmra.mxu0 %v8682_v15  ;;  %3221 = vperm.xlu0 %8230, %v315_v5   ;;  %v319_v15 = vld [vmem:[%s10995_s7 + $0x60] sm:$0xff] }
  0xd5   : > { %7631 = vmatmul.mubr.bf16.gmra.mxu1 %v8806_v56  ;;  %7586 = vmatprep.mubr.bf16.mxu0 %v8692_v26  ;;  %v320_v26 = vld [vmem:[%s10995_s7 + $0x68] sm:$0xff]  ;;  %v325_v56 = vld [vmem:[%s10995_s7 + $0x90] sm:$0xff] }
  0xd6   : > { %7634 = vmatprep.mubr.bf16.mxu1 %v8812_v62  ;;  %3226 = vperm.xlu1 %8231, %v316_v13   ;;  %v326_v62 = vld [vmem:[%s10995_s7 + $0x98] sm:$0xff] }
  0xd8   : > { %3231 = vperm.xlu0 %8230, %v317_v31   ;;  %v2566_v31 = vpack.c.bf16 %v2539_v19, %v2538_v21  ;;  %v2546_v21 = vld [vmem:[#allocation2 + $0xb0] sm:$0xff]  ;;  %v2547_v19 = vld [vmem:[#allocation2 + $0xb8] sm:$0xff] }
  0xda   : > { %3236 = vperm.xlu1 %8231, %v318_v32  }
  0xdc   : > { %7587 = vmatmul.mubr.bf16.gmra.mxu0 %v8697_v28  ;;  %3241 = vperm.xlu0 %8230, %v319_v15   ;;  %v322_v28 = vld [vmem:[%s10995_s7 + $0x78] sm:$0xff] }
  0xdd   : > { %7635 = vmatmul.mubr.bf16.gmra.mxu1 %v8814_v14  ;;  %7590 = vmatprep.mubr.bf16.mxu0 %v8706_v35  ;;  %v8956_v35 = vpack.c.bf16 %v1951_v40, %v1950_v37  ;;  %v2258_v14 = vpack.c.bf16 %v2228_v61, %v2227_v52  ;;  %v332_v37 = vld [vmem:[%s10995_s7 + $0xc8] sm:$0xff]  ;;  %v2543_v52 = vld [vmem:[#allocation2 + $0x98] sm:$0xff] }
  0xde   : > { %7638 = vmatprep.mubr.bf16.mxu1 %v8820_v17  ;;  %3246 = vperm.xlu1 %8231, %v320_v26   ;;  %v2259_v17 = vpack.c.bf16 %v2230_v6, %v2229_v59  ;;  %v2235_v26 = vld [vmem:[#allocation2 + $0x7f] sm:$0xff]  ;;  %v2236_v40 = vld [vmem:[#allocation2 + $0x87] sm:$0xff] }
  0xdf   : > { %v8317_v61 = vld [vmem:[%s10989_s1 + $0x218] sm:$0xff]   ;;  %v2262_v58 = vpack.c.bf16 %v2236_v40, %v2235_v26  ;;  %v8320_v26 = vld [vmem:[%s10989_s1 + $0x200] sm:$0xff]  }
  0xe0   : > { %3251 = vperm.xlu0 %8230, %v321_v53   ;;  %v334_v59 = vld [vmem:[%s10995_s7 + $0xd8] sm:$0xff] }
  0xe2   : > { %3256 = vperm.xlu1 %8231, %v322_v28   ;;  %v2541_v28 = vld [vmem:[#allocation2 + $0x88] sm:$0xff] }
  0xe4   : > { %7591 = vmatmul.mubr.bf16.gmra.mxu0 %v8954_v48  ;;  %3261 = vperm.xlu0 %8230, %v323_v55   ;;  %v2238_v55 = vld [vmem:[#allocation2 + $0x97] sm:$0xff] }
  0xe5   : > { %7639 = vmatmul.mubr.bf16.gmra.mxu1 %v8956_v35  ;;  %7658 = vmatprep.mubr.bf16.mxu0 %v2257_v49  ;;  %v2237_v49 = vld [vmem:[#allocation2 + $0x8f] sm:$0xff] }
  0xe6   : > { %7706 = vmatprep.mubr.bf16.mxu1 %v2562_v50  ;;  %3266 = vperm.xlu1 %8231, %v324_v3   ;;  %v2542_v3 = vld [vmem:[#allocation2 + $0x90] sm:$0xff] }
  0xe8   : > { %3271 = vperm.xlu0 %8230, %v325_v56  }
  0xea   : > { %3276 = vperm.xlu1 %8231, %v326_v62   ;;  %v2567_v62 = vpack.c.bf16 %v2541_v28, %v2540_v42  ;;  %v2243_v42 = vld [vmem:[#allocation2 + $0xbf] sm:$0xff] }
  0xec   : > { %v7372_v7 = vpop.f32.mrf.mxu0  ;;  %7659 = vmatmul.mubr.bf16.vlgmr.msra.gmra.mxu0 %v2258_v14  ;;  %3281 = vperm.xlu0 %8230, %v327_v16   ;;  %v2263_v14 = vpack.c.bf16 %v2238_v55, %v2237_v49  ;;  %v2568_v16 = vpack.c.bf16 %v2543_v52, %v2542_v3  ;;  %v2549_v55 = vld [vmem:[#allocation2 + $0xc8] sm:$0xff]  ;;  %v2246_v3 = vld [vmem:[#allocation2 + $0xd7] sm:$0xff] }
  0xed   : > { %v7420_v47 = vpop.f32.mrf.mxu1  ;;  %7739 = vmatpush3.bf16.msra.mxu0 %v8901_v23  ;;  %7707 = vmatmul.mubr.bf16.vlgmr.msra.gmra.mxu1 %v2563_v10  ;;  %v330_v23 = vld [vmem:[%s10995_s7 + $0xb8] sm:$0xff] }
  0xee   : > { %v8985_v34 = vadd.f32 %v7420_v47, %v7372_v7  ;;  %v669_v63 = vpop.f32.mrf.mxu0  ;;  %7662 = vmatprep.mubr.bf16.mxu0 %v2259_v17  ;;  %7740 = vmatprep.subr.bf16.mxu0 %v8314_v29  ;;  %v2240_v47 = vld [vmem:[#allocation2 + $0xa7] sm:$0xff] }
  0xef   : > { %v878_v51 = vpop.f32.mrf.mxu1  ;;  %7710 = vmatprep.mubr.bf16.mxu1 %v2564_v36  ;;  %3286 = vperm.xlu1 %8231, %v328_v45  }
  0xf0   : > { %v8990_v22 = vadd.f32 %v878_v51, %v669_v63  ;;  %v7373_v38 = vpop.f32.mrf.mxu0  ;;  %3291 = vperm.xlu0 %8230, %v329_v12  }
  0xf1   : > { %v7421_v2 = vpop.f32.mrf.mxu1  ;;  %7741 = vmatpush3.bf16.msra.mxu0 %v8314_v29  ;;  %v8318_v29 = vld [vmem:[%s10989_s1 + $0x210] sm:$0xff]  }
  0xf2   : > { %v8998_v5 = vadd.f32 %v7421_v2, %v7373_v38  ;;  %v672_v13 = vpop.f32.mrf.mxu0  ;;  %7742 = vmatprep.subr.bf16.mxu0 %v8315_v20  ;;  %v8319_v38 = vld [vmem:[%s10989_s1 + $0x208] sm:$0xff]   ;;  %v2264_v2 = vpack.c.bf16 %v2240_v47, %v2239_v11 }
  0xf3   : > { %v881_v32 = vpop.f32.mrf.mxu1  ;;  %3296 = vperm.xlu1 %8231, %v330_v23   ;;  %v2248_v47 = vld [vmem:[#allocation2 + $0xe7] sm:$0xff] }
  0xf4   : > { %v9003_v15 = vadd.f32 %v881_v32, %v672_v13  ;;  %v7376_v41 = vpop.f32.mrf.mxu0  ;;  %7663 = vmatmul.mubr.bf16.gmra.mxu0 %v2260_v54  ;;  %3301 = vperm.xlu0 %8230, %v331_v30   ;;  %v2569_v30 = vpack.c.bf16 %v2545_v18, %v2544_v9  ;;  %v2552_v9 = vld [vmem:[#allocation2 + $0xe0] sm:$0xff]  ;;  %v2553_v18 = vld [vmem:[#allocation2 + $0xe8] sm:$0xff] }
  0xf5   : > { %v7424_v53 = vpop.f32.mrf.mxu1  ;;  %7711 = vmatmul.mubr.bf16.gmra.mxu1 %v2565_v24  ;;  %7666 = vmatprep.mubr.bf16.mxu0 %v2261_v25  ;;  %v338_v24 = vld [vmem:[%s10995_s7 + $0xf8] sm:$0xff] }
  0xf6   : > { %v9011_v44 = vadd.f32 %v7424_v53, %v7376_v41  ;;  %v685_v46 = vpop.f32.mrf.mxu0  ;;  %7714 = vmatprep.mubr.bf16.mxu1 %v2566_v31  ;;  %7743 = vmatpush3.bf16.msra.mxu0 %v8315_v20  ;;  %v2242_v20 = vld [vmem:[#allocation2 + $0xb7] sm:$0xff] }
  0xf7   : > { %v894_v50 = vpop.f32.mrf.mxu1  ;;  %7744 = vmatprep.subr.bf16.mxu0 %v8316_v33  ;;  %3306 = vperm.xlu1 %8231, %v332_v37   ;;  %v2265_v13 = vpack.c.bf16 %v2242_v20, %v2241_v39  ;;  %v2249_v39 = vld [vmem:[#allocation2 + $0xef] sm:$0xff]  ;;  %v2250_v20 = vld [vmem:[#allocation2 + $0xf7] sm:$0xff] }
  0xf8   : > { %v9016_v56 = vadd.f32 %v894_v50, %v685_v46  ;;  %v7377_v57 = vpop.f32.mrf.mxu0  ;;  %3311 = vperm.xlu0 %8230, %v333_v43   ;;  %v2244_v43 = vld [vmem:[#allocation2 + $0xc7] sm:$0xff]  ;;  %v2245_v50 = vld [vmem:[#allocation2 + $0xcf] sm:$0xff] }
  0xf9   : > { %v7425_v6 = vpop.f32.mrf.mxu1  ;;  %v2548_v46 = vld [vmem:[#allocation2 + $0xc0] sm:$0xff] }
  0xfa   : > { %v9024_v8 = vadd.f32 %v7425_v6, %v7377_v57  ;;  %v688_v10 = vpop.f32.mrf.mxu0  ;;  %7745 = vmatpush3.bf16.msra.mxu0 %v8316_v33  ;;  %v2570_v33 = vpack.c.bf16 %v2547_v19, %v2546_v21  ;;  %v2551_v57 = vld [vmem:[#allocation2 + $0xd8] sm:$0xff]  ;;  %v2266_v6 = vpack.c.bf16 %v2244_v43, %v2243_v42  ;;  %v2554_v21 = vld [vmem:[#allocation2 + $0xf0] sm:$0xff]  ;;  %v2252_v42 = vld [vmem:[#allocation2 + $0x107] sm:$0xff] }
  0xfb   : > { %v897_v17 = vpop.f32.mrf.mxu1  ;;  %7746 = vmatprep.subr.bf16.mxu0 %v8317_v61  ;;  %3316 = vperm.xlu1 %8231, %v334_v59   ;;  %v2555_v19 = vld [vmem:[#allocation2 + $0xf8] sm:$0xff] }
  0xfc   : > { %v9029_v36 = vadd.f32 %v897_v17, %v688_v10  ;;  %v7380_v7 = vpop.f32.mrf.mxu0  ;;  %7667 = vmatmul.mubr.bf16.gmra.mxu0 %v2262_v58  ;;  %3321 = vperm.xlu0 %8230, %v335_v1   ;;  %v2267_v1 = vpack.c.bf16 %v2246_v3, %v2245_v50 }
  0xfd   : > { %v7428_v45 = vpop.f32.mrf.mxu1  ;;  %7715 = vmatmul.mubr.bf16.gmra.mxu1 %v2567_v62  ;;  %7670 = vmatprep.mubr.bf16.mxu0 %v2263_v14  ;;  %v2571_v14 = vpack.c.bf16 %v2549_v55, %v2548_v46  ;;  %v2557_v55 = vld [vmem:[#allocation2 + $0x108] sm:$0xff] }
  0xfe   : > { %v9037_v12 = vadd.f32 %v7428_v45, %v7380_v7  ;;  %v701_v63 = vpop.f32.mrf.mxu0  ;;  %7718 = vmatprep.mubr.bf16.mxu1 %v2568_v16  ;;  %7747 = vmatpush3.bf16.msra.mxu0 %v8317_v61  ;;  %v2550_v61 = vld [vmem:[#allocation2 + $0xd0] sm:$0xff]  ;;  %v2247_v45 = vld [vmem:[#allocation2 + $0xdf] sm:$0xff] }
  0xff   : > { %v910_v51 = vpop.f32.mrf.mxu1  ;;  %7748 = vmatprep.subr.bf16.mxu0 %v8318_v29  ;;  %3326 = vperm.xlu1 %8231, %v336_v60   ;;  %v2572_v17 = vpack.c.bf16 %v2551_v57, %v2550_v61 }
 0x100   : > { %v9042_v54 = vadd.f32 %v910_v51, %v701_v63  ;;  %v7381_v23 = vpop.f32.mrf.mxu0  ;;  %3331 = vperm.xlu0 %8230, %v337_v0  }
 0x101   : > { %v7429_v25 = vpop.f32.mrf.mxu1 }
 0x102   : > { %v9047_v31 = vadd.f32 %v7429_v25, %v7381_v23  ;;  %v704_v32 = vpop.f32.mrf.mxu0  ;;  %7749 = vmatpush3.bf16.msra.mxu0 %v8318_v29  ;;  %v2573_v25 = vpack.c.bf16 %v2553_v18, %v2552_v9 }
 0x103   : > { %v913_v41 = vpop.f32.mrf.mxu1  ;;  %7750 = vmatprep.subr.bf16.mxu0 %v8319_v38  ;;  %3336 = vperm.xlu1 %8231, %v338_v24  }
 0x104   : > { %v9052_v37 = vadd.f32 %v913_v41, %v704_v32  ;;  %v7384_v53 = vpop.f32.mrf.mxu0  ;;  %7671 = vmatmul.mubr.bf16.gmra.mxu0 %v2264_v2  ;;  %v2268_v2 = vpack.c.bf16 %v2248_v47, %v2247_v45  ;;  %v2835_v45 = vld [vmem:[#allocation2 + $0x31] sm:$0xff]  ;;  %v2836_v47 = vld [vmem:[#allocation2 + $0x39] sm:$0xff] }
 0x105   : > { %v7432_v40 = vpop.f32.mrf.mxu1  ;;  %7719 = vmatmul.mubr.bf16.gmra.mxu1 %v2569_v30  ;;  %7674 = vmatprep.mubr.bf16.mxu0 %v2265_v13  ;;  %v2269_v30 = vpack.c.bf16 %v2250_v20, %v2249_v39 }
 0x106   : > { %v9054_v28 = vadd.f32 %v7432_v40, %v7384_v53  ;;  %v717_v49 = vpop.f32.mrf.mxu0  ;;  %7722 = vmatprep.mubr.bf16.mxu1 %v2570_v33  ;;  %7751 = vmatpush3.bf16.msra.mxu0 %v8319_v38  ;;  %v2574_v33 = vpack.c.bf16 %v2555_v19, %v2554_v21  ;;  %v2251_v40 = vld [vmem:[#allocation2 + $0xff] sm:$0xff]  ;;  %v2867_v21 = vpack.c.bf16 %v2836_v47, %v2835_v45  ;;  %v2843_v45 = vld [vmem:[#allocation2 + $0x71] sm:$0xff] }
 0x107   : > { %v926_v52 = vpop.f32.mrf.mxu1  ;;  %7752 = vmatprep.subr.bf16.mxu0 %v8320_v26  ;;  %v2270_v61 = vpack.c.bf16 %v2252_v42, %v2251_v40  ;;  %v2844_v47 = vld [vmem:[#allocation2 + $0x79] sm:$0xff] }
 0x108   : > { %v9056_v58 = vadd.f32 %v926_v52, %v717_v49  ;;  %v7385_v59 = vpop.f32.mrf.mxu0  ;;  %v2556_v49 = vld [vmem:[#allocation2 + $0x100] sm:$0xff] }
 0x109   : > { %v7433_v62 = vpop.f32.mrf.mxu1 }
 0x10a   : > { %v9058_v10 = vadd.f32 %v7433_v62, %v7385_v59  ;;  %v720_v16 = vpop.f32.mrf.mxu0  ;;  %7753 = vmatpush3.bf16.msra.mxu0 %v8320_v26  ;;  %v2575_v59 = vpack.c.bf16 %v2557_v55, %v2556_v49 }
 0x10b   : > { %v929_v29 = vpop.f32.mrf.mxu1 }
 0x10c   : > { %v9060_v7 = vadd.f32 %v929_v29, %v720_v16  ;;  %v7388_v11 = vpop.f32.mrf.mxu0  ;;  %7675 = vmatmul.mubr.bf16.gmra.mxu0 %v2266_v6  ;;  %v2256_v29 = vld [vmem:[#allocation2 + $0x127] sm:$0xff] }
 0x10d   : > { %v7436_v60 = vpop.f32.mrf.mxu1  ;;  %7723 = vmatmul.mubr.bf16.gmra.mxu1 %v2571_v14  ;;  %7678 = vmatprep.mubr.bf16.mxu0 %v2267_v1 }
 0x10e   : > { %v9062_v0 = vadd.f32 %v7436_v60, %v7388_v11  ;;  %v733_v63 = vpop.f32.mrf.mxu0  ;;  %7726 = vmatprep.mubr.bf16.mxu1 %v2572_v17  ;;  %v2255_v17 = vld [vmem:[#allocation2 + $0x11f] sm:$0xff] }
 0x10f   : > { %v942_v51 = vpop.f32.mrf.mxu1  ;;  %v2272_v39 = vpack.c.bf16 %v2256_v29, %v2255_v17  ;;  %v2841_v17 = vld [vmem:[#allocation2 + $0x61] sm:$0xff]  ;;  %v2842_v29 = vld [vmem:[#allocation2 + $0x69] sm:$0xff] }
 0x110   : > { %v9064_v38 = vadd.f32 %v942_v51, %v733_v63  ;;  %v7389_v23 = vpop.f32.mrf.mxu0  ;;  %v8321_v51 = vld [vmem:[%s8514_s12 + $0x90] sm:$0xff] }
 0x111   : > { %v7437_v24 = vpop.f32.mrf.mxu1 }
 0x112   : > { %v9066_v13 = vadd.f32 %v7437_v24, %v7389_v23  ;;  %v9068_v32 = vpop.f32.mrf.mxu0 }
 0x113   : > { %v9070_v41 = vpop.f32.mrf.mxu1 }
 0x114   : > { %v7392_v26 = vpop.f32.mrf.mxu0  ;;  %7679 = vmatmul.mubr.bf16.gmra.mxu0 %v2268_v2 }
 0x115   : > { %v7440_v53 = vpop.f32.mrf.mxu1  ;;  %7727 = vmatmul.mubr.bf16.gmra.mxu1 %v2573_v25  ;;  %7682 = vmatprep.mubr.bf16.mxu0 %v2269_v30  ;;  %v2838_v25 = vld [vmem:[#allocation2 + $0x49] sm:$0xff] }
 0x116   : > { %v9072_v43 = vadd.f32 %v7440_v53, %v7392_v26  ;;  %v749_v46 = vpop.f32.mrf.mxu0  ;;  %7730 = vmatprep.mubr.bf16.mxu1 %v2574_v33  ;;  %v2839_v26 = vld [vmem:[#allocation2 + $0x51] sm:$0xff]  ;;  %v2840_v53 = vld [vmem:[#allocation2 + $0x59] sm:$0xff] }
 0x117   : > { %v958_v50 = vpop.f32.mrf.mxu1 }
 0x118   : > { %v9074_v3 = vadd.f32 %v958_v50, %v749_v46  ;;  %v7393_v52 = vpop.f32.mrf.mxu0  ;;  %v2869_v50 = vpack.c.bf16 %v2840_v53, %v2839_v26 }
 0x119   : > { %v7441_v57 = vpop.f32.mrf.mxu1 }
 0x11a   : > { %v9076_v6 = vadd.f32 %v7441_v57, %v7393_v52  ;;  %v9078_v62 = vpop.f32.mrf.mxu0 }
 0x11b   : > { %v9080_v14 = vpop.f32.mrf.mxu1 }
 0x11c   : > { %v7396_v1 = vpop.f32.mrf.mxu0  ;;  %7683 = vmatmul.mubr.bf16.gmra.mxu0 %v2270_v61 }
 0x11d   : > { %v7444_v16 = vpop.f32.mrf.mxu1  ;;  %7731 = vmatmul.mubr.bf16.gmra.mxu1 %v2575_v59  ;;  %7686 = vmatprep.mubr.bf16.mxu0 %v8822_v27 }
 0x11e   : > { %v9083_v11 = vadd.f32 %v7444_v16, %v7396_v1  ;;  %v765_v60 = vpop.f32.mrf.mxu0  ;;  %7734 = vmatprep.mubr.bf16.mxu1 %v8954_v48  ;;  %v2837_v48 = vld [vmem:[#allocation2 + $0x41] sm:$0xff] }
 0x11f   : > { %v974_v9 = vpop.f32.mrf.mxu1  ;;  %v2868_v49 = vpack.c.bf16 %v2838_v25, %v2837_v48 }
 0x120   : > { %v9086_v63 = vadd.f32 %v974_v9, %v765_v60  ;;  %v7397_v18 = vpop.f32.mrf.mxu0 }
 0x121   : > { %v7445_v20 = vpop.f32.mrf.mxu1 }
 0x122   : > { %v9089_v19 = vadd.f32 %v7445_v20, %v7397_v18  ;;  %v9091_v27 = vpop.f32.mrf.mxu0 }
 0x123   : > { %v9093_v23 = vpop.f32.mrf.mxu1 }
 0x124   : > { %v7400_v2 = vpop.f32.mrf.mxu0  ;;  %7687 = vmatmul.mubr.bf16.gmra.mxu0 %v2272_v39 }
 0x125   : > { %v7448_v24 = vpop.f32.mrf.mxu1  ;;  %7735 = vmatmul.mubr.bf16.gmra.mxu1 %v8321_v51  ;;  %7754 = vmatprep.mubr.bf16.mxu0 %v2867_v21  ;;  %v2870_v51 = vpack.c.bf16 %v2842_v29, %v2841_v17 }
 0x126   : > { %v9095_v30 = vadd.f32 %v7448_v24, %v7400_v2  ;;  %v781_v33 = vpop.f32.mrf.mxu0 }
 0x127   : > { %v990_v40 = vpop.f32.mrf.mxu1 }
 0x128   : > { %v9097_v42 = vadd.f32 %v990_v40, %v781_v33  ;;  %v7401_v46 = vpop.f32.mrf.mxu0 }
 0x129   : > { %v7449_v55 = vpop.f32.mrf.mxu1 }
 0x12a   : > { %v9099_v52 = vadd.f32 %v7449_v55, %v7401_v46  ;;  %v9101_v61 = vpop.f32.mrf.mxu0  ;;  %v2845_v46 = vld [vmem:[#allocation2 + $0x81] sm:$0xff]  ;;  %v2847_v55 = vld [vmem:[#allocation2 + $0x91] sm:$0xff] }
 0x12b   : > { %v9103_v57 = vpop.f32.mrf.mxu1 }
 0x12c   : > { %v7468_v59 = vpop.f32.mrf.mxu0  ;;  %7755 = vmatmul.mubr.bf16.vlgmr.msra.gmra.mxu0 %v2868_v49 }
 0x12d   : > { %v1280_v1 = vadd.f32 %v7468_v59, %v8985_v34  ;;  %v7516_v16 = vpop.f32.mrf.mxu1  ;;  %7758 = vmatprep.mubr.bf16.mxu0 %v2869_v50  ;;  %v2871_v34 = vpack.c.bf16 %v2844_v47, %v2843_v45  ;;  %v2848_v50 = vld [vmem:[#allocation2 + $0x99] sm:$0xff] }
 0x12e   : > { %v1151_v60 = vpop.f32.mrf.mxu0 }
 0x12f   : > { %v1278_v9 = vadd.f32 %v1151_v60, %v8990_v22  ;;  %v9107_v18 = vadd.f32 %v7516_v16, %v1280_v1  ;;  %v1456_v39 = vpop.f32.mrf.mxu1 }
 0x130   : > { %v7469_v20 = vpop.f32.mrf.mxu0 }
 0x131   : > { %v1281_v21 = vadd.f32 %v7469_v20, %v8998_v5  ;;  %v9110_v2 = vadd.f32 %v1456_v39, %v1278_v9  ;;  %v7517_v24 = vpop.f32.mrf.mxu1  ;;  %v2846_v5 = vld [vmem:[#allocation2 + $0x89] sm:$0xff] }
 0x132   : > { %v1154_v48 = vpop.f32.mrf.mxu0  ;;  %v2872_v17 = vpack.c.bf16 %v2846_v5, %v2845_v46 }
 0x133   : > { %v9113_v25 = vadd.f32 %v1154_v48, %v9003_v15  ;;  %v9115_v33 = vadd.f32 %v7517_v24, %v1281_v21  ;;  %v9117_v26 = vpop.f32.mrf.mxu1  ;;  %v2849_v24 = vld [vmem:[#allocation2 + $0xa1] sm:$0xff]  ;;  %v2851_v48 = vld [vmem:[#allocation2 + $0xb1] sm:$0xff] }
 0x134   : > { %v7472_v22 = vpop.f32.mrf.mxu0  ;;  %7759 = vmatmul.mubr.bf16.gmra.mxu0 %v2870_v51 }
 0x135   : > { %v1284_v53 = vadd.f32 %v7472_v22, %v9011_v44  ;;  %v7520_v40 = vpop.f32.mrf.mxu1  ;;  %7762 = vmatprep.mubr.bf16.mxu0 %v2871_v34  ;;  %v2873_v44 = vpack.c.bf16 %v2848_v50, %v2847_v55  ;;  %v2852_v22 = vld [vmem:[#allocation2 + $0xb9] sm:$0xff] }
 0x136   : > { %v1167_v49 = vpop.f32.mrf.mxu0 }
 0x137   : > { %v1282_v59 = vadd.f32 %v1167_v49, %v9016_v56  ;;  %v9121_v1 = vadd.f32 %v7520_v40, %v1284_v53  ;;  %v1472_v15 = vpop.f32.mrf.mxu1 }
 0x138   : > { %v7473_v16 = vpop.f32.mrf.mxu0 }
 0x139   : > { %v1285_v29 = vadd.f32 %v7473_v16, %v9024_v8  ;;  %v9124_v60 = vadd.f32 %v1472_v15, %v1282_v59  ;;  %v7521_v45 = vpop.f32.mrf.mxu1  ;;  %v2850_v8 = vld [vmem:[#allocation2 + $0xa9] sm:$0xff] }
 0x13a   : > { %v1170_v47 = vpop.f32.mrf.mxu0  ;;  %v2874_v5 = vpack.c.bf16 %v2850_v8, %v2849_v24 }
 0x13b   : > { %v9127_v9 = vadd.f32 %v1170_v47, %v9029_v36  ;;  %v9129_v39 = vadd.f32 %v7521_v45, %v1285_v29  ;;  %v9131_v20 = vpop.f32.mrf.mxu1  ;;  %v2854_v47 = vld [vmem:[#allocation2 + $0xc9] sm:$0xff] }
 0x13c   : > { %v7476_v56 = vpop.f32.mrf.mxu0  ;;  %7763 = vmatmul.mubr.bf16.gmra.mxu0 %v2872_v17 }
 0x13d   : > { %v1288_v51 = vadd.f32 %v7476_v56, %v9037_v12  ;;  %v7524_v21 = vpop.f32.mrf.mxu1  ;;  %7766 = vmatprep.mubr.bf16.mxu0 %v2873_v44  ;;  %v2875_v12 = vpack.c.bf16 %v2852_v22, %v2851_v48  ;;  %v2853_v44 = vld [vmem:[#allocation2 + $0xc1] sm:$0xff] }
 0x13e   : > { %v1183_v34 = vpop.f32.mrf.mxu0  ;;  %v2876_v48 = vpack.c.bf16 %v2854_v47, %v2853_v44 }
 0x13f   : > { %v1286_v53 = vadd.f32 %v1183_v34, %v9042_v54  ;;  %v9135_v40 = vadd.f32 %v7524_v21, %v1288_v51  ;;  %v1488_v36 = vpop.f32.mrf.mxu1  ;;  %v8322_v54 = vld [vmem:[%s10991_s3 + $0x78] sm:$0xff]  }
 0x140   : > { %v7477_v46 = vpop.f32.mrf.mxu0  ;;  %7786 = vmatprep.subr.bf16.mxu1 %v8322_v54  ;;  %v2856_v51 = vld [vmem:[#allocation2 + $0xd9] sm:$0xff] }
 0x141   : > { %v1289_v49 = vadd.f32 %v7477_v46, %v9047_v31  ;;  %v9138_v55 = vadd.f32 %v1488_v36, %v1286_v53  ;;  %v7525_v50 = vpop.f32.mrf.mxu1  ;;  %7787 = vmatpush3.bf16.msra.mxu1 %v8322_v54  ;;  %v2857_v54 = vld [vmem:[#allocation2 + $0xe1] sm:$0xff] }
 0x142   : > { %v1186_v59 = vpop.f32.mrf.mxu0 }
 0x143   : > { %v9141_v15 = vadd.f32 %v1186_v59, %v9052_v37  ;;  %v9143_v16 = vadd.f32 %v7525_v50, %v1289_v49  ;;  %v9145_v17 = vpop.f32.mrf.mxu1  ;;  %v2855_v37 = vld [vmem:[#allocation2 + $0xd1] sm:$0xff] }
 0x144   : > { %v7480_v29 = vpop.f32.mrf.mxu0  ;;  %7767 = vmatmul.mubr.bf16.gmra.mxu0 %v2874_v5  ;;  %v2877_v36 = vpack.c.bf16 %v2856_v51, %v2855_v37 }
 0x145   : > { %v1292_v31 = vadd.f32 %v7480_v29, %v9054_v28  ;;  %v7528_v45 = vpop.f32.mrf.mxu1  ;;  %7770 = vmatprep.mubr.bf16.mxu0 %v2875_v12  ;;  %v2858_v29 = vld [vmem:[#allocation2 + $0xe9] sm:$0xff] }
 0x146   : > { %v1199_v56 = vpop.f32.mrf.mxu0  ;;  %v2878_v51 = vpack.c.bf16 %v2858_v29, %v2857_v54 }
 0x147   : > { %v1290_v21 = vadd.f32 %v1199_v56, %v9056_v58  ;;  %v9152_v24 = vadd.f32 %v7528_v45, %v1292_v31  ;;  %v1504_v8 = vpop.f32.mrf.mxu1  ;;  %v8323_v58 = vld [vmem:[%s10991_s3 + $0x70] sm:$0xff]   ;;  %v2860_v45 = vld [vmem:[#allocation2 + $0xf9] sm:$0xff] }
 0x148   : > { %v7481_v34 = vpop.f32.mrf.mxu0  ;;  %7788 = vmatprep.subr.bf16.mxu1 %v8323_v58 }
 0x149   : > { %v1293_v22 = vadd.f32 %v7481_v34, %v9058_v10  ;;  %v9155_v53 = vadd.f32 %v1504_v8, %v1290_v21  ;;  %v7529_v28 = vpop.f32.mrf.mxu1  ;;  %7789 = vmatpush3.bf16.msra.mxu1 %v8323_v58 }
 0x14a   : > { %v1202_v46 = vpop.f32.mrf.mxu0 }
 0x14b   : > { %v9158_v5 = vadd.f32 %v1202_v46, %v9060_v7  ;;  %v9160_v49 = vadd.f32 %v7529_v28, %v1293_v22  ;;  %v9162_v50 = vpop.f32.mrf.mxu1  ;;  %v2859_v7 = vld [vmem:[#allocation2 + $0xf1] sm:$0xff] }
 0x14c   : > { %v7484_v12 = vpop.f32.mrf.mxu0  ;;  %7771 = vmatmul.mubr.bf16.gmra.mxu0 %v2876_v48  ;;  %v2879_v34 = vpack.c.bf16 %v2860_v45, %v2859_v7 }
 0x14d   : > { %v1296_v10 = vadd.f32 %v7484_v12, %v9062_v0  ;;  %v7532_v59 = vpop.f32.mrf.mxu1  ;;  %7774 = vmatprep.mubr.bf16.mxu0 %v2877_v36  ;;  %v2862_v12 = vld [vmem:[#allocation2 + $0x109] sm:$0xff] }
 0x14e   : > { %v1215_v31 = vpop.f32.mrf.mxu0 }
 0x14f   : > { %v1294_v44 = vadd.f32 %v1215_v31, %v9064_v38  ;;  %v9169_v47 = vadd.f32 %v7532_v59, %v1296_v10  ;;  %v1520_v56 = vpop.f32.mrf.mxu1  ;;  %v8324_v38 = vld [vmem:[%s10991_s3 + $0x68] sm:$0xff]  }
 0x150   : > { %v7485_v37 = vpop.f32.mrf.mxu0  ;;  %7790 = vmatprep.subr.bf16.mxu1 %v8324_v38 }
 0x151   : > { %v1297_v21 = vadd.f32 %v7485_v37, %v9066_v13  ;;  %v9172_v8 = vadd.f32 %v1520_v56, %v1294_v44  ;;  %v7533_v0 = vpop.f32.mrf.mxu1  ;;  %v2861_v13 = vld [vmem:[#allocation2 + $0x101] sm:$0xff]  ;;  %7791 = vmatpush3.bf16.msra.mxu1 %v8324_v38  ;;  %v2866_v38 = vld [vmem:[#allocation2 + $0x129] sm:$0xff] }
 0x152   : > { %v9174_v48 = vpop.f32.mrf.mxu0  ;;  %v2880_v7 = vpack.c.bf16 %v2862_v12, %v2861_v13 }
 0x153   : > { %v9176_v22 = vadd.f32 %v7533_v0, %v1297_v21  ;;  %v9178_v28 = vpop.f32.mrf.mxu1 }
 0x154   : > { %v7488_v36 = vpop.f32.mrf.mxu0  ;;  %7775 = vmatmul.mubr.bf16.gmra.mxu0 %v2878_v51 }
 0x155   : > { %v1300_v46 = vadd.f32 %v7488_v36, %v9072_v43  ;;  %v7536_v58 = vpop.f32.mrf.mxu1  ;;  %7778 = vmatprep.mubr.bf16.mxu0 %v2879_v34 }
 0x156   : > { %v1231_v10 = vpop.f32.mrf.mxu0 }
 0x157   : > { %v1298_v59 = vadd.f32 %v1231_v10, %v9074_v3  ;;  %v9185_v54 = vadd.f32 %v7536_v58, %v1300_v46  ;;  %v1536_v29 = vpop.f32.mrf.mxu1  ;;  %v8325_v3 = vld [vmem:[%s10991_s3 + $0x60] sm:$0xff]  }
 0x158   : > { %v7489_v31 = vpop.f32.mrf.mxu0  ;;  %7792 = vmatprep.subr.bf16.mxu1 %v8325_v3 }
 0x159   : > { %v1301_v45 = vadd.f32 %v7489_v31, %v9076_v6  ;;  %v9188_v44 = vadd.f32 %v1536_v29, %v1298_v59  ;;  %v7537_v56 = vpop.f32.mrf.mxu1  ;;  %v2865_v6 = vld [vmem:[#allocation2 + $0x121] sm:$0xff]  ;;  %7793 = vmatpush3.bf16.msra.mxu1 %v8325_v3 }
 0x15a   : > { %v9190_v43 = vpop.f32.mrf.mxu0  ;;  %v2882_v10 = vpack.c.bf16 %v2866_v38, %v2865_v6 }
 0x15b   : > { %v9192_v37 = vadd.f32 %v7537_v56, %v1301_v45  ;;  %v9194_v51 = vpop.f32.mrf.mxu1 }
 0x15c   : > { %11032 = vst [vmem:[#allocation4_spill] sm:$0xff] %v9194_v51  ;;  %v7492_v21 = vpop.f32.mrf.mxu0  ;;  %7779 = vmatmul.mubr.bf16.gmra.mxu0 %v2880_v7 }
 0x15d   : > { %v1304_v0 = vadd.f32 %v7492_v21, %v9083_v11  ;;  %v7540_v34 = vpop.f32.mrf.mxu1  ;;  %7782 = vmatprep.mubr.bf16.mxu0 %v8956_v35  ;;  %v8327_v35 = vld [vmem:[%s10991_s3 + $0x38] sm:$0xff]  }
 0x15e   : > { %v1247_v36 = vpop.f32.mrf.mxu0  ;;  %7834 = vmatprep.subr.bf16.mxu0 %v8327_v35 }
 0x15f   : > { %v1302_v46 = vadd.f32 %v1247_v36, %v9086_v63  ;;  %v9202_v58 = vadd.f32 %v7540_v34, %v1304_v0  ;;  %v1552_v13 = vpop.f32.mrf.mxu1  ;;  %v8326_v63 = vld [vmem:[%s10991_s3 + $0x58] sm:$0xff]   ;;  %7835 = vmatpush3.bf16.msra.mxu0 %v8327_v35  ;;  %v8328_v0 = vld [vmem:[%s10991_s3 + $0x30] sm:$0xff]  }
 0x160   : > { %v7493_v12 = vpop.f32.mrf.mxu0  ;;  %7794 = vmatprep.subr.bf16.mxu1 %v8326_v63  ;;  %7836 = vmatprep.subr.bf16.mxu0 %v8328_v0 }
 0x161   : > { %v1305_v59 = vadd.f32 %v7493_v12, %v9089_v19  ;;  %v9205_v29 = vadd.f32 %v1552_v13, %v1302_v46  ;;  %v7541_v11 = vpop.f32.mrf.mxu1  ;;  %7795 = vmatpush3.bf16.msra.mxu1 %v8326_v63 }
 0x162   : > { %v9207_v31 = vpop.f32.mrf.mxu0 }
 0x163   : > { %v9212_v7 = vadd.f32 %v7541_v11, %v1305_v59  ;;  %v9214_v45 = vpop.f32.mrf.mxu1  ;;  %7837 = vmatpush3.bf16.msra.mxu0 %v8328_v0  ;;  %v8329_v11 = vld [vmem:[%s10991_s3 + $0x50] sm:$0xff]  }
 0x164   : > { %11033 = vst [vmem:[#allocation5_spill] sm:$0xff] %v9214_v45  ;;  %v7496_v56 = vpop.f32.mrf.mxu0  ;;  %7783 = vmatmul.mubr.bf16.gmra.mxu0 %v2882_v10  ;;  %v8330_v10 = vld [vmem:[%s10991_s3 + $0x28] sm:$0xff]   ;;  %7796 = vmatprep.subr.bf16.mxu1 %v8329_v11 }
 0x165   : > { %v1308_v19 = vadd.f32 %v7496_v56, %v9095_v30  ;;  %v7544_v3 = vpop.f32.mrf.mxu1  ;;  %7838 = vmatprep.subr.bf16.mxu0 %v8330_v10  ;;  %7797 = vmatpush3.bf16.msra.mxu1 %v8329_v11 }
 0x166   : > { %v1263_v21 = vpop.f32.mrf.mxu0 }
 0x167   : > { %v1306_v34 = vadd.f32 %v1263_v21, %v9097_v42  ;;  %v9224_v6 = vadd.f32 %v7544_v3, %v1308_v19  ;;  %v1568_v38 = vpop.f32.mrf.mxu1  ;;  %7839 = vmatpush3.bf16.msra.mxu0 %v8330_v10  ;;  %v8331_v19 = vld [vmem:[%s10991_s3 + $0x20] sm:$0xff]  }
 0x168   : > { %v7497_v36 = vpop.f32.mrf.mxu0  ;;  %7840 = vmatprep.subr.bf16.mxu0 %v8331_v19 }
 0x169   : > { %v1309_v46 = vadd.f32 %v7497_v36, %v9099_v52  ;;  %v9227_v13 = vadd.f32 %v1568_v38, %v1306_v34  ;;  %v7545_v30 = vpop.f32.mrf.mxu1  ;;  %v8332_v36 = vld [vmem:[%s10991_s3 + $0x48] sm:$0xff]  }
 0x16a   : > { %v9229_v12 = vpop.f32.mrf.mxu0  ;;  %7798 = vmatprep.subr.bf16.mxu1 %v8332_v36 }
 0x16b   : > { %v9234_v59 = vadd.f32 %v7545_v30, %v1309_v46  ;;  %v9236_v42 = vpop.f32.mrf.mxu1  ;;  %7841 = vmatpush3.bf16.msra.mxu0 %v8331_v19  ;;  %7799 = vmatpush3.bf16.msra.mxu1 %v8332_v36  ;;  %v8407_v19 = vmov 0.0  }
 0x16c   : > { %11034 = vst [vmem:[#allocation6_spill] sm:$0xff] %v9236_v42  ;;  %v7564_v35 = vpop.f32.mrf.mxu0  ;;  %3371 = vst [vmem:[#allocation3] sm:$0xff] %v8407_v19 }
 0x16d   : > { %v9242_v52 = vadd.f32 %v7564_v35, %v9107_v18  ;;  %v9244_v63 = vpop.f32.mrf.mxu1  ;;  %v8334_v35 = vld [vmem:[%s10991_s3 + $0x10] sm:$0xff]   ;;  %3373 = vst [vmem:[#allocation3 + $0x10] sm:$0xff] %v8407_v19  ;;  %3374 = vst [vmem:[#allocation3 + $0x18] sm:$0xff] %v8407_v19 }
 0x16e   : > { %v1761_v56 = vpop.f32.mrf.mxu0  ;;  %3372 = vst [vmem:[#allocation3 + $0x8] sm:$0xff] %v8407_v19  ;;  %3407 = vst [vmem:[#allocation3 + $0x120] sm:$0xff] %v8407_v19 }
 0x16f   : > { %v9250_v3 = vadd.f32 %v1761_v56, %v9110_v2  ;;  %v9252_v21 = vpop.f32.mrf.mxu1  ;;  %v8333_v2 = vld [vmem:[%s10991_s3 + $0x18] sm:$0xff]   ;;  %v8335_v56 = vld [vmem:[%s10991_s3 + $0x40] sm:$0xff]   ;;  %3408 = vst [vmem:[#allocation3 + $0x128] sm:$0xff] %v8407_v19  ;;  %3409 = vst [vmem:[#allocation3 + $0x130] sm:$0xff] %v8407_v19 }
 0x170   : > { %v7565_v0 = vpop.f32.mrf.mxu0  ;;  %7842 = vmatprep.subr.bf16.mxu0 %v8333_v2  ;;  %7800 = vmatprep.subr.bf16.mxu1 %v8335_v56  ;;  %v8336_v19 = vld [vmem:[%s10991_s3 + $0x8] sm:$0xff]  }
 0x171   : > { %v9255_v18 = vadd.f32 %v7565_v0, %v9115_v33  ;;  %v9257_v34 = vpop.f32.mrf.mxu1  ;;  %7843 = vmatpush3.bf16.msra.mxu0 %v8333_v2  ;;  %7801 = vmatpush3.bf16.msra.mxu1 %v8335_v56  ;;  %v8337_v56 = vld [vmem:[%s10991_s3] sm:$0xff]  }
 0x172   : > { %v9259_v38 = vpop.f32.mrf.mxu0  ;;  %7844 = vmatprep.subr.bf16.mxu0 %v8334_v35 }
 0x173   : > { %v9267_v46 = vpop.f32.mrf.mxu1 }
 0x174   : > { %v7568_v30 = vpop.f32.mrf.mxu0 }
 0x175   : > { %v9270_v33 = vadd.f32 %v7568_v30, %v9121_v1  ;;  %v9272_v10 = vpop.f32.mrf.mxu1  ;;  %7845 = vmatpush3.bf16.msra.mxu0 %v8334_v35 }
 0x176   : > { %v1777_v11 = vpop.f32.mrf.mxu0  ;;  %7846 = vmatprep.subr.bf16.mxu0 %v8336_v19 }
 0x177   : > { %v9281_v1 = vadd.f32 %v1777_v11, %v9124_v60  ;;  %v9283_v0 = vpop.f32.mrf.mxu1  ;;  %v11038_v11 = vmov 0.0|0.0  }
 0x178   : > { %v7569_v36 = vpop.f32.mrf.mxu0  ;;  %7802 = vmatprep.mubr.bf16.mxu1 %v11038_v11  ;;  %v3411_v11 = vld [vmem:[#allocation3 + $0xf] sm:$0xff] }
 0x179   : > { %v9286_v2 = vadd.f32 %v7569_v36, %v9129_v39  ;;  %v9288_v30 = vpop.f32.mrf.mxu1  ;;  %7847 = vmatpush3.bf16.msra.mxu0 %v8336_v19 }
 0x17a   : > { %11036 = vst [vmem:[#allocation8_spill] sm:$0xff] %v9288_v30  ;;  %v9290_v4 = vpop.f32.mrf.mxu0  ;;  %7848 = vmatprep.subr.bf16.mxu0 %v8337_v56  ;;  %v3412_v30 = vld [vmem:[#allocation3 + $0x17] sm:$0xff] }
 0x17b   : > { %11035 = vst [vmem:[#allocation7_spill] sm:$0xff] %v9286_v2  ;;  %v9295_v60 = vpop.f32.mrf.mxu1  ;;  %v3443_v19 = vpack.c.bf16 %v3412_v30, %v3411_v11  ;;  %v9338_v11 = vld [vmem:[%s10991_s3 + $0xb8] sm:$0xff]  }
 0x17c   : > { %11037 = vst [vmem:[#allocation9_spill] sm:$0xff] %v9295_v60  ;;  %v7572_v42 = vpop.f32.mrf.mxu0  ;;  %11051 = vst [vmem:[#allocation22_spill] sm:$0xff] %v9338_v11  ;;  %7882 = vmatprep.subr.bf16.mxu1 %v9338_v11 }
 0x17d   : > { %v9299_v45 = vadd.f32 %v7572_v42, %v9135_v40  ;;  %v9301_v39 = vpop.f32.mrf.mxu1  ;;  %7849 = vmatpush3.bf16.msra.mxu0 %v8337_v56  ;;  %7850 = vmatprep.mubr.bf16.mxu0 %v3443_v19 }
 0x17e   : > { %11040 = vst [vmem:[#allocation11_spill] sm:$0xff] %v9301_v39  ;;  %v1793_v35 = vpop.f32.mrf.mxu0 }
 0x17f   : > { %11039 = vst [vmem:[#allocation10_spill] sm:$0xff] %v9299_v45  ;;  %v9307_v36 = vadd.f32 %v1793_v35, %v9138_v55  ;;  %v9309_v51 = vpop.f32.mrf.mxu1 }
 0x180   : > { %11042 = vst [vmem:[#allocation13_spill] sm:$0xff] %v9309_v51  ;;  %v7573_v60 = vpop.f32.mrf.mxu0 }
 0x181   : > { %11041 = vst [vmem:[#allocation12_spill] sm:$0xff] %v9307_v36  ;;  %v9312_v40 = vadd.f32 %v7573_v60, %v9143_v16  ;;  %v9314_v42 = vpop.f32.mrf.mxu1 }
 0x182   : > { %11043 = vst [vmem:[#allocation14_spill] sm:$0xff] %v9314_v42  ;;  %v9316_v39 = vpop.f32.mrf.mxu0 }
 0x183   : > { %v9318_v45 = vpop.f32.mrf.mxu1 }
 0x184   : > { %11044 = vst [vmem:[#allocation15_spill] sm:$0xff] %v9318_v45  ;;  %v7576_v55 = vpop.f32.mrf.mxu0 }
 0x185   : > { %v9321_v35 = vadd.f32 %v7576_v55, %v9152_v24  ;;  %v9323_v51 = vpop.f32.mrf.mxu1 }
 0x186   : > { %11046 = vst [vmem:[#allocation17_spill] sm:$0xff] %v9323_v51  ;;  %v1809_v36 = vpop.f32.mrf.mxu0 }
 0x187   : > { %11045 = vst [vmem:[#allocation16_spill] sm:$0xff] %v9321_v35  ;;  %v9326_v2 = vadd.f32 %v1809_v36, %v9155_v53  ;;  %v9328_v16 = vpop.f32.mrf.mxu1 }
 0x188   : > { %11048 = vst [vmem:[#allocation19_spill] sm:$0xff] %v9328_v16  ;;  %v7577_v60 = vpop.f32.mrf.mxu0 }
 0x189   : > { %11047 = vst [vmem:[#allocation18_spill] sm:$0xff] %v9326_v2  ;;  %v9331_v30 = vadd.f32 %v7577_v60, %v9160_v49  ;;  %v9333_v56 = vpop.f32.mrf.mxu1 }
 0x18a   : > { %11050 = vst [vmem:[#allocation21_spill] sm:$0xff] %v9333_v56  ;;  %v9340_v24 = vpop.f32.mrf.mxu0 }
 0x18b   : > { %11049 = vst [vmem:[#allocation20_spill] sm:$0xff] %v9331_v30  ;;  %11052 = vst [vmem:[#allocation23_spill] sm:$0xff] %v9340_v24  ;;  %v9342_v19 = vpop.f32.mrf.mxu1 }
 0x18c   : > { %11053 = vst [vmem:[#allocation24_spill] sm:$0xff] %v9342_v19  ;;  %v7580_v53 = vpop.f32.mrf.mxu0 }
 0x18d   : > { %v9346_v36 = vadd.f32 %v7580_v53, %v9169_v47  ;;  %v9348_v55 = vpop.f32.mrf.mxu1 }
 0x18e   : > { %11055 = vst [vmem:[#allocation26_spill] sm:$0xff] %v9348_v55  ;;  %v1825_v49 = vpop.f32.mrf.mxu0 }
 0x18f   : > { %11054 = vst [vmem:[#allocation25_spill] sm:$0xff] %v9346_v36  ;;  %v9351_v60 = vadd.f32 %v1825_v49, %v9172_v8  ;;  %v9353_v56 = vpop.f32.mrf.mxu1 }
 0x190   : > { %11057 = vst [vmem:[#allocation28_spill] sm:$0xff] %v9353_v56  ;;  %v7581_v30 = vpop.f32.mrf.mxu0 }
 0x191   : > { %11056 = vst [vmem:[#allocation27_spill] sm:$0xff] %v9351_v60  ;;  %v9356_v16 = vadd.f32 %v7581_v30, %v9176_v22  ;;  %v9358_v2 = vpop.f32.mrf.mxu1 }
 0x192   : > { %11059 = vst [vmem:[#allocation30_spill] sm:$0xff] %v9358_v2  ;;  %v9360_v19 = vpop.f32.mrf.mxu0 }
 0x193   : > { %11058 = vst [vmem:[#allocation29_spill] sm:$0xff] %v9356_v16  ;;  %11060 = vst [vmem:[#allocation31_spill] sm:$0xff] %v9360_v19  ;;  %v9362_v11 = vpop.f32.mrf.mxu1 }
 0x194   : > { %11061 = vst [vmem:[#allocation32_spill] sm:$0xff] %v9362_v11  ;;  %v7584_v47 = vpop.f32.mrf.mxu0 }
 0x195   : > { %v9365_v53 = vadd.f32 %v7584_v47, %v9185_v54  ;;  %v9367_v55 = vpop.f32.mrf.mxu1 }
 0x196   : > { %11063 = vst [vmem:[#allocation34_spill] sm:$0xff] %v9367_v55  ;;  %v1841_v8 = vpop.f32.mrf.mxu0 }
 0x197   : > { %11062 = vst [vmem:[#allocation33_spill] sm:$0xff] %v9365_v53  ;;  %v9370_v49 = vadd.f32 %v1841_v8, %v9188_v44  ;;  %v9372_v56 = vpop.f32.mrf.mxu1 }
 0x198   : > { %11065 = vst [vmem:[#allocation36_spill] sm:$0xff] %v9372_v56  ;;  %v7585_v22 = vpop.f32.mrf.mxu0 }
 0x199   : > { %11064 = vst [vmem:[#allocation35_spill] sm:$0xff] %v9370_v49  ;;  %v9375_v30 = vadd.f32 %v7585_v22, %v9192_v37  ;;  %v9377_v2 = vpop.f32.mrf.mxu1 }
 0x19a   : > { %11067 = vst [vmem:[#allocation38_spill] sm:$0xff] %v9377_v2  ;;  %v9379_v16 = vpop.f32.mrf.mxu0 }
 0x19b   : > { %11066 = vst [vmem:[#allocation37_spill] sm:$0xff] %v9375_v30  ;;  %11068 = vst [vmem:[#allocation39_spill] sm:$0xff] %v9379_v16  ;;  %v9381_v11 = vpop.f32.mrf.mxu1 }
 0x19c   : > { %11069 = vst [vmem:[#allocation40_spill] sm:$0xff] %v9381_v11  ;;  %v7588_v54 = vpop.f32.mrf.mxu0 }
 0x19d   : > { %v9384_v47 = vadd.f32 %v7588_v54, %v9202_v58  ;;  %v9386_v55 = vpop.f32.mrf.mxu1  ;;  %v9403_v58 = vld [vmem:[%s10991_s3 + $0xf8] sm:$0xff]  }
 0x19e   : > { %11071 = vst [vmem:[#allocation42_spill] sm:$0xff] %v9386_v55  ;;  %v1857_v44 = vpop.f32.mrf.mxu0  ;;  %11077 = vst [vmem:[#allocation48_spill] sm:$0xff] %v9403_v58  ;;  %7930 = vmatprep.subr.bf16.mxu0 %v9403_v58 }
 0x19f   : > { %11070 = vst [vmem:[#allocation41_spill] sm:$0xff] %v9384_v47  ;;  %v9389_v8 = vadd.f32 %v1857_v44, %v9205_v29  ;;  %v9391_v56 = vpop.f32.mrf.mxu1 }
 0x1a0   : > { %11073 = vst [vmem:[#allocation44_spill] sm:$0xff] %v9391_v56  ;;  %v7589_v37 = vpop.f32.mrf.mxu0 }
 0x1a1   : > { %11072 = vst [vmem:[#allocation43_spill] sm:$0xff] %v9389_v8  ;;  %v9394_v22 = vadd.f32 %v7589_v37, %v9212_v7  ;;  %v9396_v2 = vpop.f32.mrf.mxu1 }
 0x1a2   : > { %11075 = vst [vmem:[#allocation46_spill] sm:$0xff] %v9396_v2  ;;  %v9398_v30 = vpop.f32.mrf.mxu0 }
 0x1a3   : > { %11074 = vst [vmem:[#allocation45_spill] sm:$0xff] %v9394_v22  ;;  %11076 = vst [vmem:[#allocation47_spill] sm:$0xff] %v9398_v30  ;;  %v9405_v54 = vpop.f32.mrf.mxu1 }
 0x1a4   : > { %11078 = vst [vmem:[#allocation49_spill] sm:$0xff] %v9405_v54  ;;  %v7592_v55 = vpop.f32.mrf.mxu0 }
 0x1a5   : > { %v9409_v29 = vadd.f32 %v7592_v55, %v9224_v6  ;;  %v9411_v44 = vpop.f32.mrf.mxu1 }
 0x1a6   : > { %11080 = vst [vmem:[#allocation51_spill] sm:$0xff] %v9411_v44  ;;  %v1873_v7 = vpop.f32.mrf.mxu0 }
 0x1a7   : > { %11079 = vst [vmem:[#allocation50_spill] sm:$0xff] %v9409_v29  ;;  %v9414_v37 = vadd.f32 %v1873_v7, %v9227_v13  ;;  %v9416_v2 = vpop.f32.mrf.mxu1 }
 0x1a8   : > { %11082 = vst [vmem:[#allocation53_spill] sm:$0xff] %v9416_v2  ;;  %v7593_v22 = vpop.f32.mrf.mxu0 }
 0x1a9   : > { %11081 = vst [vmem:[#allocation52_spill] sm:$0xff] %v9414_v37  ;;  %v9419_v56 = vadd.f32 %v7593_v22, %v9234_v59  ;;  %v9421_v8 = vpop.f32.mrf.mxu1 }
 0x1aa   : > { %11084 = vst [vmem:[#allocation55_spill] sm:$0xff] %v9421_v8  ;;  %v9423_v54 = vpop.f32.mrf.mxu0 }
 0x1ab   : > { %11083 = vst [vmem:[#allocation54_spill] sm:$0xff] %v9419_v56  ;;  %11085 = vst [vmem:[#allocation56_spill] sm:$0xff] %v9423_v54  ;;  %v9425_v30 = vpop.f32.mrf.mxu1 }
 0x1ac   : > { %11086 = vst [vmem:[#allocation57_spill] sm:$0xff] %v9425_v30  ;;  %v7660_v6 = vpop.f32.mrf.mxu0 }
 0x1ad   : > { %v9427_v55 = vpop.f32.mrf.mxu1 }
 0x1ae   : > { %v2371_v44 = vpop.f32.mrf.mxu0 }
 0x1af   : > { %v9429_v29 = vpop.f32.mrf.mxu1 }
 0x1b0   : > { %v9431_v13 = vpop.f32.mrf.mxu0 }
 0x1b1   : > { %v9433_v7 = vpop.f32.mrf.mxu1 }
 0x1b2   : > { %v9435_v2 = vpop.f32.mrf.mxu0 }
 0x1b3   : > { %v9439_v22 = vpop.f32.mrf.mxu1 }
 0x1b4   : > { %v9437_v59 = vpop.f32.mrf.mxu0 }
 0x1b5   : > { %v9445_v30 = vpop.f32.mrf.mxu1 }
 0x1b6   : > { %v9441_v8 = vpop.f32.mrf.mxu0 }
 0x1b7   : > { %v9451_v47 = vpop.f32.mrf.mxu1 }
 0x1b8   : > { %v9443_v56 = vpop.f32.mrf.mxu0 }
 0x1b9   : > { %v9457_v16 = vpop.f32.mrf.mxu1 }
 0x1ba   : > { %v9447_v37 = vpop.f32.mrf.mxu0  ;;  %11090 = vst [vmem:[#allocation61_spill] sm:$0xff] %v9457_v16 }
 0x1bb   : > { %v9463_v60 = vpop.f32.mrf.mxu1 }
 0x1bc   : > { %v9449_v54 = vpop.f32.mrf.mxu0  ;;  %11093 = vst [vmem:[#allocation64_spill] sm:$0xff] %v9463_v60  ;;  %v9485_v60 = vpop.permute.xlu1 %3191 }
 0x1bd   : > { %11087 = vst [vmem:[#allocation58_spill] sm:$0xff] %v9449_v54  ;;  %v9469_v51 = vpop.f32.mrf.mxu1  ;;  %11104 = vst [vmem:[#allocation75_spill] sm:$0xff] %v9485_v60 }
 0x1be   : > { %v9453_v11 = vpop.f32.mrf.mxu0  ;;  %11096 = vst [vmem:[#allocation67_spill] sm:$0xff] %v9469_v51 }
 0x1bf   : > { %11088 = vst [vmem:[#allocation59_spill] sm:$0xff] %v9453_v11  ;;  %v9475_v11 = vpop.f32.mrf.mxu1 }
 0x1c0   : > { %v9455_v58 = vpop.f32.mrf.mxu0  ;;  %11099 = vst [vmem:[#allocation70_spill] sm:$0xff] %v9475_v11  ;;  %v9497_v11 = vpop.permute.xlu1 %3196 }
 0x1c1   : > { %11089 = vst [vmem:[#allocation60_spill] sm:$0xff] %v9455_v58  ;;  %v9477_v58 = vpop.permute.xlu0 %3181  ;;  %11110 = vst [vmem:[#allocation81_spill] sm:$0xff] %v9497_v11 }
 0x1c2   : > { %v9459_v49 = vpop.f32.mrf.mxu0  ;;  %11100 = vst [vmem:[#allocation71_spill] sm:$0xff] %v9477_v58 }
 0x1c3   : > { %11091 = vst [vmem:[#allocation62_spill] sm:$0xff] %v9459_v49 }
 0x1c4   : > { %v9461_v53 = vpop.f32.mrf.mxu0 }
 0x1c5   : > { %11092 = vst [vmem:[#allocation63_spill] sm:$0xff] %v9461_v53  ;;  %v9483_v53 = vpop.f32.mrf.mxu1 }
 0x1c6   : > { %v9465_v36 = vpop.f32.mrf.mxu0  ;;  %11103 = vst [vmem:[#allocation74_spill] sm:$0xff] %v9483_v53 }
 0x1c7   : > { %11094 = vst [vmem:[#allocation65_spill] sm:$0xff] %v9465_v36 }
 0x1c8   : > { %v9467_v19 = vpop.f32.mrf.mxu0 }
 0x1c9   : > { %11095 = vst [vmem:[#allocation66_spill] sm:$0xff] %v9467_v19  ;;  %v9489_v19 = vpop.permute.xlu0 %3186 }
 0x1ca   : > { %v9471_v35 = vpop.f32.mrf.mxu0  ;;  %11106 = vst [vmem:[#allocation77_spill] sm:$0xff] %v9489_v19  ;;  %v9511_v19 = vpop.permute.xlu1 %3206 }
 0x1cb   : > { %11097 = vst [vmem:[#allocation68_spill] sm:$0xff] %v9471_v35  ;;  %v9493_v35 = vpop.f32.mrf.mxu1  ;;  %11117 = vst [vmem:[#allocation88_spill] sm:$0xff] %v9511_v19 }
 0x1cc   : > { %v9473_v24 = vpop.f32.mrf.mxu0  ;;  %11108 = vst [vmem:[#allocation79_spill] sm:$0xff] %v9493_v35 }
 0x1cd   : > { %11098 = vst [vmem:[#allocation69_spill] sm:$0xff] %v9473_v24 }
 0x1ce   : > { %v9479_v45 = vpop.f32.mrf.mxu0 }
 0x1cf   : > { %11101 = vst [vmem:[#allocation72_spill] sm:$0xff] %v9479_v45  ;;  %v9501_v45 = vpop.f32.mrf.mxu1 }
 0x1d0   : > { %v9481_v49 = vpop.f32.mrf.mxu0  ;;  %11112 = vst [vmem:[#allocation83_spill] sm:$0xff] %v9501_v45  ;;  %v1584_v45 = vadd.f32 %v9117_v26, %v9113_v25  ;;  %v2196_v26 = vadd.f32 %v9257_v34, %v9255_v18  ;;  %v994_v18 = vadd.f32 %v9103_v57, %v9101_v61  ;;  %v1596_v61 = vadd.f32 %v9162_v50, %v9158_v5 }
 0x1d1   : > { %11102 = vst [vmem:[#allocation73_spill] sm:$0xff] %v9481_v49  ;;  %v9503_v49 = vpop.permute.xlu0 %3201  ;;  %v2199_v57 = vadd.f32 %v9272_v10, %v9270_v33 }
 0x1d2   : > { %v9487_v36 = vpop.f32.mrf.mxu0  ;;  %11113 = vst [vmem:[#allocation84_spill] sm:$0xff] %v9503_v49 }
 0x1d3   : > { %11105 = vst [vmem:[#allocation76_spill] sm:$0xff] %v9487_v36  ;;  %v9509_v36 = vpop.f32.mrf.mxu1  ;;  %v2504_v50 = vadd.f32 %v9437_v59, %v2199_v57  ;;  %v11132_v59 = vld [vmem:[#allocation5_spill] sm:$0xff] }
 0x1d4   : > { %v9491_v51 = vpop.f32.mrf.mxu0  ;;  %11116 = vst [vmem:[#allocation87_spill] sm:$0xff] %v9509_v36  ;;  %v2195_v36 = vadd.f32 %v9244_v63, %v9242_v52  ;;  %v946_v52 = vadd.f32 %v9070_v41, %v9068_v32  ;;  %v1588_v32 = vadd.f32 %v9131_v20, %v9127_v9  ;;  %v1592_v41 = vadd.f32 %v9145_v17, %v9141_v15 }
 0x1d5   : > { %11107 = vst [vmem:[#allocation78_spill] sm:$0xff] %v9491_v51  ;;  %v9515_v35 = vpop.permute.xlu0 %3211  ;;  %v9519_v42 = vpop.f32.mrf.mxu1 }
 0x1d6   : > { %v9495_v24 = vpop.f32.mrf.mxu0  ;;  %11119 = vst [vmem:[#allocation90_spill] sm:$0xff] %v9515_v35  ;;  %11121 = vst [vmem:[#allocation92_spill] sm:$0xff] %v9519_v42  ;;  %v2500_v42 = vadd.f32 %v7660_v6, %v2195_v36  ;;  %v2501_v36 = vadd.f32 %v9431_v13, %v2196_v26 }
 0x1d7   : > { %11109 = vst [vmem:[#allocation80_spill] sm:$0xff] %v9495_v24  ;;  %v9531_v19 = vpop.f32.mrf.mxu1 }
 0x1d8   : > { %v9499_v54 = vpop.f32.mrf.mxu0  ;;  %v2805_v34 = vadd.f32 %v9427_v55, %v2500_v42  ;;  %v2806_v5 = vadd.f32 %v9433_v7, %v2501_v36  ;;  %v11131_v7 = vld [vmem:[#allocation4_spill] sm:$0xff] }
 0x1d9   : > { %11111 = vst [vmem:[#allocation82_spill] sm:$0xff] %v9499_v54  ;;  %v9534_v49 = vpop.permute.xlu0 %3221 }
 0x1da   : > { %v9505_v53 = vpop.f32.mrf.mxu0  ;;  %11125 = vst [vmem:[#allocation96_spill] sm:$0xff] %v9534_v49 }
 0x1db   : > { %11114 = vst [vmem:[#allocation85_spill] sm:$0xff] %v9505_v53  ;;  %v9525_v53 = vpop.permute.xlu1 %3216 }
 0x1dc   : > { %v9507_v16 = vpop.f32.mrf.mxu0  ;;  %11123 = vst [vmem:[#allocation94_spill] sm:$0xff] %v9525_v53  ;;  %v9544_v53 = vpop.f32.mrf.mxu1 }
 0x1dd   : > { %11115 = vst [vmem:[#allocation86_spill] sm:$0xff] %v9507_v16 }
 0x1de   : > { %v9513_v51 = vpop.f32.mrf.mxu0  ;;  %v9579_v20 = vpop.f32.mrf.mxu1 }
 0x1df   : > { %11118 = vst [vmem:[#allocation89_spill] sm:$0xff] %v9513_v51  ;;  %v1889_v51 = vadd.f32 %v9259_v38, %v1584_v45  ;;  %v962_v45 = vadd.f32 %v9080_v14, %v9078_v62  ;;  %v9551_v38 = vpop.permute.xlu1 %3226  ;;  %v1295_v62 = vadd.f32 %v9174_v48, %v946_v52 }
 0x1e0   : > { %v9517_v24 = vpop.f32.mrf.mxu0  ;;  %11126 = vst [vmem:[#allocation97_spill] sm:$0xff] %v9551_v38  ;;  %v9599_v6 = vpop.f32.mrf.mxu1 }
 0x1e1   : > { %11120 = vst [vmem:[#allocation91_spill] sm:$0xff] %v9517_v24  ;;  %v2194_v63 = vadd.f32 %v9267_v46, %v1889_v51  ;;  %v9567_v51 = vpop.permute.xlu0 %3231  ;;  %v1299_v17 = vadd.f32 %v9190_v43, %v962_v45  ;;  %v2197_v46 = vadd.f32 %v9283_v0, %v9281_v1  ;;  %v1307_v43 = vadd.f32 %v9229_v12, %v994_v18 }
 0x1e2   : > { %v9521_v54 = vpop.f32.mrf.mxu0  ;;  %11127 = vst [vmem:[#allocation98_spill] sm:$0xff] %v9567_v51 }
 0x1e3   : > { %11122 = vst [vmem:[#allocation93_spill] sm:$0xff] %v9521_v54  ;;  %v2193_v54 = vadd.f32 %v9252_v21, %v9250_v3  ;;  %v978_v21 = vadd.f32 %v9093_v23, %v9091_v27  ;;  %v2499_v14 = vadd.f32 %v9435_v2, %v2194_v63  ;;  %v9572_v23 = vld [vmem:[%s10990_s2] ss:$0 sm:$0xff]  ;;  %v1893_v2 = vadd.f32 %v9290_v4, %v1588_v32  ;;  %v9596_v0 = vpop.permute.xlu1 %3236  ;;  %v11135_v32 = vld [vmem:[#allocation6_spill] sm:$0xff] }
 0x1e4   : > { %v9527_v16 = vpop.f32.mrf.mxu0  ;;  %v9606_v12 = vadd.f32 %v11131_v7, %v1299_v17  ;;  %v9627_v17 = vpop.f32.mrf.mxu1  ;;  %v11146_v7 = vld [vmem:[#allocation23_spill] sm:$0xff] }
 0x1e5   : > { %11124 = vst [vmem:[#allocation95_spill] sm:$0xff] %v9527_v16  ;;  %v2498_v16 = vadd.f32 %v2371_v44, %v2193_v54  ;;  %v1303_v48 = vadd.f32 %v9207_v31, %v978_v21  ;;  %v11128_v54 = vld [vmem:[#allocation7_spill] sm:$0xff]  ;;  %v11129_v31 = vld [vmem:[#allocation8_spill] sm:$0xff]  ;;  %v2804_v1 = vadd.f32 %v9439_v22, %v2499_v14  ;;  %v2502_v44 = vadd.f32 %v9441_v8, %v2197_v46  ;;  %v11133_v22 = vld [vmem:[#allocation9_spill] sm:$0xff]  ;;  %v9613_v63 = vpop.permute.xlu0 %3241 }
 0x1e6   : > { %v9536_v24 = vpop.f32.mrf.mxu0  ;;  %11130 = vst [vmem:[#allocation7_spill] sm:$0xff] %v9596_v0  ;;  %v2198_v52 = vadd.f32 %v11133_v22, %v1893_v2  ;;  %11134 = vst [vmem:[#allocation8_spill] sm:$0xff] %v9613_v63  ;;  %v2809_v21 = vadd.f32 %v9445_v30, %v2504_v50  ;;  %v11136_v14 = vld [vmem:[#allocation10_spill] sm:$0xff] }
 0x1e7   : > { %v2803_v9 = vadd.f32 %v9429_v29, %v2498_v16  ;;  %v9590_v16 = vadd.f32 %v9178_v28, %v1295_v62  ;;  %v2200_v29 = vadd.f32 %v11129_v31, %v11128_v54  ;;  %v9609_v26 = vadd.f32 %v11132_v59, %v1303_v48  ;;  %v9637_v54 = vpop.permute.xlu1 %3246  ;;  %v11144_v31 = vld [vmem:[#allocation77_spill] sm:$0xff] }
 0x1e8   : > { %v9540_v25 = vpop.f32.mrf.mxu0  ;;  %v9620_v62 = vadd.f32 %v11135_v32, %v1307_v43  ;;  %v2807_v30 = vadd.f32 %v9451_v47, %v2502_v44  ;;  %11143 = vst [vmem:[#allocation4_spill] sm:$0xff] %v9637_v54  ;;  %v1901_v59 = vadd.f32 %v11146_v7, %v1596_v61  ;;  %v8339_v61 = vld [vmem:[%s10991_s3 + $0xb0] sm:$0xff]  }
 0x1e9   : > { %v2505_v45 = vadd.f32 %v9443_v56, %v2200_v29  ;;  %v1897_v56 = vadd.f32 %v9316_v39, %v1592_v41  ;;  %v11141_v39 = vld [vmem:[#allocation61_spill] sm:$0xff]  ;;  %v11161_v7 = vld [vmem:[#allocation62_spill] sm:$0xff] }
 0x1ea   : > { %v9553_v3 = vpop.f32.mrf.mxu0 }
 0x1eb   : > { %v2810_v41 = vadd.f32 %v11141_v39, %v2505_v45 }
 0x1ec   : > { %v7756_v27 = vpop.f32.mrf.mxu0 }
 0x1ed   : > { %v3110_v15 = vadd.f32 %v7756_v27, %v2805_v34  ;;  %v11137_v27 = vld [vmem:[#allocation11_spill] sm:$0xff] }
 0x1ee   : > { %v2981_v42 = vpop.f32.mrf.mxu0  ;;  %v2203_v57 = vadd.f32 %v11137_v27, %v11136_v14  ;;  %v11150_v27 = vld [vmem:[#allocation16_spill] sm:$0xff] }
 0x1ef   : > { %v3149_v33 = vadd.f32 %v9572_v23, %v3110_v15  ;;  %v3108_v10 = vadd.f32 %v2981_v42, %v2803_v9  ;;  %v2503_v9 = vadd.f32 %v9447_v37, %v2198_v52  ;;  %v11138_v42 = vld [vmem:[#allocation12_spill] sm:$0xff]  ;;  %v11142_v37 = vld [vmem:[#allocation58_spill] sm:$0xff]  ;;  %v11148_v52 = vld [vmem:[#allocation59_spill] sm:$0xff] }
 0x1f0   : > { %v7757_v4 = vpop.f32.mrf.mxu0  ;;  %v2508_v43 = vadd.f32 %v11142_v37, %v2203_v57  ;;  %v11151_v57 = vld [vmem:[#allocation17_spill] sm:$0xff] }
 0x1f1   : > { %v9602_v55 = vmul.f32 %v9485_v60, %v3149_v33  ;;  %v3147_v28 = vadd.f32 %v9572_v23, %v3108_v10  ;;  %v3111_v13 = vadd.f32 %v7757_v4, %v2806_v5  ;;  %v11139_v5 = vld [vmem:[#allocation13_spill] sm:$0xff]  ;;  %v11140_v33 = vld [vmem:[#allocation14_spill] sm:$0xff] }
 0x1f2   : > { %v2984_v8 = vpop.f32.mrf.mxu0  ;;  %v2201_v50 = vadd.f32 %v11139_v5, %v11138_v42  ;;  %v2204_v10 = vadd.f32 %v11140_v33, %v9312_v40  ;;  %v11147_v40 = vld [vmem:[#allocation64_spill] sm:$0xff]  ;;  %v11157_v33 = vld [vmem:[#allocation67_spill] sm:$0xff] }
 0x1f3   : > { %3377 = vst [vmem:[#allocation3 + $0x30] sm:$0xff] %v9602_v55  ;;  %v3339_v18 = vmul.f32 %v9477_v58, %v3147_v28  ;;  %v3150_v34 = vadd.f32 %v9572_v23, %v3111_v13  ;;  %v3109_v36 = vadd.f32 %v2984_v8, %v2804_v1  ;;  %v11145_v28 = vld [vmem:[#allocation15_spill] sm:$0xff]  ;;  %v2808_v22 = vadd.f32 %v11147_v40, %v2503_v9  ;;  %v9646_v8 = vpop.permute.xlu0 %3251  ;;  %v11152_v9 = vld [vmem:[#allocation18_spill] sm:$0xff]  ;;  %v11156_v42 = vld [vmem:[#allocation60_spill] sm:$0xff] }
 0x1f4   : > { %v7760_v15 = vpop.f32.mrf.mxu0  ;;  %v2202_v13 = vadd.f32 %v11145_v28, %v1897_v56  ;;  %v2506_v45 = vadd.f32 %v11148_v52, %v2201_v50  ;;  %11149 = vst [vmem:[#allocation5_spill] sm:$0xff] %v9646_v8  ;;  %v2207_v56 = vadd.f32 %v11151_v57, %v11150_v27  ;;  %v2509_v5 = vadd.f32 %v11156_v42, %v2204_v10  ;;  %v9674_v10 = vpop.permute.xlu1 %3256  ;;  %v11171_v42 = vld [vmem:[#allocation63_spill] sm:$0xff] }
 0x1f5   : > { %3375 = vst [vmem:[#allocation3 + $0x20] sm:$0xff] %v3339_v18  ;;  %v3342_v48 = vmul.f32 %v9497_v11, %v3150_v34  ;;  %v3148_v46 = vadd.f32 %v9572_v23, %v3109_v36  ;;  %v3114_v2 = vadd.f32 %v7760_v15, %v2809_v21  ;;  %v9648_v34 = vpop.f32.mrf.mxu1  ;;  %v11153_v15 = vld [vmem:[#allocation19_spill] sm:$0xff]  ;;  %v2813_v39 = vadd.f32 %v11157_v33, %v2508_v43  ;;  %v11163_v43 = vld [vmem:[#allocation22_spill] sm:$0xff] }
 0x1f6   : > { %v2997_v47 = vpop.f32.mrf.mxu0  ;;  %v2507_v40 = vadd.f32 %v11161_v7, %v2202_v13  ;;  %11162 = vst [vmem:[#allocation9_spill] sm:$0xff] %v9674_v10  ;;  %v11166_v13 = vld [vmem:[#allocation25_spill] sm:$0xff] }
 0x1f7   : > { %3378 = vst [vmem:[#allocation3 + $0x38] sm:$0xff] %v3342_v48  ;;  %v3340_v29 = vmul.f32 %v11144_v31, %v3148_v46  ;;  %v3153_v1 = vadd.f32 %v9572_v23, %v3114_v2  ;;  %v3112_v4 = vadd.f32 %v2997_v47, %v2807_v30  ;;  %v3509_v44 = vpack.c.bf16 %v3342_v48, %v9602_v55  ;;  %v11154_v48 = vld [vmem:[#allocation20_spill] sm:$0xff]  ;;  %v11155_v46 = vld [vmem:[#allocation21_spill] sm:$0xff]  ;;  %v9678_v27 = vpop.f32.mrf.mxu1  ;;  %v9694_v33 = vpop.permute.xlu0 %3261 }
 0x1f8   : > { %v7761_v21 = vpop.f32.mrf.mxu0  ;;  %v2205_v30 = vadd.f32 %v11153_v15, %v11152_v9  ;;  %v2208_v2 = vadd.f32 %v11155_v46, %v11154_v48  ;;  %v11168_v9 = vld [vmem:[#allocation27_spill] sm:$0xff]  ;;  %v11169_v15 = vld [vmem:[#allocation28_spill] sm:$0xff]  ;;  %v11170_v48 = vld [vmem:[#allocation74_spill] sm:$0xff]  ;;  %11172 = vst [vmem:[#allocation6_spill] sm:$0xff] %v9694_v33 }
 0x1f9   : > { %3376 = vst [vmem:[#allocation3 + $0x28] sm:$0xff] %v3340_v29  ;;  %v9651_v36 = vmul.f32 %v9515_v35, %v3153_v1  ;;  %v3151_v32 = vadd.f32 %v9572_v23, %v3112_v4  ;;  %v3115_v55 = vadd.f32 %v7761_v21, %v2810_v41  ;;  %v3508_v14 = vpack.c.bf16 %v3340_v29, %v3339_v18  ;;  %v11158_v18 = vld [vmem:[#allocation84_spill] sm:$0xff]  ;;  %v11160_v4 = vld [vmem:[#allocation31_spill] sm:$0xff]  ;;  %v11164_v21 = vld [vmem:[#allocation70_spill] sm:$0xff] }
 0x1fa   : > { %v3000_v50 = vpop.f32.mrf.mxu0  ;;  %v11159_v29 = vld [vmem:[#allocation24_spill] sm:$0xff]  ;;  %v1905_v28 = vadd.f32 %v11160_v4, %v9590_v16  ;;  %v8340_v16 = vld [vmem:[%s10991_s3 + $0xa8] sm:$0xff]   ;;  %v2814_v46 = vadd.f32 %v11170_v48, %v2509_v5  ;;  %v11177_v5 = vld [vmem:[#allocation79_spill] sm:$0xff] }
 0x1fb   : > { %3381 = vst [vmem:[#allocation3 + $0x50] sm:$0xff] %v9651_v36  ;;  %v9667_v41 = vmul.f32 %v11158_v18, %v3151_v32  ;;  %v3154_v37 = vadd.f32 %v9572_v23, %v3115_v55  ;;  %v3113_v47 = vadd.f32 %v3000_v50, %v2808_v22  ;;  %7803 = vmatmul.mubr.bf16.vlgmr.msra.gmra.mxu1 %v3508_v14  ;;  %v11165_v22 = vld [vmem:[#allocation94_spill] sm:$0xff] }
 0x1fc   : > { %v2206_v1 = vadd.f32 %v11159_v29, %v1901_v59  ;;  %v7764_v52 = vpop.f32.mrf.mxu0  ;;  %7806 = vmatprep.mubr.bf16.mxu1 %v3509_v44  ;;  %7883 = vmatpush3.bf16.msra.mxu1 %v11163_v43  ;;  %v2811_v32 = vadd.f32 %v11164_v21, %v2506_v45  ;;  %v11167_v44 = vld [vmem:[#allocation26_spill] sm:$0xff]  ;;  %v9690_v45 = vadd.f32 %v11169_v15, %v11168_v9  ;;  %v11178_v9 = vld [vmem:[#allocation65_spill] sm:$0xff] }
 0x1fd   : > { %3379 = vst [vmem:[#allocation3 + $0x40] sm:$0xff] %v9667_v41  ;;  %v3346_v55 = vmul.f32 %v11165_v22, %v3154_v37  ;;  %v3152_v59 = vadd.f32 %v9572_v23, %v3113_v47  ;;  %v3118_v14 = vadd.f32 %v7764_v52, %v2813_v39  ;;  %7884 = vmatprep.subr.bf16.mxu1 %v8339_v61  ;;  %v11173_v39 = vld [vmem:[#allocation88_spill] sm:$0xff]  ;;  %v11174_v52 = vld [vmem:[#allocation29_spill] sm:$0xff]  ;;  %v11175_v43 = vld [vmem:[#allocation30_spill] sm:$0xff] }
 0x1fe   : > { %v2211_v57 = vadd.f32 %v11167_v44, %v11166_v13  ;;  %v2512_v50 = vadd.f32 %v11171_v42, %v2207_v56  ;;  %v3013_v37 = vpop.f32.mrf.mxu0  ;;  %v9701_v21 = vadd.f32 %v11175_v43, %v11174_v52  ;;  %v11176_v13 = vld [vmem:[#allocation32_spill] sm:$0xff]  ;;  %v2812_v56 = vadd.f32 %v11177_v5, %v2507_v40  ;;  %v11179_v40 = vld [vmem:[#allocation33_spill] sm:$0xff]  ;;  %v11181_v43 = vld [vmem:[#allocation66_spill] sm:$0xff] }
 0x1ff   : > { %3382 = vst [vmem:[#allocation3 + $0x58] sm:$0xff] %v3346_v55  ;;  %v3344_v47 = vmul.f32 %v11173_v39, %v3152_v59  ;;  %v3157_v29 = vadd.f32 %v9572_v23, %v3118_v14  ;;  %v3116_v4 = vadd.f32 %v3013_v37, %v2811_v32  ;;  %v3511_v7 = vpack.c.bf16 %v3346_v55, %v9651_v36  ;;  %v3413_v42 = vld [vmem:[#allocation3 + $0x1f] sm:$0xff]  ;;  %v9708_v14 = vpop.f32.mrf.mxu1  ;;  %v3416_v37 = vld [vmem:[#allocation3 + $0x37] sm:$0xff] }
 0x200   : > { %v9704_v44 = vadd.f32 %v11176_v13, %v1905_v28  ;;  %v2510_v15 = vadd.f32 %v11178_v9, %v2205_v30  ;;  %v7765_v48 = vpop.f32.mrf.mxu0  ;;  %v3414_v18 = vld [vmem:[#allocation3 + $0x27] sm:$0xff]  ;;  %v3415_v59 = vld [vmem:[#allocation3 + $0x2f] sm:$0xff]  ;;  %7885 = vmatpush3.bf16.msra.mxu1 %v8339_v61  ;;  %v2513_v13 = vadd.f32 %v11181_v43, %v2208_v2  ;;  %v9721_v61 = vpop.permute.xlu1 %3266 }
 0x201   : > { %3380 = vst [vmem:[#allocation3 + $0x48] sm:$0xff] %v3344_v47  ;;  %v9711_v36 = vmul.f32 %v9567_v51, %v3157_v29  ;;  %v3155_v32 = vadd.f32 %v9572_v23, %v3116_v4  ;;  %v3119_v55 = vadd.f32 %v7765_v48, %v2814_v46  ;;  %v9714_v28 = vpack.c.bf16 %v3414_v18, %v3413_v42  ;;  %v11180_v30 = vld [vmem:[#allocation34_spill] sm:$0xff]  ;;  %v8341_v18 = vld [vmem:[%s10991_s3 + $0xa0] sm:$0xff]   ;;  %v11183_v46 = vld [vmem:[#allocation83_spill] sm:$0xff]  ;;  %v9742_v43 = vpop.permute.xlu0 %3271 }
 0x202   : > { %7886 = vmatprep.subr.bf16.mxu1 %v8340_v16  ;;  %v9718_v52 = vadd.f32 %v11180_v30, %v11179_v40  ;;  %11182 = vst [vmem:[#allocation10_spill] sm:$0xff] %v9721_v61  ;;  %v3016_v5 = vpop.f32.mrf.mxu0  ;;  %v9723_v9 = vpack.c.bf16 %v3416_v37, %v3415_v59  ;;  %v3510_v29 = vpack.c.bf16 %v3344_v47, %v9667_v41  ;;  %v8344_v41 = vld [vmem:[%s10991_s3 + $0xf0] sm:$0xff]   ;;  %v11184_v47 = vld [vmem:[#allocation87_spill] sm:$0xff]  ;;  %v11185_v37 = vld [vmem:[#allocation68_spill] sm:$0xff] }
 0x203   : > { %v2817_v4 = vadd.f32 %v11183_v46, %v2512_v50  ;;  %3385 = vst [vmem:[#allocation3 + $0x70] sm:$0xff] %v9711_v36  ;;  %v9732_v48 = vmul.f32 %v9534_v49, %v3155_v32  ;;  %v3158_v2 = vadd.f32 %v9572_v23, %v3119_v55  ;;  %v3117_v42 = vadd.f32 %v3016_v5, %v2812_v56  ;;  %v11186_v30 = vld [vmem:[#allocation69_spill] sm:$0xff]  ;;  %v9745_v32 = vpop.f32.mrf.mxu1 }
 0x204   : > { %7851 = vmatmul.mubr.bf16.vlgmr.msra.gmra.mxu0 %v9714_v28  ;;  %v2815_v59 = vadd.f32 %v11184_v47, %v2510_v15  ;;  %v2511_v40 = vadd.f32 %v11185_v37, %v2206_v1  ;;  %v2516_v50 = vadd.f32 %v11186_v30, %v2211_v57  ;;  %11187 = vst [vmem:[#allocation11_spill] sm:$0xff] %v9742_v43  ;;  %v7768_v46 = vpop.f32.mrf.mxu0  ;;  %v11188_v1 = vld [vmem:[#allocation35_spill] sm:$0xff]  ;;  %v11189_v15 = vld [vmem:[#allocation36_spill] sm:$0xff] }
 0x205   : > { %7854 = vmatprep.mubr.bf16.mxu0 %v9723_v9  ;;  %7807 = vmatmul.mubr.bf16.gmra.mxu1 %v3510_v29  ;;  %3383 = vst [vmem:[#allocation3 + $0x60] sm:$0xff] %v9732_v48  ;;  %v3350_v56 = vmul.f32 %v9596_v0, %v3158_v2  ;;  %v3156_v55 = vadd.f32 %v9572_v23, %v3117_v42  ;;  %v11190_v47 = vld [vmem:[#allocation39_spill] sm:$0xff]  ;;  %v11191_v30 = vld [vmem:[#allocation92_spill] sm:$0xff] }
 0x206   : > { %v3122_v5 = vadd.f32 %v7768_v46, %v2817_v4  ;;  %7810 = vmatprep.mubr.bf16.mxu1 %v3511_v7  ;;  %7887 = vmatpush3.bf16.msra.mxu1 %v8340_v16  ;;  %v9752_v57 = vadd.f32 %v11189_v15, %v11188_v1  ;;  %v1909_v37 = vadd.f32 %v11190_v47, %v9606_v12  ;;  %v3029_v49 = vpop.f32.mrf.mxu0  ;;  %v8342_v2 = vld [vmem:[%s10991_s3 + $0x98] sm:$0xff]   ;;  %v11192_v0 = vld [vmem:[#allocation48_spill] sm:$0xff]  ;;  %v8346_v12 = vld [vmem:[%s10991_s3 + $0xe8] sm:$0xff]  }
 0x207   : > { %v2818_v29 = vadd.f32 %v11191_v30, %v2513_v13  ;;  %7888 = vmatprep.subr.bf16.mxu1 %v8341_v18  ;;  %7931 = vmatpush3.bf16.msra.mxu0 %v11192_v0  ;;  %3386 = vst [vmem:[#allocation3 + $0x78] sm:$0xff] %v3350_v56  ;;  %v3348_v16 = vmul.f32 %v9551_v38, %v3156_v55  ;;  %v11193_v13 = vld [vmem:[#allocation37_spill] sm:$0xff]  ;;  %v11194_v46 = vld [vmem:[#allocation38_spill] sm:$0xff]  ;;  %v11195_v0 = vld [vmem:[#allocation72_spill] sm:$0xff]  ;;  %v9777_v30 = vpop.f32.mrf.mxu1 }
 0x208   : > { %v3161_v7 = vadd.f32 %v9572_v23, %v3122_v5  ;;  %v3120_v4 = vadd.f32 %v3029_v49, %v2815_v59  ;;  %v3513_v42 = vpack.c.bf16 %v3350_v56, %v9711_v36  ;;  %7932 = vmatprep.subr.bf16.mxu0 %v8344_v41  ;;  %v9769_v1 = vadd.f32 %v11194_v46, %v11193_v13  ;;  %v9775_v5 = vpop.permute.xlu1 %3276  ;;  %v7769_v49 = vpop.f32.mrf.mxu0  ;;  %v3417_v36 = vld [vmem:[#allocation3 + $0x3f] sm:$0xff]  ;;  %v3418_v59 = vld [vmem:[#allocation3 + $0x47] sm:$0xff]  ;;  %v3419_v56 = vld [vmem:[#allocation3 + $0x4f] sm:$0xff] }
 0x209   : > { %v2816_v15 = vadd.f32 %v9531_v19, %v2511_v40  ;;  %v2514_v47 = vadd.f32 %v11195_v0, %v9690_v45  ;;  %v2821_v55 = vadd.f32 %v9544_v53, %v2516_v50  ;;  %11196 = vst [vmem:[#allocation12_spill] sm:$0xff] %v9775_v5  ;;  %3384 = vst [vmem:[#allocation3 + $0x68] sm:$0xff] %v3348_v16  ;;  %v3420_v45 = vld [vmem:[#allocation3 + $0x57] sm:$0xff]  ;;  %v11197_v53 = vld [vmem:[#allocation73_spill] sm:$0xff]  ;;  %v9787_v46 = vpop.permute.xlu0 %3281 }
 0x20a   : > { %v9780_v38 = vmul.f32 %v9646_v8, %v3161_v7  ;;  %v3159_v13 = vadd.f32 %v9572_v23, %v3120_v4  ;;  %v3123_v19 = vadd.f32 %v7769_v49, %v2818_v29  ;;  %v9783_v40 = vpack.c.bf16 %v3418_v59, %v3417_v36  ;;  %7889 = vmatpush3.bf16.msra.mxu1 %v8341_v18  ;;  %v3032_v0 = vpop.f32.mrf.mxu0  ;;  %v8345_v29 = vld [vmem:[%s10991_s3 + $0x90] sm:$0xff]  }
 0x20b   : > { %v2517_v50 = vadd.f32 %v11197_v53, %v9701_v21  ;;  %11198 = vst [vmem:[#allocation13_spill] sm:$0xff] %v9787_v46  ;;  %v9789_v51 = vpack.c.bf16 %v3420_v45, %v3419_v56  ;;  %v3512_v39 = vpack.c.bf16 %v3348_v16, %v9732_v48  ;;  %7890 = vmatprep.subr.bf16.mxu1 %v8342_v2  ;;  %v8347_v48 = vld [vmem:[%s10991_s3 + $0xe0] sm:$0xff]   ;;  %v11200_v49 = vld [vmem:[#allocation78_spill] sm:$0xff] }
 0x20c   : > { %7933 = vmatpush3.bf16.msra.mxu0 %v8344_v41  ;;  %3389 = vst [vmem:[#allocation3 + $0x90] sm:$0xff] %v9780_v38  ;;  %v9797_v18 = vmul.f32 %v9613_v63, %v3159_v13  ;;  %v3162_v21 = vadd.f32 %v9572_v23, %v3123_v19  ;;  %v3121_v7 = vadd.f32 %v3032_v0, %v2816_v15  ;;  %v11199_v16 = vld [vmem:[#allocation76_spill] sm:$0xff]  ;;  %v7772_v59 = vpop.f32.mrf.mxu0  ;;  %v9810_v15 = vpop.f32.mrf.mxu1  ;;  %v11202_v19 = vld [vmem:[#allocation41_spill] sm:$0xff] }
 0x20d   : > { %7855 = vmatmul.mubr.bf16.gmra.mxu0 %v9783_v40  ;;  %7934 = vmatprep.subr.bf16.mxu0 %v8346_v12  ;;  %v2819_v41 = vadd.f32 %v9579_v20, %v2514_v47  ;;  %v2515_v4 = vadd.f32 %v11199_v16, %v9704_v44  ;;  %v2520_v36 = vadd.f32 %v11200_v49, %v9718_v52  ;;  %v11201_v44 = vld [vmem:[#allocation40_spill] sm:$0xff]  ;;  %v11203_v52 = vld [vmem:[#allocation42_spill] sm:$0xff] }
 0x20e   : > { %7858 = vmatprep.mubr.bf16.mxu0 %v9789_v51  ;;  %7811 = vmatmul.mubr.bf16.gmra.mxu1 %v3512_v39  ;;  %3387 = vst [vmem:[#allocation3 + $0x80] sm:$0xff] %v9797_v18  ;;  %v9814_v56 = vmul.f32 %v9674_v10, %v3162_v21  ;;  %v3160_v13 = vadd.f32 %v9572_v23, %v3121_v7  ;;  %v9821_v39 = vpop.permute.xlu1 %3286  ;;  %v3045_v0 = vpop.f32.mrf.mxu0  ;;  %v8348_v21 = vld [vmem:[%s10991_s3 + $0x88] sm:$0xff]   ;;  %v11206_v16 = vld [vmem:[#allocation80_spill] sm:$0xff] }
 0x20f   : > { %v3126_v20 = vadd.f32 %v7772_v59, %v2821_v55  ;;  %7814 = vmatprep.mubr.bf16.mxu1 %v3513_v42  ;;  %7891 = vmatpush3.bf16.msra.mxu1 %v8342_v2  ;;  %v2214_v47 = vadd.f32 %v11201_v44, %v1909_v37  ;;  %v2219_v45 = vadd.f32 %v11203_v52, %v11202_v19  ;;  %v9842_v44 = vpop.f32.mrf.mxu1 }
 0x210   : > { %v2822_v53 = vadd.f32 %v9599_v6, %v2517_v50  ;;  %11204 = vst [vmem:[#allocation14_spill] sm:$0xff] %v9821_v39  ;;  %7892 = vmatprep.subr.bf16.mxu1 %v8345_v29  ;;  %7935 = vmatpush3.bf16.msra.mxu0 %v8346_v12  ;;  %3390 = vst [vmem:[#allocation3 + $0x98] sm:$0xff] %v9814_v56  ;;  %v3352_v2 = vmul.f32 %v9637_v54, %v3160_v13  ;;  %v8349_v6 = vld [vmem:[%s10991_s3 + $0xd8] sm:$0xff]   ;;  %v9840_v13 = vpop.permute.xlu0 %3291 }
 0x211   : > { %v3165_v37 = vadd.f32 %v9572_v23, %v3126_v20  ;;  %v3124_v42 = vadd.f32 %v3045_v0, %v2819_v41  ;;  %v3515_v55 = vpack.c.bf16 %v9814_v56, %v9780_v38  ;;  %7936 = vmatprep.subr.bf16.mxu0 %v8347_v48  ;;  %v11205_v12 = vld [vmem:[#allocation47_spill] sm:$0xff]  ;;  %v2820_v7 = vadd.f32 %v9627_v17, %v2515_v4  ;;  %v7773_v41 = vpop.f32.mrf.mxu0  ;;  %v3422_v38 = vld [vmem:[#allocation3 + $0x67] sm:$0xff]  ;;  %v3423_v56 = vld [vmem:[#allocation3 + $0x6f] sm:$0xff] }
 0x212   : > { %v1913_v50 = vadd.f32 %v11205_v12, %v9609_v26  ;;  %v2518_v49 = vadd.f32 %v11206_v16, %v9752_v57  ;;  %v2825_v59 = vadd.f32 %v9648_v34, %v2520_v36  ;;  %11207 = vst [vmem:[#allocation61_spill] sm:$0xff] %v9840_v13  ;;  %v3421_v20 = vld [vmem:[#allocation3 + $0x5f] sm:$0xff]  ;;  %3388 = vst [vmem:[#allocation3 + $0x88] sm:$0xff] %v3352_v2  ;;  %v3424_v57 = vld [vmem:[#allocation3 + $0x77] sm:$0xff] }
 0x213   : > { %v9845_v19 = vmul.f32 %v9742_v43, %v3165_v37  ;;  %v3163_v26 = vadd.f32 %v9572_v23, %v3124_v42  ;;  %v3127_v17 = vadd.f32 %v7773_v41, %v2822_v53  ;;  %v9848_v4 = vpack.c.bf16 %v3422_v38, %v3421_v20  ;;  %7893 = vmatpush3.bf16.msra.mxu1 %v8345_v29  ;;  %v11208_v34 = vld [vmem:[#allocation82_spill] sm:$0xff]  ;;  %v3048_v52 = vpop.f32.mrf.mxu0  ;;  %v8351_v37 = vld [vmem:[%s10991_s3 + $0x80] sm:$0xff]   ;;  %v9870_v20 = vpop.permute.xlu1 %3296 }
 0x214   : > { %v2521_v36 = vadd.f32 %v11208_v34, %v9769_v1  ;;  %v9852_v0 = vpack.c.bf16 %v3424_v57, %v3423_v56  ;;  %v3514_v12 = vpack.c.bf16 %v3352_v2, %v9797_v18  ;;  %7937 = vmatpush3.bf16.msra.mxu0 %v8347_v48  ;;  %7894 = vmatprep.subr.bf16.mxu1 %v8348_v21  ;;  %v8350_v1 = vld [vmem:[%s10991_s3 + $0xd0] sm:$0xff]   ;;  %v11209_v48 = vld [vmem:[#allocation85_spill] sm:$0xff] }
 0x215   : > { %3393 = vst [vmem:[#allocation3 + $0xb0] sm:$0xff] %v9845_v19  ;;  %v9860_v53 = vmul.f32 %v9694_v33, %v3163_v26  ;;  %v3166_v29 = vadd.f32 %v9572_v23, %v3127_v17  ;;  %v3125_v42 = vadd.f32 %v3048_v52, %v2820_v7  ;;  %7859 = vmatmul.mubr.bf16.gmra.mxu0 %v9848_v4  ;;  %v11210_v16 = vld [vmem:[#allocation86_spill] sm:$0xff]  ;;  %11211 = vst [vmem:[#allocation58_spill] sm:$0xff] %v9870_v20  ;;  %v7776_v38 = vpop.f32.mrf.mxu0  ;;  %v9873_v7 = vpop.f32.mrf.mxu1  ;;  %v11214_v17 = vld [vmem:[#allocation45_spill] sm:$0xff] }
 0x216   : > { %7938 = vmatprep.subr.bf16.mxu0 %v8349_v6  ;;  %v2823_v18 = vadd.f32 %v9678_v27, %v2518_v49  ;;  %v2519_v2 = vadd.f32 %v11209_v48, %v2214_v47  ;;  %v2524_v41 = vadd.f32 %v11210_v16, %v2219_v45  ;;  %7862 = vmatprep.mubr.bf16.mxu0 %v9852_v0  ;;  %v11212_v47 = vld [vmem:[#allocation43_spill] sm:$0xff]  ;;  %v11213_v45 = vld [vmem:[#allocation44_spill] sm:$0xff]  ;;  %v11215_v57 = vld [vmem:[#allocation46_spill] sm:$0xff] }
 0x217   : > { %7815 = vmatmul.mubr.bf16.gmra.mxu1 %v3514_v12  ;;  %3391 = vst [vmem:[#allocation3 + $0xa0] sm:$0xff] %v9860_v53  ;;  %v9877_v56 = vmul.f32 %v9775_v5, %v3166_v29  ;;  %v3164_v26 = vadd.f32 %v9572_v23, %v3125_v42  ;;  %v3130_v27 = vadd.f32 %v7776_v38, %v2825_v59  ;;  %v9885_v12 = vpop.permute.xlu0 %3301  ;;  %v3061_v48 = vpop.f32.mrf.mxu0  ;;  %v9890_v29 = vld [vmem:[%s10991_s3 + $0x138] sm:$0xff]   ;;  %v11218_v38 = vld [vmem:[#allocation89_spill] sm:$0xff] }
 0x218   : > { %7818 = vmatprep.mubr.bf16.mxu1 %v3515_v55  ;;  %7895 = vmatpush3.bf16.msra.mxu1 %v8348_v21  ;;  %v2217_v49 = vadd.f32 %v11213_v45, %v11212_v47  ;;  %v2220_v34 = vadd.f32 %v11215_v57, %v11214_v17  ;;  %v2826_v52 = vadd.f32 %v9708_v14, %v2521_v36  ;;  %v11217_v36 = vld [vmem:[#allocation49_spill] sm:$0xff]  ;;  %v3425_v17 = vld [vmem:[#allocation3 + $0x7f] sm:$0xff]  ;;  %v9906_v57 = vpop.f32.mrf.mxu1 }
 0x219   : > { %11216 = vst [vmem:[#allocation15_spill] sm:$0xff] %v9885_v12  ;;  %7939 = vmatpush3.bf16.msra.mxu0 %v8349_v6  ;;  %7896 = vmatprep.subr.bf16.mxu1 %v8351_v37  ;;  %3394 = vst [vmem:[#allocation3 + $0xb8] sm:$0xff] %v9877_v56  ;;  %v9894_v21 = vmul.f32 %v9721_v61, %v3164_v26  ;;  %v3169_v55 = vadd.f32 %v9572_v23, %v3130_v27  ;;  %v8352_v6 = vld [vmem:[%s10991_s3 + $0xc8] sm:$0xff]   ;;  %v7777_v45 = vpop.f32.mrf.mxu0 }
 0x21a   : > { %v3128_v59 = vadd.f32 %v3061_v48, %v2823_v18  ;;  %v3517_v14 = vpack.c.bf16 %v9877_v56, %v9845_v19  ;;  %7940 = vmatprep.subr.bf16.mxu0 %v8350_v1  ;;  %v2218_v42 = vadd.f32 %v11217_v36, %v1913_v50  ;;  %v2824_v16 = vadd.f32 %v9745_v32, %v2519_v2  ;;  %v3426_v27 = vld [vmem:[#allocation3 + $0x87] sm:$0xff]  ;;  %v3427_v18 = vld [vmem:[#allocation3 + $0x8f] sm:$0xff]  ;;  %v3428_v32 = vld [vmem:[#allocation3 + $0x97] sm:$0xff] }
 0x21b   : > { %v2522_v47 = vadd.f32 %v11218_v38, %v2217_v49  ;;  %v2829_v26 = vadd.f32 %v9777_v30, %v2524_v41  ;;  %3392 = vst [vmem:[#allocation3 + $0xa8] sm:$0xff] %v9894_v21  ;;  %v9910_v19 = vmul.f32 %v9840_v13, %v3169_v55  ;;  %v3131_v50 = vadd.f32 %v7777_v45, %v2826_v52  ;;  %v11219_v2 = vld [vmem:[#allocation91_spill] sm:$0xff]  ;;  %v9916_v41 = vpop.permute.xlu1 %3306  ;;  %v3064_v49 = vpop.f32.mrf.mxu0 }
 0x21c   : > { %v3167_v56 = vadd.f32 %v9572_v23, %v3128_v59  ;;  %v9913_v48 = vpack.c.bf16 %v3426_v27, %v3425_v17  ;;  %7897 = vmatpush3.bf16.msra.mxu1 %v8351_v37  ;;  %v2525_v30 = vadd.f32 %v11219_v2, %v2220_v34  ;;  %11220 = vst [vmem:[#allocation23_spill] sm:$0xff] %v9916_v41  ;;  %v8353_v34 = vld [vmem:[%s10991_s3 + $0xc0] sm:$0xff]   ;;  %v11221_v59 = vld [vmem:[#allocation50_spill] sm:$0xff]  ;;  %v11222_v45 = vld [vmem:[#allocation51_spill] sm:$0xff] }
 0x21d   : > { %v9918_v36 = vpack.c.bf16 %v3428_v32, %v3427_v18  ;;  %v3516_v38 = vpack.c.bf16 %v9894_v21, %v9860_v53  ;;  %7941 = vmatpush3.bf16.msra.mxu0 %v8350_v1  ;;  %7978 = vmatprep.subr.bf16.mxu1 %v9890_v29  ;;  %3397 = vst [vmem:[#allocation3 + $0xd0] sm:$0xff] %v9910_v19  ;;  %v11223_v1 = vld [vmem:[#allocation56_spill] sm:$0xff]  ;;  %v11224_v27 = vld [vmem:[#allocation93_spill] sm:$0xff]  ;;  %v9935_v32 = vpop.permute.xlu0 %3311 }
 0x21e   : > { %v3359_v52 = vmul.f32 %v9787_v46, %v3167_v56  ;;  %v3170_v55 = vadd.f32 %v9572_v23, %v3131_v50  ;;  %v3129_v37 = vadd.f32 %v3064_v49, %v2824_v16  ;;  %7863 = vmatmul.mubr.bf16.gmra.mxu0 %v9913_v48  ;;  %7942 = vmatprep.subr.bf16.mxu0 %v8352_v6  ;;  %v7780_v56 = vpop.f32.mrf.mxu0  ;;  %v2788_v50 = vpop.f32.mrf.mxu1 }
 0x21f   : > { %v2223_v53 = vadd.f32 %v11222_v45, %v11221_v59  ;;  %v1917_v17 = vadd.f32 %v11223_v1, %v9620_v62  ;;  %v2523_v18 = vadd.f32 %v11224_v27, %v2218_v42  ;;  %11225 = vst [vmem:[#allocation64_spill] sm:$0xff] %v9935_v32  ;;  %7866 = vmatprep.mubr.bf16.mxu0 %v9918_v36  ;;  %v11226_v45 = vld [vmem:[#allocation52_spill] sm:$0xff]  ;;  %v11227_v62 = vld [vmem:[#allocation53_spill] sm:$0xff]  ;;  %v11228_v27 = vld [vmem:[#allocation95_spill] sm:$0xff] }
 0x220   : > { %7819 = vmatmul.mubr.bf16.gmra.mxu1 %v3516_v38  ;;  %v2827_v16 = vadd.f32 %v9810_v15, %v2522_v47  ;;  %3395 = vst [vmem:[#allocation3 + $0xc0] sm:$0xff] %v3359_v52  ;;  %v3362_v2 = vmul.f32 %v9870_v20, %v3170_v55  ;;  %v3168_v49 = vadd.f32 %v9572_v23, %v3129_v37  ;;  %v3077_v13 = vpop.f32.mrf.mxu0  ;;  %v11231_v37 = vld [vmem:[#allocation57_spill] sm:$0xff] }
 0x221   : > { %v3134_v59 = vadd.f32 %v7780_v56, %v2829_v26  ;;  %7822 = vmatprep.mubr.bf16.mxu1 %v3517_v14  ;;  %v2221_v1 = vadd.f32 %v11227_v62, %v11226_v45  ;;  %v2830_v42 = vadd.f32 %v9842_v44, %v2525_v30  ;;  %v2528_v46 = vadd.f32 %v11228_v27, %v2223_v53  ;;  %v9951_v14 = vld [vmem:[%s10991_s3 + $0x178] sm:$0xff]   ;;  %v11229_v26 = vld [vmem:[#allocation54_spill] sm:$0xff] }
 0x222   : > { %7943 = vmatpush3.bf16.msra.mxu0 %v8352_v6  ;;  %3398 = vst [vmem:[#allocation3 + $0xd8] sm:$0xff] %v3362_v2  ;;  %v3360_v15 = vmul.f32 %v9821_v39, %v3168_v49  ;;  %v3132_v38 = vadd.f32 %v3077_v13, %v2827_v16  ;;  %v3519_v55 = vpack.c.bf16 %v3362_v2, %v9910_v19  ;;  %v11230_v44 = vld [vmem:[#allocation55_spill] sm:$0xff]  ;;  %v9958_v49 = vpop.permute.xlu1 %3316  ;;  %v7781_v13 = vpop.f32.mrf.mxu0  ;;  %v3430_v19 = vld [vmem:[#allocation3 + $0xa7] sm:$0xff]  ;;  %v3431_v2 = vld [vmem:[#allocation3 + $0xaf] sm:$0xff] }
 0x223   : > { %v3173_v47 = vadd.f32 %v9572_v23, %v3134_v59  ;;  %7944 = vmatprep.subr.bf16.mxu0 %v8353_v34  ;;  %v2224_v30 = vadd.f32 %v11230_v44, %v11229_v26  ;;  %v2222_v53 = vadd.f32 %v11231_v37, %v1917_v17  ;;  %v2828_v6 = vadd.f32 %v9873_v7, %v2523_v18  ;;  %v3429_v16 = vld [vmem:[#allocation3 + $0x9f] sm:$0xff]  ;;  %v7737_v59 = vpop.f32.mrf.mxu1  ;;  %v3432_v17 = vld [vmem:[#allocation3 + $0xb7] sm:$0xff]  ;;  %v9968_v18 = vpop.permute.xlu0 %3321 }
 0x224   : > { %v2526_v56 = vadd.f32 %v9536_v24, %v2221_v1  ;;  %11232 = vst [vmem:[#allocation59_spill] sm:$0xff] %v9958_v49  ;;  %3396 = vst [vmem:[#allocation3 + $0xc8] sm:$0xff] %v3360_v15  ;;  %v3171_v62 = vadd.f32 %v9572_v23, %v3132_v38  ;;  %v3135_v27 = vadd.f32 %v7781_v13, %v2830_v42  ;;  %v3080_v1 = vpop.f32.mrf.mxu0 }
 0x225   : > { %v9961_v45 = vmul.f32 %v9935_v32, %v3173_v47  ;;  %v9964_v26 = vpack.c.bf16 %v3430_v19, %v3429_v16  ;;  %v2833_v7 = vadd.f32 %v9906_v57, %v2528_v46  ;;  %v2529_v24 = vadd.f32 %v9540_v25, %v2224_v30  ;;  %11233 = vst [vmem:[#allocation16_spill] sm:$0xff] %v9968_v18 }
 0x226   : > { %v9970_v44 = vpack.c.bf16 %v3432_v17, %v3431_v2  ;;  %v9972_v37 = vpack.c.bf16 %v3360_v15, %v3359_v52  ;;  %7945 = vmatpush3.bf16.msra.mxu0 %v8353_v34  ;;  %v3363_v47 = vmul.f32 %v9885_v12, %v3171_v62  ;;  %v3174_v42 = vadd.f32 %v9572_v23, %v3135_v27  ;;  %v7784_v46 = vpop.f32.mrf.mxu0  ;;  %v2791_v52 = vpop.f32.mrf.mxu1 }
 0x227   : > { %3401 = vst [vmem:[#allocation3 + $0xf0] sm:$0xff] %v9961_v45  ;;  %v3133_v38 = vadd.f32 %v3080_v1, %v2828_v6  ;;  %7867 = vmatmul.mubr.bf16.gmra.mxu0 %v9964_v26  ;;  %8026 = vmatprep.subr.bf16.mxu0 %v9951_v14  ;;  %v2527_v25 = vadd.f32 %v9553_v3, %v2222_v53  ;;  %v9986_v13 = vpop.permute.xlu1 %3326  ;;  %v9993_v2 = vpop.permute.xlu0 %3331  ;;  %v3433_v27 = vld [vmem:[#allocation3 + $0xbf] sm:$0xff] }
 0x228   : > { %7870 = vmatprep.mubr.bf16.mxu0 %v9970_v44  ;;  %7823 = vmatmul.mubr.bf16.gmra.mxu1 %v9972_v37  ;;  %v2831_v57 = vadd.f32 %v2788_v50, %v2526_v56  ;;  %3399 = vst [vmem:[#allocation3 + $0xe0] sm:$0xff] %v3363_v47  ;;  %v9983_v34 = vmul.f32 %v9958_v49, %v3174_v42  ;;  %11234 = vst [vmem:[#allocation17_spill] sm:$0xff] %v9986_v13  ;;  %v3093_v16 = vpop.f32.mrf.mxu0 }
 0x229   : > { %v3172_v15 = vadd.f32 %v9572_v23, %v3133_v38  ;;  %v3138_v30 = vadd.f32 %v7784_v46, %v2833_v7  ;;  %7826 = vmatprep.mubr.bf16.mxu1 %v3519_v55  ;;  %v2834_v6 = vadd.f32 %v7737_v59, %v2529_v24  ;;  %v2832_v19 = vadd.f32 %v2791_v52, %v2527_v25  ;;  %v3436_v42 = vld [vmem:[#allocation3 + $0xd7] sm:$0xff] }
 0x22a   : > { %3402 = vst [vmem:[#allocation3 + $0xf8] sm:$0xff] %v9983_v34  ;;  %v3136_v50 = vadd.f32 %v3093_v16, %v2831_v57  ;;  %v3521_v56 = vpack.c.bf16 %v9983_v34, %v9961_v45  ;;  %11235 = vst [vmem:[#allocation18_spill] sm:$0xff] %v9993_v2  ;;  %v7785_v62 = vpop.f32.mrf.mxu0 }
 0x22b   : > { %v3364_v3 = vmul.f32 %v9916_v41, %v3172_v15  ;;  %v3177_v53 = vadd.f32 %v9572_v23, %v3138_v30  ;;  %v3434_v55 = vld [vmem:[#allocation3 + $0xc7] sm:$0xff]  ;;  %v3435_v59 = vld [vmem:[#allocation3 + $0xcf] sm:$0xff]  ;;  %v3139_v24 = vadd.f32 %v7785_v62, %v2834_v6  ;;  %v10009_v15 = vpop.permute.xlu1 %3336 }
 0x22c   : > { %v3175_v7 = vadd.f32 %v9572_v23, %v3136_v50  ;;  %v9999_v1 = vpack.c.bf16 %v3434_v55, %v3433_v27  ;;  %v3096_v38 = vpop.f32.mrf.mxu0  ;;  %v10001_v46 = vpack.c.bf16 %v3436_v42, %v3435_v59  ;;  %11236 = vst [vmem:[#allocation19_spill] sm:$0xff] %v10009_v15 }
 0x22d   : > { %3400 = vst [vmem:[#allocation3 + $0xe8] sm:$0xff] %v3364_v3  ;;  %v9996_v17 = vmul.f32 %v9993_v2, %v3177_v53  ;;  %v10003_v45 = vpack.c.bf16 %v3364_v3, %v3363_v47  ;;  %v3178_v57 = vadd.f32 %v9572_v23, %v3139_v24  ;;  %v3137_v52 = vadd.f32 %v3096_v38, %v2832_v19  ;;  %v3957_v3 = vld [vmem:[#allocation3 + $0x11] sm:$0xff]  ;;  %v3958_v53 = vld [vmem:[#allocation3 + $0x19] sm:$0xff]  ;;  %v3960_v24 = vld [vmem:[#allocation3 + $0x29] sm:$0xff] }
 0x22e   : > { %v3367_v25 = vmul.f32 %v9968_v18, %v3175_v7  ;;  %v3959_v7 = vld [vmem:[#allocation3 + $0x21] sm:$0xff] }
 0x22f   : > { %3405 = vst [vmem:[#allocation3 + $0x110] sm:$0xff] %v9996_v17  ;;  %7871 = vmatmul.mubr.bf16.gmra.mxu0 %v9999_v1  ;;  %v10014_v30 = vmul.f32 %v10009_v15, %v3178_v57  ;;  %v3176_v47 = vadd.f32 %v9572_v23, %v3137_v52  ;;  %v3437_v16 = vld [vmem:[#allocation3 + $0xdf] sm:$0xff] }
 0x230   : > { %7874 = vmatprep.mubr.bf16.mxu0 %v10001_v46  ;;  %7827 = vmatmul.mubr.bf16.gmra.mxu1 %v10003_v45  ;;  %3403 = vst [vmem:[#allocation3 + $0x100] sm:$0xff] %v3367_v25  ;;  %v3962_v57 = vld [vmem:[#allocation3 + $0x39] sm:$0xff] }
 0x231   : > { %7830 = vmatprep.mubr.bf16.mxu1 %v3521_v56  ;;  %3406 = vst [vmem:[#allocation3 + $0x118] sm:$0xff] %v10014_v30  ;;  %v3368_v6 = vmul.f32 %v9986_v13, %v3176_v47  ;;  %v4614_v50 = vpack.c.bf16 %v10014_v30, %v9996_v17  ;;  %v3440_v27 = vld [vmem:[#allocation3 + $0xf7] sm:$0xff]  ;;  %v3989_v56 = vpack.c.bf16 %v3958_v53, %v3957_v3  ;;  %v8356_v3 = vld [vmem:[%s10991_s3 + $0x128] sm:$0xff]  }
 0x232   : > { %v10032_v47 = vpack.c.bf16 %v3960_v24, %v3959_v7  ;;  %v3963_v53 = vld [vmem:[#allocation3 + $0x41] sm:$0xff]  ;;  %v8360_v7 = vld [vmem:[%s10991_s3 + $0x170] sm:$0xff]   ;;  %v8358_v24 = vld [vmem:[%s10991_s3 + $0x118] sm:$0xff]  }
 0x233   : > { %3404 = vst [vmem:[#allocation3 + $0x108] sm:$0xff] %v3368_v6  ;;  %v10025_v23 = vpack.c.bf16 %v3368_v6, %v3367_v25  ;;  %v8355_v25 = vld [vmem:[%s10991_s3 + $0x130] sm:$0xff]   ;;  %v8388_v30 = vld [vmem:[%s10991_s3 + $0x228] sm:$0xff]  }
 0x234   : > { %v3438_v19 = vld [vmem:[#allocation3 + $0xe7] sm:$0xff]  ;;  %v3439_v62 = vld [vmem:[#allocation3 + $0xef] sm:$0xff] }
 0x235   : > { %v10021_v55 = vpack.c.bf16 %v3438_v19, %v3437_v16  ;;  %v10023_v59 = vpack.c.bf16 %v3440_v27, %v3439_v62  ;;  %v3961_v16 = vld [vmem:[#allocation3 + $0x31] sm:$0xff]  ;;  %v3964_v19 = vld [vmem:[#allocation3 + $0x49] sm:$0xff]  ;;  %v3966_v62 = vld [vmem:[#allocation3 + $0x59] sm:$0xff] }
 0x236   : > { %v10038_v6 = vpack.c.bf16 %v3962_v57, %v3961_v16  ;;  %v10047_v27 = vpack.c.bf16 %v3964_v19, %v3963_v53  ;;  %v3969_v16 = vld [vmem:[#allocation3 + $0x71] sm:$0xff]  ;;  %v3971_v53 = vld [vmem:[#allocation3 + $0x81] sm:$0xff]  ;;  %v3972_v19 = vld [vmem:[#allocation3 + $0x89] sm:$0xff] }
 0x237   : > { %7875 = vmatmul.mubr.bf16.gmra.mxu0 %v10021_v55  ;;  %v3441_v42 = vld [vmem:[#allocation3 + $0xff] sm:$0xff] }
 0x238   : > { %7878 = vmatprep.mubr.bf16.mxu0 %v10023_v59  ;;  %7831 = vmatmul.mubr.bf16.gmra.mxu1 %v10025_v23  ;;  %v5207_v15 = vld [vmem:[#allocation3 + $0x11f] sm:$0xff] }
 0x239   : > { %7898 = vmatprep.mubr.bf16.mxu1 %v3989_v56  ;;  %v3965_v56 = vld [vmem:[#allocation3 + $0x51] sm:$0xff] }
 0x23a   : > { %v3442_v38 = vld [vmem:[#allocation3 + $0x107] sm:$0xff] }
 0x23b   : > { %v10030_v52 = vpack.c.bf16 %v3442_v38, %v3441_v42  ;;  %v3968_v42 = vld [vmem:[#allocation3 + $0x69] sm:$0xff] }
 0x23c   : > { %v8362_v38 = vld [vmem:[%s10991_s3 + $0x168] sm:$0xff]  }
 0x23d   : > { %v5204_v13 = vld [vmem:[#allocation3 + $0x107] sm:$0xff] }
 0x23f   : > { %7879 = vmatmul.mubr.bf16.gmra.mxu0 %v10030_v52 }
 0x240   : > { %7946 = vmatprep.mubr.bf16.mxu0 %v9714_v28  ;;  %7899 = vmatmul.mubr.bf16.vlgmr.msra.gmra.mxu1 %v10032_v47  ;;  %v8357_v28 = vld [vmem:[%s10991_s3 + $0x120] sm:$0xff]  }
 0x241   : > { %7902 = vmatprep.mubr.bf16.mxu1 %v10038_v6  ;;  %7979 = vmatpush3.bf16.msra.mxu1 %v9890_v29  ;;  %v10053_v29 = vpack.c.bf16 %v3966_v62, %v3965_v56  ;;  %v8365_v62 = vld [vmem:[%s10991_s3 + $0x158] sm:$0xff]  }
 0x242   : > { %7980 = vmatprep.subr.bf16.mxu1 %v8355_v25  ;;  %v3974_v56 = vld [vmem:[#allocation3 + $0x99] sm:$0xff] }
 0x245   : > { %7981 = vmatpush3.bf16.msra.mxu1 %v8355_v25  ;;  %v8361_v25 = vld [vmem:[%s10991_s3 + $0x110] sm:$0xff]  }
 0x246   : > { %7982 = vmatprep.subr.bf16.mxu1 %v8356_v3 }
 0x247   : > { %7947 = vmatmul.mubr.bf16.vlgmr.msra.gmra.mxu0 %v9723_v9  ;;  %v3967_v9 = vld [vmem:[#allocation3 + $0x61] sm:$0xff] }
 0x248   : > { %7950 = vmatprep.mubr.bf16.mxu0 %v9783_v40  ;;  %7903 = vmatmul.mubr.bf16.gmra.mxu1 %v10047_v27  ;;  %v3970_v40 = vld [vmem:[#allocation3 + $0x79] sm:$0xff]  ;;  %v10068_v57 = vpack.c.bf16 %v3968_v42, %v3967_v9  ;;  %v8366_v9 = vld [vmem:[%s10991_s3 + $0x150] sm:$0xff]   ;;  %v3975_v42 = vld [vmem:[#allocation3 + $0xa1] sm:$0xff] }
 0x249   : > { %7906 = vmatprep.mubr.bf16.mxu1 %v10053_v29  ;;  %7983 = vmatpush3.bf16.msra.mxu1 %v8356_v3  ;;  %v8363_v3 = vld [vmem:[%s10991_s3 + $0x160] sm:$0xff]  }
 0x24a   : > { %7984 = vmatprep.subr.bf16.mxu1 %v8357_v28  ;;  %8027 = vmatpush3.bf16.msra.mxu0 %v9951_v14  ;;  %v10074_v14 = vpack.c.bf16 %v3970_v40, %v3969_v16  ;;  %v8368_v40 = vld [vmem:[%s10991_s3 + $0x148] sm:$0xff]  }
 0x24b   : > { %8028 = vmatprep.subr.bf16.mxu0 %v8360_v7 }
 0x24d   : > { %7985 = vmatpush3.bf16.msra.mxu1 %v8357_v28  ;;  %v3973_v28 = vld [vmem:[#allocation3 + $0x91] sm:$0xff] }
 0x24e   : > { %7986 = vmatprep.subr.bf16.mxu1 %v8358_v24  ;;  %8029 = vmatpush3.bf16.msra.mxu0 %v8360_v7  ;;  %v8367_v7 = vld [vmem:[%s10991_s3 + $0x100] sm:$0xff]  }
 0x24f   : > { %7951 = vmatmul.mubr.bf16.gmra.mxu0 %v9789_v51  ;;  %8030 = vmatprep.subr.bf16.mxu0 %v8362_v38  ;;  %v8364_v51 = vld [vmem:[%s10991_s3 + $0x108] sm:$0xff]  }
 0x250   : > { %7954 = vmatprep.mubr.bf16.mxu0 %v9848_v4  ;;  %7907 = vmatmul.mubr.bf16.gmra.mxu1 %v10068_v57  ;;  %v10088_v4 = vpack.c.bf16 %v3972_v19, %v3971_v53  ;;  %v3979_v53 = vld [vmem:[#allocation3 + $0xc1] sm:$0xff]  ;;  %v3980_v19 = vld [vmem:[#allocation3 + $0xc9] sm:$0xff] }
 0x251   : > { %7910 = vmatprep.mubr.bf16.mxu1 %v10074_v14  ;;  %7987 = vmatpush3.bf16.msra.mxu1 %v8358_v24  ;;  %v10094_v24 = vpack.c.bf16 %v3974_v56, %v3973_v28  ;;  %v10127_v56 = vpack.c.bf16 %v3980_v19, %v3979_v53  ;;  %v3981_v28 = vld [vmem:[#allocation3 + $0xd1] sm:$0xff]  ;;  %v4567_v53 = vld [vmem:[#allocation3 + $0x20] sm:$0xff] }
 0x252   : > { %7988 = vmatprep.subr.bf16.mxu1 %v8361_v25  ;;  %8031 = vmatpush3.bf16.msra.mxu0 %v8362_v38  ;;  %v3976_v38 = vld [vmem:[#allocation3 + $0xa9] sm:$0xff] }
 0x253   : > { %8032 = vmatprep.subr.bf16.mxu0 %v8363_v3  ;;  %v10110_v16 = vpack.c.bf16 %v3976_v38, %v3975_v42  ;;  %v3986_v42 = vld [vmem:[#allocation3 + $0xf9] sm:$0xff] }
 0x255   : > { %7989 = vmatpush3.bf16.msra.mxu1 %v8361_v25  ;;  %v3977_v25 = vld [vmem:[#allocation3 + $0xb1] sm:$0xff] }
 0x256   : > { %8033 = vmatpush3.bf16.msra.mxu0 %v8363_v3  ;;  %7990 = vmatprep.subr.bf16.mxu1 %v8364_v51 }
 0x257   : > { %7955 = vmatmul.mubr.bf16.gmra.mxu0 %v9852_v0  ;;  %8034 = vmatprep.subr.bf16.mxu0 %v8365_v62  ;;  %v10105_v0 = vld [vmem:[%s10991_s3 + $0x1b8] sm:$0xff]  }
 0x258   : > { %7958 = vmatprep.mubr.bf16.mxu0 %v9913_v48  ;;  %7911 = vmatmul.mubr.bf16.gmra.mxu1 %v10088_v4  ;;  %v3978_v48 = vld [vmem:[#allocation3 + $0xb9] sm:$0xff] }
 0x259   : > { %7914 = vmatprep.mubr.bf16.mxu1 %v10094_v24  ;;  %7991 = vmatpush3.bf16.msra.mxu1 %v8364_v51  ;;  %v10114_v3 = vpack.c.bf16 %v3978_v48, %v3977_v25  ;;  %v8369_v51 = vld [vmem:[%s10991_s3 + $0x140] sm:$0xff]   ;;  %v4568_v25 = vld [vmem:[#allocation3 + $0x28] sm:$0xff] }
 0x25a   : > { %8035 = vmatpush3.bf16.msra.mxu0 %v8365_v62  ;;  %7992 = vmatprep.subr.bf16.mxu1 %v8367_v7  ;;  %v3982_v62 = vld [vmem:[#allocation3 + $0xd9] sm:$0xff]  ;;  %v4599_v19 = vpack.c.bf16 %v4568_v25, %v4567_v53  ;;  %v4576_v25 = vld [vmem:[#allocation3 + $0x68] sm:$0xff]  ;;  %v4573_v53 = vld [vmem:[#allocation3 + $0x50] sm:$0xff] }
 0x25b   : > { %8036 = vmatprep.subr.bf16.mxu0 %v8366_v9 }
 0x25d   : > { %7993 = vmatpush3.bf16.msra.mxu1 %v8367_v7  ;;  %v3983_v7 = vld [vmem:[#allocation3 + $0xe1] sm:$0xff] }
 0x25e   : > { %8037 = vmatpush3.bf16.msra.mxu0 %v8366_v9  ;;  %8074 = vmatprep.subr.bf16.mxu1 %v10105_v0  ;;  %v3984_v9 = vld [vmem:[#allocation3 + $0xe9] sm:$0xff] }
 0x25f   : > { %7959 = vmatmul.mubr.bf16.gmra.mxu0 %v9918_v36  ;;  %8038 = vmatprep.subr.bf16.mxu0 %v8368_v40  ;;  %v10125_v36 = vld [vmem:[%s10991_s3 + $0x1f8] sm:$0xff]   ;;  %v10136_v38 = vpack.c.bf16 %v3984_v9, %v3983_v7  ;;  %v4569_v9 = vld [vmem:[#allocation3 + $0x30] sm:$0xff] }
 0x260   : > { %7962 = vmatprep.mubr.bf16.mxu0 %v9964_v26  ;;  %7915 = vmatmul.mubr.bf16.gmra.mxu1 %v10110_v16  ;;  %v10130_v26 = vpack.c.bf16 %v3982_v62, %v3981_v28  ;;  %v4293_v62 = vld [vmem:[#allocation3 + $0x117] sm:$0xff]  ;;  %v4572_v28 = vld [vmem:[#allocation3 + $0x48] sm:$0xff] }
 0x261   : > { %7918 = vmatprep.mubr.bf16.mxu1 %v10114_v3 }
 0x262   : > { %8039 = vmatpush3.bf16.msra.mxu0 %v8368_v40  ;;  %v3985_v40 = vld [vmem:[#allocation3 + $0xf1] sm:$0xff] }
 0x263   : > { %8040 = vmatprep.subr.bf16.mxu0 %v8369_v51  ;;  %v10139_v48 = vpack.c.bf16 %v3986_v42, %v3985_v40  ;;  %v4571_v40 = vld [vmem:[#allocation3 + $0x40] sm:$0xff] }
 0x266   : > { %8041 = vmatpush3.bf16.msra.mxu0 %v8369_v51 }
 0x267   : > { %7963 = vmatmul.mubr.bf16.gmra.mxu0 %v9970_v44  ;;  %8122 = vmatprep.subr.bf16.mxu0 %v10125_v36  ;;  %v3987_v44 = vld [vmem:[#allocation3 + $0x101] sm:$0xff] }
 0x268   : > { %7966 = vmatprep.mubr.bf16.mxu0 %v9999_v1  ;;  %7919 = vmatmul.mubr.bf16.gmra.mxu1 %v10127_v56  ;;  %v3988_v1 = vld [vmem:[#allocation3 + $0x109] sm:$0xff] }
 0x269   : > { %7922 = vmatprep.mubr.bf16.mxu1 %v10130_v26  ;;  %v10144_v51 = vpack.c.bf16 %v3988_v1, %v3987_v44  ;;  %v8372_v44 = vld [vmem:[%s10991_s3 + $0x1a8] sm:$0xff]   ;;  %v4574_v1 = vld [vmem:[#allocation3 + $0x58] sm:$0xff] }
 0x26f   : > { %7967 = vmatmul.mubr.bf16.gmra.mxu0 %v10001_v46  ;;  %v4292_v46 = vld [vmem:[#allocation3 + $0x10f] sm:$0xff] }
 0x270   : > { %7970 = vmatprep.mubr.bf16.mxu0 %v10021_v55  ;;  %7923 = vmatmul.mubr.bf16.gmra.mxu1 %v10136_v38  ;;  %v4570_v55 = vld [vmem:[#allocation3 + $0x38] sm:$0xff]  ;;  %v10149_v7 = vpack.c.bf16 %v4293_v62, %v4292_v46  ;;  %v4575_v46 = vld [vmem:[#allocation3 + $0x60] sm:$0xff] }
 0x271   : > { %7926 = vmatprep.mubr.bf16.mxu1 %v10139_v48  ;;  %v10151_v42 = vpack.c.bf16 %v4570_v55, %v4569_v9  ;;  %v8376_v55 = vld [vmem:[%s10991_s3 + $0x1f0] sm:$0xff]   ;;  %v8374_v62 = vld [vmem:[%s10991_s3 + $0x198] sm:$0xff]   ;;  %v4580_v9 = vld [vmem:[#allocation3 + $0x88] sm:$0xff] }
 0x277   : > { %7971 = vmatmul.mubr.bf16.gmra.mxu0 %v10023_v59  ;;  %v8371_v59 = vld [vmem:[%s10991_s3 + $0x1b0] sm:$0xff]  }
 0x278   : > { %7974 = vmatprep.mubr.bf16.mxu0 %v10030_v52  ;;  %7927 = vmatmul.mubr.bf16.gmra.mxu1 %v10144_v51  ;;  %v10157_v52 = vpack.c.bf16 %v4572_v28, %v4571_v40  ;;  %v8378_v28 = vld [vmem:[%s10991_s3 + $0x1e8] sm:$0xff]  }
 0x279   : > { %7994 = vmatprep.mubr.bf16.mxu1 %v4599_v19  ;;  %v10166_v19 = vpack.c.bf16 %v4574_v1, %v4573_v53  ;;  %v8379_v1 = vld [vmem:[%s10991_s3 + $0x1e0] sm:$0xff]   ;;  %v8381_v53 = vld [vmem:[%s10991_s3 + $0x1d8] sm:$0xff]  }
 0x27f   : > { %7975 = vmatmul.mubr.bf16.gmra.mxu0 %v10149_v7 }
 0x280   : > { %8042 = vmatprep.mubr.bf16.mxu0 %v10032_v47  ;;  %7995 = vmatmul.mubr.bf16.vlgmr.msra.gmra.mxu1 %v10151_v42  ;;  %v8373_v47 = vld [vmem:[%s10991_s3 + $0x1a0] sm:$0xff]  }
 0x281   : > { %7998 = vmatprep.mubr.bf16.mxu1 %v10157_v52  ;;  %8075 = vmatpush3.bf16.msra.mxu1 %v10105_v0  ;;  %v10172_v0 = vpack.c.bf16 %v4576_v25, %v4575_v46  ;;  %v4582_v25 = vld [vmem:[#allocation3 + $0x98] sm:$0xff]  ;;  %v10207_v46 = vld [vmem:[#allocation3 + $0xa0] sm:$0xff] }
 0x282   : > { %8076 = vmatprep.subr.bf16.mxu1 %v8371_v59 }
 0x285   : > { %8077 = vmatpush3.bf16.msra.mxu1 %v8371_v59  ;;  %v4579_v59 = vld [vmem:[#allocation3 + $0x80] sm:$0xff] }
 0x286   : > { %8078 = vmatprep.subr.bf16.mxu1 %v8372_v44 }
 0x287   : > { %8043 = vmatmul.mubr.bf16.vlgmr.msra.gmra.mxu0 %v10038_v6  ;;  %v4578_v6 = vld [vmem:[#allocation3 + $0x78] sm:$0xff] }
 0x288   : > { %8046 = vmatprep.mubr.bf16.mxu0 %v10047_v27  ;;  %7999 = vmatmul.mubr.bf16.gmra.mxu1 %v10166_v19  ;;  %v4577_v27 = vld [vmem:[#allocation3 + $0x70] sm:$0xff] }
 0x289   : > { %8002 = vmatprep.mubr.bf16.mxu1 %v10172_v0  ;;  %8079 = vmatpush3.bf16.msra.mxu1 %v8372_v44  ;;  %v10187_v40 = vpack.c.bf16 %v4578_v6, %v4577_v27  ;;  %v8377_v44 = vld [vmem:[%s10991_s3 + $0x190] sm:$0xff]  }
 0x28a   : > { %8080 = vmatprep.subr.bf16.mxu1 %v8373_v47  ;;  %8123 = vmatpush3.bf16.msra.mxu0 %v10125_v36  ;;  %v10193_v36 = vpack.c.bf16 %v4580_v9, %v4579_v59  ;;  %v8382_v6 = vld [vmem:[%s10991_s3 + $0x1d0] sm:$0xff]   ;;  %v4590_v59 = vld [vmem:[#allocation3 + $0xd8] sm:$0xff] }
 0x28b   : > { %8124 = vmatprep.subr.bf16.mxu0 %v8376_v55  ;;  %v4585_v9 = vld [vmem:[#allocation3 + $0xb0] sm:$0xff] }
 0x28d   : > { %8081 = vmatpush3.bf16.msra.mxu1 %v8373_v47 }
 0x28e   : > { %8082 = vmatprep.subr.bf16.mxu1 %v8374_v62  ;;  %8125 = vmatpush3.bf16.msra.mxu0 %v8376_v55  ;;  %v8383_v55 = vld [vmem:[%s10991_s3 + $0x180] sm:$0xff]  }
 0x28f   : > { %8047 = vmatmul.mubr.bf16.gmra.mxu0 %v10053_v29  ;;  %8126 = vmatprep.subr.bf16.mxu0 %v8378_v28  ;;  %v8380_v29 = vld [vmem:[%s10991_s3 + $0x188] sm:$0xff]  }
 0x290   : > { %8050 = vmatprep.mubr.bf16.mxu0 %v10068_v57  ;;  %8003 = vmatmul.mubr.bf16.gmra.mxu1 %v10187_v40  ;;  %v4581_v57 = vld [vmem:[#allocation3 + $0x90] sm:$0xff] }
 0x291   : > { %8006 = vmatprep.mubr.bf16.mxu1 %v10193_v36  ;;  %8083 = vmatpush3.bf16.msra.mxu1 %v8374_v62  ;;  %v10209_v47 = vpack.c.bf16 %v4582_v25, %v4581_v57  ;;  %v4607_v62 = vpack.c.bf16 %v9894_v21, %v10207_v46  ;;  %v8384_v21 = vld [vmem:[%s10991_s3 + $0x1c8] sm:$0xff]   ;;  %v5179_v25 = vld [vmem:[#allocation3 + $0x3f] sm:$0xff] }
 0x292   : > { %8084 = vmatprep.subr.bf16.mxu1 %v8377_v44  ;;  %8127 = vmatpush3.bf16.msra.mxu0 %v8378_v28  ;;  %v4586_v28 = vld [vmem:[#allocation3 + $0xb8] sm:$0xff] }
 0x293   : > { %8128 = vmatprep.subr.bf16.mxu0 %v8379_v1  ;;  %v10228_v27 = vpack.c.bf16 %v4586_v28, %v4585_v9  ;;  %v5183_v28 = vld [vmem:[#allocation3 + $0x5f] sm:$0xff]  ;;  %v5186_v9 = vld [vmem:[#allocation3 + $0x77] sm:$0xff] }
 0x295   : > { %8085 = vmatpush3.bf16.msra.mxu1 %v8377_v44  ;;  %v4589_v44 = vld [vmem:[#allocation3 + $0xd0] sm:$0xff] }
 0x296   : > { %8129 = vmatpush3.bf16.msra.mxu0 %v8379_v1  ;;  %8086 = vmatprep.subr.bf16.mxu1 %v8380_v29  ;;  %v10237_v1 = vpack.c.bf16 %v4590_v59, %v4589_v44 }
 0x297   : > { %8051 = vmatmul.mubr.bf16.gmra.mxu0 %v10074_v14  ;;  %8130 = vmatprep.subr.bf16.mxu0 %v8381_v53  ;;  %v8386_v14 = vld [vmem:[%s10991_s3 + $0x238] sm:$0xff]  }
 0x298   : > { %8054 = vmatprep.mubr.bf16.mxu0 %v10088_v4  ;;  %8007 = vmatmul.mubr.bf16.gmra.mxu1 %v10209_v47  ;;  %v8385_v4 = vld [vmem:[%s10991_s3 + $0x1c0] sm:$0xff]  }
 0x299   : > { %8010 = vmatprep.mubr.bf16.mxu1 %v4607_v62  ;;  %8087 = vmatpush3.bf16.msra.mxu1 %v8380_v29  ;;  %v5181_v29 = vld [vmem:[#allocation3 + $0x4f] sm:$0xff] }
 0x29a   : > { %8131 = vmatpush3.bf16.msra.mxu0 %v8381_v53  ;;  %8088 = vmatprep.subr.bf16.mxu1 %v8383_v55  ;;  %v5182_v53 = vld [vmem:[#allocation3 + $0x57] sm:$0xff]  ;;  %v5185_v62 = vld [vmem:[#allocation3 + $0x6f] sm:$0xff] }
 0x29b   : > { %8132 = vmatprep.subr.bf16.mxu0 %v8382_v6  ;;  %v5211_v57 = vpack.c.bf16 %v5182_v53, %v5181_v29  ;;  %v5189_v29 = vld [vmem:[#allocation3 + $0x8f] sm:$0xff] }
 0x29d   : > { %8089 = vmatpush3.bf16.msra.mxu1 %v8383_v55  ;;  %v5184_v55 = vld [vmem:[#allocation3 + $0x67] sm:$0xff] }
 0x29e   : > { %8133 = vmatpush3.bf16.msra.mxu0 %v8382_v6  ;;  %8170 = vmatprep.subr.bf16.mxu1 %v8386_v14 }
 0x29f   : > { %8055 = vmatmul.mubr.bf16.gmra.mxu0 %v10094_v24  ;;  %8134 = vmatprep.subr.bf16.mxu0 %v8384_v21  ;;  %v10243_v24 = vld [vmem:[#allocation3 + $0xf0] sm:$0xff] }
 0x2a0   : > { %8058 = vmatprep.mubr.bf16.mxu0 %v10110_v16  ;;  %8011 = vmatmul.mubr.bf16.gmra.mxu1 %v10228_v27  ;;  %v5177_v16 = vld [vmem:[#allocation3 + $0x2f] sm:$0xff] }
 0x2a1   : > { %8014 = vmatprep.mubr.bf16.mxu1 %v9972_v37  ;;  %v4612_v37 = vpack.c.bf16 %v9983_v34, %v10243_v24  ;;  %v4902_v34 = vld [vmem:[#allocation3 + $0x111] sm:$0xff] }
 0x2a2   : > { %8135 = vmatpush3.bf16.msra.mxu0 %v8384_v21  ;;  %v5212_v21 = vpack.c.bf16 %v5184_v55, %v5183_v28 }
 0x2a3   : > { %8136 = vmatprep.subr.bf16.mxu0 %v8385_v4 }
 0x2a6   : > { %8137 = vmatpush3.bf16.msra.mxu0 %v8385_v4  ;;  %v5213_v4 = vpack.c.bf16 %v5186_v9, %v5185_v62 }
 0x2a7   : > { %8059 = vmatmul.mubr.bf16.gmra.mxu0 %v10114_v3  ;;  %v5178_v3 = vld [vmem:[#allocation3 + $0x37] sm:$0xff] }
 0x2a8   : > { %8062 = vmatprep.mubr.bf16.mxu0 %v10127_v56  ;;  %8015 = vmatmul.mubr.bf16.gmra.mxu1 %v10237_v1  ;;  %v5209_v56 = vpack.c.bf16 %v5178_v3, %v5177_v16 }
 0x2a9   : > { %8018 = vmatprep.mubr.bf16.mxu1 %v10003_v45  ;;  %v4903_v45 = vld [vmem:[#allocation3 + $0x119] sm:$0xff] }
 0x2af   : > { %8063 = vmatmul.mubr.bf16.gmra.mxu0 %v10130_v26  ;;  %v5180_v26 = vld [vmem:[#allocation3 + $0x47] sm:$0xff] }
 0x2b0   : > { %8066 = vmatprep.mubr.bf16.mxu0 %v10136_v38  ;;  %8019 = vmatmul.mubr.bf16.gmra.mxu1 %v4612_v37  ;;  %v10255_v38 = vpack.c.bf16 %v4903_v45, %v4902_v34 }
 0x2b1   : > { %8022 = vmatprep.mubr.bf16.mxu1 %v10025_v23  ;;  %v5210_v23 = vpack.c.bf16 %v5180_v26, %v5179_v25  ;;  %v5187_v25 = vld [vmem:[#allocation3 + $0x7f] sm:$0xff] }
 0x2b7   : > { %8067 = vmatmul.mubr.bf16.gmra.mxu0 %v10139_v48  ;;  %v8387_v48 = vld [vmem:[%s10991_s3 + $0x230] sm:$0xff]  }
 0x2b8   : > { %8070 = vmatprep.mubr.bf16.mxu0 %v10144_v51  ;;  %8023 = vmatmul.mubr.bf16.gmra.mxu1 %v4614_v50 }
 0x2b9   : > { %8090 = vmatprep.mubr.bf16.mxu1 %v5209_v56  ;;  %v8390_v56 = vld [vmem:[%s10991_s3 + $0x218] sm:$0xff]  }
 0x2bb   : > { %v7804_v51 = vpop.f32.mrf.mxu1 }
 0x2bd   : > { %v3621_v17 = vpop.f32.mrf.mxu1 }
 0x2bf   : > { %8071 = vmatmul.mubr.bf16.gmra.mxu0 %v10255_v38  ;;  %v7805_v50 = vpop.f32.mrf.mxu1 }
 0x2c0   : > { %8138 = vmatprep.mubr.bf16.mxu0 %v10151_v42  ;;  %8091 = vmatmul.mubr.bf16.vlgmr.msra.gmra.mxu1 %v5210_v23  ;;  %v8389_v42 = vld [vmem:[%s10991_s3 + $0x220] sm:$0xff]  }
 0x2c1   : > { %8094 = vmatprep.mubr.bf16.mxu1 %v5211_v57  ;;  %8171 = vmatpush3.bf16.msra.mxu1 %v8386_v14  ;;  %v3624_v6 = vpop.f32.mrf.mxu1  ;;  %v8391_v57 = vld [vmem:[%s10991_s3 + $0x210] sm:$0xff]  }
 0x2c2   : > { %8172 = vmatprep.subr.bf16.mxu1 %v8387_v48 }
 0x2c4   : > { %v7852_v14 = vpop.f32.mrf.mxu0 }
 0x2c5   : > { %8173 = vmatpush3.bf16.msra.mxu1 %v8387_v48  ;;  %v10269_v59 = vadd.f32 %v7852_v14, %v7804_v51  ;;  %v7808_v44 = vpop.f32.mrf.mxu1  ;;  %v5190_v51 = vld [vmem:[#allocation3 + $0x97] sm:$0xff] }
 0x2c6   : > { %8174 = vmatprep.subr.bf16.mxu1 %v8388_v30  ;;  %v3830_v37 = vpop.f32.mrf.mxu0 }
 0x2c7   : > { %8139 = vmatmul.mubr.bf16.vlgmr.msra.gmra.mxu0 %v10157_v52  ;;  %v10272_v16 = vadd.f32 %v3830_v37, %v3621_v17  ;;  %v3637_v3 = vpop.f32.mrf.mxu1  ;;  %v5188_v52 = vld [vmem:[#allocation3 + $0x87] sm:$0xff] }
 0x2c8   : > { %8142 = vmatprep.mubr.bf16.mxu0 %v10166_v19  ;;  %8095 = vmatmul.mubr.bf16.gmra.mxu1 %v5212_v21  ;;  %v7853_v34 = vpop.f32.mrf.mxu0  ;;  %v5214_v48 = vpack.c.bf16 %v5188_v52, %v5187_v25  ;;  %v8392_v21 = vld [vmem:[%s10991_s3 + $0x208] sm:$0xff]   ;;  %v8393_v52 = vld [vmem:[%s10991_s3 + $0x200] sm:$0xff]  }
 0x2c9   : > { %8098 = vmatprep.mubr.bf16.mxu1 %v5213_v4  ;;  %8175 = vmatpush3.bf16.msra.mxu1 %v8388_v30  ;;  %v10277_v45 = vadd.f32 %v7853_v34, %v7805_v50  ;;  %v7809_v26 = vpop.f32.mrf.mxu1  ;;  %v5215_v30 = vpack.c.bf16 %v5190_v51, %v5189_v29  ;;  %v5193_v4 = vld [vmem:[#allocation3 + $0xaf] sm:$0xff]  ;;  %v5194_v34 = vld [vmem:[#allocation3 + $0xb7] sm:$0xff] }
 0x2ca   : > { %8176 = vmatprep.subr.bf16.mxu1 %v8389_v42  ;;  %v3833_v19 = vpop.f32.mrf.mxu0  ;;  %v5497_v51 = vld [vmem:[#allocation3 + $0xa8] sm:$0xff] }
 0x2cb   : > { %v10279_v23 = vadd.f32 %v3833_v19, %v3624_v6  ;;  %v3640_v53 = vpop.f32.mrf.mxu1 }
 0x2cd   : > { %8177 = vmatpush3.bf16.msra.mxu1 %v8389_v42  ;;  %v7856_v17 = vpop.f32.mrf.mxu0 }
 0x2ce   : > { %8178 = vmatprep.subr.bf16.mxu1 %v8390_v56  ;;  %v10285_v50 = vadd.f32 %v7856_v17, %v7808_v44  ;;  %v7812_v55 = vpop.f32.mrf.mxu1  ;;  %v5191_v44 = vld [vmem:[#allocation3 + $0x9f] sm:$0xff] }
 0x2cf   : > { %8143 = vmatmul.mubr.bf16.gmra.mxu0 %v10172_v0  ;;  %v3846_v62 = vpop.f32.mrf.mxu0  ;;  %v5192_v0 = vld [vmem:[#allocation3 + $0xa7] sm:$0xff] }
 0x2d0   : > { %8146 = vmatprep.mubr.bf16.mxu0 %v10187_v40  ;;  %8099 = vmatmul.mubr.bf16.gmra.mxu1 %v5214_v48  ;;  %v10288_v6 = vadd.f32 %v3846_v62, %v3637_v3  ;;  %v3653_v28 = vpop.f32.mrf.mxu1  ;;  %v5216_v3 = vpack.c.bf16 %v5192_v0, %v5191_v44  ;;  %v5521_v0 = vpack.c.bf16 %v5497_v51, %v10207_v46  ;;  %v5501_v46 = vld [vmem:[#allocation3 + $0xc8] sm:$0xff] }
 0x2d1   : > { %8102 = vmatprep.mubr.bf16.mxu1 %v5215_v30  ;;  %8179 = vmatpush3.bf16.msra.mxu1 %v8390_v56  ;;  %v7857_v9 = vpop.f32.mrf.mxu0  ;;  %v5196_v30 = vld [vmem:[#allocation3 + $0xc7] sm:$0xff] }
 0x2d2   : > { %8180 = vmatprep.subr.bf16.mxu1 %v8391_v57  ;;  %v10293_v42 = vadd.f32 %v7857_v9, %v7809_v26  ;;  %v7813_v14 = vpop.f32.mrf.mxu1  ;;  %v5217_v26 = vpack.c.bf16 %v5194_v34, %v5193_v4  ;;  %v5197_v9 = vld [vmem:[#allocation3 + $0xcf] sm:$0xff] }
 0x2d3   : > { %v3849_v40 = vpop.f32.mrf.mxu0 }
 0x2d4   : > { %v10295_v37 = vadd.f32 %v3849_v40, %v3640_v53  ;;  %v3656_v56 = vpop.f32.mrf.mxu1 }
 0x2d5   : > { %8181 = vmatpush3.bf16.msra.mxu1 %v8391_v57  ;;  %v7860_v29 = vpop.f32.mrf.mxu0 }
 0x2d6   : > { %8182 = vmatprep.subr.bf16.mxu1 %v8392_v21  ;;  %v10301_v19 = vadd.f32 %v7860_v29, %v7812_v55 }
 0x2d7   : > { %8147 = vmatmul.mubr.bf16.gmra.mxu0 %v10193_v36  ;;  %v7816_v25 = vpop.f32.mrf.mxu1  ;;  %v3862_v53 = vpop.f32.mrf.mxu0 }
 0x2d8   : > { %8150 = vmatprep.mubr.bf16.mxu0 %v10209_v47  ;;  %8103 = vmatmul.mubr.bf16.gmra.mxu1 %v5216_v3  ;;  %v10304_v48 = vadd.f32 %v3862_v53, %v3653_v28  ;;  %v5195_v47 = vld [vmem:[#allocation3 + $0xbf] sm:$0xff]  ;;  %v5198_v28 = vld [vmem:[#allocation3 + $0xd7] sm:$0xff]  ;;  %v5200_v53 = vld [vmem:[#allocation3 + $0xe7] sm:$0xff] }
 0x2d9   : > { %8106 = vmatprep.mubr.bf16.mxu1 %v5217_v26  ;;  %8183 = vmatpush3.bf16.msra.mxu1 %v8392_v21  ;;  %v3669_v57 = vpop.f32.mrf.mxu1  ;;  %v7861_v17 = vpop.f32.mrf.mxu0  ;;  %v5218_v21 = vpack.c.bf16 %v5196_v30, %v5195_v47  ;;  %v5219_v3 = vpack.c.bf16 %v5198_v28, %v5197_v9  ;;  %v5202_v28 = vld [vmem:[#allocation3 + $0xf7] sm:$0xff] }
 0x2da   : > { %8184 = vmatprep.subr.bf16.mxu1 %v8393_v52  ;;  %v10306_v62 = vadd.f32 %v7861_v17, %v7813_v14  ;;  %v5500_v17 = vld [vmem:[#allocation3 + $0xc0] sm:$0xff] }
 0x2db   : > { %v7817_v36 = vpop.f32.mrf.mxu1  ;;  %v3865_v55 = vpop.f32.mrf.mxu0 }
 0x2dc   : > { %v10309_v4 = vadd.f32 %v3865_v55, %v3656_v56  ;;  %v5201_v55 = vld [vmem:[#allocation3 + $0xef] sm:$0xff] }
 0x2dd   : > { %8185 = vmatpush3.bf16.msra.mxu1 %v8393_v52  ;;  %v3672_v40 = vpop.f32.mrf.mxu1 }
 0x2de   : > { %v7864_v44 = vpop.f32.mrf.mxu0 }
 0x2df   : > { %8151 = vmatmul.mubr.bf16.gmra.mxu0 %v5521_v0  ;;  %v10311_v34 = vadd.f32 %v7864_v44, %v7816_v25  ;;  %v5523_v25 = vpack.c.bf16 %v5501_v46, %v5500_v17  ;;  %v5199_v0 = vld [vmem:[#allocation3 + $0xdf] sm:$0xff]  ;;  %v5505_v46 = vld [vmem:[#allocation3 + $0xe8] sm:$0xff] }
 0x2e0   : > { %8154 = vmatprep.mubr.bf16.mxu0 %v10228_v27  ;;  %v7820_v14 = vpop.f32.mrf.mxu1  ;;  %8107 = vmatmul.mubr.bf16.gmra.mxu1 %v5218_v21  ;;  %v3878_v29 = vpop.f32.mrf.mxu0  ;;  %v5220_v21 = vpack.c.bf16 %v5200_v53, %v5199_v0  ;;  %v5504_v0 = vld [vmem:[#allocation3 + $0xe0] sm:$0xff] }
 0x2e1   : > { %8110 = vmatprep.mubr.bf16.mxu1 %v5219_v3  ;;  %v10314_v26 = vadd.f32 %v3878_v29, %v3669_v57  ;;  %v5221_v57 = vpack.c.bf16 %v5202_v28, %v5201_v55  ;;  %v5203_v28 = vld [vmem:[#allocation3 + $0xff] sm:$0xff] }
 0x2e2   : > { %v3685_v52 = vpop.f32.mrf.mxu1  ;;  %v7865_v56 = vpop.f32.mrf.mxu0 }
 0x2e3   : > { %v10316_v51 = vadd.f32 %v7865_v56, %v7817_v36 }
 0x2e4   : > { %v7821_v30 = vpop.f32.mrf.mxu1  ;;  %v3881_v9 = vpop.f32.mrf.mxu0 }
 0x2e5   : > { %v10318_v47 = vadd.f32 %v3881_v9, %v3672_v40  ;;  %v5507_v9 = vld [vmem:[#allocation3 + $0xf8] sm:$0xff] }
 0x2e6   : > { %v3688_v27 = vpop.f32.mrf.mxu1 }
 0x2e7   : > { %v7868_v44 = vpop.f32.mrf.mxu0  ;;  %8155 = vmatmul.mubr.bf16.gmra.mxu0 %v5523_v25 }
 0x2e8   : > { %v10320_v3 = vadd.f32 %v7868_v44, %v7820_v14  ;;  %8158 = vmatprep.mubr.bf16.mxu0 %v10237_v1  ;;  %v7824_v36 = vpop.f32.mrf.mxu1  ;;  %8111 = vmatmul.mubr.bf16.gmra.mxu1 %v5220_v21  ;;  %v5525_v14 = vpack.c.bf16 %v5505_v46, %v5504_v0  ;;  %v5526_v1 = vpack.c.bf16 %v5507_v9, %v10243_v24  ;;  %v5509_v46 = vld [vmem:[#allocation3 + $0x108] sm:$0xff] }
 0x2e9   : > { %v3894_v29 = vpop.f32.mrf.mxu0  ;;  %8114 = vmatprep.mubr.bf16.mxu1 %v5221_v57  ;;  %v5222_v57 = vpack.c.bf16 %v5204_v13, %v5203_v28  ;;  %v5208_v24 = vld [vmem:[#allocation3 + $0x127] sm:$0xff] }
 0x2ea   : > { %v10323_v56 = vadd.f32 %v3894_v29, %v3685_v52  ;;  %v3701_v17 = vpop.f32.mrf.mxu1  ;;  %v5508_v13 = vld [vmem:[#allocation3 + $0x100] sm:$0xff] }
 0x2eb   : > { %v7869_v40 = vpop.f32.mrf.mxu0 }
 0x2ec   : > { %v10325_v53 = vadd.f32 %v7869_v40, %v7821_v30  ;;  %v7825_v25 = vpop.f32.mrf.mxu1 }
 0x2ed   : > { %v3897_v55 = vpop.f32.mrf.mxu0 }
 0x2ee   : > { %v10327_v44 = vadd.f32 %v3897_v55, %v3688_v27  ;;  %v3704_v21 = vpop.f32.mrf.mxu1  ;;  %v5511_v55 = vld [vmem:[#allocation3 + $0x118] sm:$0xff] }
 0x2ef   : > { %v7872_v52 = vpop.f32.mrf.mxu0  ;;  %8159 = vmatmul.mubr.bf16.gmra.mxu0 %v5525_v14 }
 0x2f0   : > { %v10330_v29 = vadd.f32 %v7872_v52, %v7824_v36  ;;  %8162 = vmatprep.mubr.bf16.mxu0 %v5526_v1  ;;  %v7828_v18 = vpop.f32.mrf.mxu1  ;;  %8115 = vmatmul.mubr.bf16.gmra.mxu1 %v5222_v57  ;;  %v5788_v36 = vld [vmem:[#allocation3 + $0x39] sm:$0xff]  ;;  %v5527_v1 = vpack.c.bf16 %v5509_v46, %v5508_v13  ;;  %v5510_v52 = vld [vmem:[#allocation3 + $0x110] sm:$0xff] }
 0x2f1   : > { %v3910_v30 = vpop.f32.mrf.mxu0  ;;  %8118 = vmatprep.mubr.bf16.mxu1 %v10149_v7  ;;  %v5528_v2 = vpack.c.bf16 %v5511_v55, %v5510_v52  ;;  %v5789_v55 = vld [vmem:[#allocation3 + $0x41] sm:$0xff]  ;;  %v5790_v52 = vld [vmem:[#allocation3 + $0x49] sm:$0xff] }
 0x2f2   : > { %v10333_v40 = vadd.f32 %v3910_v30, %v3701_v17  ;;  %v3717_v0 = vpop.f32.mrf.mxu1  ;;  %v5224_v17 = vpack.c.bf16 %v5208_v24, %v5207_v15  ;;  %v5787_v30 = vld [vmem:[#allocation3 + $0x31] sm:$0xff] }
 0x2f3   : > { %v7873_v27 = vpop.f32.mrf.mxu0  ;;  %v5819_v12 = vpack.c.bf16 %v5788_v36, %v5787_v30 }
 0x2f4   : > { %v10335_v9 = vadd.f32 %v7873_v27, %v7825_v25  ;;  %v7829_v14 = vpop.f32.mrf.mxu1 }
 0x2f5   : > { %v3913_v28 = vpop.f32.mrf.mxu0 }
 0x2f6   : > { %v10337_v57 = vadd.f32 %v3913_v28, %v3704_v21  ;;  %v3720_v7 = vpop.f32.mrf.mxu1  ;;  %v8396_v21 = vld [vmem:[#allocation3] sm:$0xff] }
 0x2f7   : > { %v7876_v41 = vpop.f32.mrf.mxu0  ;;  %8163 = vmatmul.mubr.bf16.gmra.mxu0 %v5527_v1  ;;  %v5529_v28 = vpack.c.bf16 %v8396_v21, %v8396_v21  ;;  %v5792_v1 = vld [vmem:[#allocation3 + $0x59] sm:$0xff] }
 0x2f8   : > { %v10339_v49 = vadd.f32 %v7876_v41, %v7828_v18  ;;  %8166 = vmatprep.mubr.bf16.mxu0 %v5528_v2  ;;  %v7832_v25 = vpop.f32.mrf.mxu1  ;;  %8119 = vmatmul.mubr.bf16.gmra.mxu1 %v5224_v17  ;;  %v5820_v2 = vpack.c.bf16 %v5790_v52, %v5789_v55  ;;  %v5791_v17 = vld [vmem:[#allocation3 + $0x51] sm:$0xff]  ;;  %v5794_v55 = vld [vmem:[#allocation3 + $0x69] sm:$0xff] }
 0x2f9   : > { %v3926_v27 = vpop.f32.mrf.mxu0  ;;  %8186 = vmatprep.mubr.bf16.mxu1 %v5819_v12  ;;  %v5821_v12 = vpack.c.bf16 %v5792_v1, %v5791_v17  ;;  %v5796_v1 = vld [vmem:[#allocation3 + $0x79] sm:$0xff] }
 0x2fa   : > { %v10341_v32 = vadd.f32 %v3926_v27, %v3717_v0  ;;  %v3733_v46 = vpop.f32.mrf.mxu1 }
 0x2fb   : > { %v7877_v13 = vpop.f32.mrf.mxu0 }
 0x2fc   : > { %v10343_v15 = vadd.f32 %v7877_v13, %v7829_v14  ;;  %v7833_v24 = vpop.f32.mrf.mxu1 }
 0x2fd   : > { %v3929_v36 = vpop.f32.mrf.mxu0 }
 0x2fe   : > { %v10345_v41 = vadd.f32 %v3929_v36, %v3720_v7  ;;  %v3736_v18 = vpop.f32.mrf.mxu1  ;;  %v5793_v36 = vld [vmem:[#allocation3 + $0x61] sm:$0xff] }
 0x2ff   : > { %v7880_v30 = vpop.f32.mrf.mxu0  ;;  %8167 = vmatmul.mubr.bf16.gmra.mxu0 %v5529_v28 }
 0x300   : > { %v10347_v0 = vadd.f32 %v7880_v30, %v7832_v25  ;;  %v7900_v27 = vpop.f32.mrf.mxu1  ;;  %8187 = vmatmul.mubr.bf16.vlgmr.msra.gmra.mxu1 %v5820_v2 }
 0x301   : > { %v3942_v21 = vpop.f32.mrf.mxu0  ;;  %v4232_v39 = vadd.f32 %v7900_v27, %v10269_v59  ;;  %8190 = vmatprep.mubr.bf16.mxu1 %v5821_v12  ;;  %v5822_v59 = vpack.c.bf16 %v5794_v55, %v5793_v36  ;;  %v5795_v12 = vld [vmem:[#allocation3 + $0x71] sm:$0xff]  ;;  %v5797_v36 = vld [vmem:[#allocation3 + $0x81] sm:$0xff]  ;;  %v5798_v55 = vld [vmem:[#allocation3 + $0x89] sm:$0xff] }
 0x302   : > { %v10350_v14 = vadd.f32 %v3942_v21, %v3733_v46  ;;  %v4103_v13 = vpop.f32.mrf.mxu1  ;;  %v5823_v21 = vpack.c.bf16 %v5796_v1, %v5795_v12  ;;  %v5800_v1 = vld [vmem:[#allocation3 + $0x99] sm:$0xff] }
 0x303   : > { %v7881_v20 = vpop.f32.mrf.mxu0  ;;  %v4230_v7 = vadd.f32 %v4103_v13, %v10272_v16 }
 0x304   : > { %v10353_v52 = vadd.f32 %v7881_v20, %v7833_v24  ;;  %v7901_v28 = vpop.f32.mrf.mxu1 }
 0x305   : > { %v3945_v25 = vpop.f32.mrf.mxu0  ;;  %v4233_v17 = vadd.f32 %v7901_v28, %v10277_v45 }
 0x306   : > { %v10356_v2 = vadd.f32 %v3945_v25, %v3736_v18  ;;  %v4106_v30 = vpop.f32.mrf.mxu1 }
 0x307   : > { %v7948_v46 = vpop.f32.mrf.mxu0  ;;  %v4231_v27 = vadd.f32 %v4106_v30, %v10279_v23 }
 0x308   : > { %v10359_v61 = vadd.f32 %v7948_v46, %v4232_v39  ;;  %v7904_v16 = vpop.f32.mrf.mxu1  ;;  %8191 = vmatmul.mubr.bf16.gmra.mxu1 %v5822_v59  ;;  %v5799_v46 = vld [vmem:[#allocation3 + $0x91] sm:$0xff] }
 0x309   : > { %v4408_v20 = vpop.f32.mrf.mxu0  ;;  %v4236_v24 = vadd.f32 %v7904_v16, %v10285_v50  ;;  %8194 = vmatprep.mubr.bf16.mxu1 %v5823_v21  ;;  %v5824_v50 = vpack.c.bf16 %v5798_v55, %v5797_v36  ;;  %v5825_v16 = vpack.c.bf16 %v5800_v1, %v5799_v46  ;;  %v5801_v36 = vld [vmem:[#allocation3 + $0xa1] sm:$0xff]  ;;  %v5802_v55 = vld [vmem:[#allocation3 + $0xa9] sm:$0xff]  ;;  %v5804_v1 = vld [vmem:[#allocation3 + $0xb9] sm:$0xff] }
 0x30a   : > { %v10362_v13 = vadd.f32 %v4408_v20, %v4230_v7  ;;  %v4119_v45 = vpop.f32.mrf.mxu1 }
 0x30b   : > { %v7949_v18 = vpop.f32.mrf.mxu0  ;;  %v4234_v28 = vadd.f32 %v4119_v45, %v10288_v6 }
 0x30c   : > { %v10365_v25 = vadd.f32 %v7949_v18, %v4233_v17  ;;  %v7905_v23 = vpop.f32.mrf.mxu1 }
 0x30d   : > { %v4411_v39 = vpop.f32.mrf.mxu0  ;;  %v4237_v30 = vadd.f32 %v7905_v23, %v10293_v42 }
 0x30e   : > { %v10368_v59 = vadd.f32 %v4411_v39, %v4231_v27  ;;  %v4122_v12 = vpop.f32.mrf.mxu1 }
 0x30f   : > { %v7952_v7 = vpop.f32.mrf.mxu0  ;;  %v4235_v21 = vadd.f32 %v4122_v12, %v10295_v37 }
 0x310   : > { %v10371_v20 = vadd.f32 %v7952_v7, %v4236_v24  ;;  %v7908_v6 = vpop.f32.mrf.mxu1  ;;  %8195 = vmatmul.mubr.bf16.gmra.mxu1 %v5824_v50  ;;  %v5803_v7 = vld [vmem:[#allocation3 + $0xb1] sm:$0xff] }
 0x311   : > { %v4424_v17 = vpop.f32.mrf.mxu0  ;;  %v4240_v45 = vadd.f32 %v7908_v6, %v10301_v19  ;;  %8198 = vmatprep.mubr.bf16.mxu1 %v5825_v16  ;;  %v5826_v19 = vpack.c.bf16 %v5802_v55, %v5801_v36  ;;  %v5827_v6 = vpack.c.bf16 %v5804_v1, %v5803_v7  ;;  %v5805_v36 = vld [vmem:[#allocation3 + $0xc1] sm:$0xff]  ;;  %v5806_v55 = vld [vmem:[#allocation3 + $0xc9] sm:$0xff]  ;;  %v5808_v1 = vld [vmem:[#allocation3 + $0xd9] sm:$0xff] }
 0x312   : > { %v10374_v18 = vadd.f32 %v4424_v17, %v4234_v28  ;;  %v4135_v42 = vpop.f32.mrf.mxu1 }
 0x313   : > { %v7953_v27 = vpop.f32.mrf.mxu0  ;;  %v4238_v23 = vadd.f32 %v4135_v42, %v10304_v48 }
 0x314   : > { %v10377_v39 = vadd.f32 %v7953_v27, %v4237_v30  ;;  %v7909_v37 = vpop.f32.mrf.mxu1 }
 0x315   : > { %v4427_v24 = vpop.f32.mrf.mxu0  ;;  %v4241_v12 = vadd.f32 %v7909_v37, %v10306_v62 }
 0x316   : > { %v10380_v50 = vadd.f32 %v4427_v24, %v4235_v21  ;;  %v4138_v46 = vpop.f32.mrf.mxu1 }
 0x317   : > { %v7956_v28 = vpop.f32.mrf.mxu0  ;;  %v4239_v16 = vadd.f32 %v4138_v46, %v10309_v4 }
 0x318   : > { %v10383_v17 = vadd.f32 %v7956_v28, %v4240_v45  ;;  %v7912_v48 = vpop.f32.mrf.mxu1  ;;  %8199 = vmatmul.mubr.bf16.gmra.mxu1 %v5826_v19  ;;  %v5807_v28 = vld [vmem:[#allocation3 + $0xd1] sm:$0xff] }
 0x319   : > { %v4440_v30 = vpop.f32.mrf.mxu0  ;;  %v4244_v42 = vadd.f32 %v7912_v48, %v10311_v34  ;;  %8202 = vmatprep.mubr.bf16.mxu1 %v5827_v6  ;;  %v5828_v34 = vpack.c.bf16 %v5806_v55, %v5805_v36  ;;  %v5829_v48 = vpack.c.bf16 %v5808_v1, %v5807_v28  ;;  %v5809_v36 = vld [vmem:[#allocation3 + $0xe1] sm:$0xff]  ;;  %v5810_v55 = vld [vmem:[#allocation3 + $0xe9] sm:$0xff]  ;;  %v5812_v1 = vld [vmem:[#allocation3 + $0xf9] sm:$0xff] }
 0x31a   : > { %v10386_v27 = vadd.f32 %v4440_v30, %v4238_v23  ;;  %v4151_v62 = vpop.f32.mrf.mxu1 }
 0x31b   : > { %v7957_v21 = vpop.f32.mrf.mxu0  ;;  %v4242_v37 = vadd.f32 %v4151_v62, %v10314_v26 }
 0x31c   : > { %v10389_v24 = vadd.f32 %v7957_v21, %v4241_v12  ;;  %v7913_v4 = vpop.f32.mrf.mxu1 }
 0x31d   : > { %v4443_v45 = vpop.f32.mrf.mxu0  ;;  %v4245_v46 = vadd.f32 %v7913_v4, %v10316_v51 }
 0x31e   : > { %v10392_v19 = vadd.f32 %v4443_v45, %v4239_v16  ;;  %v4154_v7 = vpop.f32.mrf.mxu1 }
 0x31f   : > { %v7960_v23 = vpop.f32.mrf.mxu0  ;;  %v4243_v6 = vadd.f32 %v4154_v7, %v10318_v47 }
 0x320   : > { %v10395_v30 = vadd.f32 %v7960_v23, %v4244_v42  ;;  %v7916_v26 = vpop.f32.mrf.mxu1  ;;  %8203 = vmatmul.mubr.bf16.gmra.mxu1 %v5828_v34  ;;  %v5811_v23 = vld [vmem:[#allocation3 + $0xf1] sm:$0xff] }
 0x321   : > { %v4456_v12 = vpop.f32.mrf.mxu0  ;;  %v4248_v62 = vadd.f32 %v7916_v26, %v10320_v3  ;;  %8206 = vmatprep.mubr.bf16.mxu1 %v5829_v48  ;;  %v5830_v3 = vpack.c.bf16 %v5810_v55, %v5809_v36  ;;  %v5831_v26 = vpack.c.bf16 %v5812_v1, %v5811_v23  ;;  %v5813_v36 = vld [vmem:[#allocation3 + $0x101] sm:$0xff]  ;;  %v5814_v55 = vld [vmem:[#allocation3 + $0x109] sm:$0xff] }
 0x322   : > { %v10398_v21 = vadd.f32 %v4456_v12, %v4242_v37  ;;  %v4167_v51 = vpop.f32.mrf.mxu1  ;;  %v5832_v23 = vpack.c.bf16 %v5814_v55, %v5813_v36 }
 0x323   : > { %v7961_v16 = vpop.f32.mrf.mxu0  ;;  %v4246_v4 = vadd.f32 %v4167_v51, %v10323_v56 }
 0x324   : > { %v10401_v45 = vadd.f32 %v7961_v16, %v4245_v46  ;;  %v7917_v47 = vpop.f32.mrf.mxu1 }
 0x325   : > { %v4459_v42 = vpop.f32.mrf.mxu0  ;;  %v4249_v7 = vadd.f32 %v7917_v47, %v10325_v53 }
 0x326   : > { %v10404_v34 = vadd.f32 %v4459_v42, %v4243_v6  ;;  %v4170_v28 = vpop.f32.mrf.mxu1 }
 0x327   : > { %v7964_v37 = vpop.f32.mrf.mxu0  ;;  %v4247_v48 = vadd.f32 %v4170_v28, %v10327_v44 }
 0x328   : > { %v10407_v12 = vadd.f32 %v7964_v37, %v4248_v62  ;;  %v7920_v56 = vpop.f32.mrf.mxu1  ;;  %8207 = vmatmul.mubr.bf16.gmra.mxu1 %v5830_v3 }
 0x329   : > { %v4472_v46 = vpop.f32.mrf.mxu0  ;;  %v4252_v51 = vadd.f32 %v7920_v56, %v10330_v29  ;;  %8210 = vmatprep.mubr.bf16.mxu1 %v5831_v26 }
 0x32a   : > { %v10410_v16 = vadd.f32 %v4472_v46, %v4246_v4  ;;  %v4183_v53 = vpop.f32.mrf.mxu1  ;;  %v5818_v46 = vld [vmem:[#allocation3 + $0x129] sm:$0xff] }
 0x32b   : > { %v7965_v6 = vpop.f32.mrf.mxu0  ;;  %v4250_v47 = vadd.f32 %v4183_v53, %v10333_v40 }
 0x32c   : > { %v10413_v42 = vadd.f32 %v7965_v6, %v4249_v7  ;;  %v7921_v44 = vpop.f32.mrf.mxu1  ;;  %v5817_v7 = vld [vmem:[#allocation3 + $0x121] sm:$0xff] }
 0x32d   : > { %v4475_v1 = vpop.f32.mrf.mxu0  ;;  %v4253_v62 = vadd.f32 %v7921_v44, %v10335_v9 }
 0x32e   : > { %v10416_v28 = vadd.f32 %v4475_v1, %v4247_v48  ;;  %v4186_v3 = vpop.f32.mrf.mxu1 }
 0x32f   : > { %v7968_v29 = vpop.f32.mrf.mxu0  ;;  %v4251_v4 = vadd.f32 %v4186_v3, %v10337_v57 }
 0x330   : > { %v10419_v37 = vadd.f32 %v7968_v29, %v4252_v51  ;;  %v7924_v26 = vpop.f32.mrf.mxu1  ;;  %8211 = vmatmul.mubr.bf16.gmra.mxu1 %v5832_v23  ;;  %v5834_v51 = vpack.c.bf16 %v5818_v46, %v5817_v7 }
 0x331   : > { %v4488_v40 = vpop.f32.mrf.mxu0  ;;  %v4256_v56 = vadd.f32 %v7924_v26, %v10339_v49  ;;  %8214 = vmatprep.mubr.bf16.mxu1 %v10255_v38 }
 0x332   : > { %v10423_v53 = vadd.f32 %v4488_v40, %v4250_v47  ;;  %v4199_v9 = vpop.f32.mrf.mxu1 }
 0x333   : > { %v7969_v48 = vpop.f32.mrf.mxu0  ;;  %v4254_v6 = vadd.f32 %v4199_v9, %v10341_v32 }
 0x334   : > { %v10426_v36 = vadd.f32 %v7969_v48, %v4253_v62  ;;  %v7925_v57 = vpop.f32.mrf.mxu1 }
 0x335   : > { %v4491_v55 = vpop.f32.mrf.mxu0  ;;  %v4257_v44 = vadd.f32 %v7925_v57, %v10343_v15 }
 0x336   : > { %v10429_v1 = vadd.f32 %v4491_v55, %v4251_v4  ;;  %v4202_v49 = vpop.f32.mrf.mxu1 }
 0x337   : > { %v7972_v3 = vpop.f32.mrf.mxu0  ;;  %v4255_v38 = vadd.f32 %v4202_v49, %v10345_v41 }
 0x338   : > { %v10432_v23 = vadd.f32 %v7972_v3, %v4256_v56  ;;  %v7928_v47 = vpop.f32.mrf.mxu1  ;;  %8215 = vmatmul.mubr.bf16.gmra.mxu1 %v5834_v51 }
 0x339   : > { %v4504_v29 = vpop.f32.mrf.mxu0  ;;  %v4260_v32 = vadd.f32 %v7928_v47, %v10347_v0 }
 0x33a   : > { %v10435_v62 = vadd.f32 %v4504_v29, %v4254_v6  ;;  %v4215_v26 = vpop.f32.mrf.mxu1 }
 0x33b   : > { %v7973_v40 = vpop.f32.mrf.mxu0  ;;  %v4258_v7 = vadd.f32 %v4215_v26, %v10350_v14 }
 0x33c   : > { %v10438_v15 = vadd.f32 %v7973_v40, %v4257_v44  ;;  %v7929_v4 = vpop.f32.mrf.mxu1 }
 0x33d   : > { %v4507_v46 = vpop.f32.mrf.mxu0  ;;  %v4261_v9 = vadd.f32 %v7929_v4, %v10353_v52 }
 0x33e   : > { %v10441_v41 = vadd.f32 %v4507_v46, %v4255_v38  ;;  %v4218_v56 = vpop.f32.mrf.mxu1 }
 0x33f   : > { %v7976_v48 = vpop.f32.mrf.mxu0  ;;  %v4259_v57 = vadd.f32 %v4218_v56, %v10356_v2 }
 0x340   : > { %v10444_v51 = vadd.f32 %v7976_v48, %v4260_v32  ;;  %v7996_v0 = vpop.f32.mrf.mxu1 }
 0x341   : > { %v4520_v6 = vpop.f32.mrf.mxu0  ;;  %v4842_v55 = vadd.f32 %v7996_v0, %v10359_v61 }
 0x342   : > { %v10447_v49 = vadd.f32 %v4520_v6, %v4258_v7  ;;  %v4713_v14 = vpop.f32.mrf.mxu1 }
 0x343   : > { %v7977_v44 = vpop.f32.mrf.mxu0  ;;  %v4840_v3 = vadd.f32 %v4713_v14, %v10362_v13 }
 0x344   : > { %v10450_v47 = vadd.f32 %v7977_v44, %v4261_v9  ;;  %v7997_v52 = vpop.f32.mrf.mxu1 }
 0x345   : > { %v4523_v38 = vpop.f32.mrf.mxu0  ;;  %v10453_v29 = vadd.f32 %v7997_v52, %v10365_v25 }
 0x346   : > { %v10455_v2 = vadd.f32 %v4523_v38, %v4259_v57  ;;  %v4716_v32 = vpop.f32.mrf.mxu1 }
 0x347   : > { %v8044_v26 = vpop.f32.mrf.mxu0  ;;  %v10458_v40 = vadd.f32 %v4716_v32, %v10368_v59 }
 0x348   : > { %v10460_v61 = vadd.f32 %v8044_v26, %v4842_v55  ;;  %v8000_v7 = vpop.f32.mrf.mxu1 }
 0x349   : > { %v5018_v4 = vpop.f32.mrf.mxu0  ;;  %v4846_v13 = vadd.f32 %v8000_v7, %v10371_v20 }
 0x34a   : > { %v10463_v46 = vadd.f32 %v5018_v4, %v4840_v3  ;;  %v4729_v9 = vpop.f32.mrf.mxu1 }
 0x34b   : > { %v10465_v56 = vpop.f32.mrf.mxu0  ;;  %v4844_v25 = vadd.f32 %v4729_v9, %v10374_v18 }
 0x34c   : > { %v8001_v48 = vpop.f32.mrf.mxu1 }
 0x34d   : > { %v10468_v57 = vpop.f32.mrf.mxu0  ;;  %v10471_v0 = vadd.f32 %v8001_v48, %v10377_v39 }
 0x34e   : > { %v4732_v59 = vpop.f32.mrf.mxu1 }
 0x34f   : > { %v8048_v6 = vpop.f32.mrf.mxu0  ;;  %v10474_v55 = vadd.f32 %v4732_v59, %v10380_v50 }
 0x350   : > { %v10476_v14 = vadd.f32 %v8048_v6, %v4846_v13  ;;  %v8004_v20 = vpop.f32.mrf.mxu1 }
 0x351   : > { %v5034_v44 = vpop.f32.mrf.mxu0  ;;  %v4850_v3 = vadd.f32 %v8004_v20, %v10383_v17 }
 0x352   : > { %v10479_v52 = vadd.f32 %v5034_v44, %v4844_v25  ;;  %v4745_v18 = vpop.f32.mrf.mxu1 }
 0x353   : > { %v10481_v38 = vpop.f32.mrf.mxu0  ;;  %v4848_v32 = vadd.f32 %v4745_v18, %v10386_v27 }
 0x354   : > { %v8005_v39 = vpop.f32.mrf.mxu1 }
 0x355   : > { %v10484_v26 = vpop.f32.mrf.mxu0  ;;  %v10487_v7 = vadd.f32 %v8005_v39, %v10389_v24 }
 0x356   : > { %v4748_v50 = vpop.f32.mrf.mxu1 }
 0x357   : > { %v8052_v4 = vpop.f32.mrf.mxu0  ;;  %v10490_v13 = vadd.f32 %v4748_v50, %v10392_v19 }
 0x358   : > { %v10492_v9 = vadd.f32 %v8052_v4, %v4850_v3  ;;  %v8008_v17 = vpop.f32.mrf.mxu1 }
 0x359   : > { %v5050_v25 = vpop.f32.mrf.mxu0  ;;  %v4854_v48 = vadd.f32 %v8008_v17, %v10395_v30 }
 0x35a   : > { %v10495_v59 = vadd.f32 %v5050_v25, %v4848_v32  ;;  %v4761_v27 = vpop.f32.mrf.mxu1 }
 0x35b   : > { %v10497_v6 = vpop.f32.mrf.mxu0  ;;  %v4852_v20 = vadd.f32 %v4761_v27, %v10398_v21 }
 0x35c   : > { %v8009_v24 = vpop.f32.mrf.mxu1 }
 0x35d   : > { %v10500_v44 = vpop.f32.mrf.mxu0  ;;  %v10503_v18 = vadd.f32 %v8009_v24, %v10401_v45 }
 0x35e   : > { %v4764_v19 = vpop.f32.mrf.mxu1 }
 0x35f   : > { %v8056_v3 = vpop.f32.mrf.mxu0  ;;  %v10506_v39 = vadd.f32 %v4764_v19, %v10404_v34 }
 0x360   : > { %v10508_v50 = vadd.f32 %v8056_v3, %v4854_v48  ;;  %v8012_v30 = vpop.f32.mrf.mxu1 }
 0x361   : > { %v5066_v32 = vpop.f32.mrf.mxu0  ;;  %v4858_v4 = vadd.f32 %v8012_v30, %v10407_v12 }
 0x362   : > { %v10511_v17 = vadd.f32 %v5066_v32, %v4852_v20  ;;  %v4777_v21 = vpop.f32.mrf.mxu1 }
 0x363   : > { %v10513_v25 = vpop.f32.mrf.mxu0  ;;  %v4856_v27 = vadd.f32 %v4777_v21, %v10410_v16 }
 0x364   : > { %v8013_v45 = vpop.f32.mrf.mxu1 }
 0x365   : > { %v10516_v24 = vpop.f32.mrf.mxu0  ;;  %v10519_v5 = vadd.f32 %v8013_v45, %v10413_v42 }
 0x366   : > { %v4780_v34 = vpop.f32.mrf.mxu1 }
 0x367   : > { %v8060_v48 = vpop.f32.mrf.mxu0  ;;  %v10522_v19 = vadd.f32 %v4780_v34, %v10416_v28 }
 0x368   : > { %v10524_v3 = vadd.f32 %v8060_v48, %v4858_v4  ;;  %v8016_v12 = vpop.f32.mrf.mxu1 }
 0x369   : > { %v5082_v20 = vpop.f32.mrf.mxu0  ;;  %v4862_v30 = vadd.f32 %v8016_v12, %v10419_v37 }
 0x36a   : > { %v10527_v32 = vadd.f32 %v5082_v20, %v4856_v27  ;;  %v4793_v16 = vpop.f32.mrf.mxu1 }
 0x36b   : > { %v10529_v21 = vpop.f32.mrf.mxu0  ;;  %v4860_v33 = vadd.f32 %v4793_v16, %v10423_v53 }
 0x36c   : > { %v8017_v42 = vpop.f32.mrf.mxu1 }
 0x36d   : > { %v10532_v45 = vpop.f32.mrf.mxu0  ;;  %v10535_v43 = vadd.f32 %v8017_v42, %v10426_v36 }
 0x36e   : > { %v4796_v28 = vpop.f32.mrf.mxu1 }
 0x36f   : > { %v8064_v4 = vpop.f32.mrf.mxu0  ;;  %v10538_v34 = vadd.f32 %v4796_v28, %v10429_v1 }
 0x370   : > { %v10540_v48 = vadd.f32 %v8064_v4, %v4862_v30  ;;  %v8020_v37 = vpop.f32.mrf.mxu1 }
 0x371   : > { %v5098_v27 = vpop.f32.mrf.mxu0  ;;  %v4866_v12 = vadd.f32 %v8020_v37, %v10432_v23 }
 0x372   : > { %v10543_v20 = vadd.f32 %v5098_v27, %v4860_v33  ;;  %v4809_v53 = vpop.f32.mrf.mxu1 }
 0x373   : > { %v10545_v16 = vpop.f32.mrf.mxu0  ;;  %v4864_v54 = vadd.f32 %v4809_v53, %v10435_v62 }
 0x374   : > { %v8021_v36 = vpop.f32.mrf.mxu1 }
 0x375   : > { %v10548_v42 = vpop.f32.mrf.mxu0  ;;  %v10551_v63 = vadd.f32 %v8021_v36, %v10438_v15 }
 0x376   : > { %v4812_v1 = vpop.f32.mrf.mxu1 }
 0x377   : > { %v8068_v30 = vpop.f32.mrf.mxu0  ;;  %v10554_v28 = vadd.f32 %v4812_v1, %v10441_v41 }
 0x378   : > { %v10556_v4 = vadd.f32 %v8068_v30, %v4866_v12  ;;  %v8024_v33 = vpop.f32.mrf.mxu1 }
 0x379   : > { %v5114_v23 = vpop.f32.mrf.mxu0  ;;  %v4870_v37 = vadd.f32 %v8024_v33, %v10444_v51 }
 0x37a   : > { %v10559_v27 = vadd.f32 %v5114_v23, %v4864_v54  ;;  %v4825_v62 = vpop.f32.mrf.mxu1 }
 0x37b   : > { %v10561_v53 = vpop.f32.mrf.mxu0  ;;  %v4868_v10 = vadd.f32 %v4825_v62, %v10447_v49 }
 0x37c   : > { %v8025_v15 = vpop.f32.mrf.mxu1 }
 0x37d   : > { %v10564_v36 = vpop.f32.mrf.mxu0  ;;  %v10567_v8 = vadd.f32 %v8025_v15, %v10450_v47 }
 0x37e   : > { %v4828_v41 = vpop.f32.mrf.mxu1 }
 0x37f   : > { %v8072_v12 = vpop.f32.mrf.mxu0  ;;  %v10570_v1 = vadd.f32 %v4828_v41, %v10455_v2 }
 0x380   : > { %v10572_v30 = vadd.f32 %v8072_v12, %v4870_v37  ;;  %v8092_v54 = vpop.f32.mrf.mxu1 }
 0x381   : > { %11237 = vst [vmem:[#allocation20_spill] sm:$0xff] %v10570_v1  ;;  %v5130_v51 = vpop.f32.mrf.mxu0  ;;  %v10575_v33 = vadd.f32 %v8092_v54, %v10460_v61 }
 0x382   : > { %v5173_v23 = vadd.f32 %v5130_v51, %v4868_v10  ;;  %v5323_v49 = vpop.f32.mrf.mxu1 }
 0x383   : > { %v10577_v62 = vpop.f32.mrf.mxu0  ;;  %v10580_v22 = vadd.f32 %v5323_v49, %v10463_v46 }
 0x384   : > { %v10582_v47 = vpop.f32.mrf.mxu1 }
 0x385   : > { %v10584_v15 = vpop.f32.mrf.mxu0 }
 0x386   : > { %11238 = vst [vmem:[#allocation21_spill] sm:$0xff] %v10584_v15  ;;  %v10586_v2 = vpop.f32.mrf.mxu1 }
 0x387   : > { %v8140_v37 = vpop.f32.mrf.mxu0 }
 0x388   : > { %v8096_v41 = vpop.f32.mrf.mxu1 }
 0x389   : > { %v5628_v12 = vpop.f32.mrf.mxu0  ;;  %v10589_v35 = vadd.f32 %v8096_v41, %v10476_v14 }
 0x38a   : > { %v5339_v61 = vpop.f32.mrf.mxu1 }
 0x38b   : > { %v10591_v10 = vpop.f32.mrf.mxu0  ;;  %v10594_v54 = vadd.f32 %v5339_v61, %v10479_v52 }
 0x38c   : > { %v10596_v46 = vpop.f32.mrf.mxu1 }
 0x38d   : > { %11239 = vst [vmem:[#allocation60_spill] sm:$0xff] %v10594_v54  ;;  %11240 = vst [vmem:[#allocation67_spill] sm:$0xff] %v10596_v46  ;;  %v10598_v51 = vpop.f32.mrf.mxu0 }
 0x38e   : > { %v10600_v49 = vpop.f32.mrf.mxu1 }
 0x38f   : > { %11241 = vst [vmem:[#allocation24_spill] sm:$0xff] %v10600_v49  ;;  %v10602_v31 = vpop.f32.mrf.mxu0 }
 0x390   : > { %v8100_v58 = vpop.f32.mrf.mxu1 }
 0x391   : > { %v10605_v11 = vadd.f32 %v8100_v58, %v10492_v9  ;;  %v10607_v41 = vpop.f32.mrf.mxu0 }
 0x392   : > { %v5355_v14 = vpop.f32.mrf.mxu1 }
 0x393   : > { %11242 = vst [vmem:[#allocation31_spill] sm:$0xff] %v10605_v11  ;;  %v10610_v60 = vadd.f32 %v5355_v14, %v10495_v59  ;;  %v10616_v54 = vpop.f32.mrf.mxu0 }
 0x394   : > { %v10612_v52 = vpop.f32.mrf.mxu1 }
 0x395   : > { %11243 = vst [vmem:[#allocation62_spill] sm:$0xff] %v10610_v60  ;;  %11244 = vst [vmem:[#allocation22_spill] sm:$0xff] %v10612_v52  ;;  %v10621_v46 = vpop.f32.mrf.mxu0 }
 0x396   : > { %v10614_v61 = vpop.f32.mrf.mxu1 }
 0x397   : > { %11245 = vst [vmem:[#allocation70_spill] sm:$0xff] %v10614_v61  ;;  %v10630_v14 = vpop.f32.mrf.mxu0 }
 0x398   : > { %v8104_v15 = vpop.f32.mrf.mxu1 }
 0x399   : > { %v10619_v49 = vadd.f32 %v8104_v15, %v10508_v50  ;;  %v10635_v52 = vpop.f32.mrf.mxu0 }
 0x39a   : > { %v5371_v1 = vpop.f32.mrf.mxu1 }
 0x39b   : > { %11246 = vst [vmem:[#allocation25_spill] sm:$0xff] %v10619_v49  ;;  %v10624_v58 = vadd.f32 %v5371_v1, %v10511_v17  ;;  %v10644_v1 = vpop.f32.mrf.mxu0 }
 0x39c   : > { %v10626_v9 = vpop.f32.mrf.mxu1 }
 0x39d   : > { %11247 = vst [vmem:[#allocation26_spill] sm:$0xff] %v10624_v58  ;;  %11248 = vst [vmem:[#allocation27_spill] sm:$0xff] %v10626_v9  ;;  %v10649_v9 = vpop.f32.mrf.mxu0 }
 0x39e   : > { %v10628_v59 = vpop.f32.mrf.mxu1 }
 0x39f   : > { %11249 = vst [vmem:[#allocation28_spill] sm:$0xff] %v10628_v59 }
 0x3a0   : > { %v8108_v60 = vpop.f32.mrf.mxu1 }
 0x3a1   : > { %v10633_v61 = vadd.f32 %v8108_v60, %v10524_v3 }
 0x3a2   : > { %v5387_v11 = vpop.f32.mrf.mxu1 }
 0x3a3   : > { %11250 = vst [vmem:[#allocation74_spill] sm:$0xff] %v10633_v61  ;;  %v10638_v50 = vadd.f32 %v5387_v11, %v10527_v32  ;;  %v10658_v32 = vpop.f32.mrf.mxu0 }
 0x3a4   : > { %v10640_v15 = vpop.f32.mrf.mxu1 }
 0x3a5   : > { %11251 = vst [vmem:[#allocation63_spill] sm:$0xff] %v10638_v50  ;;  %11252 = vst [vmem:[#allocation29_spill] sm:$0xff] %v10640_v15  ;;  %v10663_v15 = vpop.f32.mrf.mxu0 }
 0x3a6   : > { %v10642_v17 = vpop.f32.mrf.mxu1 }
 0x3a7   : > { %11253 = vst [vmem:[#allocation30_spill] sm:$0xff] %v10642_v17 }
 0x3a8   : > { %v8112_v58 = vpop.f32.mrf.mxu1 }
 0x3a9   : > { %v10647_v49 = vadd.f32 %v8112_v58, %v10540_v48 }
 0x3aa   : > { %v5403_v59 = vpop.f32.mrf.mxu1 }
 0x3ab   : > { %11254 = vst [vmem:[#allocation32_spill] sm:$0xff] %v10647_v49  ;;  %v10652_v60 = vadd.f32 %v5403_v59, %v10543_v20  ;;  %v10672_v59 = vpop.f32.mrf.mxu0 }
 0x3ac   : > { %v10654_v3 = vpop.f32.mrf.mxu1 }
 0x3ad   : > { %11255 = vst [vmem:[#allocation79_spill] sm:$0xff] %v10652_v60  ;;  %11256 = vst [vmem:[#allocation65_spill] sm:$0xff] %v10654_v3  ;;  %v10677_v3 = vpop.f32.mrf.mxu0 }
 0x3ae   : > { %v10656_v11 = vpop.f32.mrf.mxu1 }
 0x3af   : > { %11257 = vst [vmem:[#allocation33_spill] sm:$0xff] %v10656_v11 }
 0x3b0   : > { %v8116_v50 = vpop.f32.mrf.mxu1 }
 0x3b1   : > { %v10661_v61 = vadd.f32 %v8116_v50, %v10556_v4 }
 0x3b2   : > { %v5419_v17 = vpop.f32.mrf.mxu1 }
 0x3b3   : > { %11258 = vst [vmem:[#allocation34_spill] sm:$0xff] %v10661_v61  ;;  %v10666_v48 = vadd.f32 %v5419_v17, %v10559_v27  ;;  %v5148_v27 = vadd.f32 %v10465_v56, %v10453_v29  ;;  %v5757_v17 = vadd.f32 %v8140_v37, %v10575_v33  ;;  %v5152_v29 = vadd.f32 %v10481_v38, %v10471_v0  ;;  %v10706_v33 = vld [vmem:[%s10993_s5] ss:$0 sm:$0xff] }
 0x3b4   : > { %v10668_v58 = vpop.f32.mrf.mxu1  ;;  %v5150_v56 = vadd.f32 %v10484_v26, %v10474_v55  ;;  %v5156_v0 = vadd.f32 %v10497_v6, %v10487_v7  ;;  %v10717_v55 = vadd.f32 %v10500_v44, %v10490_v13  ;;  %v10721_v38 = vadd.f32 %v10513_v25, %v10503_v18 }
 0x3b5   : > { %11259 = vst [vmem:[#allocation66_spill] sm:$0xff] %v10666_v48  ;;  %v10688_v48 = vpop.f32.mrf.mxu0  ;;  %v10725_v26 = vadd.f32 %v10516_v24, %v10506_v39  ;;  %v10737_v18 = vadd.f32 %v10529_v21, %v10519_v5  ;;  %v10741_v39 = vadd.f32 %v10532_v45, %v10522_v19  ;;  %v10745_v25 = vadd.f32 %v10545_v16, %v10535_v43 }
 0x3b6   : > { %v10670_v20 = vpop.f32.mrf.mxu1  ;;  %v10749_v24 = vadd.f32 %v10548_v42, %v10538_v34  ;;  %v10758_v19 = vadd.f32 %v10561_v53, %v10551_v63  ;;  %v10762_v43 = vadd.f32 %v10564_v36, %v10554_v28  ;;  %v10766_v45 = vadd.f32 %v10577_v62, %v10567_v8  ;;  %v11263_v42 = vld [vmem:[#allocation67_spill] sm:$0xff]  ;;  %v11264_v53 = vld [vmem:[#allocation20_spill] sm:$0xff] }
 0x3b7   : > { %11260 = vst [vmem:[#allocation83_spill] sm:$0xff] %v10670_v20  ;;  %v5761_v34 = vadd.f32 %v10602_v31, %v10589_v35  ;;  %v11266_v36 = vld [vmem:[#allocation60_spill] sm:$0xff] }
 0x3b8   : > { %v8120_v60 = vpop.f32.mrf.mxu1  ;;  %v5759_v8 = vadd.f32 %v10607_v41, %v11266_v36  ;;  %v11267_v31 = vld [vmem:[#allocation24_spill] sm:$0xff] }
 0x3b9   : > { %v10675_v11 = vadd.f32 %v8120_v60, %v10572_v30  ;;  %v10693_v30 = vld [vmem:[%s10992_s4] ss:$0 sm:$0xff]  ;;  %v5453_v60 = vadd.f32 %v10582_v47, %v5148_v27 }
 0x3ba   : > { %v5435_v49 = vpop.f32.mrf.mxu1 }
 0x3bb   : > { %v10679_v4 = vadd.f32 %v5435_v49, %v5173_v23  ;;  %v5146_v23 = vadd.f32 %v10468_v57, %v10458_v40  ;;  %v5755_v49 = vadd.f32 %v5628_v12, %v10580_v22  ;;  %v10710_v22 = vpop.f32.mrf.mxu0 }
 0x3bc   : > { %v10681_v50 = vpop.f32.mrf.mxu1 }
 0x3bd   : > { %11261 = vst [vmem:[#allocation87_spill] sm:$0xff] %v10679_v4  ;;  %v5758_v4 = vadd.f32 %v10591_v10, %v5453_v60  ;;  %v5451_v40 = vadd.f32 %v10586_v2, %v5146_v23  ;;  %v10730_v2 = vld [vmem:[%s10994_s6] ss:$0 sm:$0xff]  ;;  %v11265_v23 = vld [vmem:[#allocation21_spill] sm:$0xff] }
 0x3be   : > { %v10683_v61 = vpop.f32.mrf.mxu1  ;;  %v10776_v28 = vadd.f32 %v11265_v23, %v11264_v53  ;;  %v11272_v53 = vld [vmem:[#allocation62_spill] sm:$0xff] }
 0x3bf   : > { %11262 = vst [vmem:[#allocation68_spill] sm:$0xff] %v10683_v61  ;;  %v5756_v7 = vadd.f32 %v10598_v51, %v5451_v40  ;;  %v10751_v51 = vpop.f32.mrf.mxu0  ;;  %v5763_v23 = vadd.f32 %v10635_v52, %v11272_v53 }
 0x3c0   : > { %v8188_v20 = vpop.f32.mrf.mxu1 }
 0x3c1   : > { %v6062_v61 = vadd.f32 %v8188_v20, %v5757_v17 }
 0x3c2   : > { %v5933_v37 = vpop.f32.mrf.mxu1 }
 0x3c3   : > { %v6101_v57 = vadd.f32 %v10693_v30, %v6062_v61  ;;  %v6060_v47 = vadd.f32 %v5933_v37, %v5755_v49  ;;  %v10782_v37 = vpop.f32.mrf.mxu0 }
 0x3c4   : > { %v8189_v12 = vpop.f32.mrf.mxu1 }
 0x3c5   : > { %v6140_v6 = vmul.f32 %v10706_v33, %v6101_v57  ;;  %v6099_v13 = vadd.f32 %v10693_v30, %v6060_v47  ;;  %v6063_v44 = vadd.f32 %v8189_v12, %v5758_v4  ;;  %v5457_v4 = vadd.f32 %v11263_v42, %v5152_v29  ;;  %v11268_v47 = vld [vmem:[#allocation22_spill] sm:$0xff]  ;;  %v10795_v42 = vpop.f32.mrf.mxu0 }
 0x3c6   : > { %v5936_v10 = vpop.f32.mrf.mxu1  ;;  %v5455_v29 = vadd.f32 %v11267_v31, %v5150_v56  ;;  %v5461_v12 = vadd.f32 %v11268_v47, %v5156_v0  ;;  %v11269_v56 = vld [vmem:[#allocation31_spill] sm:$0xff] }
 0x3c7   : > { %v6179_v61 = vadd.f32 %v10730_v2, %v6140_v6  ;;  %v6138_v5 = vmul.f32 %v10706_v33, %v6099_v13  ;;  %v6102_v21 = vadd.f32 %v10693_v30, %v6063_v44  ;;  %v6061_v20 = vadd.f32 %v5936_v10, %v5756_v7 }
 0x3c8   : > { %v8192_v16 = vpop.f32.mrf.mxu1  ;;  %v5762_v35 = vadd.f32 %v10616_v54, %v5457_v4  ;;  %v5760_v44 = vadd.f32 %v10621_v46, %v5455_v29  ;;  %v11271_v4 = vld [vmem:[#allocation81_spill] sm:$0xff] }
 0x3c9   : > { %v6177_v27 = vadd.f32 %v10730_v2, %v6138_v5  ;;  %v6141_v17 = vmul.f32 %v10706_v33, %v6102_v21  ;;  %v6100_v63 = vadd.f32 %v10693_v30, %v6061_v20  ;;  %v6211_v62 = vmax.f32 %v6179_v61, 0.0  ;;  %v11270_v21 = vld [vmem:[#allocation75_spill] sm:$0xff] }
 0x3ca   : > { %v6066_v49 = vadd.f32 %v8192_v16, %v5761_v34  ;;  %v5949_v60 = vpop.f32.mrf.mxu1  ;;  %v5765_v5 = vadd.f32 %v10630_v14, %v11269_v56  ;;  %v11273_v14 = vld [vmem:[#allocation71_spill] sm:$0xff] }
 0x3cb   : > { %v6180_v40 = vadd.f32 %v10730_v2, %v6141_v17  ;;  %v6139_v57 = vmul.f32 %v10706_v33, %v6100_v63  ;;  %v6209_v7 = vmax.f32 %v6177_v27, 0.0  ;;  %v6064_v13 = vadd.f32 %v5949_v60, %v5759_v8 }
 0x3cc   : > { %v6105_v6 = vadd.f32 %v10693_v30, %v6066_v49  ;;  %v8193_v41 = vpop.f32.mrf.mxu1  ;;  %v6243_v20 = vmul.f32 %v6211_v62, %v11270_v21 }
 0x3cd   : > { %v6212_v10 = vmax.f32 %v6180_v40, 0.0  ;;  %v6178_v54 = vadd.f32 %v10730_v2, %v6139_v57  ;;  %v6067_v61 = vadd.f32 %v8193_v41, %v5762_v35  ;;  %v6103_v0 = vadd.f32 %v10693_v30, %v6064_v13  ;;  %v11274_v35 = vld [vmem:[#allocation77_spill] sm:$0xff]  ;;  %v10809_v13 = vpop.f32.mrf.mxu0 }
 0x3ce   : > { %v6144_v34 = vmul.f32 %v10706_v33, %v6105_v6  ;;  %v5952_v16 = vpop.f32.mrf.mxu1  ;;  %v6241_v36 = vmul.f32 %v6209_v7, %v11273_v14  ;;  %v5766_v57 = vadd.f32 %v10644_v1, %v5461_v12  ;;  %v11276_v1 = vld [vmem:[#allocation27_spill] sm:$0xff]  ;;  %v11279_v14 = vld [vmem:[#allocation94_spill] sm:$0xff] }
 0x3cf   : > { %v6244_v27 = vmul.f32 %v6212_v10, %v11271_v4  ;;  %v6210_v17 = vmax.f32 %v6178_v54, 0.0  ;;  %v6106_v46 = vadd.f32 %v10693_v30, %v6067_v61  ;;  %v6065_v63 = vadd.f32 %v5952_v16, %v5760_v44  ;;  %v11275_v61 = vld [vmem:[#allocation70_spill] sm:$0xff] }
 0x3d0   : > { %v6183_v8 = vadd.f32 %v10730_v2, %v6144_v34  ;;  %v6142_v62 = vmul.f32 %v10706_v33, %v6103_v0  ;;  %v8196_v49 = vpop.f32.mrf.mxu1  ;;  %v5459_v56 = vadd.f32 %v11275_v61, %v10717_v55  ;;  %v5465_v12 = vadd.f32 %v11276_v1, %v10721_v38  ;;  %v11278_v55 = vld [vmem:[#allocation90_spill] sm:$0xff] }
 0x3d1   : > { %v6815_v60 = vpack.c.bf16 %v6244_v27, %v6243_v20  ;;  %v6242_v31 = vmul.f32 %v6210_v17, %v11274_v35  ;;  %v6145_v29 = vmul.f32 %v10706_v33, %v6106_v46  ;;  %v6104_v40 = vadd.f32 %v10693_v30, %v6065_v63  ;;  %v11277_v17 = vld [vmem:[#allocation28_spill] sm:$0xff]  ;;  %v11281_v35 = vld [vmem:[#allocation26_spill] sm:$0xff] }
 0x3d2   : > { %v6215_v47 = vmax.f32 %v6183_v8, 0.0  ;;  %v6181_v52 = vadd.f32 %v10730_v2, %v6142_v62  ;;  %v6070_v6 = vadd.f32 %v8196_v49, %v5765_v5  ;;  %v5965_v7 = vpop.f32.mrf.mxu1  ;;  %v5764_v27 = vadd.f32 %v10649_v9, %v5459_v56 }
 0x3d3   : > { %6907 = vst [vmem:[%s8489_s22 + $0x18] sm:$0xff] %v6815_v60   ;;  %v6810_v41 = vpack.c.bf16 %v6242_v31, %v6241_v36  ;;  %v6184_v44 = vadd.f32 %v10730_v2, %v6145_v29  ;;  %v6143_v10 = vmul.f32 %v10706_v33, %v6104_v40  ;;  %v6068_v54 = vadd.f32 %v5965_v7, %v5763_v23  ;;  %v10827_v23 = vpop.f32.mrf.mxu0  ;;  %v11280_v60 = vld [vmem:[#allocation25_spill] sm:$0xff] }
 0x3d4   : > { %v6213_v21 = vmax.f32 %v6181_v52, 0.0  ;;  %v6109_v20 = vadd.f32 %v10693_v30, %v6070_v6  ;;  %v8197_v5 = vpop.f32.mrf.mxu1  ;;  %v5463_v46 = vadd.f32 %v11277_v17, %v10725_v26  ;;  %v6247_v63 = vmul.f32 %v6215_v47, %v11278_v55  ;;  %v11283_v6 = vld [vmem:[#allocation88_spill] sm:$0xff]  ;;  %v11285_v17 = vld [vmem:[#allocation30_spill] sm:$0xff] }
 0x3d5   : > { %6906 = vst [vmem:[%s8489_s22 + $0x10] sm:$0xff] %v6810_v41   ;;  %v6216_v34 = vmax.f32 %v6184_v44, 0.0  ;;  %v6182_v0 = vadd.f32 %v10730_v2, %v6143_v10  ;;  %v6107_v16 = vadd.f32 %v10693_v30, %v6068_v54  ;;  %v6071_v4 = vadd.f32 %v8197_v5, %v5766_v57  ;;  %v11282_v57 = vld [vmem:[#allocation84_spill] sm:$0xff]  ;;  %v10843_v56 = vpop.f32.mrf.mxu0 }
 0x3d6   : > { %v6148_v38 = vmul.f32 %v10706_v33, %v6109_v20  ;;  %v5968_v53 = vpop.f32.mrf.mxu1  ;;  %v5769_v9 = vadd.f32 %v10658_v32, %v11280_v60  ;;  %v5767_v26 = vadd.f32 %v10663_v15, %v11281_v35  ;;  %v6245_v47 = vmul.f32 %v6213_v21, %v11282_v57 }
 0x3d7   : > { %v6248_v36 = vmul.f32 %v6216_v34, %v11279_v14  ;;  %v6214_v8 = vmax.f32 %v6182_v0, 0.0  ;;  %v6146_v62 = vmul.f32 %v10706_v33, %v6107_v16  ;;  %v6110_v49 = vadd.f32 %v10693_v30, %v6071_v4  ;;  %v11284_v34 = vld [vmem:[#allocation29_spill] sm:$0xff] }
 0x3d8   : > { %v6187_v31 = vadd.f32 %v10730_v2, %v6148_v38  ;;  %v6069_v29 = vadd.f32 %v5968_v53, %v5764_v27  ;;  %v8200_v40 = vpop.f32.mrf.mxu1  ;;  %v5770_v15 = vadd.f32 %v10672_v59, %v5465_v12  ;;  %v5768_v5 = vadd.f32 %v10677_v3, %v5463_v46  ;;  %v11286_v38 = vld [vmem:[#allocation98_spill] sm:$0xff] }
 0x3d9   : > { %v6825_v52 = vpack.c.bf16 %v6248_v36, %v6247_v63  ;;  %v6246_v7 = vmul.f32 %v6214_v8, %v11283_v6  ;;  %v6149_v41 = vmul.f32 %v10706_v33, %v6110_v49  ;;  %v6185_v10 = vadd.f32 %v10730_v2, %v6146_v62  ;;  %v10859_v36 = vpop.f32.mrf.mxu0  ;;  %v11287_v8 = vld [vmem:[#allocation7_spill] sm:$0xff] }
 0x3da   : > { %v6219_v44 = vmax.f32 %v6187_v31, 0.0  ;;  %v6108_v32 = vadd.f32 %v10693_v30, %v6069_v29  ;;  %v6074_v54 = vadd.f32 %v8200_v40, %v5769_v9  ;;  %v5981_v61 = vpop.f32.mrf.mxu1  ;;  %v5469_v0 = vadd.f32 %v11284_v34, %v10737_v18  ;;  %v11288_v9 = vld [vmem:[#allocation74_spill] sm:$0xff] }
 0x3db   : > { %6909 = vst [vmem:[%s8489_s22 + $0x28] sm:$0xff] %v6825_v52   ;;  %v6820_v1 = vpack.c.bf16 %v6246_v7, %v6245_v47  ;;  %v6188_v21 = vadd.f32 %v10730_v2, %v6149_v41  ;;  %v6072_v20 = vadd.f32 %v5981_v61, %v5767_v26  ;;  %v5467_v59 = vadd.f32 %v11285_v17, %v10741_v39  ;;  %v11289_v26 = vld [vmem:[#allocation63_spill] sm:$0xff]  ;;  %v11290_v41 = vld [vmem:[#allocation96_spill] sm:$0xff] }
 0x3dc   : > { %v6147_v16 = vmul.f32 %v10706_v33, %v6108_v32  ;;  %v6113_v4 = vadd.f32 %v10693_v30, %v6074_v54  ;;  %v8201_v27 = vpop.f32.mrf.mxu1  ;;  %v6251_v53 = vmul.f32 %v6219_v44, %v11286_v38  ;;  %v6217_v14 = vmax.f32 %v6185_v10, 0.0  ;;  %v11291_v10 = vld [vmem:[#allocation97_spill] sm:$0xff] }
 0x3dd   : > { %6908 = vst [vmem:[%s8489_s22 + $0x20] sm:$0xff] %v6820_v1   ;;  %v6220_v12 = vmax.f32 %v6188_v21, 0.0  ;;  %v6111_v55 = vadd.f32 %v10693_v30, %v6072_v20  ;;  %v6075_v63 = vadd.f32 %v8201_v27, %v5770_v15  ;;  %v5773_v35 = vadd.f32 %v10688_v48, %v11288_v9  ;;  %v10875_v15 = vpop.f32.mrf.mxu0  ;;  %v11297_v9 = vld [vmem:[#allocation8_spill] sm:$0xff] }
 0x3de   : > { %v6186_v3 = vadd.f32 %v10730_v2, %v6147_v16  ;;  %v6152_v18 = vmul.f32 %v10706_v33, %v6113_v4  ;;  %v5984_v46 = vpop.f32.mrf.mxu1  ;;  %v5771_v31 = vadd.f32 %v10710_v22, %v11289_v26  ;;  %v6249_v44 = vmul.f32 %v6217_v14, %v11290_v41 }
 0x3df   : > { %v6252_v62 = vmul.f32 %v6220_v12, %v11287_v8  ;;  %v6150_v49 = vmul.f32 %v10706_v33, %v6111_v55  ;;  %v6114_v39 = vadd.f32 %v10693_v30, %v6075_v63  ;;  %v6073_v60 = vadd.f32 %v5984_v46, %v5768_v5  ;;  %v11292_v5 = vld [vmem:[#allocation65_spill] sm:$0xff]  ;;  %v11293_v63 = vld [vmem:[#allocation32_spill] sm:$0xff]  ;;  %v8165_v46 = vpop.f32.mrf.mxu0 }
 0x3e0   : > { %v6218_v29 = vmax.f32 %v6186_v3, 0.0  ;;  %v6191_v40 = vadd.f32 %v10730_v2, %v6152_v18  ;;  %v8204_v57 = vpop.f32.mrf.mxu1  ;;  %v5774_v22 = vadd.f32 %v10751_v51, %v5469_v0  ;;  %v5473_v34 = vadd.f32 %v11292_v5, %v10745_v25  ;;  %v11295_v8 = vld [vmem:[#allocation9_spill] sm:$0xff] }
 0x3e1   : > { %v6835_v47 = vpack.c.bf16 %v6252_v62, %v6251_v53  ;;  %v6189_v52 = vadd.f32 %v10730_v2, %v6150_v49  ;;  %v6153_v6 = vmul.f32 %v10706_v33, %v6114_v39  ;;  %v6112_v7 = vadd.f32 %v10693_v30, %v6073_v60  ;;  %v11294_v53 = vld [vmem:[#allocation5_spill] sm:$0xff]  ;;  %v11296_v39 = vld [vmem:[#allocation79_spill] sm:$0xff] }
 0x3e2   : > { %v6250_v32 = vmul.f32 %v6218_v29, %v11291_v10  ;;  %v6223_v48 = vmax.f32 %v6191_v40, 0.0  ;;  %v6078_v54 = vadd.f32 %v8204_v57, %v5773_v35  ;;  %v5997_v61 = vpop.f32.mrf.mxu1  ;;  %v5772_v12 = vadd.f32 %v10782_v37, %v5467_v59  ;;  %v11298_v40 = vld [vmem:[#allocation4_spill] sm:$0xff] }
 0x3e3   : > { %6911 = vst [vmem:[%s8489_s22 + $0x38] sm:$0xff] %v6835_v47   ;;  %v6192_v1 = vadd.f32 %v10730_v2, %v6153_v6  ;;  %v6151_v21 = vmul.f32 %v10706_v33, %v6112_v7  ;;  %v6076_v20 = vadd.f32 %v5997_v61, %v5771_v31  ;;  %v6221_v4 = vmax.f32 %v6189_v52, 0.0  ;;  %v11299_v7 = vld [vmem:[#allocation33_spill] sm:$0xff] }
 0x3e4   : > { %v6830_v16 = vpack.c.bf16 %v6250_v32, %v6249_v44  ;;  %v6117_v27 = vadd.f32 %v10693_v30, %v6078_v54  ;;  %v8205_v17 = vpop.f32.mrf.mxu1  ;;  %v5777_v38 = vadd.f32 %v10795_v42, %v11293_v63  ;;  %v6255_v14 = vmul.f32 %v6223_v48, %v11294_v53  ;;  %v5727_v48 = vpop.f32.mrf.mxu0 }
 0x3e5   : > { %v6224_v51 = vmax.f32 %v6192_v1, 0.0  ;;  %v6190_v0 = vadd.f32 %v10730_v2, %v6151_v21  ;;  %v6115_v55 = vadd.f32 %v10693_v30, %v6076_v20  ;;  %v6079_v3 = vadd.f32 %v8205_v17, %v5774_v22 }
 0x3e6   : > { %6910 = vst [vmem:[%s8489_s22 + $0x30] sm:$0xff] %v6830_v16   ;;  %v6156_v25 = vmul.f32 %v10706_v33, %v6117_v27  ;;  %v6000_v18 = vpop.f32.mrf.mxu1  ;;  %v5775_v60 = vadd.f32 %v10809_v13, %v11296_v39  ;;  %v6253_v42 = vmul.f32 %v6221_v4, %v11297_v9  ;;  %v5778_v6 = vadd.f32 %v10827_v23, %v5473_v34  ;;  %v11300_v16 = vld [vmem:[#allocation34_spill] sm:$0xff]  ;;  %v11301_v27 = vld [vmem:[#allocation83_spill] sm:$0xff] }
 0x3e7   : > { %v6256_v62 = vmul.f32 %v6224_v51, %v11295_v8  ;;  %v6222_v49 = vmax.f32 %v6190_v0, 0.0  ;;  %v6154_v37 = vmul.f32 %v10706_v33, %v6115_v55  ;;  %v6077_v59 = vadd.f32 %v6000_v18, %v5772_v12  ;;  %v8168_v55 = vpop.f32.mrf.mxu0  ;;  %v11304_v8 = vld [vmem:[#allocation12_spill] sm:$0xff]  ;;  %v11306_v9 = vld [vmem:[#allocation66_spill] sm:$0xff] }
 0x3e8   : > { %v6195_v35 = vadd.f32 %v10730_v2, %v6156_v25  ;;  %v6118_v26 = vadd.f32 %v10693_v30, %v6079_v3  ;;  %v8208_v31 = vpop.f32.mrf.mxu1  ;;  %v5471_v13 = vadd.f32 %v11299_v7, %v10749_v24  ;;  %v5477_v32 = vadd.f32 %v10668_v58, %v10758_v19  ;;  %v11303_v3 = vld [vmem:[#allocation6_spill] sm:$0xff] }
 0x3e9   : > { %v6845_v29 = vpack.c.bf16 %v6256_v62, %v6255_v14  ;;  %v6254_v57 = vmul.f32 %v6222_v49, %v11298_v40  ;;  %v6193_v47 = vadd.f32 %v10730_v2, %v6154_v37  ;;  %v6116_v52 = vadd.f32 %v10693_v30, %v6077_v59  ;;  %v11302_v14 = vld [vmem:[#allocation11_spill] sm:$0xff]  ;;  %v11305_v49 = vld [vmem:[#allocation10_spill] sm:$0xff] }
 0x3ea   : > { %v6157_v41 = vmul.f32 %v10706_v33, %v6118_v26  ;;  %v6082_v44 = vadd.f32 %v8208_v31, %v5777_v38  ;;  %v6013_v10 = vpop.f32.mrf.mxu1  ;;  %v6227_v1 = vmax.f32 %v6195_v35, 0.0  ;;  %v5776_v5 = vadd.f32 %v10843_v56, %v5471_v13 }
 0x3eb   : > { %6913 = vst [vmem:[%s8489_s22 + $0x48] sm:$0xff] %v6845_v29   ;;  %v6840_v54 = vpack.c.bf16 %v6254_v57, %v6253_v42  ;;  %v6155_v61 = vmul.f32 %v10706_v33, %v6116_v52  ;;  %v6080_v22 = vadd.f32 %v6013_v10, %v5775_v60  ;;  %v6225_v21 = vmax.f32 %v6193_v47, 0.0  ;;  %v5740_v57 = vpop.f32.mrf.mxu0 }
 0x3ec   : > { %v6196_v23 = vadd.f32 %v10730_v2, %v6157_v41  ;;  %v6121_v24 = vadd.f32 %v10693_v30, %v6082_v44  ;;  %v8209_v20 = vpop.f32.mrf.mxu1  ;;  %v5781_v4 = vadd.f32 %v10859_v36, %v11300_v16  ;;  %v5475_v17 = vadd.f32 %v11301_v27, %v10762_v43  ;;  %v11310_v16 = vld [vmem:[#allocation13_spill] sm:$0xff] }
 0x3ed   : > { %6912 = vst [vmem:[%s8489_s22 + $0x40] sm:$0xff] %v6840_v54   ;;  %v6194_v34 = vadd.f32 %v10730_v2, %v6155_v61  ;;  %v6119_v58 = vadd.f32 %v10693_v30, %v6080_v22  ;;  %v6083_v19 = vadd.f32 %v8209_v20, %v5778_v6  ;;  %v6259_v25 = vmul.f32 %v6227_v1, %v11302_v14  ;;  %v11307_v22 = vld [vmem:[#allocation61_spill] sm:$0xff] }
 0x3ee   : > { %v6228_v12 = vmax.f32 %v6196_v23, 0.0  ;;  %v6160_v51 = vmul.f32 %v10706_v33, %v6121_v24  ;;  %v6016_v0 = vpop.f32.mrf.mxu1  ;;  %v6257_v18 = vmul.f32 %v6225_v21, %v11303_v3  ;;  %v5779_v42 = vadd.f32 %v10875_v15, %v11306_v9  ;;  %v8169_v23 = vpop.f32.mrf.mxu0  ;;  %v11308_v24 = vld [vmem:[#allocation58_spill] sm:$0xff] }
 0x3ef   : > { %v6226_v63 = vmax.f32 %v6194_v34, 0.0  ;;  %v6158_v56 = vmul.f32 %v10706_v33, %v6119_v58  ;;  %v6122_v38 = vadd.f32 %v10693_v30, %v6083_v19  ;;  %v6081_v53 = vadd.f32 %v6016_v0, %v5776_v5  ;;  %v11309_v58 = vld [vmem:[#allocation87_spill] sm:$0xff] }
 0x3f0   : > { %v6260_v36 = vmul.f32 %v6228_v12, %v11304_v8  ;;  %v6199_v62 = vadd.f32 %v10730_v2, %v6160_v51  ;;  %v8212_v43 = vpop.f32.mrf.mxu1  ;;  %v5782_v40 = vadd.f32 %v8165_v46, %v5477_v32  ;;  %v5481_v7 = vadd.f32 %v10681_v50, %v10766_v45  ;;  %v11311_v51 = vld [vmem:[#allocation14_spill] sm:$0xff]  ;;  %v5743_v3 = vpop.f32.mrf.mxu0 }
 0x3f1   : > { %v6258_v37 = vmul.f32 %v6226_v63, %v11305_v49  ;;  %v6197_v59 = vadd.f32 %v10730_v2, %v6158_v56  ;;  %v6161_v39 = vmul.f32 %v10706_v33, %v6122_v38  ;;  %v6120_v60 = vadd.f32 %v10693_v30, %v6081_v53 }
 0x3f2   : > { %v6855_v35 = vpack.c.bf16 %v6260_v36, %v6259_v25  ;;  %v6231_v26 = vmax.f32 %v6199_v62, 0.0  ;;  %v6086_v31 = vadd.f32 %v8212_v43, %v5781_v4  ;;  %v6029_v29 = vpop.f32.mrf.mxu1  ;;  %v5780_v10 = vadd.f32 %v5727_v48, %v5475_v17  ;;  %v11312_v43 = vld [vmem:[#allocation68_spill] sm:$0xff] }
 0x3f3   : > { %v6850_v47 = vpack.c.bf16 %v6258_v37, %v6257_v18  ;;  %v6200_v52 = vadd.f32 %v10730_v2, %v6161_v39  ;;  %v6159_v6 = vmul.f32 %v10706_v33, %v6120_v60  ;;  %v6229_v13 = vmax.f32 %v6197_v59, 0.0 }
 0x3f4   : > { %6915 = vst [vmem:[%s8489_s22 + $0x58] sm:$0xff] %v6855_v35   ;;  %v6125_v41 = vadd.f32 %v10693_v30, %v6086_v31  ;;  %v6084_v15 = vadd.f32 %v6029_v29, %v5779_v42  ;;  %v8213_v44 = vpop.f32.mrf.mxu1  ;;  %v5785_v61 = vadd.f32 %v8168_v55, %v10675_v11  ;;  %v6263_v1 = vmul.f32 %v6231_v26, %v11307_v22  ;;  %v11313_v31 = vld [vmem:[#allocation64_spill] sm:$0xff] }
 0x3f5   : > { %6914 = vst [vmem:[%s8489_s22 + $0x50] sm:$0xff] %v6850_v47   ;;  %v6232_v54 = vmax.f32 %v6200_v52, 0.0  ;;  %v6198_v46 = vadd.f32 %v10730_v2, %v6159_v6  ;;  %v6087_v32 = vadd.f32 %v8213_v44, %v5782_v40  ;;  %v5783_v19 = vadd.f32 %v5740_v57, %v11309_v58  ;;  %v11314_v47 = vld [vmem:[#allocation59_spill] sm:$0xff] }
 0x3f6   : > { %v6164_v21 = vmul.f32 %v10706_v33, %v6125_v41  ;;  %v6123_v50 = vadd.f32 %v10693_v30, %v6084_v15  ;;  %v6032_v45 = vpop.f32.mrf.mxu1  ;;  %v6261_v4 = vmul.f32 %v6229_v13, %v11310_v16  ;;  %v5786_v56 = vadd.f32 %v8169_v23, %v5481_v7  ;;  %v11315_v15 = vld [vmem:[#allocation15_spill] sm:$0xff]  ;;  %v11319_v16 = vld [vmem:[#allocation16_spill] sm:$0xff] }
 0x3f7   : > { %v6264_v20 = vmul.f32 %v6232_v54, %v11308_v24  ;;  %v6230_v5 = vmax.f32 %v6198_v46, 0.0  ;;  %v6126_v48 = vadd.f32 %v10693_v30, %v6087_v32  ;;  %v6085_v34 = vadd.f32 %v6032_v45, %v5780_v10  ;;  %v11316_v54 = vld [vmem:[#allocation23_spill] sm:$0xff] }
 0x3f8   : > { %v6203_v11 = vadd.f32 %v10730_v2, %v6164_v21  ;;  %v6162_v27 = vmul.f32 %v10706_v33, %v6123_v50  ;;  %v8216_v17 = vpop.f32.mrf.mxu1  ;;  %v5479_v49 = vadd.f32 %v11312_v43, %v10776_v28 }
 0x3f9   : > { %v6865_v12 = vpack.c.bf16 %v6264_v20, %v6263_v1  ;;  %v6262_v0 = vmul.f32 %v6230_v5, %v11311_v51  ;;  %v6165_v55 = vmul.f32 %v10706_v33, %v6126_v48  ;;  %v6124_v63 = vadd.f32 %v10693_v30, %v6085_v34  ;;  %v11317_v5 = vld [vmem:[#allocation18_spill] sm:$0xff]  ;;  %v11318_v34 = vld [vmem:[#allocation19_spill] sm:$0xff] }
 0x3fa   : > { %v6235_v38 = vmax.f32 %v6203_v11, 0.0  ;;  %v6201_v53 = vadd.f32 %v10730_v2, %v6162_v27  ;;  %v6090_v14 = vadd.f32 %v8216_v17, %v5785_v61  ;;  %v6045_v25 = vpop.f32.mrf.mxu1  ;;  %v5784_v26 = vadd.f32 %v5743_v3, %v5479_v49  ;;  %v11320_v11 = vld [vmem:[#allocation17_spill] sm:$0xff] }
 0x3fb   : > { %6917 = vst [vmem:[%s8489_s22 + $0x68] sm:$0xff] %v6865_v12   ;;  %v6860_v18 = vpack.c.bf16 %v6262_v0, %v6261_v4  ;;  %v6204_v8 = vadd.f32 %v10730_v2, %v6165_v55  ;;  %v6163_v36 = vmul.f32 %v10706_v33, %v6124_v63  ;;  %v6088_v62 = vadd.f32 %v6045_v25, %v5783_v19 }
 0x3fc   : > { %v6233_v37 = vmax.f32 %v6201_v53, 0.0  ;;  %v6129_v59 = vadd.f32 %v10693_v30, %v6090_v14  ;;  %v8217_v39 = vpop.f32.mrf.mxu1  ;;  %v6267_v29 = vmul.f32 %v6235_v38, %v11313_v31 }
 0x3fd   : > { %6916 = vst [vmem:[%s8489_s22 + $0x60] sm:$0xff] %v6860_v18   ;;  %v6236_v60 = vmax.f32 %v6204_v8, 0.0  ;;  %v6202_v9 = vadd.f32 %v10730_v2, %v6163_v36  ;;  %v6127_v42 = vadd.f32 %v10693_v30, %v6088_v62  ;;  %v6091_v35 = vadd.f32 %v8217_v39, %v5786_v56 }
 0x3fe   : > { %v6168_v40 = vmul.f32 %v10706_v33, %v6129_v59  ;;  %v6048_v57 = vpop.f32.mrf.mxu1  ;;  %v6265_v44 = vmul.f32 %v6233_v37, %v11315_v15 }
 0x3ff   : > { %v6268_v28 = vmul.f32 %v6236_v60, %v11314_v47  ;;  %v6234_v52 = vmax.f32 %v6202_v9, 0.0  ;;  %v6166_v6 = vmul.f32 %v10706_v33, %v6127_v42  ;;  %v6130_v7 = vadd.f32 %v10693_v30, %v6091_v35 }
 0x400   : > { %v6207_v13 = vadd.f32 %v10730_v2, %v6168_v40  ;;  %v6089_v41 = vadd.f32 %v6048_v57, %v5784_v26 }
 0x401   : > { %v6875_v10 = vpack.c.bf16 %v6268_v28, %v6267_v29  ;;  %v6266_v46 = vmul.f32 %v6234_v52, %v11316_v54  ;;  %v6169_v32 = vmul.f32 %v10706_v33, %v6130_v7  ;;  %v6205_v61 = vadd.f32 %v10730_v2, %v6166_v6 }
 0x402   : > { %v6128_v22 = vadd.f32 %v10693_v30, %v6089_v41  ;;  %v6239_v21 = vmax.f32 %v6207_v13, 0.0 }
 0x403   : > { %6919 = vst [vmem:[%s8489_s22 + $0x78] sm:$0xff] %v6875_v10   ;;  %v6870_v1 = vpack.c.bf16 %v6266_v46, %v6265_v44  ;;  %v6208_v50 = vadd.f32 %v10730_v2, %v6169_v32  ;;  %v6237_v24 = vmax.f32 %v6205_v61, 0.0 }
 0x404   : > { %v6167_v45 = vmul.f32 %v10706_v33, %v6128_v22  ;;  %v6271_v48 = vmul.f32 %v6239_v21, %v11317_v5 }
 0x405   : > { %6918 = vst [vmem:[%s8489_s22 + $0x70] sm:$0xff] %v6870_v1   ;;  %v6240_v23 = vmax.f32 %v6208_v50, 0.0  ;;  %v6269_v4 = vmul.f32 %v6237_v24, %v11319_v16 }
 0x406   : > { %v6206_v20 = vadd.f32 %v10730_v2, %v6167_v45 }
 0x407   : > { %v6272_v58 = vmul.f32 %v6240_v23, %v11318_v34 }
 0x408   : > { %v6238_v19 = vmax.f32 %v6206_v20, 0.0 }
 0x409   : > { %v6885_v30 = vpack.c.bf16 %v6272_v58, %v6271_v48 }
 0x40a   : > { %v6270_v27 = vmul.f32 %v6238_v19, %v11320_v11 }
 0x40b   : > { %6921 = vst [vmem:[%s8489_s22 + $0x88] sm:$0xff] %v6885_v30  }
 0x40c   : > { %v6880_v17 = vpack.c.bf16 %v6270_v27, %v6269_v4 }
 0x40e   : > { %6920 = vst [vmem:[%s8489_s22 + $0x80] sm:$0xff] %v6880_v17  }
 0x40f PF: > { %s18_s27 = sadd.s32 1, %s8403_s27  }
 0x410   : > { %p15_p4 = scmp.ge.s32.totalorder %s18_s27, 4  }
 0x412   :  { %17 = sbr.rel (!%p15_p4) target bundleno = 1 (0x1), region = 82 }

// kernel: vgg_forward.6
= control target key start
LH: loop header
LB: loop body
LE: loop exit
PB: predicated region body
PF: predicated region fallthrough
CT: control target
= control target key end

     0   :  { %s8352_s30 = smov 0   ;;  %s10889_s0 = inlined_call_operand.vmem [shape: bf16[2,320,128], index: 0, kind: input, shape index: {}]   ;;  %s10890_s1 = inlined_call_operand.vmem [shape: bf16[1152,128], index: 1, kind: input, shape index: {}]   ;;  %s10891_s2 = inlined_call_operand.vmem [shape: f32[1,128], index: 2, kind: input, shape index: {}]   ;;  %s10892_s3 = inlined_call_operand.vmem [shape: bf16[1152,128], index: 3, kind: input, shape index: {}]   ;;  %s10893_s4 = inlined_call_operand.vmem [shape: f32[1,128], index: 4, kind: input, shape index: {}]   ;;  %s10894_s5 = inlined_call_operand.vmem [shape: f32[1,128], index: 5, kind: input, shape index: {}]   ;;  %s10895_s6 = inlined_call_operand.vmem [shape: f32[1,128], index: 6, kind: input, shape index: {}]   ;;  %s10896_s7 = inlined_call_operand.vmem [shape: f32[256,1], index: 7, kind: input, shape index: {}]   ;;  %s10897_s8 = inlined_call_operand.vmem [shape: f32[49,256], index: 8, kind: input, shape index: {}]   ;;  %s10898_s9 = inlined_call_operand.vmem [shape: f32[2,49,128], index: 9, kind: output, shape index: {}]  }
   0x1 LB: > { %s6476_s10 = sadd.s32 4294967295, %s8297_s30   ;;  %p6480_p0 = scmp.ge.s32.totalorder %s8297_s30, 1  ;;  %s8297_s30 = sphi %s8352_s30, %s19_s30  }
   0x2   : > { %p287_p1 = scmp.lt.s32.totalorder %s8297_s30, 3 }
   0x4   : > { %p288_p2 = pnand %p6480_p0, %p287_p1 }
   0x6   : > { %291 = sbr.rel (%p288_p2) target bundleno = 1275 (0x4fb), region = 56 }
   0xb   : > { %v8127_v0 = vld [vmem:[%s10890_s1 + $0x78] sm:$0xff]   ;;  %p323_p3 = scmp.lt.s32.totalorder %s6476_s10, 1  ;;  %v8129_v2 = vld [vmem:[%s10890_s1 + $0x70] sm:$0xff]   ;;  %v8131_v4 = vld [vmem:[%s10890_s1 + $0x68] sm:$0xff]  }
   0xc   : > { %v8128_v1 = vld [vmem:[%s10890_s1 + $0x38] sm:$0xff]   ;;  %7217 = vmatprep.subr.bf16.mxu0 %v8127_v0  ;;  %v8130_v3 = vld [vmem:[%s10890_s1 + $0x30] sm:$0xff]   ;;  %v8132_v5 = vld [vmem:[%s10890_s1 + $0x28] sm:$0xff]  }
   0xd   : > { %7265 = vmatprep.subr.bf16.mxu1 %v8128_v1  ;;  %7218 = vmatpush3.bf16.msra.mxu0 %v8127_v0  ;;  %s11200_s10 = smov (!%p323_p3, %s6476_s10), 1  ;;  %v8133_v6 = vld [vmem:[%s10890_s1 + $0x60] sm:$0xff]   ;;  %v8135_v8 = vld [vmem:[%s10890_s1 + $0x58] sm:$0xff]   ;;  %v8137_v10 = vld [vmem:[%s10890_s1 + $0x50] sm:$0xff]  }
   0xe   : > { %7266 = vmatpush3.bf16.msra.mxu1 %v8128_v1  ;;  %7219 = vmatprep.subr.bf16.mxu0 %v8129_v2  ;;  %v8134_v7 = vld [vmem:[%s10890_s1 + $0x20] sm:$0xff]   ;;  %s8113_s27 = smul.u32 160, %s11200_s10  ;;  %v8136_v9 = vld [vmem:[%s10890_s1 + $0x18] sm:$0xff]   ;;  %v8138_v14 = vld [vmem:[%s10890_s1 + $0x10] sm:$0xff]  }
   0xf   : > { %7267 = vmatprep.subr.bf16.mxu1 %v8130_v3  ;;  %v8139_v29 = vld [vmem:[%s10890_s1 + $0x48] sm:$0xff]   ;;  %v8141_v47 = vld [vmem:[%s10890_s1 + $0x40] sm:$0xff]   ;;  %v8153_v54 = vld [vmem:[%s10890_s1 + $0xb8] sm:$0xff]   ;;  %s8114_s13 = smul.u32 56, %s11200_s10 }
  0x10   : > { %s8396_s15 = scalar_lea.vmem %s10889_s0, %s8113_s27  ;;  %v8140_v35 = vld [vmem:[%s10890_s1 + $0x8] sm:$0xff]   ;;  %v8142_v48 = vld [vmem:[%s10890_s1] sm:$0xff]   ;;  %v8154_v57 = vld [vmem:[%s10890_s1 + $0xf8] sm:$0xff]  }
  0x11   : > { %7220 = vmatpush3.bf16.msra.mxu0 %v8129_v2  ;;  %v6713_v11 = vld [vmem:[%s8396_s15 + $0x8] sm:$0xff]   ;;  %v6634_v13 = vld [vmem:[%s8396_s15] sm:$0xff]   ;;  %v6714_v18 = vld [vmem:[%s8396_s15 + $0x10] sm:$0xff]   ;;  %s332_s17 = scalar_lea.vmem %s10898_s9, %s8114_s13 }
  0x12   : > { %7268 = vmatpush3.bf16.msra.mxu1 %v8130_v3  ;;  %7221 = vmatprep.subr.bf16.mxu0 %v8131_v4  ;;  %v8143_v12 = vld [vmem:[%s8396_s15 + $0x8] sm:$0xff]  ;;  %v6639_v15 = vunpack.c.l.bf16 %v6713_v11  ;;  %v6640_v16 = vunpack.c.h.bf16 %v6713_v11  ;;  %v6636_v17 = vunpack.c.h.bf16 %v6634_v13  ;;  %v6715_v19 = vld [vmem:[%s8396_s15 + $0x18] sm:$0xff]   ;;  %v6643_v20 = vunpack.c.l.bf16 %v6714_v18  ;;  %v6716_v24 = vld [vmem:[%s8396_s15 + $0x20] sm:$0xff]  }
  0x13   : > { %7269 = vmatprep.subr.bf16.mxu1 %v8132_v5  ;;  %7233 = vmatprep.mubr.bf16.mxu0 %v8143_v12  ;;  %v6644_v21 = vunpack.c.h.bf16 %v6714_v18  ;;  %v6647_v22 = vunpack.c.l.bf16 %v6715_v19  ;;  %v6648_v23 = vunpack.c.h.bf16 %v6715_v19  ;;  %v6651_v25 = vunpack.c.l.bf16 %v6716_v24  ;;  %v6717_v27 = vld [vmem:[%s8396_s15 + $0x28] sm:$0xff]   ;;  %v6718_v28 = vld [vmem:[%s8396_s15 + $0x30] sm:$0xff]   ;;  %v6719_v34 = vld [vmem:[%s8396_s15 + $0x38] sm:$0xff]  }
  0x14   : > { %448 = vst [vmem:[#allocation2 + $0x10] sm:$0xff] %v6639_v15  ;;  %449 = vst [vmem:[#allocation2 + $0x18] sm:$0xff] %v6640_v16  ;;  %v6652_v26 = vunpack.c.h.bf16 %v6716_v24  ;;  %v6655_v30 = vunpack.c.l.bf16 %v6717_v27  ;;  %v6656_v31 = vunpack.c.h.bf16 %v6717_v27  ;;  %v6659_v32 = vunpack.c.l.bf16 %v6718_v28  ;;  %v6720_v38 = vld [vmem:[%s8396_s15 + $0x40] sm:$0xff]   ;;  %v6721_v39 = vld [vmem:[%s8396_s15 + $0x48] sm:$0xff]  }
  0x15   : > { %7222 = vmatpush3.bf16.msra.mxu0 %v8131_v4  ;;  %447 = vst [vmem:[#allocation2 + $0x8] sm:$0xff] %v6636_v17  ;;  %450 = vst [vmem:[#allocation2 + $0x20] sm:$0xff] %v6643_v20  ;;  %v6660_v33 = vunpack.c.h.bf16 %v6718_v28  ;;  %v6663_v36 = vunpack.c.l.bf16 %v6719_v34  ;;  %v6664_v37 = vunpack.c.h.bf16 %v6719_v34  ;;  %v6667_v40 = vunpack.c.l.bf16 %v6720_v38  ;;  %v6722_v44 = vld [vmem:[%s8396_s15 + $0x50] sm:$0xff]   ;;  %v8145_v60 = vld [vmem:[%s8396_s15 + $0x18] sm:$0xff] }
  0x16   : > { %7270 = vmatpush3.bf16.msra.mxu1 %v8132_v5  ;;  %7223 = vmatprep.subr.bf16.mxu0 %v8133_v6  ;;  %451 = vst [vmem:[#allocation2 + $0x28] sm:$0xff] %v6644_v21  ;;  %452 = vst [vmem:[#allocation2 + $0x30] sm:$0xff] %v6647_v22  ;;  %v6668_v41 = vunpack.c.h.bf16 %v6720_v38  ;;  %v6671_v42 = vunpack.c.l.bf16 %v6721_v39  ;;  %v6672_v43 = vunpack.c.h.bf16 %v6721_v39  ;;  %v6675_v45 = vunpack.c.l.bf16 %v6722_v44  ;;  %v8435_v58 = vld [vmem:[%s8396_s15 + $0x10] sm:$0xff]  ;;  %v6723_v63 = vld [vmem:[%s8396_s15 + $0x58] sm:$0xff]  }
  0x17   : > { %7271 = vmatprep.subr.bf16.mxu1 %v8134_v7  ;;  %453 = vst [vmem:[#allocation2 + $0x38] sm:$0xff] %v6648_v23  ;;  %454 = vst [vmem:[#allocation2 + $0x40] sm:$0xff] %v6651_v25  ;;  %v6676_v46 = vunpack.c.h.bf16 %v6722_v44  ;;  %v8155_v62 = vld [vmem:[%s10890_s1 + $0xb0] sm:$0xff]   ;;  %v6679_v3 = vunpack.c.l.bf16 %v6723_v63  ;;  %v6680_v4 = vunpack.c.h.bf16 %v6723_v63  ;;  %v6724_v5 = vld [vmem:[%s8396_s15 + $0x60] sm:$0xff]  }
  0x18   : > { %455 = vst [vmem:[#allocation2 + $0x48] sm:$0xff] %v6652_v26  ;;  %456 = vst [vmem:[#allocation2 + $0x50] sm:$0xff] %v6655_v30  ;;  %v8156_v2 = vld [vmem:[%s10890_s1 + $0xf0] sm:$0xff]   ;;  %v8159_v11 = vld [vmem:[%s10890_s1 + $0xa8] sm:$0xff]  }
  0x19   : > { %7224 = vmatpush3.bf16.msra.mxu0 %v8133_v6  ;;  %457 = vst [vmem:[#allocation2 + $0x58] sm:$0xff] %v6656_v31  ;;  %458 = vst [vmem:[#allocation2 + $0x60] sm:$0xff] %v6659_v32  ;;  %v8160_v12 = vld [vmem:[%s10890_s1 + $0xe8] sm:$0xff]   ;;  %v6726_v17 = vld [vmem:[%s8396_s15 + $0x70] sm:$0xff]  }
  0x1a   : > { %7272 = vmatpush3.bf16.msra.mxu1 %v8134_v7  ;;  %7225 = vmatprep.subr.bf16.mxu0 %v8135_v8  ;;  %459 = vst [vmem:[#allocation2 + $0x68] sm:$0xff] %v6660_v33  ;;  %460 = vst [vmem:[#allocation2 + $0x70] sm:$0xff] %v6663_v36  ;;  %v6683_v7 = vunpack.c.l.bf16 %v6724_v5  ;;  %v6725_v16 = vld [vmem:[%s8396_s15 + $0x68] sm:$0xff]   ;;  %v6691_v20 = vunpack.c.l.bf16 %v6726_v17  ;;  %v6692_v21 = vunpack.c.h.bf16 %v6726_v17  ;;  %v8161_v22 = vld [vmem:[%s10890_s1 + $0xa0] sm:$0xff]  }
  0x1b   : > { %7273 = vmatprep.subr.bf16.mxu1 %v8136_v9  ;;  %461 = vst [vmem:[#allocation2 + $0x78] sm:$0xff] %v6664_v37  ;;  %462 = vst [vmem:[#allocation2 + $0x80] sm:$0xff] %v6667_v40  ;;  %v487_v50 = vld [vmem:[#allocation2 + $0x17] sm:$0xff]  ;;  %v6687_v18 = vunpack.c.l.bf16 %v6725_v16  ;;  %v6688_v19 = vunpack.c.h.bf16 %v6725_v16  ;;  %v8162_v23 = vld [vmem:[%s10890_s1 + $0xe0] sm:$0xff]  }
  0x1c   : > { %463 = vst [vmem:[#allocation2 + $0x88] sm:$0xff] %v6668_v41  ;;  %464 = vst [vmem:[#allocation2 + $0x90] sm:$0xff] %v6671_v42  ;;  %v486_v49 = vld [vmem:[#allocation2 + $0xf] sm:$0xff]  ;;  %v488_v52 = vld [vmem:[#allocation2 + $0x1f] sm:$0xff] }
  0x1d   : > { %7226 = vmatpush3.bf16.msra.mxu0 %v8135_v8  ;;  %465 = vst [vmem:[#allocation2 + $0x98] sm:$0xff] %v6672_v43  ;;  %466 = vst [vmem:[#allocation2 + $0xa0] sm:$0xff] %v6675_v45  ;;  %v518_v51 = vpack.c.bf16 %v487_v50, %v486_v49  ;;  %v489_v53 = vld [vmem:[#allocation2 + $0x27] sm:$0xff]  ;;  %v490_v55 = vld [vmem:[#allocation2 + $0x2f] sm:$0xff]  ;;  %v6684_v8 = vunpack.c.h.bf16 %v6724_v5 }
  0x1e   : > { %7274 = vmatpush3.bf16.msra.mxu1 %v8136_v9  ;;  %7227 = vmatprep.subr.bf16.mxu0 %v8137_v10  ;;  %467 = vst [vmem:[#allocation2 + $0xa8] sm:$0xff] %v6676_v46  ;;  %v491_v56 = vld [vmem:[#allocation2 + $0x37] sm:$0xff]  ;;  %v8437_v59 = vpack.c.bf16 %v489_v53, %v488_v52  ;;  %v492_v0 = vld [vmem:[#allocation2 + $0x3f] sm:$0xff]  ;;  %468 = vst [vmem:[#allocation2 + $0xb0] sm:$0xff] %v6679_v3 }
  0x1f   : > { %7275 = vmatprep.subr.bf16.mxu1 %v8138_v14  ;;  %7281 = vmatprep.mubr.bf16.mxu1 %v518_v51  ;;  %v8440_v61 = vpack.c.bf16 %v491_v56, %v490_v55  ;;  %v493_v1 = vld [vmem:[#allocation2 + $0x47] sm:$0xff]  ;;  %v494_v6 = vld [vmem:[#allocation2 + $0x4f] sm:$0xff]  ;;  %469 = vst [vmem:[#allocation2 + $0xb8] sm:$0xff] %v6680_v4  ;;  %470 = vst [vmem:[#allocation2 + $0xc0] sm:$0xff] %v6683_v7 }
  0x20   : > { %v8454_v9 = vld [vmem:[%s8396_s15 + $0x20] sm:$0xff]  ;;  %471 = vst [vmem:[#allocation2 + $0xc8] sm:$0xff] %v6684_v8  ;;  %v8462_v13 = vpack.c.bf16 %v493_v1, %v492_v0  ;;  %472 = vst [vmem:[#allocation2 + $0xd0] sm:$0xff] %v6687_v18  ;;  %v8165_v28 = vld [vmem:[%s10890_s1 + $0x98] sm:$0xff]  }
  0x21   : > { %7228 = vmatpush3.bf16.msra.mxu0 %v8137_v10  ;;  %v495_v10 = vld [vmem:[#allocation2 + $0x57] sm:$0xff]  ;;  %473 = vst [vmem:[#allocation2 + $0xd8] sm:$0xff] %v6688_v19  ;;  %474 = vst [vmem:[#allocation2 + $0xe0] sm:$0xff] %v6691_v20  ;;  %v496_v24 = vld [vmem:[#allocation2 + $0x5f] sm:$0xff] }
  0x22   : > { %7276 = vmatpush3.bf16.msra.mxu1 %v8138_v14  ;;  %7229 = vmatprep.subr.bf16.mxu0 %v8139_v29  ;;  %v8465_v14 = vld [vmem:[%s8396_s15 + $0x28] sm:$0xff]  ;;  %v8467_v15 = vpack.c.bf16 %v495_v10, %v494_v6  ;;  %475 = vst [vmem:[#allocation2 + $0xe8] sm:$0xff] %v6692_v21  ;;  %v499_v27 = vld [vmem:[#allocation2 + $0x77] sm:$0xff]  ;;  %v6728_v34 = vld [vmem:[%s8396_s15 + $0x80] sm:$0xff]  }
  0x23   : > { %7277 = vmatprep.subr.bf16.mxu1 %v8140_v35  ;;  %v497_v25 = vld [vmem:[#allocation2 + $0x67] sm:$0xff]  ;;  %v498_v26 = vld [vmem:[#allocation2 + $0x6f] sm:$0xff]  ;;  %v8166_v31 = vld [vmem:[%s10890_s1 + $0xd8] sm:$0xff]   ;;  %v6699_v37 = vunpack.c.l.bf16 %v6728_v34  ;;  %v6700_v38 = vunpack.c.h.bf16 %v6728_v34 }
  0x24   : > { %v8486_v30 = vld [vmem:[%s8396_s15 + $0x30] sm:$0xff]  ;;  %v8495_v36 = vld [vmem:[%s8396_s15 + $0x38] sm:$0xff]  ;;  %v8497_v39 = vpack.c.bf16 %v499_v27, %v498_v26  ;;  %v501_v43 = vld [vmem:[#allocation2 + $0x87] sm:$0xff] }
  0x25   : > { %7230 = vmatpush3.bf16.msra.mxu0 %v8139_v29  ;;  %v6727_v29 = vld [vmem:[%s8396_s15 + $0x78] sm:$0xff]   ;;  %v8167_v40 = vld [vmem:[%s10890_s1 + $0x90] sm:$0xff]   ;;  %478 = vst [vmem:[#allocation2 + $0x100] sm:$0xff] %v6699_v37  ;;  %479 = vst [vmem:[#allocation2 + $0x108] sm:$0xff] %v6700_v38 }
  0x26   : > { %7278 = vmatpush3.bf16.msra.mxu1 %v8140_v35  ;;  %7231 = vmatprep.subr.bf16.mxu0 %v8141_v47  ;;  %v6695_v32 = vunpack.c.l.bf16 %v6727_v29  ;;  %v6696_v33 = vunpack.c.h.bf16 %v6727_v29  ;;  %v8492_v35 = vpack.c.bf16 %v497_v25, %v496_v24  ;;  %v8168_v41 = vld [vmem:[%s10890_s1 + $0xd0] sm:$0xff]   ;;  %v500_v42 = vld [vmem:[#allocation2 + $0x7f] sm:$0xff]  ;;  %v8171_v46 = vld [vmem:[%s10890_s1 + $0x88] sm:$0xff]  }
  0x27   : > { %7279 = vmatprep.subr.bf16.mxu1 %v8142_v48  ;;  %v502_v44 = vld [vmem:[#allocation2 + $0x8f] sm:$0xff]  ;;  %v503_v45 = vld [vmem:[#allocation2 + $0x97] sm:$0xff]  ;;  %v8518_v49 = vpack.c.bf16 %v501_v43, %v500_v42  ;;  %v8173_v52 = vld [vmem:[%s10890_s1 + $0x80] sm:$0xff]  }
  0x28   : > { %476 = vst [vmem:[#allocation2 + $0xf0] sm:$0xff] %v6695_v32  ;;  %477 = vst [vmem:[#allocation2 + $0xf8] sm:$0xff] %v6696_v33  ;;  %v8521_v50 = vld [vmem:[%s8396_s15 + $0x48] sm:$0xff]  ;;  %v8523_v51 = vpack.c.bf16 %v503_v45, %v502_v44  ;;  %v8174_v53 = vld [vmem:[%s10890_s1 + $0xc0] sm:$0xff]  }
  0x29   : > { %7232 = vmatpush3.bf16.msra.mxu0 %v8141_v47  ;;  %v8513_v47 = vld [vmem:[%s8396_s15 + $0x40] sm:$0xff]  ;;  %v506_v56 = vld [vmem:[#allocation2 + $0xaf] sm:$0xff]  ;;  %v8546_v63 = vld [vmem:[%s10890_s1 + $0x178] sm:$0xff]  }
  0x2a   : > { %7280 = vmatpush3.bf16.msra.mxu1 %v8142_v48  ;;  %7313 = vmatprep.subr.bf16.mxu0 %v8153_v54  ;;  %v8172_v48 = vld [vmem:[%s10890_s1 + $0xc8] sm:$0xff]   ;;  %v8551_v1 = vld [vmem:[%s8396_s15 + $0x58] sm:$0xff]  ;;  %v8562_v7 = vld [vmem:[%s8396_s15 + $0x60] sm:$0xff] }
  0x2b   : > { %7361 = vmatprep.subr.bf16.mxu1 %v8154_v57  ;;  %v505_v55 = vld [vmem:[#allocation2 + $0xa7] sm:$0xff]  ;;  %v508_v3 = vld [vmem:[#allocation2 + $0xbf] sm:$0xff]  ;;  %v510_v5 = vld [vmem:[#allocation2 + $0xcf] sm:$0xff] }
  0x2c   : > { %7234 = vmatmul.mubr.bf16.vlgmr.msra.gmra.mxu0 %v8435_v58  ;;  %v509_v4 = vld [vmem:[#allocation2 + $0xc7] sm:$0xff]  ;;  %v511_v6 = vld [vmem:[#allocation2 + $0xd7] sm:$0xff] }
  0x2d   : > { %7282 = vmatmul.mubr.bf16.vlgmr.msra.gmra.mxu1 %v8437_v59  ;;  %7237 = vmatprep.mubr.bf16.mxu0 %v8145_v60  ;;  %v507_v60 = vld [vmem:[#allocation2 + $0xb7] sm:$0xff]  ;;  %v8564_v8 = vpack.c.bf16 %v509_v4, %v508_v3  ;;  %v8567_v10 = vld [vmem:[%s8396_s15 + $0x68] sm:$0xff] }
  0x2e   : > { %7285 = vmatprep.mubr.bf16.mxu1 %v8440_v61  ;;  %7314 = vmatpush3.bf16.msra.mxu0 %v8153_v54  ;;  %v504_v54 = vld [vmem:[#allocation2 + $0x9f] sm:$0xff]  ;;  %v513_v16 = vld [vmem:[#allocation2 + $0xe7] sm:$0xff]  ;;  %v1032_v26 = vld [vmem:[#allocation2 + $0x11] sm:$0xff] }
  0x2f   : > { %7362 = vmatpush3.bf16.msra.mxu1 %v8154_v57  ;;  %7315 = vmatprep.subr.bf16.mxu0 %v8155_v62  ;;  %v8536_v57 = vld [vmem:[%s8396_s15 + $0x50] sm:$0xff]  ;;  %v8548_v0 = vpack.c.bf16 %v505_v55, %v504_v54  ;;  %v6729_v17 = vld [vmem:[%s8396_s15 + $0x88] sm:$0xff]   ;;  %v8582_v24 = vld [vmem:[%s8396_s15 + $0x78] sm:$0xff] }
  0x30   : > { %7363 = vmatprep.subr.bf16.mxu1 %v8156_v2  ;;  %v514_v18 = vld [vmem:[#allocation2 + $0xef] sm:$0xff]  ;;  %v6703_v19 = vunpack.c.l.bf16 %v6729_v17  ;;  %v6704_v20 = vunpack.c.h.bf16 %v6729_v17  ;;  %v515_v21 = vld [vmem:[#allocation2 + $0xf7] sm:$0xff]  ;;  %v517_v29 = vld [vmem:[#allocation2 + $0x107] sm:$0xff] }
  0x31   : > { %v8584_v25 = vpack.c.bf16 %v515_v21, %v514_v18  ;;  %v1033_v27 = vld [vmem:[#allocation2 + $0x19] sm:$0xff]  ;;  %v1034_v34 = vld [vmem:[#allocation2 + $0x21] sm:$0xff]  ;;  %v1035_v37 = vld [vmem:[#allocation2 + $0x29] sm:$0xff] }
  0x32   : > { %7316 = vmatpush3.bf16.msra.mxu0 %v8155_v62  ;;  %v8541_v62 = vld [vmem:[%s10890_s1 + $0x138] sm:$0xff]   ;;  %480 = vst [vmem:[#allocation2 + $0x110] sm:$0xff] %v6703_v19  ;;  %481 = vst [vmem:[#allocation2 + $0x118] sm:$0xff] %v6704_v20  ;;  %v1064_v33 = vpack.c.bf16 %v1033_v27, %v1032_v26  ;;  %v6730_v42 = vld [vmem:[%s8396_s15 + $0x90] sm:$0xff]  }
  0x33   : > { %7364 = vmatpush3.bf16.msra.mxu1 %v8156_v2  ;;  %7317 = vmatprep.subr.bf16.mxu0 %v8159_v11  ;;  %v8553_v2 = vpack.c.bf16 %v507_v60, %v506_v56  ;;  %v1036_v38 = vld [vmem:[#allocation2 + $0x31] sm:$0xff]  ;;  %v6707_v44 = vunpack.c.l.bf16 %v6730_v42  ;;  %v6708_v45 = vunpack.c.h.bf16 %v6730_v42  ;;  %v1041_v54 = vld [vmem:[#allocation2 + $0x59] sm:$0xff]  ;;  %v8179_v55 = vld [vmem:[%s10890_s1 + $0x128] sm:$0xff]  }
  0x34   : > { %7238 = vmatmul.mubr.bf16.gmra.mxu0 %v8454_v9  ;;  %7365 = vmatprep.subr.bf16.mxu1 %v8160_v12  ;;  %v8180_v56 = vld [vmem:[%s10890_s1 + $0x168] sm:$0xff]   ;;  %v1044_v4 = vld [vmem:[#allocation2 + $0x71] sm:$0xff]  ;;  %v1049_v20 = vld [vmem:[#allocation2 + $0x99] sm:$0xff] }
  0x35   : > { %7286 = vmatmul.mubr.bf16.gmra.mxu1 %v8462_v13  ;;  %7241 = vmatprep.mubr.bf16.mxu0 %v8465_v14  ;;  %482 = vst [vmem:[#allocation2 + $0x120] sm:$0xff] %v6707_v44  ;;  %483 = vst [vmem:[#allocation2 + $0x128] sm:$0xff] %v6708_v45  ;;  %v1043_v3 = vld [vmem:[#allocation2 + $0x69] sm:$0xff]  ;;  %v1048_v19 = vld [vmem:[#allocation2 + $0x91] sm:$0xff] }
  0x36   : > { %7289 = vmatprep.mubr.bf16.mxu1 %v8467_v15  ;;  %7318 = vmatpush3.bf16.msra.mxu0 %v8159_v11  ;;  %v8569_v11 = vpack.c.bf16 %v511_v6, %v510_v5  ;;  %v1045_v5 = vld [vmem:[#allocation2 + $0x79] sm:$0xff]  ;;  %v1047_v18 = vld [vmem:[#allocation2 + $0x89] sm:$0xff] }
  0x37   : > { %7366 = vmatpush3.bf16.msra.mxu1 %v8160_v12  ;;  %7319 = vmatprep.subr.bf16.mxu0 %v8161_v22  ;;  %v512_v12 = vld [vmem:[#allocation2 + $0xdf] sm:$0xff]  ;;  %v8643_v17 = vpack.c.bf16 %v1045_v5, %v1044_v4  ;;  %v8186_v21 = vld [vmem:[%s10890_s1 + $0x150] sm:$0xff]   ;;  %v8187_v26 = vld [vmem:[%s10890_s1 + $0x108] sm:$0xff]  }
  0x38   : > { %7367 = vmatprep.subr.bf16.mxu1 %v8162_v23  ;;  %v8183_v6 = vld [vmem:[%s10890_s1 + $0x118] sm:$0xff]   ;;  %v8188_v27 = vld [vmem:[%s10890_s1 + $0x148] sm:$0xff]  }
  0x39   : > { %v8192_v42 = vld [vmem:[%s10890_s1 + $0x1f8] sm:$0xff]  }
  0x3a   : > { %7320 = vmatpush3.bf16.msra.mxu0 %v8161_v22  ;;  %v8577_v22 = vld [vmem:[%s8396_s15 + $0x70] sm:$0xff]  ;;  %v8289_v5 = vld [vmem:[%s8396_s15 + $0x18] sm:$0xff] }
  0x3b   : > { %7368 = vmatpush3.bf16.msra.mxu1 %v8162_v23  ;;  %7321 = vmatprep.subr.bf16.mxu0 %v8165_v28  ;;  %v8579_v23 = vpack.c.bf16 %v513_v16, %v512_v12  ;;  %v8184_v12 = vld [vmem:[%s10890_s1 + $0x158] sm:$0xff]  }
  0x3c   : > { %7242 = vmatmul.mubr.bf16.gmra.mxu0 %v8486_v30  ;;  %7369 = vmatprep.subr.bf16.mxu1 %v8166_v31  ;;  %v1368_v4 = vld [vmem:[#allocation2 + $0x117] sm:$0xff] }
  0x3d   : > { %7290 = vmatmul.mubr.bf16.gmra.mxu1 %v8492_v35  ;;  %7245 = vmatprep.mubr.bf16.mxu0 %v8495_v36 }
  0x3e   : > { %7293 = vmatprep.mubr.bf16.mxu1 %v8497_v39  ;;  %7322 = vmatpush3.bf16.msra.mxu0 %v8165_v28  ;;  %v516_v28 = vld [vmem:[#allocation2 + $0xff] sm:$0xff] }
  0x3f   : > { %7370 = vmatpush3.bf16.msra.mxu1 %v8166_v31  ;;  %7323 = vmatprep.subr.bf16.mxu0 %v8167_v40  ;;  %v8591_v31 = vld [vmem:[%s8396_s15 + $0x80] sm:$0xff]  ;;  %v8593_v32 = vpack.c.bf16 %v517_v29, %v516_v28  ;;  %v8663_v29 = vpack.c.bf16 %v1049_v20, %v1048_v19  ;;  %v340_v19 = vld [vmem:[%s10896_s7 + $0x30] sm:$0xff]  ;;  %v341_v20 = vld [vmem:[%s10896_s7 + $0x38] sm:$0xff] }
  0x40   : > { %7371 = vmatprep.subr.bf16.mxu1 %v8168_v41 }
  0x42   : > { %7324 = vmatpush3.bf16.msra.mxu0 %v8167_v40  ;;  %v1037_v40 = vld [vmem:[#allocation2 + $0x39] sm:$0xff] }
  0x43   : > { %7372 = vmatpush3.bf16.msra.mxu1 %v8168_v41  ;;  %7325 = vmatprep.subr.bf16.mxu0 %v8171_v46  ;;  %v8598_v41 = vpack.c.bf16 %v1035_v37, %v1034_v34  ;;  %v8601_v43 = vpack.c.bf16 %v1037_v40, %v1036_v38  ;;  %v1052_v34 = vld [vmem:[#allocation2 + $0xb1] sm:$0xff]  ;;  %v1053_v37 = vld [vmem:[#allocation2 + $0xb9] sm:$0xff] }
  0x44   : > { %7246 = vmatmul.mubr.bf16.gmra.mxu0 %v8513_v47  ;;  %7373 = vmatprep.subr.bf16.mxu1 %v8172_v48  ;;  %v8190_v38 = vld [vmem:[%s10890_s1 + $0x140] sm:$0xff]   ;;  %v8191_v40 = vld [vmem:[%s10890_s1 + $0x1b8] sm:$0xff]   ;;  %v8683_v45 = vpack.c.bf16 %v1053_v37, %v1052_v34  ;;  %v2557_v37 = vld [vmem:[#allocation2 + $0x30] sm:$0xff] }
  0x45   : > { %7294 = vmatmul.mubr.bf16.gmra.mxu1 %v8518_v49  ;;  %7249 = vmatprep.mubr.bf16.mxu0 %v8521_v50  ;;  %v2253_v34 = vld [vmem:[#allocation2 + $0x37] sm:$0xff] }
  0x46   : > { %7297 = vmatprep.mubr.bf16.mxu1 %v8523_v51  ;;  %7326 = vmatpush3.bf16.msra.mxu0 %v8171_v46  ;;  %v8177_v46 = vld [vmem:[%s10890_s1 + $0x130] sm:$0xff]  }
  0x47   : > { %7374 = vmatpush3.bf16.msra.mxu1 %v8172_v48  ;;  %7327 = vmatprep.subr.bf16.mxu0 %v8173_v52  ;;  %v1038_v48 = vld [vmem:[#allocation2 + $0x41] sm:$0xff] }
  0x48   : > { %7375 = vmatprep.subr.bf16.mxu1 %v8174_v53 }
  0x4a   : > { %7328 = vmatpush3.bf16.msra.mxu0 %v8173_v52  ;;  %v1039_v52 = vld [vmem:[#allocation2 + $0x49] sm:$0xff] }
  0x4b   : > { %7376 = vmatpush3.bf16.msra.mxu1 %v8174_v53  ;;  %7409 = vmatprep.subr.bf16.mxu0 %v8541_v62  ;;  %v1040_v53 = vld [vmem:[#allocation2 + $0x51] sm:$0xff] }
  0x4c   : > { %7250 = vmatmul.mubr.bf16.gmra.mxu0 %v8536_v57  ;;  %7457 = vmatprep.subr.bf16.mxu1 %v8546_v63  ;;  %v8623_v60 = vpack.c.bf16 %v1041_v54, %v1040_v53  ;;  %v1058_v53 = vld [vmem:[#allocation2 + $0xe1] sm:$0xff]  ;;  %v1059_v54 = vld [vmem:[#allocation2 + $0xe9] sm:$0xff] }
  0x4d   : > { %7298 = vmatmul.mubr.bf16.gmra.mxu1 %v8548_v0  ;;  %7253 = vmatprep.mubr.bf16.mxu0 %v8551_v1 }
  0x4e   : > { %7301 = vmatprep.mubr.bf16.mxu1 %v8553_v2 }
  0x54   : > { %7254 = vmatmul.mubr.bf16.gmra.mxu0 %v8562_v7 }
  0x55   : > { %7302 = vmatmul.mubr.bf16.gmra.mxu1 %v8564_v8  ;;  %7257 = vmatprep.mubr.bf16.mxu0 %v8567_v10 }
  0x56   : > { %7305 = vmatprep.mubr.bf16.mxu1 %v8569_v11 }
  0x5c   : > { %7258 = vmatmul.mubr.bf16.gmra.mxu0 %v8577_v22 }
  0x5d   : > { %7306 = vmatmul.mubr.bf16.gmra.mxu1 %v8579_v23  ;;  %7261 = vmatprep.mubr.bf16.mxu0 %v8582_v24 }
  0x5e   : > { %7309 = vmatprep.mubr.bf16.mxu1 %v8584_v25 }
  0x64   : > { %7262 = vmatmul.mubr.bf16.gmra.mxu0 %v8591_v31 }
  0x65   : > { %7310 = vmatmul.mubr.bf16.gmra.mxu1 %v8593_v32  ;;  %7329 = vmatprep.mubr.bf16.mxu0 %v1064_v33  ;;  %v1051_v33 = vld [vmem:[#allocation2 + $0xa9] sm:$0xff] }
  0x66   : > { %7377 = vmatprep.mubr.bf16.mxu1 %v8437_v59  ;;  %v8178_v59 = vld [vmem:[%s10890_s1 + $0x170] sm:$0xff]  }
  0x6c   : > { %7330 = vmatmul.mubr.bf16.vlgmr.msra.gmra.mxu0 %v8598_v41 }
  0x6d   : > { %7378 = vmatmul.mubr.bf16.vlgmr.msra.gmra.mxu1 %v8440_v61  ;;  %7333 = vmatprep.mubr.bf16.mxu0 %v8601_v43  ;;  %v8621_v61 = vpack.c.bf16 %v1039_v52, %v1038_v48 }
  0x6e   : > { %7381 = vmatprep.mubr.bf16.mxu1 %v8462_v13  ;;  %7410 = vmatpush3.bf16.msra.mxu0 %v8541_v62  ;;  %v1042_v13 = vld [vmem:[#allocation2 + $0x61] sm:$0xff] }
  0x6f   : > { %7458 = vmatpush3.bf16.msra.mxu1 %v8546_v63  ;;  %7411 = vmatprep.subr.bf16.mxu0 %v8177_v46  ;;  %v8181_v62 = vld [vmem:[%s10890_s1 + $0x120] sm:$0xff]   ;;  %v8641_v16 = vpack.c.bf16 %v1043_v3, %v1042_v13  ;;  %v1063_v3 = vld [vmem:[#allocation2 + $0x109] sm:$0xff] }
  0x70   : > { %7459 = vmatprep.subr.bf16.mxu1 %v8178_v59  ;;  %v8182_v63 = vld [vmem:[%s10890_s1 + $0x160] sm:$0xff]  }
  0x72   : > { %7412 = vmatpush3.bf16.msra.mxu0 %v8177_v46  ;;  %v1055_v46 = vld [vmem:[#allocation2 + $0xc9] sm:$0xff] }
  0x73   : > { %7460 = vmatpush3.bf16.msra.mxu1 %v8178_v59  ;;  %7413 = vmatprep.subr.bf16.mxu0 %v8179_v55  ;;  %v1057_v59 = vld [vmem:[#allocation2 + $0xd9] sm:$0xff] }
  0x74   : > { %7334 = vmatmul.mubr.bf16.gmra.mxu0 %v8621_v61  ;;  %7461 = vmatprep.subr.bf16.mxu1 %v8180_v56 }
  0x75   : > { %7382 = vmatmul.mubr.bf16.gmra.mxu1 %v8467_v15  ;;  %7337 = vmatprep.mubr.bf16.mxu0 %v8623_v60  ;;  %v1046_v15 = vld [vmem:[#allocation2 + $0x81] sm:$0xff] }
  0x76   : > { %7385 = vmatprep.mubr.bf16.mxu1 %v8492_v35  ;;  %7414 = vmatpush3.bf16.msra.mxu0 %v8179_v55  ;;  %v8185_v35 = vld [vmem:[%s10890_s1 + $0x110] sm:$0xff]   ;;  %v8661_v28 = vpack.c.bf16 %v1047_v18, %v1046_v15  ;;  %v335_v15 = vld [vmem:[%s10896_s7 + $0x8] sm:$0xff]  ;;  %v8786_v18 = vld [vmem:[%s10890_s1 + $0x238] sm:$0xff]  }
  0x77   : > { %7462 = vmatpush3.bf16.msra.mxu1 %v8180_v56  ;;  %7415 = vmatprep.subr.bf16.mxu0 %v8181_v62  ;;  %v1060_v55 = vld [vmem:[#allocation2 + $0xf1] sm:$0xff]  ;;  %v1061_v56 = vld [vmem:[#allocation2 + $0xf9] sm:$0xff] }
  0x78   : > { %7463 = vmatprep.subr.bf16.mxu1 %v8182_v63  ;;  %v8699_v13 = vpack.c.bf16 %v1061_v56, %v1060_v55  ;;  %v2561_v55 = vld [vmem:[#allocation2 + $0x50] sm:$0xff]  ;;  %v2562_v56 = vld [vmem:[#allocation2 + $0x58] sm:$0xff] }
  0x7a   : > { %7416 = vmatpush3.bf16.msra.mxu0 %v8181_v62  ;;  %v1367_v62 = vld [vmem:[#allocation2 + $0x10f] sm:$0xff] }
  0x7b   : > { %7464 = vmatpush3.bf16.msra.mxu1 %v8182_v63  ;;  %7417 = vmatprep.subr.bf16.mxu0 %v8183_v6  ;;  %v8200_v63 = vld [vmem:[%s10890_s1 + $0x1d8] sm:$0xff]  }
  0x7c   : > { %7338 = vmatmul.mubr.bf16.gmra.mxu0 %v8641_v16  ;;  %7465 = vmatprep.subr.bf16.mxu1 %v8184_v12 }
  0x7d   : > { %7386 = vmatmul.mubr.bf16.gmra.mxu1 %v8497_v39  ;;  %7341 = vmatprep.mubr.bf16.mxu0 %v8643_v17  ;;  %v1050_v39 = vld [vmem:[#allocation2 + $0xa1] sm:$0xff] }
  0x7e   : > { %7389 = vmatprep.mubr.bf16.mxu1 %v8518_v49  ;;  %7418 = vmatpush3.bf16.msra.mxu0 %v8183_v6  ;;  %v8189_v49 = vld [vmem:[%s10890_s1 + $0x100] sm:$0xff]   ;;  %v8681_v44 = vpack.c.bf16 %v1051_v33, %v1050_v39  ;;  %v348_v39 = vld [vmem:[%s10896_s7 + $0x70] sm:$0xff] }
  0x7f   : > { %7466 = vmatpush3.bf16.msra.mxu1 %v8184_v12  ;;  %7419 = vmatprep.subr.bf16.mxu0 %v8185_v35  ;;  %v334_v6 = vld [vmem:[%s10896_s7] sm:$0xff]  ;;  %v336_v12 = vld [vmem:[%s10896_s7 + $0x10] sm:$0xff] }
  0x80   : > { %7467 = vmatprep.subr.bf16.mxu1 %v8186_v21  ;;  %v1978_v33 = vld [vmem:[#allocation2 + $0x119] sm:$0xff] }
  0x82   : > { %7420 = vmatpush3.bf16.msra.mxu0 %v8185_v35  ;;  %v339_v35 = vld [vmem:[%s10896_s7 + $0x28] sm:$0xff] }
  0x83   : > { %7468 = vmatpush3.bf16.msra.mxu1 %v8186_v21  ;;  %7421 = vmatprep.subr.bf16.mxu0 %v8187_v26  ;;  %v344_v21 = vld [vmem:[%s10896_s7 + $0x50] sm:$0xff] }
  0x84   : > { %7342 = vmatmul.mubr.bf16.gmra.mxu0 %v8661_v28  ;;  %7469 = vmatprep.subr.bf16.mxu1 %v8188_v27 }
  0x85   : > { %7390 = vmatmul.mubr.bf16.gmra.mxu1 %v8523_v51  ;;  %7345 = vmatprep.mubr.bf16.mxu0 %v8663_v29  ;;  %v1054_v51 = vld [vmem:[#allocation2 + $0xc1] sm:$0xff] }
  0x86   : > { %7393 = vmatprep.mubr.bf16.mxu1 %v8548_v0  ;;  %7422 = vmatpush3.bf16.msra.mxu0 %v8187_v26  ;;  %v1056_v0 = vld [vmem:[#allocation2 + $0xd1] sm:$0xff]  ;;  %v8689_v48 = vpack.c.bf16 %v1055_v46, %v1054_v51  ;;  %v351_v51 = vld [vmem:[%s10896_s7 + $0x88] sm:$0xff]  ;;  %v2254_v46 = vld [vmem:[#allocation2 + $0x3f] sm:$0xff] }
  0x87   : > { %7470 = vmatpush3.bf16.msra.mxu1 %v8188_v27  ;;  %7423 = vmatprep.subr.bf16.mxu0 %v8189_v49  ;;  %v8691_v52 = vpack.c.bf16 %v1057_v59, %v1056_v0  ;;  %v345_v26 = vld [vmem:[%s10896_s7 + $0x58] sm:$0xff]  ;;  %v2255_v0 = vld [vmem:[#allocation2 + $0x47] sm:$0xff] }
  0x88   : > { %7471 = vmatprep.subr.bf16.mxu1 %v8190_v38  ;;  %v6731_v27 = vld [vmem:[%s8396_s15 + $0x98] sm:$0xff]   ;;  %v2559_v59 = vld [vmem:[#allocation2 + $0x40] sm:$0xff] }
  0x8a   : > { %7424 = vmatpush3.bf16.msra.mxu0 %v8189_v49  ;;  %v2252_v49 = vld [vmem:[#allocation2 + $0x2f] sm:$0xff] }
  0x8b   : > { %7472 = vmatpush3.bf16.msra.mxu1 %v8190_v38  ;;  %7505 = vmatprep.subr.bf16.mxu0 %v8191_v40  ;;  %v2558_v38 = vld [vmem:[#allocation2 + $0x38] sm:$0xff] }
  0x8c   : > { %7346 = vmatmul.mubr.bf16.gmra.mxu0 %v8681_v44  ;;  %7553 = vmatprep.subr.bf16.mxu1 %v8192_v42 }
  0x8d   : > { %7394 = vmatmul.mubr.bf16.gmra.mxu1 %v8553_v2  ;;  %7349 = vmatprep.mubr.bf16.mxu0 %v8683_v45  ;;  %v8697_v2 = vpack.c.bf16 %v1059_v54, %v1058_v53  ;;  %v2256_v53 = vld [vmem:[#allocation2 + $0x4f] sm:$0xff]  ;;  %v2257_v54 = vld [vmem:[#allocation2 + $0x57] sm:$0xff] }
  0x8e   : > { %7397 = vmatprep.mubr.bf16.mxu1 %v8564_v8  ;;  %v1062_v8 = vld [vmem:[#allocation2 + $0x101] sm:$0xff] }
  0x94   : > { %7350 = vmatmul.mubr.bf16.gmra.mxu0 %v8689_v48 }
  0x95   : > { %7398 = vmatmul.mubr.bf16.gmra.mxu1 %v8569_v11  ;;  %7353 = vmatprep.mubr.bf16.mxu0 %v8691_v52  ;;  %v8705_v11 = vpack.c.bf16 %v1063_v3, %v1062_v8  ;;  %v2286_v3 = vpack.c.bf16 %v2257_v54, %v2256_v53 }
  0x96   : > { %7401 = vmatprep.mubr.bf16.mxu1 %v8579_v23  ;;  %v8707_v23 = vpack.c.bf16 %v1368_v4, %v1367_v62  ;;  %v354_v62 = vld [vmem:[%s10896_s7 + $0xa0] sm:$0xff]  ;;  %v2591_v4 = vpack.c.bf16 %v2562_v56, %v2561_v55 }
  0x97   : > { %v362_v56 = vld [vmem:[%s10896_s7 + $0xe0] sm:$0xff] }
  0x9c   : > { %7354 = vmatmul.mubr.bf16.gmra.mxu0 %v8697_v2 }
  0x9d   : > { %7402 = vmatmul.mubr.bf16.gmra.mxu1 %v8584_v25  ;;  %7357 = vmatprep.mubr.bf16.mxu0 %v8699_v13  ;;  %v8193_v25 = vld [vmem:[%s10890_s1 + $0x1b0] sm:$0xff]  }
  0x9e   : > { %7405 = vmatprep.mubr.bf16.mxu1 %v8593_v32  ;;  %v8194_v32 = vld [vmem:[%s10890_s1 + $0x1f0] sm:$0xff]  }
  0xa4   : > { %7358 = vmatmul.mubr.bf16.gmra.mxu0 %v8705_v11 }
  0xa5   : > { %7406 = vmatmul.mubr.bf16.gmra.mxu1 %v8707_v23  ;;  %7425 = vmatprep.mubr.bf16.mxu0 %v8435_v58  ;;  %v8195_v58 = vld [vmem:[%s10890_s1 + $0x1a8] sm:$0xff]  }
  0xa6   : > { %7473 = vmatprep.mubr.bf16.mxu1 %v8598_v41  ;;  %v8196_v41 = vld [vmem:[%s10890_s1 + $0x1e8] sm:$0xff]  }
  0xac   : > { %7426 = vmatmul.mubr.bf16.vlgmr.msra.gmra.mxu0 %v8289_v5  ;;  %v355_v5 = vld [vmem:[%s10896_s7 + $0xa8] sm:$0xff] }
  0xad   : > { %7474 = vmatmul.mubr.bf16.vlgmr.msra.gmra.mxu1 %v8601_v43  ;;  %7429 = vmatprep.mubr.bf16.mxu0 %v8454_v9  ;;  %v8197_v43 = vld [vmem:[%s10890_s1 + $0x1a0] sm:$0xff]  }
  0xae   : > { %7477 = vmatprep.mubr.bf16.mxu1 %v8621_v61  ;;  %7506 = vmatpush3.bf16.msra.mxu0 %v8191_v40  ;;  %v8198_v9 = vld [vmem:[%s10890_s1 + $0x1e0] sm:$0xff]   ;;  %v8199_v61 = vld [vmem:[%s10890_s1 + $0x198] sm:$0xff]   ;;  %v8839_v40 = vld [vmem:[%s8396_s15 + $0x88] sm:$0xff] }
  0xaf   : > { %7554 = vmatpush3.bf16.msra.mxu1 %v8192_v42  ;;  %7507 = vmatprep.subr.bf16.mxu0 %v8193_v25  ;;  %v2284_v42 = vpack.c.bf16 %v2253_v34, %v2252_v49  ;;  %v360_v49 = vld [vmem:[%s10896_s7 + $0xd0] sm:$0xff] }
  0xb0   : > { %7555 = vmatprep.subr.bf16.mxu1 %v8194_v32 }
  0xb2   : > { %7508 = vmatpush3.bf16.msra.mxu0 %v8193_v25 }
  0xb3   : > { %7556 = vmatpush3.bf16.msra.mxu1 %v8194_v32  ;;  %7509 = vmatprep.subr.bf16.mxu0 %v8195_v58  ;;  %v2258_v32 = vld [vmem:[#allocation2 + $0x5f] sm:$0xff] }
  0xb4   : > { %7430 = vmatmul.mubr.bf16.gmra.mxu0 %v8465_v14  ;;  %7557 = vmatprep.subr.bf16.mxu1 %v8196_v41  ;;  %v8299_v14 = vmov 0  }
  0xb5   : > { %7478 = vmatmul.mubr.bf16.gmra.mxu1 %v8623_v60  ;;  %7433 = vmatprep.mubr.bf16.mxu0 %v8486_v30  ;;  %v8201_v30 = vld [vmem:[%s10890_s1 + $0x190] sm:$0xff]  }
  0xb6   : > { %7481 = vmatprep.mubr.bf16.mxu1 %v8641_v16  ;;  %7510 = vmatpush3.bf16.msra.mxu0 %v8195_v58  ;;  %v8202_v60 = vld [vmem:[%s10890_s1 + $0x1d0] sm:$0xff]   ;;  %v8206_v16 = vld [vmem:[%s10890_s1 + $0x180] sm:$0xff]  }
  0xb7   : > { %7558 = vmatpush3.bf16.msra.mxu1 %v8196_v41  ;;  %7511 = vmatprep.subr.bf16.mxu0 %v8197_v43  ;;  %v2259_v41 = vld [vmem:[#allocation2 + $0x67] sm:$0xff] }
  0xb8   : > { %7559 = vmatprep.subr.bf16.mxu1 %v8198_v9  ;;  %8125 = vset.pattern.permute.xlu0 %v8299_v14 }
  0xb9   : > { %3208 = vperm.xlu0 %8125, %v334_v6   ;;  %8126 = vset.pattern.permute.xlu1 %v8299_v14  ;;  %v2564_v14 = vld [vmem:[#allocation2 + $0x68] sm:$0xff] }
  0xba   : > { %7512 = vmatpush3.bf16.msra.mxu0 %v8197_v43  ;;  %3218 = vperm.xlu1 %8126, %v336_v12   ;;  %v2563_v43 = vld [vmem:[#allocation2 + $0x60] sm:$0xff]  ;;  %v2566_v12 = vld [vmem:[#allocation2 + $0x78] sm:$0xff] }
  0xbb   : > { %7560 = vmatpush3.bf16.msra.mxu1 %v8198_v9  ;;  %7513 = vmatprep.subr.bf16.mxu0 %v8199_v61  ;;  %v356_v9 = vld [vmem:[%s10896_s7 + $0xb0] sm:$0xff] }
  0xbc   : > { %7434 = vmatmul.mubr.bf16.gmra.mxu0 %v8495_v36  ;;  %7561 = vmatprep.subr.bf16.mxu1 %v8200_v63  ;;  %v8204_v36 = vld [vmem:[%s10890_s1 + $0x188] sm:$0xff]  }
  0xbd   : > { %7482 = vmatmul.mubr.bf16.gmra.mxu1 %v8643_v17  ;;  %7437 = vmatprep.mubr.bf16.mxu0 %v8513_v47  ;;  %v8205_v47 = vld [vmem:[%s10890_s1 + $0x1c8] sm:$0xff]   ;;  %v8207_v17 = vld [vmem:[%s10890_s1 + $0x1c0] sm:$0xff]  }
  0xbe   : > { %7485 = vmatprep.mubr.bf16.mxu1 %v8661_v28  ;;  %7514 = vmatpush3.bf16.msra.mxu0 %v8199_v61  ;;  %v6711_v28 = vunpack.c.l.bf16 %v6731_v27 }
  0xbf   : > { %7562 = vmatpush3.bf16.msra.mxu1 %v8200_v63  ;;  %7515 = vmatprep.subr.bf16.mxu0 %v8201_v30 }
  0xc0   : > { %7563 = vmatprep.subr.bf16.mxu1 %v8202_v60  ;;  %3213 = vperm.xlu0 %8125, %v335_v15   ;;  %484 = vst [vmem:[#allocation2 + $0x130] sm:$0xff] %v6711_v28  ;;  %v2287_v15 = vpack.c.bf16 %v2259_v41, %v2258_v32  ;;  %v2262_v28 = vld [vmem:[#allocation2 + $0x7f] sm:$0xff]  ;;  %v363_v32 = vld [vmem:[%s10896_s7 + $0xe8] sm:$0xff] }
  0xc1   : > { %v2571_v41 = vld [vmem:[#allocation2 + $0xa0] sm:$0xff] }
  0xc2   : > { %7516 = vmatpush3.bf16.msra.mxu0 %v8201_v30  ;;  %v2260_v30 = vld [vmem:[#allocation2 + $0x6f] sm:$0xff] }
  0xc3   : > { %7564 = vmatpush3.bf16.msra.mxu1 %v8202_v60  ;;  %7517 = vmatprep.subr.bf16.mxu0 %v8204_v36  ;;  %v2261_v60 = vld [vmem:[#allocation2 + $0x77] sm:$0xff] }
  0xc4   : > { %7438 = vmatmul.mubr.bf16.gmra.mxu0 %v8521_v50  ;;  %7565 = vmatprep.subr.bf16.mxu1 %v8205_v47  ;;  %v337_v50 = vld [vmem:[%s10896_s7 + $0x18] sm:$0xff] }
  0xc5   : > { %7486 = vmatmul.mubr.bf16.gmra.mxu1 %v8663_v29  ;;  %7441 = vmatprep.mubr.bf16.mxu0 %v8536_v57  ;;  %v338_v57 = vld [vmem:[%s10896_s7 + $0x20] sm:$0xff]  ;;  %v1977_v29 = vld [vmem:[#allocation2 + $0x111] sm:$0xff] }
  0xc6   : > { %7489 = vmatprep.mubr.bf16.mxu1 %v8681_v44  ;;  %7518 = vmatpush3.bf16.msra.mxu0 %v8204_v36  ;;  %v350_v44 = vld [vmem:[%s10896_s7 + $0x80] sm:$0xff]  ;;  %v2565_v36 = vld [vmem:[#allocation2 + $0x70] sm:$0xff] }
  0xc7   : > { %7566 = vmatpush3.bf16.msra.mxu1 %v8205_v47  ;;  %7519 = vmatprep.subr.bf16.mxu0 %v8206_v16  ;;  %v8210_v47 = vld [vmem:[%s10890_s1 + $0x228] sm:$0xff]  }
  0xc8   : > { %7567 = vmatprep.subr.bf16.mxu1 %v8207_v17  ;;  %3223 = vperm.xlu1 %8126, %v337_v50   ;;  %v357_v50 = vld [vmem:[%s10896_s7 + $0xb8] sm:$0xff] }
  0xc9   : > { %3228 = vperm.xlu0 %8125, %v338_v57  }
  0xca   : > { %7520 = vmatpush3.bf16.msra.mxu0 %v8206_v16 }
  0xcb   : > { %7568 = vmatpush3.bf16.msra.mxu1 %v8207_v17  ;;  %7601 = vmatprep.subr.bf16.mxu0 %v8786_v18 }
  0xcc   : > { %7442 = vmatmul.mubr.bf16.gmra.mxu0 %v8551_v1  ;;  %3233 = vperm.xlu1 %8126, %v339_v35   ;;  %v342_v1 = vld [vmem:[%s10896_s7 + $0x40] sm:$0xff]  ;;  %v2288_v35 = vpack.c.bf16 %v2261_v60, %v2260_v30  ;;  %v2268_v30 = vld [vmem:[#allocation2 + $0xaf] sm:$0xff]  ;;  %v2269_v60 = vld [vmem:[#allocation2 + $0xb7] sm:$0xff] }
  0xcd   : > { %7490 = vmatmul.mubr.bf16.gmra.mxu1 %v8683_v45  ;;  %7445 = vmatprep.mubr.bf16.mxu0 %v8562_v7  ;;  %v343_v7 = vld [vmem:[%s10896_s7 + $0x48] sm:$0xff]  ;;  %v2589_v45 = vpack.c.bf16 %v2558_v38, %v2557_v37 }
  0xce   : > { %7493 = vmatprep.mubr.bf16.mxu1 %v8689_v48  ;;  %3238 = vperm.xlu0 %8125, %v340_v19   ;;  %v352_v48 = vld [vmem:[%s10896_s7 + $0x90] sm:$0xff]  ;;  %v358_v19 = vld [vmem:[%s10896_s7 + $0xc0] sm:$0xff]  ;;  %v2568_v38 = vld [vmem:[#allocation2 + $0x88] sm:$0xff] }
  0xd0   : > { %3243 = vperm.xlu1 %8126, %v341_v20  }
  0xd2   : > { %3248 = vperm.xlu0 %8125, %v342_v1  }
  0xd4   : > { %7446 = vmatmul.mubr.bf16.gmra.mxu0 %v8567_v10  ;;  %3253 = vperm.xlu1 %8126, %v343_v7   ;;  %v346_v10 = vld [vmem:[%s10896_s7 + $0x60] sm:$0xff]  ;;  %v2593_v7 = vpack.c.bf16 %v2566_v12, %v2565_v36  ;;  %v2573_v36 = vld [vmem:[#allocation2 + $0xb0] sm:$0xff]  ;;  %v2574_v12 = vld [vmem:[#allocation2 + $0xb8] sm:$0xff] }
  0xd5   : > { %7494 = vmatmul.mubr.bf16.gmra.mxu1 %v8691_v52  ;;  %7449 = vmatprep.mubr.bf16.mxu0 %v8577_v22  ;;  %v347_v22 = vld [vmem:[%s10896_s7 + $0x68] sm:$0xff] }
  0xd6   : > { %7497 = vmatprep.mubr.bf16.mxu1 %v8697_v2  ;;  %3258 = vperm.xlu0 %8125, %v344_v21   ;;  %v2560_v52 = vld [vmem:[#allocation2 + $0x48] sm:$0xff]  ;;  %v353_v2 = vld [vmem:[%s10896_s7 + $0x98] sm:$0xff] }
  0xd7   : > { %v2590_v8 = vpack.c.bf16 %v2560_v52, %v2559_v59  ;;  %v361_v52 = vld [vmem:[%s10896_s7 + $0xd8] sm:$0xff] }
  0xd8   : > { %3263 = vperm.xlu1 %8126, %v345_v26   ;;  %v8211_v26 = vld [vmem:[%s10890_s1 + $0x220] sm:$0xff]  }
  0xda   : > { %3268 = vperm.xlu0 %8125, %v346_v10  }
  0xdc   : > { %7450 = vmatmul.mubr.bf16.gmra.mxu0 %v8582_v24  ;;  %3273 = vperm.xlu1 %8126, %v347_v22   ;;  %v349_v24 = vld [vmem:[%s10896_s7 + $0x78] sm:$0xff]  ;;  %v359_v22 = vld [vmem:[%s10896_s7 + $0xc8] sm:$0xff] }
  0xdd   : > { %7498 = vmatmul.mubr.bf16.gmra.mxu1 %v8699_v13  ;;  %7453 = vmatprep.mubr.bf16.mxu0 %v8591_v31  ;;  %v8841_v31 = vpack.c.bf16 %v1978_v33, %v1977_v29  ;;  %v2285_v13 = vpack.c.bf16 %v2255_v0, %v2254_v46  ;;  %v2567_v33 = vld [vmem:[#allocation2 + $0x80] sm:$0xff]  ;;  %v8212_v46 = vld [vmem:[%s10890_s1 + $0x218] sm:$0xff]  }
  0xde   : > { %7501 = vmatprep.mubr.bf16.mxu1 %v8705_v11  ;;  %3278 = vperm.xlu0 %8125, %v348_v39   ;;  %v8209_v11 = vld [vmem:[%s10890_s1 + $0x230] sm:$0xff]   ;;  %v2263_v39 = vld [vmem:[#allocation2 + $0x87] sm:$0xff]  ;;  %v2594_v54 = vpack.c.bf16 %v2568_v38, %v2567_v33 }
  0xdf   : > { %v2271_v33 = vld [vmem:[#allocation2 + $0xc7] sm:$0xff] }
  0xe0   : > { %3283 = vperm.xlu1 %8126, %v349_v24   ;;  %v2264_v24 = vld [vmem:[#allocation2 + $0x8f] sm:$0xff] }
  0xe2   : > { %3288 = vperm.xlu0 %8125, %v350_v44  }
  0xe4   : > { %7454 = vmatmul.mubr.bf16.gmra.mxu0 %v8839_v40  ;;  %3293 = vperm.xlu1 %8126, %v351_v51   ;;  %v2570_v51 = vld [vmem:[#allocation2 + $0x98] sm:$0xff] }
  0xe5   : > { %7502 = vmatmul.mubr.bf16.gmra.mxu1 %v8841_v31  ;;  %7521 = vmatprep.mubr.bf16.mxu0 %v2284_v42  ;;  %v2265_v42 = vld [vmem:[#allocation2 + $0x97] sm:$0xff] }
  0xe6   : > { %7569 = vmatprep.mubr.bf16.mxu1 %v2589_v45  ;;  %3298 = vperm.xlu0 %8125, %v352_v48   ;;  %v2569_v45 = vld [vmem:[#allocation2 + $0x90] sm:$0xff]  ;;  %v2289_v48 = vpack.c.bf16 %v2263_v39, %v2262_v28  ;;  %v2290_v55 = vpack.c.bf16 %v2265_v42, %v2264_v24  ;;  %v2270_v39 = vld [vmem:[#allocation2 + $0xbf] sm:$0xff]  ;;  %v2576_v24 = vld [vmem:[#allocation2 + $0xc8] sm:$0xff] }
  0xe7   : > { %v2272_v42 = vld [vmem:[#allocation2 + $0xcf] sm:$0xff] }
  0xe8   : > { %3303 = vperm.xlu1 %8126, %v353_v2  }
  0xea   : > { %3308 = vperm.xlu0 %8125, %v354_v62   ;;  %v8213_v62 = vld [vmem:[%s10890_s1 + $0x210] sm:$0xff]  }
  0xec   : > { %v7235_v25 = vpop.f32.mrf.mxu0  ;;  %7522 = vmatmul.mubr.bf16.vlgmr.msra.gmra.mxu0 %v2285_v13  ;;  %3313 = vperm.xlu1 %8126, %v355_v5  }
  0xed   : > { %v7283_v58 = vpop.f32.mrf.mxu1  ;;  %7570 = vmatmul.mubr.bf16.vlgmr.msra.gmra.mxu1 %v2590_v8  ;;  %7525 = vmatprep.mubr.bf16.mxu0 %v2286_v3  ;;  %v2595_v8 = vpack.c.bf16 %v2570_v51, %v2569_v45  ;;  %v2577_v51 = vld [vmem:[#allocation2 + $0xd0] sm:$0xff] }
  0xee   : > { %v8869_v61 = vadd.f32 %v7283_v58, %v7235_v25  ;;  %v696_v63 = vpop.f32.mrf.mxu0  ;;  %7573 = vmatprep.mubr.bf16.mxu1 %v2591_v4  ;;  %7602 = vmatpush3.bf16.msra.mxu0 %v8786_v18  ;;  %v2592_v18 = vpack.c.bf16 %v2564_v14, %v2563_v43  ;;  %v2266_v25 = vld [vmem:[#allocation2 + $0x9f] sm:$0xff]  ;;  %v2267_v58 = vld [vmem:[#allocation2 + $0xa7] sm:$0xff]  ;;  %v364_v43 = vld [vmem:[%s10896_s7 + $0xf0] sm:$0xff] }
  0xef   : > { %v905_v6 = vpop.f32.mrf.mxu1  ;;  %7603 = vmatprep.subr.bf16.mxu0 %v8209_v11  ;;  %3318 = vperm.xlu0 %8125, %v356_v9   ;;  %v2572_v14 = vld [vmem:[#allocation2 + $0xa8] sm:$0xff] }
  0xf0   : > { %v8875_v16 = vadd.f32 %v905_v6, %v696_v63  ;;  %v7236_v17 = vpop.f32.mrf.mxu0  ;;  %3323 = vperm.xlu1 %8126, %v357_v50   ;;  %v2291_v50 = vpack.c.bf16 %v2267_v58, %v2266_v25  ;;  %v2579_v58 = vld [vmem:[#allocation2 + $0xe0] sm:$0xff] }
  0xf1   : > { %v7284_v57 = vpop.f32.mrf.mxu1 }
  0xf2   : > { %v8883_v20 = vadd.f32 %v7284_v57, %v7236_v17  ;;  %v699_v1 = vpop.f32.mrf.mxu0  ;;  %7604 = vmatpush3.bf16.msra.mxu0 %v8209_v11  ;;  %v365_v57 = vld [vmem:[%s10896_s7 + $0xf8] sm:$0xff] }
  0xf3   : > { %v908_v21 = vpop.f32.mrf.mxu1  ;;  %7605 = vmatprep.subr.bf16.mxu0 %v8210_v47  ;;  %3328 = vperm.xlu0 %8125, %v358_v19   ;;  %v2292_v19 = vpack.c.bf16 %v2269_v60, %v2268_v30  ;;  %v2277_v30 = vld [vmem:[#allocation2 + $0xf7] sm:$0xff] }
  0xf4   : > { %v8888_v27 = vadd.f32 %v908_v21, %v699_v1  ;;  %v7239_v10 = vpop.f32.mrf.mxu0  ;;  %7526 = vmatmul.mubr.bf16.gmra.mxu0 %v2287_v15  ;;  %3333 = vperm.xlu1 %8126, %v359_v22   ;;  %v2597_v21 = vpack.c.bf16 %v2574_v12, %v2573_v36  ;;  %v2582_v36 = vld [vmem:[#allocation2 + $0xf8] sm:$0xff] }
  0xf5   : > { %v7287_v29 = vpop.f32.mrf.mxu1  ;;  %7574 = vmatmul.mubr.bf16.gmra.mxu1 %v2592_v18  ;;  %7529 = vmatprep.mubr.bf16.mxu0 %v2288_v35  ;;  %v2596_v35 = vpack.c.bf16 %v2572_v14, %v2571_v41  ;;  %v2276_v14 = vld [vmem:[#allocation2 + $0xef] sm:$0xff] }
  0xf6   : > { %v8896_v34 = vadd.f32 %v7287_v29, %v7239_v10  ;;  %v712_v37 = vpop.f32.mrf.mxu0  ;;  %7577 = vmatprep.mubr.bf16.mxu1 %v2593_v7  ;;  %7606 = vmatpush3.bf16.msra.mxu0 %v8210_v47  ;;  %v8214_v47 = vld [vmem:[%s10890_s1 + $0x208] sm:$0xff]   ;;  %v8216_v10 = vld [vmem:[%s10890_s1 + $0x200] sm:$0xff]  }
  0xf7   : > { %v921_v44 = vpop.f32.mrf.mxu1  ;;  %7607 = vmatprep.subr.bf16.mxu0 %v8211_v26  ;;  %3338 = vperm.xlu0 %8125, %v360_v49   ;;  %v2575_v49 = vld [vmem:[#allocation2 + $0xc0] sm:$0xff] }
  0xf8   : > { %v8901_v0 = vadd.f32 %v921_v44, %v712_v37  ;;  %v7240_v59 = vpop.f32.mrf.mxu0  ;;  %3343 = vperm.xlu1 %8126, %v361_v52   ;;  %v2273_v44 = vld [vmem:[#allocation2 + $0xd7] sm:$0xff]  ;;  %v2293_v52 = vpack.c.bf16 %v2271_v33, %v2270_v39 }
  0xf9   : > { %v7288_v53 = vpop.f32.mrf.mxu1 }
  0xfa   : > { %v8909_v2 = vadd.f32 %v7288_v53, %v7240_v59  ;;  %v715_v13 = vpop.f32.mrf.mxu0  ;;  %7608 = vmatpush3.bf16.msra.mxu0 %v8211_v26 }
  0xfb   : > { %v924_v3 = vpop.f32.mrf.mxu1  ;;  %7609 = vmatprep.subr.bf16.mxu0 %v8212_v46  ;;  %3348 = vperm.xlu0 %8125, %v362_v56  }
  0xfc   : > { %v8914_v4 = vadd.f32 %v924_v3, %v715_v13  ;;  %v7243_v11 = vpop.f32.mrf.mxu0  ;;  %7530 = vmatmul.mubr.bf16.gmra.mxu0 %v2289_v48  ;;  %3353 = vperm.xlu1 %8126, %v363_v32   ;;  %v2274_v32 = vld [vmem:[#allocation2 + $0xdf] sm:$0xff] }
  0xfd   : > { %v7291_v5 = vpop.f32.mrf.mxu1  ;;  %7578 = vmatmul.mubr.bf16.gmra.mxu1 %v2594_v54  ;;  %7533 = vmatprep.mubr.bf16.mxu0 %v2290_v55  ;;  %v2598_v54 = vpack.c.bf16 %v2576_v24, %v2575_v49  ;;  %v2294_v55 = vpack.c.bf16 %v2273_v44, %v2272_v42  ;;  %v2583_v49 = vld [vmem:[#allocation2 + $0x100] sm:$0xff] }
  0xfe   : > { %v8922_v9 = vadd.f32 %v7291_v5, %v7243_v11  ;;  %v728_v63 = vpop.f32.mrf.mxu0  ;;  %7581 = vmatprep.mubr.bf16.mxu1 %v2595_v8  ;;  %7610 = vmatpush3.bf16.msra.mxu0 %v8212_v46  ;;  %v2578_v46 = vld [vmem:[#allocation2 + $0xd8] sm:$0xff]  ;;  %v2275_v5 = vld [vmem:[#allocation2 + $0xe7] sm:$0xff] }
  0xff   : > { %v937_v6 = vpop.f32.mrf.mxu1  ;;  %7611 = vmatprep.subr.bf16.mxu0 %v8213_v62  ;;  %3358 = vperm.xlu0 %8125, %v364_v43   ;;  %v2599_v8 = vpack.c.bf16 %v2578_v46, %v2577_v51 }
 0x100   : > { %v8927_v17 = vadd.f32 %v937_v6, %v728_v63  ;;  %v7244_v15 = vpop.f32.mrf.mxu0  ;;  %3363 = vperm.xlu1 %8126, %v365_v57   ;;  %v2580_v63 = vld [vmem:[#allocation2 + $0xe8] sm:$0xff]  ;;  %v2581_v6 = vld [vmem:[#allocation2 + $0xf0] sm:$0xff] }
 0x101   : > { %v7292_v18 = vpop.f32.mrf.mxu1  ;;  %v2600_v57 = vpack.c.bf16 %v2580_v63, %v2579_v58 }
 0x102   : > { %v8932_v1 = vadd.f32 %v7292_v18, %v7244_v15  ;;  %v731_v7 = vpop.f32.mrf.mxu0  ;;  %7612 = vmatpush3.bf16.msra.mxu0 %v8213_v62  ;;  %v2295_v15 = vpack.c.bf16 %v2275_v5, %v2274_v32  ;;  %v2296_v18 = vpack.c.bf16 %v2277_v30, %v2276_v14  ;;  %v2863_v32 = vld [vmem:[#allocation2 + $0x39] sm:$0xff]  ;;  %v8215_v30 = vld [vmem:[%s8396_s15 + $0x90] sm:$0xff] }
 0x103   : > { %v940_v26 = vpop.f32.mrf.mxu1  ;;  %7613 = vmatprep.subr.bf16.mxu0 %v8214_v47 }
 0x104   : > { %v8937_v28 = vadd.f32 %v940_v26, %v731_v7  ;;  %v7247_v22 = vpop.f32.mrf.mxu0  ;;  %7534 = vmatmul.mubr.bf16.gmra.mxu0 %v2291_v50  ;;  %v2601_v7 = vpack.c.bf16 %v2582_v36, %v2581_v6 }
 0x105   : > { %v7295_v29 = vpop.f32.mrf.mxu1  ;;  %7582 = vmatmul.mubr.bf16.gmra.mxu1 %v2596_v35  ;;  %7537 = vmatprep.mubr.bf16.mxu0 %v2292_v19 }
 0x106   : > { %v8939_v37 = vadd.f32 %v7295_v29, %v7247_v22  ;;  %v744_v38 = vpop.f32.mrf.mxu0  ;;  %7585 = vmatprep.mubr.bf16.mxu1 %v2597_v21  ;;  %7614 = vmatpush3.bf16.msra.mxu0 %v8214_v47  ;;  %v2278_v22 = vld [vmem:[#allocation2 + $0xff] sm:$0xff]  ;;  %v2279_v29 = vld [vmem:[#allocation2 + $0x107] sm:$0xff] }
 0x107   : > { %v953_v45 = vpop.f32.mrf.mxu1  ;;  %7615 = vmatprep.subr.bf16.mxu0 %v8216_v10 }
 0x108   : > { %v8941_v59 = vadd.f32 %v953_v45, %v744_v38  ;;  %v7248_v48 = vpop.f32.mrf.mxu0  ;;  %v2584_v38 = vld [vmem:[#allocation2 + $0x108] sm:$0xff]  ;;  %v2297_v45 = vpack.c.bf16 %v2279_v29, %v2278_v22 }
 0x109   : > { %v7296_v53 = vpop.f32.mrf.mxu1  ;;  %v2602_v46 = vpack.c.bf16 %v2584_v38, %v2583_v49 }
 0x10a   : > { %v8943_v56 = vadd.f32 %v7296_v53, %v7248_v48  ;;  %v747_v13 = vpop.f32.mrf.mxu0  ;;  %7616 = vmatpush3.bf16.msra.mxu0 %v8216_v10 }
 0x10b   : > { %v956_v3 = vpop.f32.mrf.mxu1 }
 0x10c   : > { %v8945_v62 = vadd.f32 %v956_v3, %v747_v13  ;;  %v7251_v11 = vpop.f32.mrf.mxu0  ;;  %7538 = vmatmul.mubr.bf16.gmra.mxu0 %v2293_v52  ;;  %v2282_v13 = vld [vmem:[#allocation2 + $0x11f] sm:$0xff] }
 0x10d   : > { %v7299_v25 = vpop.f32.mrf.mxu1  ;;  %7586 = vmatmul.mubr.bf16.gmra.mxu1 %v2598_v54  ;;  %7541 = vmatprep.mubr.bf16.mxu0 %v2294_v55 }
 0x10e   : > { %v8947_v41 = vadd.f32 %v7299_v25, %v7251_v11  ;;  %v760_v43 = vpop.f32.mrf.mxu0  ;;  %7589 = vmatprep.mubr.bf16.mxu1 %v2599_v8  ;;  %v2283_v8 = vld [vmem:[#allocation2 + $0x127] sm:$0xff]  ;;  %v2862_v25 = vld [vmem:[#allocation2 + $0x31] sm:$0xff] }
 0x10f   : > { %v969_v60 = vpop.f32.mrf.mxu1  ;;  %v2299_v63 = vpack.c.bf16 %v2283_v8, %v2282_v13  ;;  %v2869_v13 = vld [vmem:[#allocation2 + $0x69] sm:$0xff] }
 0x110   : > { %v8949_v12 = vadd.f32 %v969_v60, %v760_v43  ;;  %v7252_v47 = vpop.f32.mrf.mxu0  ;;  %v2894_v60 = vpack.c.bf16 %v2863_v32, %v2862_v25  ;;  %v2871_v25 = vld [vmem:[#allocation2 + $0x79] sm:$0xff] }
 0x111   : > { %v7300_v50 = vpop.f32.mrf.mxu1 }
 0x112   : > { %v8951_v35 = vadd.f32 %v7300_v50, %v7252_v47  ;;  %v8953_v19 = vpop.f32.mrf.mxu0  ;;  %v2865_v50 = vld [vmem:[#allocation2 + $0x49] sm:$0xff] }
 0x113   : > { %v8955_v21 = vpop.f32.mrf.mxu1 }
 0x114   : > { %v7255_v26 = vpop.f32.mrf.mxu0  ;;  %7542 = vmatmul.mubr.bf16.gmra.mxu0 %v2295_v15 }
 0x115   : > { %v7303_v10 = vpop.f32.mrf.mxu1  ;;  %7590 = vmatmul.mubr.bf16.gmra.mxu1 %v2600_v57  ;;  %7545 = vmatprep.mubr.bf16.mxu0 %v2296_v18 }
 0x116   : > { %v8957_v39 = vadd.f32 %v7303_v10, %v7255_v26  ;;  %v776_v33 = vpop.f32.mrf.mxu0  ;;  %7593 = vmatprep.mubr.bf16.mxu1 %v2601_v7  ;;  %v2866_v7 = vld [vmem:[#allocation2 + $0x51] sm:$0xff]  ;;  %v2867_v26 = vld [vmem:[#allocation2 + $0x59] sm:$0xff] }
 0x117   : > { %v985_v24 = vpop.f32.mrf.mxu1  ;;  %v2896_v38 = vpack.c.bf16 %v2867_v26, %v2866_v7 }
 0x118   : > { %v8959_v42 = vadd.f32 %v985_v24, %v776_v33  ;;  %v7256_v44 = vpop.f32.mrf.mxu0 }
 0x119   : > { %v7304_v51 = vpop.f32.mrf.mxu1 }
 0x11a   : > { %v8961_v48 = vadd.f32 %v7304_v51, %v7256_v44  ;;  %v8963_v52 = vpop.f32.mrf.mxu0 }
 0x11b   : > { %v8965_v53 = vpop.f32.mrf.mxu1 }
 0x11c   : > { %v7259_v54 = vpop.f32.mrf.mxu0  ;;  %7546 = vmatmul.mubr.bf16.gmra.mxu0 %v2297_v45 }
 0x11d   : > { %v7307_v55 = vpop.f32.mrf.mxu1  ;;  %7594 = vmatmul.mubr.bf16.gmra.mxu1 %v2602_v46  ;;  %7549 = vmatprep.mubr.bf16.mxu0 %v8707_v23 }
 0x11e   : > { %v8968_v3 = vadd.f32 %v7307_v55, %v7259_v54  ;;  %v792_v11 = vpop.f32.mrf.mxu0  ;;  %7597 = vmatprep.mubr.bf16.mxu1 %v8839_v40  ;;  %v2864_v40 = vld [vmem:[#allocation2 + $0x41] sm:$0xff] }
 0x11f   : > { %v1001_v5 = vpop.f32.mrf.mxu1  ;;  %v2895_v33 = vpack.c.bf16 %v2865_v50, %v2864_v40  ;;  %v2868_v55 = vld [vmem:[#allocation2 + $0x61] sm:$0xff] }
 0x120   : > { %v8971_v58 = vadd.f32 %v1001_v5, %v792_v11  ;;  %v7260_v43 = vpop.f32.mrf.mxu0  ;;  %v2870_v11 = vld [vmem:[#allocation2 + $0x71] sm:$0xff] }
 0x121   : > { %v7308_v14 = vpop.f32.mrf.mxu1 }
 0x122   : > { %v8974_v6 = vadd.f32 %v7308_v14, %v7260_v43  ;;  %v8976_v23 = vpop.f32.mrf.mxu0  ;;  %v2897_v14 = vpack.c.bf16 %v2869_v13, %v2868_v55 }
 0x123   : > { %v8978_v36 = vpop.f32.mrf.mxu1 }
 0x124   : > { %v7263_v47 = vpop.f32.mrf.mxu0  ;;  %7550 = vmatmul.mubr.bf16.gmra.mxu0 %v2299_v63 }
 0x125   : > { %v7311_v15 = vpop.f32.mrf.mxu1  ;;  %7598 = vmatmul.mubr.bf16.gmra.mxu1 %v8215_v30  ;;  %7617 = vmatprep.mubr.bf16.mxu0 %v2894_v60 }
 0x126   : > { %v8980_v57 = vadd.f32 %v7311_v15, %v7263_v47  ;;  %v808_v18 = vpop.f32.mrf.mxu0 }
 0x127   : > { %v1017_v10 = vpop.f32.mrf.mxu1 }
 0x128   : > { %v8982_v22 = vadd.f32 %v1017_v10, %v808_v18  ;;  %v7264_v29 = vpop.f32.mrf.mxu0  ;;  %v2872_v10 = vld [vmem:[#allocation2 + $0x81] sm:$0xff] }
 0x129   : > { %v7312_v49 = vpop.f32.mrf.mxu1 }
 0x12a   : > { %v8984_v24 = vadd.f32 %v7312_v49, %v7264_v29  ;;  %v8986_v44 = vpop.f32.mrf.mxu0  ;;  %v2875_v49 = vld [vmem:[#allocation2 + $0x99] sm:$0xff] }
 0x12b   : > { %v8988_v45 = vpop.f32.mrf.mxu1 }
 0x12c   : > { %v7331_v51 = vpop.f32.mrf.mxu0  ;;  %7618 = vmatmul.mubr.bf16.vlgmr.msra.gmra.mxu0 %v2895_v33  ;;  %v2874_v33 = vld [vmem:[#allocation2 + $0x91] sm:$0xff] }
 0x12d   : > { %v1307_v46 = vadd.f32 %v7331_v51, %v8869_v61  ;;  %v7379_v54 = vpop.f32.mrf.mxu1  ;;  %7621 = vmatprep.mubr.bf16.mxu0 %v2896_v38  ;;  %v2898_v61 = vpack.c.bf16 %v2871_v25, %v2870_v11 }
 0x12e   : > { %v1178_v8 = vpop.f32.mrf.mxu0 }
 0x12f   : > { %v1305_v32 = vadd.f32 %v1178_v8, %v8875_v16  ;;  %v8992_v5 = vadd.f32 %v7379_v54, %v1307_v46  ;;  %v1483_v43 = vpop.f32.mrf.mxu1 }
 0x130   : > { %v7332_v63 = vpop.f32.mrf.mxu0 }
 0x131   : > { %v1308_v30 = vadd.f32 %v7332_v63, %v8883_v20  ;;  %v8995_v60 = vadd.f32 %v1483_v43, %v1305_v32  ;;  %v7380_v47 = vpop.f32.mrf.mxu1  ;;  %v2873_v20 = vld [vmem:[#allocation2 + $0x89] sm:$0xff] }
 0x132   : > { %v1181_v15 = vpop.f32.mrf.mxu0  ;;  %v2899_v54 = vpack.c.bf16 %v2873_v20, %v2872_v10 }
 0x133   : > { %v8998_v40 = vadd.f32 %v1181_v15, %v8888_v27  ;;  %v9000_v50 = vadd.f32 %v7380_v47, %v1308_v30  ;;  %v9002_v18 = vpop.f32.mrf.mxu1  ;;  %v2876_v30 = vld [vmem:[#allocation2 + $0xa1] sm:$0xff]  ;;  %v2879_v15 = vld [vmem:[#allocation2 + $0xb9] sm:$0xff] }
 0x134   : > { %v7335_v16 = vpop.f32.mrf.mxu0  ;;  %7622 = vmatmul.mubr.bf16.gmra.mxu0 %v2897_v14 }
 0x135   : > { %v1311_v7 = vadd.f32 %v7335_v16, %v8896_v34  ;;  %v7383_v26 = vpop.f32.mrf.mxu1  ;;  %7625 = vmatprep.mubr.bf16.mxu0 %v2898_v61  ;;  %v2900_v34 = vpack.c.bf16 %v2875_v49, %v2874_v33  ;;  %v2878_v61 = vld [vmem:[#allocation2 + $0xb1] sm:$0xff] }
 0x136   : > { %v1194_v29 = vpop.f32.mrf.mxu0 }
 0x137   : > { %v1309_v38 = vadd.f32 %v1194_v29, %v8901_v0  ;;  %v9006_v51 = vadd.f32 %v7383_v26, %v1311_v7  ;;  %v1499_v27 = vpop.f32.mrf.mxu1 }
 0x138   : > { %v7336_v46 = vpop.f32.mrf.mxu0 }
 0x139   : > { %v1312_v55 = vadd.f32 %v7336_v46, %v8909_v2  ;;  %v9009_v13 = vadd.f32 %v1499_v27, %v1309_v38  ;;  %v7384_v8 = vpop.f32.mrf.mxu1  ;;  %v2877_v2 = vld [vmem:[#allocation2 + $0xa9] sm:$0xff] }
 0x13a   : > { %v1197_v11 = vpop.f32.mrf.mxu0  ;;  %v2901_v10 = vpack.c.bf16 %v2877_v2, %v2876_v30 }
 0x13b   : > { %v9012_v25 = vadd.f32 %v1197_v11, %v8914_v4  ;;  %v9014_v32 = vadd.f32 %v7384_v8, %v1312_v55  ;;  %v9016_v43 = vpop.f32.mrf.mxu1  ;;  %v2880_v8 = vld [vmem:[#allocation2 + $0xc1] sm:$0xff]  ;;  %v2882_v11 = vld [vmem:[#allocation2 + $0xd1] sm:$0xff] }
 0x13c   : > { %v7339_v0 = vpop.f32.mrf.mxu0  ;;  %7626 = vmatmul.mubr.bf16.gmra.mxu0 %v2899_v54 }
 0x13d   : > { %v1315_v63 = vadd.f32 %v7339_v0, %v8922_v9  ;;  %v7387_v14 = vpop.f32.mrf.mxu1  ;;  %7629 = vmatprep.mubr.bf16.mxu0 %v2900_v34  ;;  %v2902_v9 = vpack.c.bf16 %v2879_v15, %v2878_v61  ;;  %v2883_v0 = vld [vmem:[#allocation2 + $0xd9] sm:$0xff] }
 0x13e   : > { %v1210_v47 = vpop.f32.mrf.mxu0 }
 0x13f   : > { %v1313_v16 = vadd.f32 %v1210_v47, %v8927_v17  ;;  %v9020_v7 = vadd.f32 %v7387_v14, %v1315_v63  ;;  %v1515_v4 = vpop.f32.mrf.mxu1 }
 0x140   : > { %v7340_v26 = vpop.f32.mrf.mxu0 }
 0x141   : > { %v1316_v20 = vadd.f32 %v7340_v26, %v8932_v1  ;;  %v9023_v29 = vadd.f32 %v1515_v4, %v1313_v16  ;;  %v7388_v33 = vpop.f32.mrf.mxu1  ;;  %v2881_v1 = vld [vmem:[#allocation2 + $0xc9] sm:$0xff] }
 0x142   : > { %v1213_v49 = vpop.f32.mrf.mxu0  ;;  %v2903_v2 = vpack.c.bf16 %v2881_v1, %v2880_v8 }
 0x143   : > { %v9026_v38 = vadd.f32 %v1213_v49, %v8937_v28  ;;  %v9028_v27 = vadd.f32 %v7388_v33, %v1316_v20  ;;  %v9030_v46 = vpop.f32.mrf.mxu1 }
 0x144   : > { %v7343_v17 = vpop.f32.mrf.mxu0  ;;  %7630 = vmatmul.mubr.bf16.gmra.mxu0 %v2901_v10 }
 0x145   : > { %v1319_v54 = vadd.f32 %v7343_v17, %v8939_v37  ;;  %v7391_v55 = vpop.f32.mrf.mxu1  ;;  %7633 = vmatprep.mubr.bf16.mxu0 %v2902_v9  ;;  %v2904_v37 = vpack.c.bf16 %v2883_v0, %v2882_v11  ;;  %v2884_v9 = vld [vmem:[#allocation2 + $0xe1] sm:$0xff]  ;;  %v2886_v17 = vld [vmem:[#allocation2 + $0xf1] sm:$0xff] }
 0x146   : > { %v1226_v34 = vpop.f32.mrf.mxu0 }
 0x147   : > { %v1317_v63 = vadd.f32 %v1226_v34, %v8941_v59  ;;  %v9034_v14 = vadd.f32 %v7391_v55, %v1319_v54  ;;  %v1531_v28 = vpop.f32.mrf.mxu1  ;;  %v2887_v54 = vld [vmem:[#allocation2 + $0xf9] sm:$0xff] }
 0x148   : > { %v7344_v30 = vpop.f32.mrf.mxu0 }
 0x149   : > { %v1320_v47 = vadd.f32 %v7344_v30, %v8943_v56  ;;  %v9037_v61 = vadd.f32 %v1531_v28, %v1317_v63  ;;  %v7392_v15 = vpop.f32.mrf.mxu1  ;;  %v2885_v56 = vld [vmem:[#allocation2 + $0xe9] sm:$0xff] }
 0x14a   : > { %v1229_v16 = vpop.f32.mrf.mxu0  ;;  %v2905_v34 = vpack.c.bf16 %v2885_v56, %v2884_v9 }
 0x14b   : > { %v9040_v4 = vadd.f32 %v1229_v16, %v8945_v62  ;;  %v9042_v26 = vadd.f32 %v7392_v15, %v1320_v47  ;;  %v9044_v10 = vpop.f32.mrf.mxu1  ;;  %v2889_v16 = vld [vmem:[#allocation2 + $0x109] sm:$0xff] }
 0x14c   : > { %v7347_v59 = vpop.f32.mrf.mxu0  ;;  %7634 = vmatmul.mubr.bf16.gmra.mxu0 %v2903_v2 }
 0x14d   : > { %v1323_v20 = vadd.f32 %v7347_v59, %v8947_v41  ;;  %v7395_v33 = vpop.f32.mrf.mxu1  ;;  %7637 = vmatprep.mubr.bf16.mxu0 %v2904_v37  ;;  %v2906_v41 = vpack.c.bf16 %v2887_v54, %v2886_v17  ;;  %v2888_v37 = vld [vmem:[#allocation2 + $0x101] sm:$0xff] }
 0x14e   : > { %v1242_v49 = vpop.f32.mrf.mxu0  ;;  %v2907_v56 = vpack.c.bf16 %v2889_v16, %v2888_v37 }
 0x14f   : > { %v1321_v55 = vadd.f32 %v1242_v49, %v8949_v12  ;;  %v9048_v8 = vadd.f32 %v7395_v33, %v1323_v20  ;;  %v1547_v62 = vpop.f32.mrf.mxu1 }
 0x150   : > { %v7348_v1 = vpop.f32.mrf.mxu0 }
 0x151   : > { %v1324_v11 = vadd.f32 %v7348_v1, %v8951_v35  ;;  %v9051_v0 = vadd.f32 %v1547_v62, %v1321_v55  ;;  %v7396_v63 = vpop.f32.mrf.mxu1 }
 0x152   : > { %v9053_v28 = vpop.f32.mrf.mxu0 }
 0x153   : > { %v9055_v30 = vadd.f32 %v7396_v63, %v1324_v11  ;;  %v9057_v2 = vpop.f32.mrf.mxu1  ;;  %v2893_v63 = vld [vmem:[#allocation2 + $0x129] sm:$0xff] }
 0x154   : > { %v7351_v47 = vpop.f32.mrf.mxu0  ;;  %7638 = vmatmul.mubr.bf16.gmra.mxu0 %v2905_v34 }
 0x155   : > { %v1327_v12 = vadd.f32 %v7351_v47, %v8957_v39  ;;  %v7399_v15 = vpop.f32.mrf.mxu1  ;;  %7641 = vmatprep.mubr.bf16.mxu0 %v2906_v41  ;;  %v8217_v39 = vld [vmem:[%s10892_s3 + $0x78] sm:$0xff]   ;;  %v8219_v47 = vld [vmem:[%s10892_s3 + $0x70] sm:$0xff]  }
 0x156   : > { %v1258_v59 = vpop.f32.mrf.mxu0  ;;  %7649 = vmatprep.subr.bf16.mxu1 %v8217_v39 }
 0x157   : > { %v1325_v35 = vadd.f32 %v1258_v59, %v8959_v42  ;;  %v9061_v20 = vadd.f32 %v7399_v15, %v1327_v12  ;;  %v1563_v33 = vpop.f32.mrf.mxu1  ;;  %7650 = vmatpush3.bf16.msra.mxu1 %v8217_v39 }
 0x158   : > { %v7352_v9 = vpop.f32.mrf.mxu0  ;;  %7651 = vmatprep.subr.bf16.mxu1 %v8219_v47 }
 0x159   : > { %v1328_v49 = vadd.f32 %v7352_v9, %v8961_v48  ;;  %v9064_v17 = vadd.f32 %v1563_v33, %v1325_v35  ;;  %v7400_v54 = vpop.f32.mrf.mxu1  ;;  %v2892_v48 = vld [vmem:[#allocation2 + $0x121] sm:$0xff]  ;;  %v8218_v9 = vld [vmem:[%s10892_s3 + $0x38] sm:$0xff]  }
 0x15a   : > { %v9066_v55 = vpop.f32.mrf.mxu0  ;;  %v2909_v59 = vpack.c.bf16 %v2893_v63, %v2892_v48  ;;  %7697 = vmatprep.subr.bf16.mxu0 %v8218_v9 }
 0x15b   : > { %v9071_v62 = vadd.f32 %v7400_v54, %v1328_v49  ;;  %v9073_v1 = vpop.f32.mrf.mxu1  ;;  %7652 = vmatpush3.bf16.msra.mxu1 %v8219_v47  ;;  %7698 = vmatpush3.bf16.msra.mxu0 %v8218_v9 }
 0x15c   : > { %10933 = vst [vmem:[#allocation4_spill] sm:$0xff] %v9073_v1  ;;  %v7355_v42 = vpop.f32.mrf.mxu0  ;;  %7642 = vmatmul.mubr.bf16.gmra.mxu0 %v2907_v56 }
 0x15d   : > { %v1331_v34 = vadd.f32 %v7355_v42, %v8968_v3  ;;  %v7403_v11 = vpop.f32.mrf.mxu1  ;;  %7645 = vmatprep.mubr.bf16.mxu0 %v8841_v31 }
 0x15e   : > { %v1274_v41 = vpop.f32.mrf.mxu0 }
 0x15f   : > { %v1329_v12 = vadd.f32 %v1274_v41, %v8971_v58  ;;  %v9081_v15 = vadd.f32 %v7403_v11, %v1331_v34  ;;  %v1579_v37 = vpop.f32.mrf.mxu1  ;;  %v8221_v58 = vld [vmem:[%s10892_s3 + $0x68] sm:$0xff]   ;;  %v8220_v34 = vld [vmem:[%s10892_s3 + $0x30] sm:$0xff]   ;;  %v8223_v11 = vld [vmem:[%s10892_s3 + $0x60] sm:$0xff]  }
 0x160   : > { %v7356_v16 = vpop.f32.mrf.mxu0  ;;  %7653 = vmatprep.subr.bf16.mxu1 %v8221_v58  ;;  %7699 = vmatprep.subr.bf16.mxu0 %v8220_v34 }
 0x161   : > { %v1332_v3 = vadd.f32 %v7356_v16, %v8974_v6  ;;  %v9084_v35 = vadd.f32 %v1579_v37, %v1329_v12  ;;  %v7404_v31 = vpop.f32.mrf.mxu1  ;;  %7654 = vmatpush3.bf16.msra.mxu1 %v8221_v58  ;;  %7700 = vmatpush3.bf16.msra.mxu0 %v8220_v34 }
 0x162   : > { %v9086_v33 = vpop.f32.mrf.mxu0  ;;  %7655 = vmatprep.subr.bf16.mxu1 %v8223_v11 }
 0x163   : > { %v9094_v56 = vadd.f32 %v7404_v31, %v1332_v3  ;;  %v9096_v49 = vpop.f32.mrf.mxu1 }
 0x164   : > { %10934 = vst [vmem:[#allocation5_spill] sm:$0xff] %v9096_v49  ;;  %v7359_v54 = vpop.f32.mrf.mxu0  ;;  %7646 = vmatmul.mubr.bf16.gmra.mxu0 %v2909_v59  ;;  %v8222_v59 = vld [vmem:[%s10892_s3 + $0x28] sm:$0xff]  }
 0x165   : > { %v1335_v6 = vadd.f32 %v7359_v54, %v8980_v57  ;;  %v7407_v39 = vpop.f32.mrf.mxu1  ;;  %7656 = vmatpush3.bf16.msra.mxu1 %v8223_v11  ;;  %7701 = vmatprep.subr.bf16.mxu0 %v8222_v59 }
 0x166   : > { %v1290_v42 = vpop.f32.mrf.mxu0  ;;  %7702 = vmatpush3.bf16.msra.mxu0 %v8222_v59 }
 0x167   : > { %v1333_v48 = vadd.f32 %v1290_v42, %v8982_v22  ;;  %v9106_v63 = vadd.f32 %v7407_v39, %v1335_v6  ;;  %v1595_v41 = vpop.f32.mrf.mxu1  ;;  %v8225_v22 = vld [vmem:[%s10892_s3 + $0x58] sm:$0xff]   ;;  %v8224_v6 = vld [vmem:[%s10892_s3 + $0x20] sm:$0xff]   ;;  %v8227_v39 = vld [vmem:[%s10892_s3 + $0x50] sm:$0xff]  }
 0x168   : > { %v7360_v47 = vpop.f32.mrf.mxu0  ;;  %7657 = vmatprep.subr.bf16.mxu1 %v8225_v22  ;;  %7703 = vmatprep.subr.bf16.mxu0 %v8224_v6 }
 0x169   : > { %v1336_v57 = vadd.f32 %v7360_v47, %v8984_v24  ;;  %v9109_v12 = vadd.f32 %v1595_v41, %v1333_v48  ;;  %v7408_v37 = vpop.f32.mrf.mxu1  ;;  %7658 = vmatpush3.bf16.msra.mxu1 %v8225_v22  ;;  %v8226_v47 = vld [vmem:[%s10892_s3 + $0x18] sm:$0xff]  }
 0x16a   : > { %v9111_v16 = vpop.f32.mrf.mxu0  ;;  %7659 = vmatprep.subr.bf16.mxu1 %v8227_v39  ;;  %7704 = vmatpush3.bf16.msra.mxu0 %v8224_v6  ;;  %v8300_v6 = vmov 0.0  }
 0x16b   : > { %v9119_v3 = vadd.f32 %v7408_v37, %v1336_v57  ;;  %v9121_v31 = vpop.f32.mrf.mxu1  ;;  %7705 = vmatprep.subr.bf16.mxu0 %v8226_v47  ;;  %3398 = vst [vmem:[#allocation3] sm:$0xff] %v8300_v6  ;;  %3400 = vst [vmem:[#allocation3 + $0x10] sm:$0xff] %v8300_v6 }
 0x16c   : > { %10935 = vst [vmem:[#allocation6_spill] sm:$0xff] %v9121_v31  ;;  %v7427_v24 = vpop.f32.mrf.mxu0  ;;  %3401 = vst [vmem:[#allocation3 + $0x18] sm:$0xff] %v8300_v6 }
 0x16d   : > { %v9124_v9 = vadd.f32 %v7427_v24, %v8992_v5  ;;  %v9126_v58 = vpop.f32.mrf.mxu1  ;;  %7660 = vmatpush3.bf16.msra.mxu1 %v8227_v39  ;;  %v8228_v24 = vld [vmem:[%s10892_s3 + $0x10] sm:$0xff]   ;;  %3399 = vst [vmem:[#allocation3 + $0x8] sm:$0xff] %v8300_v6  ;;  %3434 = vst [vmem:[#allocation3 + $0x120] sm:$0xff] %v8300_v6 }
 0x16e   : > { %v1788_v54 = vpop.f32.mrf.mxu0  ;;  %7706 = vmatpush3.bf16.msra.mxu0 %v8226_v47  ;;  %3435 = vst [vmem:[#allocation3 + $0x128] sm:$0xff] %v8300_v6  ;;  %3436 = vst [vmem:[#allocation3 + $0x130] sm:$0xff] %v8300_v6  ;;  %v8230_v6 = vld [vmem:[%s10892_s3 + $0x8] sm:$0xff]  }
 0x16f   : > { %v9135_v42 = vadd.f32 %v1788_v54, %v8995_v60  ;;  %v9137_v34 = vpop.f32.mrf.mxu1  ;;  %v8229_v60 = vld [vmem:[%s10892_s3 + $0x48] sm:$0xff]   ;;  %v8231_v54 = vld [vmem:[%s10892_s3 + $0x40] sm:$0xff]   ;;  %7707 = vmatprep.subr.bf16.mxu0 %v8228_v24 }
 0x170   : > { %v7428_v5 = vpop.f32.mrf.mxu0  ;;  %7661 = vmatprep.subr.bf16.mxu1 %v8229_v60 }
 0x171   : > { %v9140_v11 = vadd.f32 %v7428_v5, %v9000_v50  ;;  %v9142_v48 = vpop.f32.mrf.mxu1  ;;  %7662 = vmatpush3.bf16.msra.mxu1 %v8229_v60 }
 0x172   : > { %v9144_v41 = vpop.f32.mrf.mxu0  ;;  %7663 = vmatprep.subr.bf16.mxu1 %v8231_v54  ;;  %7708 = vmatpush3.bf16.msra.mxu0 %v8228_v24 }
 0x173   : > { %v9152_v57 = vpop.f32.mrf.mxu1  ;;  %7709 = vmatprep.subr.bf16.mxu0 %v8230_v6 }
 0x174   : > { %v7431_v37 = vpop.f32.mrf.mxu0 }
 0x175   : > { %v9155_v50 = vadd.f32 %v7431_v37, %v9006_v51  ;;  %v9157_v59 = vpop.f32.mrf.mxu1  ;;  %7664 = vmatpush3.bf16.msra.mxu1 %v8231_v54 }
 0x176   : > { %v1804_v22 = vpop.f32.mrf.mxu0  ;;  %7710 = vmatpush3.bf16.msra.mxu0 %v8230_v6 }
 0x177   : > { %v9166_v51 = vadd.f32 %v1804_v22, %v9009_v13  ;;  %v9168_v39 = vpop.f32.mrf.mxu1  ;;  %v8301_v22 = vmov 0.0|0.0  }
 0x178   : > { %v7432_v5 = vpop.f32.mrf.mxu0  ;;  %7665 = vmatprep.mubr.bf16.mxu1 %v8301_v22  ;;  %v3438_v22 = vld [vmem:[#allocation3 + $0xf] sm:$0xff] }
 0x179   : > { %v9171_v47 = vadd.f32 %v7432_v5, %v9014_v32  ;;  %v9173_v60 = vpop.f32.mrf.mxu1  ;;  %v8232_v5 = vld [vmem:[%s10892_s3] sm:$0xff]  }
 0x17a   : > { %10937 = vst [vmem:[#allocation8_spill] sm:$0xff] %v9173_v60  ;;  %v9175_v37 = vpop.f32.mrf.mxu0  ;;  %7711 = vmatprep.subr.bf16.mxu0 %v8232_v5  ;;  %v3439_v60 = vld [vmem:[#allocation3 + $0x17] sm:$0xff] }
 0x17b   : > { %10936 = vst [vmem:[#allocation7_spill] sm:$0xff] %v9171_v47  ;;  %v9180_v13 = vpop.f32.mrf.mxu1  ;;  %7712 = vmatpush3.bf16.msra.mxu0 %v8232_v5  ;;  %v3470_v6 = vpack.c.bf16 %v3439_v60, %v3438_v22 }
 0x17c   : > { %10938 = vst [vmem:[#allocation9_spill] sm:$0xff] %v9180_v13  ;;  %v7435_v31 = vpop.f32.mrf.mxu0 }
 0x17d   : > { %v9183_v49 = vadd.f32 %v7435_v31, %v9020_v7  ;;  %v9185_v32 = vpop.f32.mrf.mxu1  ;;  %7713 = vmatprep.mubr.bf16.mxu0 %v3470_v6 }
 0x17e   : > { %10940 = vst [vmem:[#allocation11_spill] sm:$0xff] %v9185_v32  ;;  %v1820_v24 = vpop.f32.mrf.mxu0 }
 0x17f   : > { %10939 = vst [vmem:[#allocation10_spill] sm:$0xff] %v9183_v49  ;;  %v9191_v1 = vadd.f32 %v1820_v24, %v9023_v29  ;;  %v9193_v54 = vpop.f32.mrf.mxu1 }
 0x180   : > { %10942 = vst [vmem:[#allocation13_spill] sm:$0xff] %v9193_v54  ;;  %v7436_v13 = vpop.f32.mrf.mxu0 }
 0x181   : > { %10941 = vst [vmem:[#allocation12_spill] sm:$0xff] %v9191_v1  ;;  %v9196_v7 = vadd.f32 %v7436_v13, %v9028_v27  ;;  %v9198_v31 = vpop.f32.mrf.mxu1 }
 0x182   : > { %10943 = vst [vmem:[#allocation14_spill] sm:$0xff] %v9198_v31  ;;  %v9200_v32 = vpop.f32.mrf.mxu0 }
 0x183   : > { %v9202_v49 = vpop.f32.mrf.mxu1 }
 0x184   : > { %10944 = vst [vmem:[#allocation15_spill] sm:$0xff] %v9202_v49  ;;  %v7439_v29 = vpop.f32.mrf.mxu0 }
 0x185   : > { %v9205_v24 = vadd.f32 %v7439_v29, %v9034_v14  ;;  %v9207_v54 = vpop.f32.mrf.mxu1 }
 0x186   : > { %10946 = vst [vmem:[#allocation17_spill] sm:$0xff] %v9207_v54  ;;  %v1836_v1 = vpop.f32.mrf.mxu0 }
 0x187   : > { %10945 = vst [vmem:[#allocation16_spill] sm:$0xff] %v9205_v24  ;;  %v9210_v47 = vadd.f32 %v1836_v1, %v9037_v61  ;;  %v9212_v27 = vpop.f32.mrf.mxu1 }
 0x188   : > { %10948 = vst [vmem:[#allocation19_spill] sm:$0xff] %v9212_v27  ;;  %v7440_v13 = vpop.f32.mrf.mxu0 }
 0x189   : > { %10947 = vst [vmem:[#allocation18_spill] sm:$0xff] %v9210_v47  ;;  %v9215_v60 = vadd.f32 %v7440_v13, %v9042_v26  ;;  %v9217_v5 = vpop.f32.mrf.mxu1 }
 0x18a   : > { %10950 = vst [vmem:[#allocation21_spill] sm:$0xff] %v9217_v5  ;;  %v9219_v22 = vpop.f32.mrf.mxu0 }
 0x18b   : > { %10949 = vst [vmem:[#allocation20_spill] sm:$0xff] %v9215_v60  ;;  %10951 = vst [vmem:[#allocation22_spill] sm:$0xff] %v9219_v22  ;;  %v9221_v6 = vpop.f32.mrf.mxu1 }
 0x18c   : > { %10952 = vst [vmem:[#allocation23_spill] sm:$0xff] %v9221_v6  ;;  %v7443_v14 = vpop.f32.mrf.mxu0 }
 0x18d   : > { %v9224_v29 = vadd.f32 %v7443_v14, %v9048_v8  ;;  %v9226_v54 = vpop.f32.mrf.mxu1 }
 0x18e   : > { %10954 = vst [vmem:[#allocation25_spill] sm:$0xff] %v9226_v54  ;;  %v1852_v61 = vpop.f32.mrf.mxu0 }
 0x18f   : > { %10953 = vst [vmem:[#allocation24_spill] sm:$0xff] %v9224_v29  ;;  %v9229_v1 = vadd.f32 %v1852_v61, %v9051_v0  ;;  %v9231_v27 = vpop.f32.mrf.mxu1 }
 0x190   : > { %10956 = vst [vmem:[#allocation27_spill] sm:$0xff] %v9231_v27  ;;  %v7444_v26 = vpop.f32.mrf.mxu0 }
 0x191   : > { %10955 = vst [vmem:[#allocation26_spill] sm:$0xff] %v9229_v1  ;;  %v9234_v13 = vadd.f32 %v7444_v26, %v9055_v30  ;;  %v9236_v5 = vpop.f32.mrf.mxu1 }
 0x192   : > { %10958 = vst [vmem:[#allocation29_spill] sm:$0xff] %v9236_v5  ;;  %v9238_v60 = vpop.f32.mrf.mxu0 }
 0x193   : > { %10957 = vst [vmem:[#allocation28_spill] sm:$0xff] %v9234_v13  ;;  %10959 = vst [vmem:[#allocation30_spill] sm:$0xff] %v9238_v60  ;;  %v9240_v6 = vpop.f32.mrf.mxu1 }
 0x194   : > { %10960 = vst [vmem:[#allocation31_spill] sm:$0xff] %v9240_v6  ;;  %v7447_v8 = vpop.f32.mrf.mxu0 }
 0x195   : > { %v9243_v14 = vadd.f32 %v7447_v8, %v9061_v20  ;;  %v9245_v54 = vpop.f32.mrf.mxu1  ;;  %v9262_v20 = vld [vmem:[%s10892_s3 + $0xb8] sm:$0xff]  }
 0x196   : > { %10962 = vst [vmem:[#allocation33_spill] sm:$0xff] %v9245_v54  ;;  %v1868_v0 = vpop.f32.mrf.mxu0  ;;  %10968 = vst [vmem:[#allocation39_spill] sm:$0xff] %v9262_v20  ;;  %7745 = vmatprep.subr.bf16.mxu1 %v9262_v20 }
 0x197   : > { %10961 = vst [vmem:[#allocation32_spill] sm:$0xff] %v9243_v14  ;;  %v9248_v61 = vadd.f32 %v1868_v0, %v9064_v17  ;;  %v9250_v27 = vpop.f32.mrf.mxu1 }
 0x198   : > { %10964 = vst [vmem:[#allocation35_spill] sm:$0xff] %v9250_v27  ;;  %v7448_v30 = vpop.f32.mrf.mxu0 }
 0x199   : > { %10963 = vst [vmem:[#allocation34_spill] sm:$0xff] %v9248_v61  ;;  %v9253_v26 = vadd.f32 %v7448_v30, %v9071_v62  ;;  %v9255_v5 = vpop.f32.mrf.mxu1 }
 0x19a   : > { %10966 = vst [vmem:[#allocation37_spill] sm:$0xff] %v9255_v5  ;;  %v9257_v13 = vpop.f32.mrf.mxu0 }
 0x19b   : > { %10965 = vst [vmem:[#allocation36_spill] sm:$0xff] %v9253_v26  ;;  %10967 = vst [vmem:[#allocation38_spill] sm:$0xff] %v9257_v13  ;;  %v9264_v8 = vpop.f32.mrf.mxu1 }
 0x19c   : > { %10969 = vst [vmem:[#allocation40_spill] sm:$0xff] %v9264_v8  ;;  %v7451_v54 = vpop.f32.mrf.mxu0 }
 0x19d   : > { %v9268_v17 = vadd.f32 %v7451_v54, %v9081_v15  ;;  %v9270_v0 = vpop.f32.mrf.mxu1  ;;  %v9287_v15 = vld [vmem:[%s10892_s3 + $0xf8] sm:$0xff]  }
 0x19e   : > { %10971 = vst [vmem:[#allocation42_spill] sm:$0xff] %v9270_v0  ;;  %v1884_v62 = vpop.f32.mrf.mxu0  ;;  %10977 = vst [vmem:[#allocation48_spill] sm:$0xff] %v9287_v15  ;;  %7793 = vmatprep.subr.bf16.mxu0 %v9287_v15 }
 0x19f   : > { %10970 = vst [vmem:[#allocation41_spill] sm:$0xff] %v9268_v17  ;;  %v9273_v30 = vadd.f32 %v1884_v62, %v9084_v35  ;;  %v9275_v5 = vpop.f32.mrf.mxu1 }
 0x1a0   : > { %10973 = vst [vmem:[#allocation44_spill] sm:$0xff] %v9275_v5  ;;  %v7452_v26 = vpop.f32.mrf.mxu0 }
 0x1a1   : > { %10972 = vst [vmem:[#allocation43_spill] sm:$0xff] %v9273_v30  ;;  %v9278_v13 = vadd.f32 %v7452_v26, %v9094_v56  ;;  %v9280_v27 = vpop.f32.mrf.mxu1 }
 0x1a2   : > { %10975 = vst [vmem:[#allocation46_spill] sm:$0xff] %v9280_v27  ;;  %v9282_v8 = vpop.f32.mrf.mxu0 }
 0x1a3   : > { %10974 = vst [vmem:[#allocation45_spill] sm:$0xff] %v9278_v13  ;;  %10976 = vst [vmem:[#allocation47_spill] sm:$0xff] %v9282_v8  ;;  %v9289_v54 = vpop.f32.mrf.mxu1 }
 0x1a4   : > { %10978 = vst [vmem:[#allocation49_spill] sm:$0xff] %v9289_v54  ;;  %v7455_v0 = vpop.f32.mrf.mxu0 }
 0x1a5   : > { %v9293_v35 = vadd.f32 %v7455_v0, %v9106_v63  ;;  %v9295_v62 = vpop.f32.mrf.mxu1 }
 0x1a6   : > { %10980 = vst [vmem:[#allocation51_spill] sm:$0xff] %v9295_v62  ;;  %v1900_v56 = vpop.f32.mrf.mxu0 }
 0x1a7   : > { %10979 = vst [vmem:[#allocation50_spill] sm:$0xff] %v9293_v35  ;;  %v9298_v26 = vadd.f32 %v1900_v56, %v9109_v12  ;;  %v9300_v27 = vpop.f32.mrf.mxu1 }
 0x1a8   : > { %10982 = vst [vmem:[#allocation53_spill] sm:$0xff] %v9300_v27  ;;  %v7456_v13 = vpop.f32.mrf.mxu0 }
 0x1a9   : > { %10981 = vst [vmem:[#allocation52_spill] sm:$0xff] %v9298_v26  ;;  %v9303_v5 = vadd.f32 %v7456_v13, %v9119_v3  ;;  %v9305_v30 = vpop.f32.mrf.mxu1 }
 0x1aa   : > { %10984 = vst [vmem:[#allocation55_spill] sm:$0xff] %v9305_v30  ;;  %v9307_v54 = vpop.f32.mrf.mxu0 }
 0x1ab   : > { %10983 = vst [vmem:[#allocation54_spill] sm:$0xff] %v9303_v5  ;;  %10985 = vst [vmem:[#allocation56_spill] sm:$0xff] %v9307_v54  ;;  %v9309_v8 = vpop.f32.mrf.mxu1 }
 0x1ac   : > { %10986 = vst [vmem:[#allocation57_spill] sm:$0xff] %v9309_v8  ;;  %v7523_v63 = vpop.f32.mrf.mxu0 }
 0x1ad   : > { %v9311_v0 = vpop.f32.mrf.mxu1 }
 0x1ae   : > { %v2398_v62 = vpop.f32.mrf.mxu0 }
 0x1af   : > { %v9313_v35 = vpop.f32.mrf.mxu1 }
 0x1b0   : > { %v9315_v12 = vpop.f32.mrf.mxu0 }
 0x1b1   : > { %v9317_v56 = vpop.f32.mrf.mxu1 }
 0x1b2   : > { %v9319_v27 = vpop.f32.mrf.mxu0 }
 0x1b3   : > { %v9323_v13 = vpop.f32.mrf.mxu1 }
 0x1b4   : > { %v9321_v3 = vpop.f32.mrf.mxu0 }
 0x1b5   : > { %v9329_v8 = vpop.f32.mrf.mxu1 }
 0x1b6   : > { %v9325_v30 = vpop.f32.mrf.mxu0 }
 0x1b7   : > { %v9335_v17 = vpop.f32.mrf.mxu1 }
 0x1b8   : > { %v9327_v5 = vpop.f32.mrf.mxu0 }
 0x1b9   : > { %v9341_v14 = vpop.f32.mrf.mxu1 }
 0x1ba   : > { %v9331_v54 = vpop.f32.mrf.mxu0  ;;  %10990 = vst [vmem:[#allocation61_spill] sm:$0xff] %v9341_v14 }
 0x1bb   : > { %v9347_v29 = vpop.f32.mrf.mxu1 }
 0x1bc   : > { %v9333_v26 = vpop.f32.mrf.mxu0  ;;  %10993 = vst [vmem:[#allocation64_spill] sm:$0xff] %v9347_v29  ;;  %v9369_v29 = vpop.permute.xlu1 %3218 }
 0x1bd   : > { %10987 = vst [vmem:[#allocation58_spill] sm:$0xff] %v9333_v26  ;;  %v9353_v47 = vpop.f32.mrf.mxu1  ;;  %11004 = vst [vmem:[#allocation75_spill] sm:$0xff] %v9369_v29 }
 0x1be   : > { %v9337_v61 = vpop.f32.mrf.mxu0  ;;  %10996 = vst [vmem:[#allocation67_spill] sm:$0xff] %v9353_v47 }
 0x1bf   : > { %10988 = vst [vmem:[#allocation59_spill] sm:$0xff] %v9337_v61  ;;  %v9359_v61 = vpop.f32.mrf.mxu1 }
 0x1c0   : > { %v9339_v15 = vpop.f32.mrf.mxu0  ;;  %10999 = vst [vmem:[#allocation70_spill] sm:$0xff] %v9359_v61  ;;  %v9381_v61 = vpop.permute.xlu1 %3223 }
 0x1c1   : > { %10989 = vst [vmem:[#allocation60_spill] sm:$0xff] %v9339_v15  ;;  %v9361_v15 = vpop.permute.xlu0 %3208  ;;  %11010 = vst [vmem:[#allocation81_spill] sm:$0xff] %v9381_v61 }
 0x1c2   : > { %v9343_v6 = vpop.f32.mrf.mxu0  ;;  %11000 = vst [vmem:[#allocation71_spill] sm:$0xff] %v9361_v15 }
 0x1c3   : > { %10991 = vst [vmem:[#allocation62_spill] sm:$0xff] %v9343_v6 }
 0x1c4   : > { %v9345_v1 = vpop.f32.mrf.mxu0 }
 0x1c5   : > { %10992 = vst [vmem:[#allocation63_spill] sm:$0xff] %v9345_v1  ;;  %v9367_v1 = vpop.f32.mrf.mxu1 }
 0x1c6   : > { %v9349_v20 = vpop.f32.mrf.mxu0  ;;  %11003 = vst [vmem:[#allocation74_spill] sm:$0xff] %v9367_v1 }
 0x1c7   : > { %10994 = vst [vmem:[#allocation65_spill] sm:$0xff] %v9349_v20 }
 0x1c8   : > { %v9351_v60 = vpop.f32.mrf.mxu0 }
 0x1c9   : > { %10995 = vst [vmem:[#allocation66_spill] sm:$0xff] %v9351_v60  ;;  %v9373_v60 = vpop.permute.xlu0 %3213 }
 0x1ca   : > { %v9355_v24 = vpop.f32.mrf.mxu0  ;;  %11006 = vst [vmem:[#allocation77_spill] sm:$0xff] %v9373_v60  ;;  %v9395_v60 = vpop.permute.xlu1 %3233 }
 0x1cb   : > { %10997 = vst [vmem:[#allocation68_spill] sm:$0xff] %v9355_v24  ;;  %v9377_v24 = vpop.f32.mrf.mxu1  ;;  %11017 = vst [vmem:[#allocation88_spill] sm:$0xff] %v9395_v60 }
 0x1cc   : > { %v9357_v22 = vpop.f32.mrf.mxu0  ;;  %11008 = vst [vmem:[#allocation79_spill] sm:$0xff] %v9377_v24 }
 0x1cd   : > { %10998 = vst [vmem:[#allocation69_spill] sm:$0xff] %v9357_v22 }
 0x1ce   : > { %v9363_v49 = vpop.f32.mrf.mxu0 }
 0x1cf   : > { %11001 = vst [vmem:[#allocation72_spill] sm:$0xff] %v9363_v49  ;;  %v9385_v49 = vpop.f32.mrf.mxu1 }
 0x1d0   : > { %v9365_v6 = vpop.f32.mrf.mxu0  ;;  %11012 = vst [vmem:[#allocation83_spill] sm:$0xff] %v9385_v49  ;;  %v1611_v49 = vadd.f32 %v9002_v18, %v8998_v40  ;;  %v2223_v18 = vadd.f32 %v9142_v48, %v9140_v11  ;;  %v1021_v11 = vadd.f32 %v8988_v45, %v8986_v44  ;;  %v1623_v44 = vadd.f32 %v9044_v10, %v9040_v4 }
 0x1d1   : > { %11002 = vst [vmem:[#allocation73_spill] sm:$0xff] %v9365_v6  ;;  %v9387_v6 = vpop.permute.xlu0 %3228  ;;  %v2226_v45 = vadd.f32 %v9157_v59, %v9155_v50 }
 0x1d2   : > { %v9371_v20 = vpop.f32.mrf.mxu0  ;;  %11013 = vst [vmem:[#allocation84_spill] sm:$0xff] %v9387_v6 }
 0x1d3   : > { %11005 = vst [vmem:[#allocation76_spill] sm:$0xff] %v9371_v20  ;;  %v9393_v20 = vpop.f32.mrf.mxu1  ;;  %v2531_v10 = vadd.f32 %v9321_v3, %v2226_v45  ;;  %v11032_v3 = vld [vmem:[#allocation5_spill] sm:$0xff] }
 0x1d4   : > { %v9375_v47 = vpop.f32.mrf.mxu0  ;;  %11016 = vst [vmem:[#allocation87_spill] sm:$0xff] %v9393_v20  ;;  %v2222_v20 = vadd.f32 %v9126_v58, %v9124_v9  ;;  %v973_v9 = vadd.f32 %v8955_v21, %v8953_v19  ;;  %v1615_v19 = vadd.f32 %v9016_v43, %v9012_v25  ;;  %v1619_v21 = vadd.f32 %v9030_v46, %v9026_v38 }
 0x1d5   : > { %11007 = vst [vmem:[#allocation78_spill] sm:$0xff] %v9375_v47  ;;  %v9399_v24 = vpop.permute.xlu0 %3238  ;;  %v9403_v31 = vpop.f32.mrf.mxu1 }
 0x1d6   : > { %v9379_v22 = vpop.f32.mrf.mxu0  ;;  %11019 = vst [vmem:[#allocation90_spill] sm:$0xff] %v9399_v24  ;;  %11021 = vst [vmem:[#allocation92_spill] sm:$0xff] %v9403_v31  ;;  %v2527_v31 = vadd.f32 %v7523_v63, %v2222_v20  ;;  %v2528_v20 = vadd.f32 %v9315_v12, %v2223_v18 }
 0x1d7   : > { %11009 = vst [vmem:[#allocation80_spill] sm:$0xff] %v9379_v22  ;;  %v9415_v60 = vpop.f32.mrf.mxu1 }
 0x1d8   : > { %v9383_v26 = vpop.f32.mrf.mxu0  ;;  %v2832_v48 = vadd.f32 %v9311_v0, %v2527_v31  ;;  %v1920_v31 = vadd.f32 %v9175_v37, %v1615_v19  ;;  %v2833_v4 = vadd.f32 %v9317_v56, %v2528_v20  ;;  %v11031_v56 = vld [vmem:[#allocation4_spill] sm:$0xff]  ;;  %v11035_v19 = vld [vmem:[#allocation6_spill] sm:$0xff] }
 0x1d9   : > { %11011 = vst [vmem:[#allocation82_spill] sm:$0xff] %v9383_v26  ;;  %v9418_v6 = vpop.permute.xlu0 %3248 }
 0x1da   : > { %v9389_v1 = vpop.f32.mrf.mxu0  ;;  %11025 = vst [vmem:[#allocation96_spill] sm:$0xff] %v9418_v6 }
 0x1db   : > { %11014 = vst [vmem:[#allocation85_spill] sm:$0xff] %v9389_v1  ;;  %v9409_v1 = vpop.permute.xlu1 %3243 }
 0x1dc   : > { %v9391_v14 = vpop.f32.mrf.mxu0  ;;  %11023 = vst [vmem:[#allocation94_spill] sm:$0xff] %v9409_v1  ;;  %v9428_v1 = vpop.f32.mrf.mxu1 }
 0x1dd   : > { %11015 = vst [vmem:[#allocation86_spill] sm:$0xff] %v9391_v14 }
 0x1de   : > { %v9397_v47 = vpop.f32.mrf.mxu0  ;;  %v9463_v43 = vpop.f32.mrf.mxu1 }
 0x1df   : > { %11018 = vst [vmem:[#allocation89_spill] sm:$0xff] %v9397_v47  ;;  %v1916_v47 = vadd.f32 %v9144_v41, %v1611_v49  ;;  %v989_v49 = vadd.f32 %v8965_v53, %v8963_v52  ;;  %v9435_v41 = vpop.permute.xlu1 %3253  ;;  %v1322_v52 = vadd.f32 %v9053_v28, %v973_v9 }
 0x1e0   : > { %v9401_v22 = vpop.f32.mrf.mxu0  ;;  %11026 = vst [vmem:[#allocation97_spill] sm:$0xff] %v9435_v41  ;;  %v9483_v63 = vpop.f32.mrf.mxu1 }
 0x1e1   : > { %11020 = vst [vmem:[#allocation91_spill] sm:$0xff] %v9401_v22  ;;  %v2221_v58 = vadd.f32 %v9152_v57, %v1916_v47  ;;  %v9451_v57 = vpop.permute.xlu0 %3258  ;;  %v1326_v46 = vadd.f32 %v9066_v55, %v989_v49  ;;  %v2224_v47 = vadd.f32 %v9168_v39, %v9166_v51  ;;  %v1334_v55 = vadd.f32 %v9111_v16, %v1021_v11 }
 0x1e2   : > { %v9405_v26 = vpop.f32.mrf.mxu0  ;;  %11027 = vst [vmem:[#allocation98_spill] sm:$0xff] %v9451_v57 }
 0x1e3   : > { %11022 = vst [vmem:[#allocation93_spill] sm:$0xff] %v9405_v26  ;;  %v2220_v26 = vadd.f32 %v9137_v34, %v9135_v42  ;;  %v1005_v34 = vadd.f32 %v8978_v36, %v8976_v23  ;;  %v2526_v53 = vadd.f32 %v9319_v27, %v2221_v58  ;;  %v9456_v36 = vld [vmem:[%s10891_s2] ss:$0 sm:$0xff]  ;;  %v9480_v39 = vpop.permute.xlu1 %3263  ;;  %v9490_v16 = vadd.f32 %v11031_v56, %v1326_v46  ;;  %v9511_v46 = vpop.f32.mrf.mxu1  ;;  %v11046_v56 = vld [vmem:[#allocation22_spill] sm:$0xff] }
 0x1e4   : > { %v9411_v14 = vpop.f32.mrf.mxu0 }
 0x1e5   : > { %11024 = vst [vmem:[#allocation95_spill] sm:$0xff] %v9411_v14  ;;  %v2525_v14 = vadd.f32 %v2398_v62, %v2220_v26  ;;  %v1330_v28 = vadd.f32 %v9086_v33, %v1005_v34  ;;  %v11029_v33 = vld [vmem:[#allocation8_spill] sm:$0xff]  ;;  %v2831_v51 = vadd.f32 %v9323_v13, %v2526_v53  ;;  %v2529_v26 = vadd.f32 %v9325_v30, %v2224_v47  ;;  %v11033_v13 = vld [vmem:[#allocation9_spill] sm:$0xff]  ;;  %v9497_v58 = vpop.permute.xlu0 %3268  ;;  %v11036_v53 = vld [vmem:[#allocation10_spill] sm:$0xff] }
 0x1e6   : > { %v9420_v22 = vpop.f32.mrf.mxu0  ;;  %v2225_v9 = vadd.f32 %v11033_v13, %v1920_v31  ;;  %11034 = vst [vmem:[#allocation8_spill] sm:$0xff] %v9497_v58  ;;  %v2836_v34 = vadd.f32 %v9329_v8, %v2531_v10 }
 0x1e7   : > { %v2830_v25 = vadd.f32 %v9313_v35, %v2525_v14  ;;  %v9474_v14 = vadd.f32 %v9057_v2, %v1322_v52  ;;  %v11028_v35 = vld [vmem:[#allocation7_spill] sm:$0xff]  ;;  %v9493_v18 = vadd.f32 %v11032_v3, %v1330_v28  ;;  %v9504_v52 = vadd.f32 %v11035_v19, %v1334_v55 }
 0x1e8   : > { %v9424_v40 = vpop.f32.mrf.mxu0  ;;  %v2227_v62 = vadd.f32 %v11029_v33, %v11028_v35  ;;  %11030 = vst [vmem:[#allocation7_spill] sm:$0xff] %v9480_v39  ;;  %v2834_v8 = vadd.f32 %v9335_v17, %v2529_v26  ;;  %v9521_v35 = vpop.permute.xlu1 %3273  ;;  %v11044_v33 = vld [vmem:[#allocation77_spill] sm:$0xff]  ;;  %v1928_v3 = vadd.f32 %v11046_v56, %v1623_v44  ;;  %v8235_v44 = vld [vmem:[%s10892_s3 + $0xb0] sm:$0xff]  }
 0x1e9   : > { %11043 = vst [vmem:[#allocation4_spill] sm:$0xff] %v9521_v35  ;;  %v11061_v56 = vld [vmem:[#allocation62_spill] sm:$0xff] }
 0x1ea   : > { %v9437_v42 = vpop.f32.mrf.mxu0  ;;  %v2532_v49 = vadd.f32 %v9327_v5, %v2227_v62  ;;  %v1924_v5 = vadd.f32 %v9200_v32, %v1619_v21  ;;  %v11041_v32 = vld [vmem:[#allocation61_spill] sm:$0xff] }
 0x1ec   : > { %v7619_v23 = vpop.f32.mrf.mxu0  ;;  %v2837_v21 = vadd.f32 %v11041_v32, %v2532_v49 }
 0x1ed   : > { %v3137_v38 = vadd.f32 %v7619_v23, %v2832_v48  ;;  %v11037_v23 = vld [vmem:[#allocation11_spill] sm:$0xff] }
 0x1ee   : > { %v3008_v27 = vpop.f32.mrf.mxu0  ;;  %v2230_v45 = vadd.f32 %v11037_v23, %v11036_v53  ;;  %v11050_v23 = vld [vmem:[#allocation16_spill] sm:$0xff] }
 0x1ef   : > { %v3176_v50 = vadd.f32 %v9456_v36, %v3137_v38  ;;  %v3135_v59 = vadd.f32 %v3008_v27, %v2830_v25  ;;  %v2530_v25 = vadd.f32 %v9331_v54, %v2225_v9  ;;  %v11038_v27 = vld [vmem:[#allocation12_spill] sm:$0xff]  ;;  %v11042_v54 = vld [vmem:[#allocation58_spill] sm:$0xff]  ;;  %v11048_v9 = vld [vmem:[#allocation59_spill] sm:$0xff] }
 0x1f0   : > { %v7620_v37 = vpop.f32.mrf.mxu0  ;;  %v2535_v55 = vadd.f32 %v11042_v54, %v2230_v45  ;;  %v11051_v45 = vld [vmem:[#allocation17_spill] sm:$0xff] }
 0x1f1   : > { %v9486_v0 = vmul.f32 %v9369_v29, %v3176_v50  ;;  %v3174_v2 = vadd.f32 %v9456_v36, %v3135_v59  ;;  %v3138_v12 = vadd.f32 %v7620_v37, %v2833_v4  ;;  %v11039_v4 = vld [vmem:[#allocation13_spill] sm:$0xff]  ;;  %v11040_v50 = vld [vmem:[#allocation14_spill] sm:$0xff] }
 0x1f2   : > { %v3011_v30 = vpop.f32.mrf.mxu0  ;;  %v2228_v10 = vadd.f32 %v11039_v4, %v11038_v27  ;;  %v2231_v59 = vadd.f32 %v11040_v50, %v9196_v7  ;;  %v11047_v7 = vld [vmem:[#allocation64_spill] sm:$0xff]  ;;  %v11057_v50 = vld [vmem:[#allocation67_spill] sm:$0xff] }
 0x1f3   : > { %3404 = vst [vmem:[#allocation3 + $0x30] sm:$0xff] %v9486_v0  ;;  %v3366_v11 = vmul.f32 %v9361_v15, %v3174_v2  ;;  %v3177_v48 = vadd.f32 %v9456_v36, %v3138_v12  ;;  %v3136_v20 = vadd.f32 %v3011_v30, %v2831_v51  ;;  %v11045_v2 = vld [vmem:[#allocation15_spill] sm:$0xff]  ;;  %v2835_v13 = vadd.f32 %v11047_v7, %v2530_v25  ;;  %v9530_v30 = vpop.permute.xlu0 %3278  ;;  %v11052_v25 = vld [vmem:[#allocation18_spill] sm:$0xff]  ;;  %v11056_v27 = vld [vmem:[#allocation60_spill] sm:$0xff] }
 0x1f4   : > { %v7623_v38 = vpop.f32.mrf.mxu0  ;;  %v2229_v12 = vadd.f32 %v11045_v2, %v1924_v5  ;;  %v2533_v49 = vadd.f32 %v11048_v9, %v2228_v10  ;;  %11049 = vst [vmem:[#allocation5_spill] sm:$0xff] %v9530_v30  ;;  %v2234_v5 = vadd.f32 %v11051_v45, %v11050_v23  ;;  %v2536_v4 = vadd.f32 %v11056_v27, %v2231_v59  ;;  %v9558_v59 = vpop.permute.xlu1 %3283  ;;  %v11071_v27 = vld [vmem:[#allocation63_spill] sm:$0xff] }
 0x1f5   : > { %3402 = vst [vmem:[#allocation3 + $0x20] sm:$0xff] %v3366_v11  ;;  %v3369_v28 = vmul.f32 %v9381_v61, %v3177_v48  ;;  %v3175_v47 = vadd.f32 %v9456_v36, %v3136_v20  ;;  %v3141_v31 = vadd.f32 %v7623_v38, %v2836_v34  ;;  %v9532_v48 = vpop.f32.mrf.mxu1  ;;  %v11053_v38 = vld [vmem:[#allocation19_spill] sm:$0xff]  ;;  %v2840_v32 = vadd.f32 %v11057_v50, %v2535_v55 }
 0x1f6   : > { %v3024_v17 = vpop.f32.mrf.mxu0  ;;  %v2534_v7 = vadd.f32 %v11061_v56, %v2229_v12  ;;  %11062 = vst [vmem:[#allocation9_spill] sm:$0xff] %v9558_v59  ;;  %v11063_v55 = vld [vmem:[#allocation39_spill] sm:$0xff]  ;;  %v11066_v12 = vld [vmem:[#allocation24_spill] sm:$0xff] }
 0x1f7   : > { %3405 = vst [vmem:[#allocation3 + $0x38] sm:$0xff] %v3369_v28  ;;  %v3367_v62 = vmul.f32 %v11044_v33, %v3175_v47  ;;  %v3180_v51 = vadd.f32 %v9456_v36, %v3141_v31  ;;  %v3139_v37 = vadd.f32 %v3024_v17, %v2834_v8  ;;  %v3536_v26 = vpack.c.bf16 %v3369_v28, %v9486_v0  ;;  %v11054_v28 = vld [vmem:[#allocation20_spill] sm:$0xff]  ;;  %v11055_v47 = vld [vmem:[#allocation21_spill] sm:$0xff]  ;;  %v9562_v23 = vpop.f32.mrf.mxu1  ;;  %v9578_v50 = vpop.permute.xlu0 %3288 }
 0x1f8   : > { %v7624_v34 = vpop.f32.mrf.mxu0  ;;  %v2232_v8 = vadd.f32 %v11053_v38, %v11052_v25  ;;  %v2235_v31 = vadd.f32 %v11055_v47, %v11054_v28  ;;  %v11068_v25 = vld [vmem:[#allocation26_spill] sm:$0xff]  ;;  %v11069_v38 = vld [vmem:[#allocation27_spill] sm:$0xff]  ;;  %11072 = vst [vmem:[#allocation6_spill] sm:$0xff] %v9578_v50 }
 0x1f9   : > { %3403 = vst [vmem:[#allocation3 + $0x28] sm:$0xff] %v3367_v62  ;;  %v9535_v20 = vmul.f32 %v9399_v24, %v3180_v51  ;;  %v3178_v19 = vadd.f32 %v9456_v36, %v3139_v37  ;;  %v3142_v0 = vadd.f32 %v7624_v34, %v2837_v21  ;;  %v3535_v53 = vpack.c.bf16 %v3367_v62, %v3366_v11  ;;  %v11058_v11 = vld [vmem:[#allocation84_spill] sm:$0xff]  ;;  %v11059_v62 = vld [vmem:[#allocation23_spill] sm:$0xff]  ;;  %v11060_v37 = vld [vmem:[#allocation30_spill] sm:$0xff] }
 0x1fa   : > { %v3027_v10 = vpop.f32.mrf.mxu0  ;;  %v2233_v51 = vadd.f32 %v11059_v62, %v1928_v3  ;;  %v1932_v2 = vadd.f32 %v11060_v37, %v9474_v14  ;;  %v11064_v34 = vld [vmem:[#allocation70_spill] sm:$0xff]  ;;  %v8237_v14 = vld [vmem:[%s10892_s3 + $0xa8] sm:$0xff]  }
 0x1fb   : > { %3408 = vst [vmem:[#allocation3 + $0x50] sm:$0xff] %v9535_v20  ;;  %v9551_v21 = vmul.f32 %v11058_v11, %v3178_v19  ;;  %v3181_v54 = vadd.f32 %v9456_v36, %v3142_v0  ;;  %v3140_v17 = vadd.f32 %v3027_v10, %v2835_v13  ;;  %7666 = vmatmul.mubr.bf16.vlgmr.msra.gmra.mxu1 %v3535_v53  ;;  %v11065_v13 = vld [vmem:[#allocation94_spill] sm:$0xff] }
 0x1fc   : > { %v7627_v9 = vpop.f32.mrf.mxu0  ;;  %7669 = vmatprep.mubr.bf16.mxu1 %v3536_v26  ;;  %7746 = vmatpush3.bf16.msra.mxu1 %v11063_v55  ;;  %v2838_v19 = vadd.f32 %v11064_v34, %v2533_v49  ;;  %v11067_v26 = vld [vmem:[#allocation25_spill] sm:$0xff]  ;;  %v9574_v49 = vadd.f32 %v11069_v38, %v11068_v25  ;;  %v11070_v28 = vld [vmem:[#allocation74_spill] sm:$0xff]  ;;  %v2539_v10 = vadd.f32 %v11071_v27, %v2234_v5  ;;  %v3440_v27 = vld [vmem:[#allocation3 + $0x1f] sm:$0xff] }
 0x1fd   : > { %3406 = vst [vmem:[#allocation3 + $0x40] sm:$0xff] %v9551_v21  ;;  %v3373_v0 = vmul.f32 %v11065_v13, %v3181_v54  ;;  %v3179_v3 = vadd.f32 %v9456_v36, %v3140_v17  ;;  %v3145_v53 = vadd.f32 %v7627_v9, %v2840_v32  ;;  %7747 = vmatprep.subr.bf16.mxu1 %v8235_v44  ;;  %v11073_v32 = vld [vmem:[#allocation88_spill] sm:$0xff]  ;;  %v11075_v55 = vld [vmem:[#allocation29_spill] sm:$0xff] }
 0x1fe   : > { %v2238_v45 = vadd.f32 %v11067_v26, %v11066_v12  ;;  %v2841_v47 = vadd.f32 %v11070_v28, %v2536_v4  ;;  %v3040_v54 = vpop.f32.mrf.mxu0  ;;  %v11074_v9 = vld [vmem:[#allocation28_spill] sm:$0xff]  ;;  %v11076_v12 = vld [vmem:[#allocation31_spill] sm:$0xff]  ;;  %v11078_v25 = vld [vmem:[#allocation65_spill] sm:$0xff] }
 0x1ff   : > { %3409 = vst [vmem:[#allocation3 + $0x58] sm:$0xff] %v3373_v0  ;;  %v3371_v17 = vmul.f32 %v11073_v32, %v3179_v3  ;;  %v3184_v62 = vadd.f32 %v9456_v36, %v3145_v53  ;;  %v3143_v37 = vadd.f32 %v3040_v54, %v2838_v19  ;;  %v3538_v56 = vpack.c.bf16 %v3373_v0, %v9535_v20  ;;  %v11077_v4 = vld [vmem:[#allocation79_spill] sm:$0xff]  ;;  %v9592_v53 = vpop.f32.mrf.mxu1 }
 0x200   : > { %v9585_v34 = vadd.f32 %v11075_v55, %v11074_v9  ;;  %v9588_v26 = vadd.f32 %v11076_v12, %v1932_v2  ;;  %v2839_v5 = vadd.f32 %v11077_v4, %v2534_v7  ;;  %v2537_v38 = vadd.f32 %v11078_v25, %v2232_v8  ;;  %v7628_v28 = vpop.f32.mrf.mxu0  ;;  %v3441_v15 = vld [vmem:[#allocation3 + $0x27] sm:$0xff]  ;;  %v3442_v3 = vld [vmem:[#allocation3 + $0x2f] sm:$0xff]  ;;  %7748 = vmatpush3.bf16.msra.mxu1 %v8235_v44  ;;  %v3443_v54 = vld [vmem:[#allocation3 + $0x37] sm:$0xff]  ;;  %v9605_v44 = vpop.permute.xlu1 %3293 }
 0x201   : > { %3407 = vst [vmem:[#allocation3 + $0x48] sm:$0xff] %v3371_v17  ;;  %v9595_v20 = vmul.f32 %v9451_v57, %v3184_v62  ;;  %v3182_v19 = vadd.f32 %v9456_v36, %v3143_v37  ;;  %v3146_v0 = vadd.f32 %v7628_v28, %v2841_v47  ;;  %v9598_v2 = vpack.c.bf16 %v3441_v15, %v3440_v27  ;;  %v11079_v7 = vld [vmem:[#allocation32_spill] sm:$0xff]  ;;  %v11080_v8 = vld [vmem:[#allocation33_spill] sm:$0xff]  ;;  %v11081_v55 = vld [vmem:[#allocation66_spill] sm:$0xff] }
 0x202   : > { %7749 = vmatprep.subr.bf16.mxu1 %v8237_v14  ;;  %v9602_v9 = vadd.f32 %v11080_v8, %v11079_v7  ;;  %v2540_v12 = vadd.f32 %v11081_v55, %v2235_v31  ;;  %11082 = vst [vmem:[#allocation10_spill] sm:$0xff] %v9605_v44  ;;  %v3043_v4 = vpop.f32.mrf.mxu0  ;;  %v9607_v25 = vpack.c.bf16 %v3443_v54, %v3442_v3  ;;  %v8236_v15 = vld [vmem:[%s10892_s3 + $0xf0] sm:$0xff]   ;;  %v11083_v47 = vld [vmem:[#allocation83_spill] sm:$0xff]  ;;  %v11085_v54 = vld [vmem:[#allocation68_spill] sm:$0xff]  ;;  %v9626_v55 = vpop.permute.xlu0 %3298 }
 0x203   : > { %v3537_v62 = vpack.c.bf16 %v3371_v17, %v9551_v21  ;;  %v2844_v37 = vadd.f32 %v11083_v47, %v2539_v10  ;;  %3412 = vst [vmem:[#allocation3 + $0x70] sm:$0xff] %v9595_v20  ;;  %v9616_v28 = vmul.f32 %v9418_v6, %v3182_v19  ;;  %v3185_v31 = vadd.f32 %v9456_v36, %v3146_v0  ;;  %v8239_v21 = vld [vmem:[%s10892_s3 + $0xa0] sm:$0xff]   ;;  %v11084_v17 = vld [vmem:[#allocation87_spill] sm:$0xff]  ;;  %v11086_v8 = vld [vmem:[#allocation69_spill] sm:$0xff]  ;;  %v9629_v19 = vpop.f32.mrf.mxu1 }
 0x204   : > { %v3144_v27 = vadd.f32 %v3043_v4, %v2839_v5  ;;  %7714 = vmatmul.mubr.bf16.vlgmr.msra.gmra.mxu0 %v9598_v2  ;;  %v2842_v3 = vadd.f32 %v11084_v17, %v2537_v38  ;;  %v2538_v7 = vadd.f32 %v11085_v54, %v2233_v51  ;;  %v2543_v10 = vadd.f32 %v11086_v8, %v2238_v45  ;;  %v7631_v47 = vpop.f32.mrf.mxu0  ;;  %v11088_v38 = vld [vmem:[#allocation48_spill] sm:$0xff]  ;;  %v11089_v51 = vld [vmem:[#allocation34_spill] sm:$0xff]  ;;  %v11090_v45 = vld [vmem:[#allocation35_spill] sm:$0xff] }
 0x205   : > { %11087 = vst [vmem:[#allocation11_spill] sm:$0xff] %v9626_v55  ;;  %7717 = vmatprep.mubr.bf16.mxu0 %v9607_v25  ;;  %7670 = vmatmul.mubr.bf16.gmra.mxu1 %v3537_v62  ;;  %3410 = vst [vmem:[#allocation3 + $0x60] sm:$0xff] %v9616_v28  ;;  %v3377_v5 = vmul.f32 %v9480_v39, %v3185_v31  ;;  %v3149_v4 = vadd.f32 %v7631_v47, %v2844_v37  ;;  %v11091_v54 = vld [vmem:[#allocation38_spill] sm:$0xff]  ;;  %v11092_v62 = vld [vmem:[#allocation92_spill] sm:$0xff] }
 0x206   : > { %v3183_v0 = vadd.f32 %v9456_v36, %v3144_v27  ;;  %7673 = vmatprep.mubr.bf16.mxu1 %v3538_v56  ;;  %7794 = vmatpush3.bf16.msra.mxu0 %v11088_v38  ;;  %v9637_v17 = vadd.f32 %v11090_v45, %v11089_v51  ;;  %v1936_v8 = vadd.f32 %v11091_v54, %v9490_v16  ;;  %v3056_v29 = vpop.f32.mrf.mxu0  ;;  %v8238_v31 = vld [vmem:[%s10892_s3 + $0xe8] sm:$0xff]   ;;  %v8241_v16 = vld [vmem:[%s10892_s3 + $0x98] sm:$0xff]  }
 0x207   : > { %v2845_v33 = vadd.f32 %v11092_v62, %v2540_v12  ;;  %7795 = vmatprep.subr.bf16.mxu0 %v8236_v15  ;;  %7750 = vmatpush3.bf16.msra.mxu1 %v8237_v14  ;;  %3413 = vst [vmem:[#allocation3 + $0x78] sm:$0xff] %v3377_v5  ;;  %v3188_v37 = vadd.f32 %v9456_v36, %v3149_v4  ;;  %v11093_v12 = vld [vmem:[#allocation36_spill] sm:$0xff]  ;;  %v11094_v38 = vld [vmem:[#allocation37_spill] sm:$0xff]  ;;  %v9659_v4 = vpop.permute.xlu1 %3303  ;;  %v9661_v62 = vpop.f32.mrf.mxu1  ;;  %v5814_v13 = vld [vmem:[#allocation3 + $0x31] sm:$0xff] }
 0x208   : > { %v3375_v56 = vmul.f32 %v9435_v41, %v3183_v0  ;;  %v3147_v27 = vadd.f32 %v3056_v29, %v2842_v3  ;;  %v3540_v47 = vpack.c.bf16 %v3377_v5, %v9595_v20  ;;  %7751 = vmatprep.subr.bf16.mxu1 %v8239_v21  ;;  %v9653_v51 = vadd.f32 %v11094_v38, %v11093_v12  ;;  %v11095_v14 = vld [vmem:[#allocation72_spill] sm:$0xff]  ;;  %v7632_v29 = vpop.f32.mrf.mxu0  ;;  %v3446_v5 = vld [vmem:[#allocation3 + $0x4f] sm:$0xff]  ;;  %v9671_v38 = vpop.permute.xlu0 %3308 }
 0x209   : > { %v2843_v45 = vadd.f32 %v9415_v60, %v2538_v7  ;;  %v2541_v54 = vadd.f32 %v11095_v14, %v9574_v49  ;;  %v2848_v0 = vadd.f32 %v9428_v1, %v2543_v10  ;;  %11096 = vst [vmem:[#allocation12_spill] sm:$0xff] %v9659_v4  ;;  %v3444_v20 = vld [vmem:[#allocation3 + $0x3f] sm:$0xff]  ;;  %v3445_v3 = vld [vmem:[#allocation3 + $0x47] sm:$0xff]  ;;  %v9664_v61 = vmul.f32 %v9530_v30, %v3188_v37  ;;  %v3447_v49 = vld [vmem:[#allocation3 + $0x57] sm:$0xff] }
 0x20a   : > { %3411 = vst [vmem:[#allocation3 + $0x68] sm:$0xff] %v3375_v56  ;;  %v3186_v12 = vadd.f32 %v9456_v36, %v3147_v27  ;;  %v3150_v60 = vadd.f32 %v7632_v29, %v2845_v33  ;;  %v9667_v7 = vpack.c.bf16 %v3445_v3, %v3444_v20  ;;  %7796 = vmatpush3.bf16.msra.mxu0 %v8236_v15  ;;  %v11097_v1 = vld [vmem:[#allocation73_spill] sm:$0xff]  ;;  %11098 = vst [vmem:[#allocation13_spill] sm:$0xff] %v9671_v38  ;;  %v3059_v14 = vpop.f32.mrf.mxu0  ;;  %v8240_v37 = vld [vmem:[%s10892_s3 + $0xe0] sm:$0xff]  }
 0x20b   : > { %v2544_v10 = vadd.f32 %v11097_v1, %v9585_v34  ;;  %v9673_v11 = vpack.c.bf16 %v3447_v49, %v3446_v5  ;;  %v3539_v32 = vpack.c.bf16 %v3375_v56, %v9616_v28  ;;  %7797 = vmatprep.subr.bf16.mxu0 %v8238_v31  ;;  %7752 = vmatpush3.bf16.msra.mxu1 %v8239_v21  ;;  %v8243_v28 = vld [vmem:[%s10892_s3 + $0x90] sm:$0xff]   ;;  %v11099_v27 = vld [vmem:[#allocation76_spill] sm:$0xff] }
 0x20c   : > { %3416 = vst [vmem:[#allocation3 + $0x90] sm:$0xff] %v9664_v61  ;;  %v9681_v33 = vmul.f32 %v9497_v58, %v3186_v12  ;;  %v3189_v34 = vadd.f32 %v9456_v36, %v3150_v60  ;;  %v3148_v15 = vadd.f32 %v3059_v14, %v2843_v45  ;;  %7718 = vmatmul.mubr.bf16.gmra.mxu0 %v9667_v7  ;;  %v11100_v29 = vld [vmem:[#allocation78_spill] sm:$0xff]  ;;  %v7635_v3 = vpop.f32.mrf.mxu0  ;;  %v9694_v45 = vpop.f32.mrf.mxu1  ;;  %v11102_v60 = vld [vmem:[#allocation41_spill] sm:$0xff] }
 0x20d   : > { %7753 = vmatprep.subr.bf16.mxu1 %v8241_v16  ;;  %v2846_v56 = vadd.f32 %v9463_v43, %v2541_v54  ;;  %v2542_v21 = vadd.f32 %v11099_v27, %v9588_v26  ;;  %v2547_v20 = vadd.f32 %v11100_v29, %v9602_v9  ;;  %7721 = vmatprep.mubr.bf16.mxu0 %v9673_v11  ;;  %v11101_v26 = vld [vmem:[#allocation40_spill] sm:$0xff]  ;;  %v11103_v9 = vld [vmem:[#allocation42_spill] sm:$0xff] }
 0x20e   : > { %7674 = vmatmul.mubr.bf16.gmra.mxu1 %v3539_v32  ;;  %3414 = vst [vmem:[#allocation3 + $0x80] sm:$0xff] %v9681_v33  ;;  %v9698_v5 = vmul.f32 %v9558_v59, %v3189_v34  ;;  %v3187_v12 = vadd.f32 %v9456_v36, %v3148_v15  ;;  %v3153_v43 = vadd.f32 %v7635_v3, %v2848_v0  ;;  %v9705_v32 = vpop.permute.xlu1 %3313  ;;  %v3072_v14 = vpop.f32.mrf.mxu0  ;;  %v8242_v34 = vld [vmem:[%s10892_s3 + $0xd8] sm:$0xff]   ;;  %v11106_v27 = vld [vmem:[#allocation80_spill] sm:$0xff] }
 0x20f   : > { %7677 = vmatprep.mubr.bf16.mxu1 %v3540_v47  ;;  %7798 = vmatpush3.bf16.msra.mxu0 %v8238_v31  ;;  %v2241_v54 = vadd.f32 %v11101_v26, %v1936_v8  ;;  %v2246_v49 = vadd.f32 %v11103_v9, %v11102_v60  ;;  %v2849_v1 = vadd.f32 %v9483_v63, %v2544_v10  ;;  %v8245_v63 = vld [vmem:[%s10892_s3 + $0x88] sm:$0xff]   ;;  %v11105_v10 = vld [vmem:[#allocation47_spill] sm:$0xff]  ;;  %v9726_v26 = vpop.f32.mrf.mxu1 }
 0x210   : > { %11104 = vst [vmem:[#allocation14_spill] sm:$0xff] %v9705_v32  ;;  %7799 = vmatprep.subr.bf16.mxu0 %v8240_v37  ;;  %7754 = vmatpush3.bf16.msra.mxu1 %v8241_v16  ;;  %3417 = vst [vmem:[#allocation3 + $0x98] sm:$0xff] %v9698_v5  ;;  %v3379_v31 = vmul.f32 %v9521_v35, %v3187_v12  ;;  %v3192_v8 = vadd.f32 %v9456_v36, %v3153_v43  ;;  %v9724_v12 = vpop.permute.xlu0 %3318  ;;  %v3448_v43 = vld [vmem:[#allocation3 + $0x5f] sm:$0xff] }
 0x211   : > { %v3151_v47 = vadd.f32 %v3072_v14, %v2846_v56  ;;  %v3542_v0 = vpack.c.bf16 %v9698_v5, %v9664_v61  ;;  %7755 = vmatprep.subr.bf16.mxu1 %v8243_v28  ;;  %v1940_v15 = vadd.f32 %v11105_v10, %v9493_v18  ;;  %v2847_v16 = vadd.f32 %v9511_v46, %v2542_v21  ;;  %v7636_v56 = vpop.f32.mrf.mxu0  ;;  %v3449_v61 = vld [vmem:[#allocation3 + $0x67] sm:$0xff]  ;;  %v3450_v5 = vld [vmem:[#allocation3 + $0x6f] sm:$0xff] }
 0x212   : > { %v2545_v29 = vadd.f32 %v11106_v27, %v9637_v17  ;;  %v2852_v3 = vadd.f32 %v9532_v48, %v2547_v20  ;;  %11107 = vst [vmem:[#allocation61_spill] sm:$0xff] %v9724_v12  ;;  %3415 = vst [vmem:[#allocation3 + $0x88] sm:$0xff] %v3379_v31  ;;  %v9729_v60 = vmul.f32 %v9626_v55, %v3192_v8  ;;  %v3451_v17 = vld [vmem:[#allocation3 + $0x77] sm:$0xff] }
 0x213   : > { %v3190_v18 = vadd.f32 %v9456_v36, %v3151_v47  ;;  %v3154_v46 = vadd.f32 %v7636_v56, %v2849_v1  ;;  %v9732_v21 = vpack.c.bf16 %v3449_v61, %v3448_v43  ;;  %7800 = vmatpush3.bf16.msra.mxu0 %v8240_v37  ;;  %v11108_v48 = vld [vmem:[#allocation82_spill] sm:$0xff]  ;;  %v3075_v9 = vpop.f32.mrf.mxu0  ;;  %v9736_v14 = vpack.c.bf16 %v3451_v17, %v3450_v5  ;;  %v9752_v43 = vpop.permute.xlu1 %3323 }
 0x214   : > { %v2548_v20 = vadd.f32 %v11108_v48, %v9653_v51  ;;  %v3541_v10 = vpack.c.bf16 %v3379_v31, %v9681_v33  ;;  %7801 = vmatprep.subr.bf16.mxu0 %v8242_v34  ;;  %v8244_v8 = vld [vmem:[%s10892_s3 + $0xd0] sm:$0xff]   ;;  %7756 = vmatpush3.bf16.msra.mxu1 %v8243_v28  ;;  %3420 = vst [vmem:[#allocation3 + $0xb0] sm:$0xff] %v9729_v60  ;;  %v8247_v51 = vld [vmem:[%s10892_s3 + $0x80] sm:$0xff]   ;;  %v11109_v31 = vld [vmem:[#allocation85_spill] sm:$0xff] }
 0x215   : > { %v3382_v1 = vmul.f32 %v9578_v50, %v3190_v18  ;;  %v3193_v37 = vadd.f32 %v9456_v36, %v3154_v46  ;;  %v3152_v47 = vadd.f32 %v3075_v9, %v2847_v16  ;;  %7722 = vmatmul.mubr.bf16.gmra.mxu0 %v9732_v21  ;;  %7757 = vmatprep.subr.bf16.mxu1 %v8245_v63  ;;  %v11110_v56 = vld [vmem:[#allocation86_spill] sm:$0xff]  ;;  %v7639_v61 = vpop.f32.mrf.mxu0  ;;  %v9755_v16 = vpop.f32.mrf.mxu1 }
 0x216   : > { %v2850_v33 = vadd.f32 %v9562_v23, %v2545_v29  ;;  %v2546_v27 = vadd.f32 %v11109_v31, %v2241_v54  ;;  %v2551_v28 = vadd.f32 %v11110_v56, %v2246_v49  ;;  %11111 = vst [vmem:[#allocation58_spill] sm:$0xff] %v9752_v43  ;;  %7725 = vmatprep.mubr.bf16.mxu0 %v9736_v14  ;;  %v11112_v23 = vld [vmem:[#allocation43_spill] sm:$0xff]  ;;  %v11113_v54 = vld [vmem:[#allocation44_spill] sm:$0xff]  ;;  %v11114_v49 = vld [vmem:[#allocation45_spill] sm:$0xff]  ;;  %v9764_v31 = vpop.permute.xlu0 %3328 }
 0x217   : > { %7678 = vmatmul.mubr.bf16.gmra.mxu1 %v3541_v10  ;;  %3418 = vst [vmem:[#allocation3 + $0xa0] sm:$0xff] %v3382_v1  ;;  %v3385_v5 = vmul.f32 %v9659_v4, %v3193_v37  ;;  %v3191_v18 = vadd.f32 %v9456_v36, %v3152_v47  ;;  %v3157_v46 = vadd.f32 %v7639_v61, %v2852_v3  ;;  %v11115_v17 = vld [vmem:[#allocation46_spill] sm:$0xff]  ;;  %11116 = vst [vmem:[#allocation15_spill] sm:$0xff] %v9764_v31  ;;  %v3088_v10 = vpop.f32.mrf.mxu0  ;;  %v8246_v37 = vld [vmem:[%s10892_s3 + $0xc8] sm:$0xff]  }
 0x218   : > { %7681 = vmatprep.mubr.bf16.mxu1 %v3542_v0  ;;  %7802 = vmatpush3.bf16.msra.mxu0 %v8242_v34  ;;  %v2244_v29 = vadd.f32 %v11113_v54, %v11112_v23  ;;  %v2247_v48 = vadd.f32 %v11115_v17, %v11114_v49  ;;  %v2853_v9 = vadd.f32 %v9592_v53, %v2548_v20  ;;  %v9775_v53 = vld [vmem:[%s10892_s3 + $0x138] sm:$0xff]   ;;  %v11117_v20 = vld [vmem:[#allocation49_spill] sm:$0xff]  ;;  %v9781_v17 = vpop.f32.mrf.mxu1 }
 0x219   : > { %7803 = vmatprep.subr.bf16.mxu0 %v8244_v8  ;;  %7758 = vmatpush3.bf16.msra.mxu1 %v8245_v63  ;;  %3421 = vst [vmem:[#allocation3 + $0xb8] sm:$0xff] %v3385_v5  ;;  %v3383_v34 = vmul.f32 %v9605_v44, %v3191_v18  ;;  %v3196_v0 = vadd.f32 %v9456_v36, %v3157_v46  ;;  %v11118_v23 = vld [vmem:[#allocation89_spill] sm:$0xff]  ;;  %v7640_v18 = vpop.f32.mrf.mxu0  ;;  %v3452_v49 = vld [vmem:[#allocation3 + $0x7f] sm:$0xff] }
 0x21a   : > { %v3155_v3 = vadd.f32 %v3088_v10, %v2850_v33  ;;  %v3544_v47 = vpack.c.bf16 %v3385_v5, %v9729_v60  ;;  %7759 = vmatprep.subr.bf16.mxu1 %v8247_v51  ;;  %v2245_v56 = vadd.f32 %v11117_v20, %v1940_v15  ;;  %v2851_v61 = vadd.f32 %v9629_v19, %v2546_v27  ;;  %v3453_v46 = vld [vmem:[#allocation3 + $0x87] sm:$0xff]  ;;  %v3454_v33 = vld [vmem:[#allocation3 + $0x8f] sm:$0xff]  ;;  %v3455_v19 = vld [vmem:[#allocation3 + $0x97] sm:$0xff] }
 0x21b   : > { %v2549_v63 = vadd.f32 %v11118_v23, %v2244_v29  ;;  %v2856_v54 = vadd.f32 %v9661_v62, %v2551_v28  ;;  %3419 = vst [vmem:[#allocation3 + $0xa8] sm:$0xff] %v3383_v34  ;;  %v9784_v60 = vmul.f32 %v9724_v12, %v3196_v0  ;;  %v3158_v10 = vadd.f32 %v7640_v18, %v2853_v9  ;;  %v11119_v27 = vld [vmem:[#allocation91_spill] sm:$0xff]  ;;  %v9790_v62 = vpop.permute.xlu1 %3333  ;;  %v3091_v28 = vpop.f32.mrf.mxu0  ;;  %v8248_v0 = vld [vmem:[%s10892_s3 + $0xc0] sm:$0xff]  }
 0x21c   : > { %v3194_v5 = vadd.f32 %v9456_v36, %v3155_v3  ;;  %v9787_v15 = vpack.c.bf16 %v3453_v46, %v3452_v49  ;;  %7804 = vmatpush3.bf16.msra.mxu0 %v8244_v8  ;;  %v2552_v29 = vadd.f32 %v11119_v27, %v2247_v48  ;;  %11120 = vst [vmem:[#allocation22_spill] sm:$0xff] %v9790_v62  ;;  %v11121_v3 = vld [vmem:[#allocation50_spill] sm:$0xff]  ;;  %v11123_v49 = vld [vmem:[#allocation93_spill] sm:$0xff]  ;;  %v11125_v27 = vld [vmem:[#allocation52_spill] sm:$0xff] }
 0x21d   : > { %v9792_v20 = vpack.c.bf16 %v3455_v19, %v3454_v33  ;;  %v9794_v23 = vpack.c.bf16 %v3383_v34, %v3382_v1  ;;  %7805 = vmatprep.subr.bf16.mxu0 %v8246_v37  ;;  %7760 = vmatpush3.bf16.msra.mxu1 %v8247_v51  ;;  %3424 = vst [vmem:[#allocation3 + $0xd0] sm:$0xff] %v9784_v60  ;;  %v11122_v1 = vld [vmem:[#allocation51_spill] sm:$0xff]  ;;  %v9808_v33 = vpop.permute.xlu0 %3338  ;;  %v7643_v51 = vpop.f32.mrf.mxu0 }
 0x21e   : > { %v3386_v9 = vmul.f32 %v9671_v38, %v3194_v5  ;;  %v3197_v8 = vadd.f32 %v9456_v36, %v3158_v10  ;;  %v3156_v48 = vadd.f32 %v3091_v28, %v2851_v61  ;;  %7726 = vmatmul.mubr.bf16.gmra.mxu0 %v9787_v15  ;;  %7841 = vmatprep.subr.bf16.mxu1 %v9775_v53  ;;  %v2815_v5 = vpop.f32.mrf.mxu1 }
 0x21f   : > { %v2250_v34 = vadd.f32 %v11122_v1, %v11121_v3  ;;  %v2854_v18 = vadd.f32 %v9694_v45, %v2549_v63  ;;  %v2550_v46 = vadd.f32 %v11123_v49, %v2245_v56  ;;  %11124 = vst [vmem:[#allocation64_spill] sm:$0xff] %v9808_v33  ;;  %7729 = vmatprep.mubr.bf16.mxu0 %v9792_v20  ;;  %v11126_v45 = vld [vmem:[#allocation53_spill] sm:$0xff]  ;;  %v11127_v56 = vld [vmem:[#allocation56_spill] sm:$0xff]  ;;  %v11128_v1 = vld [vmem:[#allocation95_spill] sm:$0xff]  ;;  %v3104_v50 = vpop.f32.mrf.mxu0 }
 0x220   : > { %7682 = vmatmul.mubr.bf16.gmra.mxu1 %v9794_v23  ;;  %3422 = vst [vmem:[#allocation3 + $0xc0] sm:$0xff] %v3386_v9  ;;  %v3389_v61 = vmul.f32 %v9752_v43, %v3197_v8  ;;  %v3195_v10 = vadd.f32 %v9456_v36, %v3156_v48  ;;  %v3161_v19 = vadd.f32 %v7643_v51, %v2856_v54  ;;  %v9823_v8 = vld [vmem:[%s10892_s3 + $0x178] sm:$0xff]   ;;  %v7600_v55 = vpop.f32.mrf.mxu1 }
 0x221   : > { %7685 = vmatprep.mubr.bf16.mxu1 %v3544_v47  ;;  %7806 = vmatpush3.bf16.msra.mxu0 %v8246_v37  ;;  %v2248_v63 = vadd.f32 %v11126_v45, %v11125_v27  ;;  %v1944_v28 = vadd.f32 %v11127_v56, %v9504_v52  ;;  %v2857_v3 = vadd.f32 %v9726_v26, %v2552_v29  ;;  %v11129_v52 = vld [vmem:[#allocation54_spill] sm:$0xff]  ;;  %v11130_v51 = vld [vmem:[#allocation55_spill] sm:$0xff]  ;;  %v9832_v27 = vpop.permute.xlu1 %3343  ;;  %v7644_v45 = vpop.f32.mrf.mxu0 }
 0x222   : > { %v2555_v49 = vadd.f32 %v11128_v1, %v2250_v34  ;;  %7807 = vmatprep.subr.bf16.mxu0 %v8248_v0  ;;  %3425 = vst [vmem:[#allocation3 + $0xd8] sm:$0xff] %v3389_v61  ;;  %v3387_v37 = vmul.f32 %v9705_v32, %v3195_v10  ;;  %v3200_v47 = vadd.f32 %v9456_v36, %v3161_v19  ;;  %11131 = vst [vmem:[#allocation59_spill] sm:$0xff] %v9832_v27  ;;  %v3456_v56 = vld [vmem:[#allocation3 + $0x9f] sm:$0xff]  ;;  %v3457_v1 = vld [vmem:[#allocation3 + $0xa7] sm:$0xff]  ;;  %v9842_v19 = vpop.permute.xlu0 %3348 }
 0x223   : > { %v3159_v54 = vadd.f32 %v3104_v50, %v2854_v18  ;;  %v3546_v48 = vpack.c.bf16 %v3389_v61, %v9784_v60  ;;  %v2251_v26 = vadd.f32 %v11130_v51, %v11129_v52  ;;  %v2855_v29 = vadd.f32 %v9755_v16, %v2550_v46  ;;  %v3458_v44 = vld [vmem:[#allocation3 + $0xaf] sm:$0xff]  ;;  %v3459_v61 = vld [vmem:[#allocation3 + $0xb7] sm:$0xff]  ;;  %11133 = vst [vmem:[#allocation16_spill] sm:$0xff] %v9842_v19  ;;  %v5235_v32 = vld [vmem:[#allocation3 + $0x127] sm:$0xff] }
 0x224   : > { %v2553_v34 = vadd.f32 %v9420_v22, %v2248_v63  ;;  %3423 = vst [vmem:[#allocation3 + $0xc8] sm:$0xff] %v3387_v37  ;;  %v9835_v10 = vmul.f32 %v9808_v33, %v3200_v47  ;;  %v3162_v60 = vadd.f32 %v7644_v45, %v2857_v3  ;;  %v9838_v18 = vpack.c.bf16 %v3457_v1, %v3456_v56  ;;  %v11132_v16 = vld [vmem:[#allocation57_spill] sm:$0xff]  ;;  %v3107_v63 = vpop.f32.mrf.mxu0 }
 0x225   : > { %v3198_v50 = vadd.f32 %v9456_v36, %v3159_v54  ;;  %7808 = vmatpush3.bf16.msra.mxu0 %v8248_v0  ;;  %v2249_v22 = vadd.f32 %v11132_v16, %v1944_v28  ;;  %v2556_v46 = vadd.f32 %v9424_v40, %v2251_v26  ;;  %v9844_v52 = vpack.c.bf16 %v3459_v61, %v3458_v44 }
 0x226   : > { %v9846_v51 = vpack.c.bf16 %v3387_v37, %v3386_v9  ;;  %7889 = vmatprep.subr.bf16.mxu0 %v9823_v8  ;;  %v2860_v47 = vadd.f32 %v9781_v17, %v2555_v49  ;;  %3428 = vst [vmem:[#allocation3 + $0xf0] sm:$0xff] %v9835_v10  ;;  %v3201_v0 = vadd.f32 %v9456_v36, %v3162_v60  ;;  %v7647_v54 = vpop.f32.mrf.mxu0  ;;  %v2818_v9 = vpop.f32.mrf.mxu1 }
 0x227   : > { %v3390_v3 = vmul.f32 %v9764_v31, %v3198_v50  ;;  %v3160_v28 = vadd.f32 %v3107_v63, %v2855_v29  ;;  %7730 = vmatmul.mubr.bf16.gmra.mxu0 %v9838_v18  ;;  %v2554_v40 = vadd.f32 %v9437_v42, %v2249_v22  ;;  %v2858_v44 = vadd.f32 %v2815_v5, %v2553_v34  ;;  %v9859_v29 = vpop.permute.xlu1 %3353  ;;  %v9864_v50 = vpop.permute.xlu0 %3358  ;;  %v3460_v61 = vld [vmem:[#allocation3 + $0xbf] sm:$0xff] }
 0x228   : > { %7733 = vmatprep.mubr.bf16.mxu0 %v9844_v52  ;;  %7686 = vmatmul.mubr.bf16.gmra.mxu1 %v9846_v51  ;;  %v3393_v17 = vmul.f32 %v9832_v27, %v3201_v0  ;;  %v3165_v37 = vadd.f32 %v7647_v54, %v2860_v47  ;;  %v2861_v26 = vadd.f32 %v7600_v55, %v2556_v46  ;;  %v3120_v45 = vpop.f32.mrf.mxu0 }
 0x229   : > { %3426 = vst [vmem:[#allocation3 + $0xe0] sm:$0xff] %v3390_v3  ;;  %v3199_v49 = vadd.f32 %v9456_v36, %v3160_v28  ;;  %7689 = vmatprep.mubr.bf16.mxu1 %v3546_v48  ;;  %11134 = vst [vmem:[#allocation17_spill] sm:$0xff] %v9859_v29  ;;  %v3163_v1 = vadd.f32 %v3120_v45, %v2858_v44  ;;  %v2859_v34 = vadd.f32 %v2818_v9, %v2554_v40  ;;  %v3463_v47 = vld [vmem:[#allocation3 + $0xd7] sm:$0xff] }
 0x22a   : > { %3429 = vst [vmem:[#allocation3 + $0xf8] sm:$0xff] %v3393_v17  ;;  %v3204_v56 = vadd.f32 %v9456_v36, %v3165_v37  ;;  %v3548_v5 = vpack.c.bf16 %v3393_v17, %v9835_v10  ;;  %11135 = vst [vmem:[#allocation18_spill] sm:$0xff] %v9864_v50  ;;  %v7648_v60 = vpop.f32.mrf.mxu0  ;;  %v3985_v45 = vld [vmem:[#allocation3 + $0x19] sm:$0xff] }
 0x22b   : > { %v3391_v42 = vmul.f32 %v9790_v62, %v3199_v49  ;;  %v3461_v16 = vld [vmem:[#allocation3 + $0xc7] sm:$0xff]  ;;  %v3462_v22 = vld [vmem:[#allocation3 + $0xcf] sm:$0xff]  ;;  %v3202_v48 = vadd.f32 %v9456_v36, %v3163_v1  ;;  %v3166_v46 = vadd.f32 %v7648_v60, %v2861_v26  ;;  %v9877_v9 = vpop.permute.xlu1 %3363 }
 0x22c   : > { %v3396_v55 = vmul.f32 %v9864_v50, %v3204_v56  ;;  %v9868_v63 = vpack.c.bf16 %v3461_v16, %v3460_v61  ;;  %v3123_v0 = vpop.f32.mrf.mxu0  ;;  %v9870_v28 = vpack.c.bf16 %v3463_v47, %v3462_v22  ;;  %11136 = vst [vmem:[#allocation19_spill] sm:$0xff] %v9877_v9  ;;  %v3984_v26 = vld [vmem:[#allocation3 + $0x11] sm:$0xff]  ;;  %v3987_v16 = vld [vmem:[#allocation3 + $0x29] sm:$0xff] }
 0x22d   : > { %3427 = vst [vmem:[#allocation3 + $0xe8] sm:$0xff] %v3391_v42  ;;  %v9872_v10 = vpack.c.bf16 %v3391_v42, %v3390_v3  ;;  %v3394_v40 = vmul.f32 %v9842_v19, %v3202_v48  ;;  %v3205_v54 = vadd.f32 %v9456_v36, %v3166_v46  ;;  %v3164_v44 = vadd.f32 %v3123_v0, %v2859_v34  ;;  %v3989_v48 = vld [vmem:[#allocation3 + $0x39] sm:$0xff]  ;;  %v3988_v0 = vld [vmem:[#allocation3 + $0x31] sm:$0xff] }
 0x22e   : > { %3432 = vst [vmem:[#allocation3 + $0x110] sm:$0xff] %v3396_v55 }
 0x22f   : > { %7734 = vmatmul.mubr.bf16.gmra.mxu0 %v9868_v63  ;;  %3430 = vst [vmem:[#allocation3 + $0x100] sm:$0xff] %v3394_v40  ;;  %v9882_v17 = vmul.f32 %v9877_v9, %v3205_v54  ;;  %v3203_v3 = vadd.f32 %v9456_v36, %v3164_v44  ;;  %v4016_v36 = vpack.c.bf16 %v3985_v45, %v3984_v26  ;;  %v8253_v44 = vld [vmem:[%s10892_s3 + $0x128] sm:$0xff]   ;;  %v3992_v45 = vld [vmem:[#allocation3 + $0x51] sm:$0xff] }
 0x230   : > { %7737 = vmatprep.mubr.bf16.mxu0 %v9870_v28  ;;  %7690 = vmatmul.mubr.bf16.gmra.mxu1 %v9872_v10  ;;  %v3464_v37 = vld [vmem:[#allocation3 + $0xdf] sm:$0xff]  ;;  %v9904_v54 = vpack.c.bf16 %v3989_v48, %v3988_v0  ;;  %v3999_v0 = vld [vmem:[#allocation3 + $0x89] sm:$0xff] }
 0x231   : > { %7693 = vmatprep.mubr.bf16.mxu1 %v3548_v5  ;;  %3433 = vst [vmem:[#allocation3 + $0x118] sm:$0xff] %v9882_v17  ;;  %v3395_v49 = vmul.f32 %v9859_v29, %v3203_v3  ;;  %v3467_v1 = vld [vmem:[#allocation3 + $0xf7] sm:$0xff]  ;;  %v3986_v5 = vld [vmem:[#allocation3 + $0x21] sm:$0xff] }
 0x232   : > { %v9898_v47 = vpack.c.bf16 %v3987_v16, %v3986_v5  ;;  %v3990_v3 = vld [vmem:[#allocation3 + $0x41] sm:$0xff]  ;;  %v3996_v16 = vld [vmem:[#allocation3 + $0x71] sm:$0xff] }
 0x233   : > { %3431 = vst [vmem:[#allocation3 + $0x108] sm:$0xff] %v3395_v49  ;;  %v9891_v61 = vpack.c.bf16 %v3395_v49, %v3394_v40  ;;  %v8251_v40 = vld [vmem:[%s10892_s3 + $0x130] sm:$0xff]   ;;  %v8258_v48 = vld [vmem:[%s10892_s3 + $0x158] sm:$0xff]  }
 0x234   : > { %v3465_v42 = vld [vmem:[#allocation3 + $0xe7] sm:$0xff]  ;;  %v3466_v56 = vld [vmem:[#allocation3 + $0xef] sm:$0xff] }
 0x235   : > { %v9887_v34 = vpack.c.bf16 %v3465_v42, %v3464_v37  ;;  %v9889_v60 = vpack.c.bf16 %v3467_v1, %v3466_v56  ;;  %v3991_v49 = vld [vmem:[#allocation3 + $0x49] sm:$0xff]  ;;  %v3993_v37 = vld [vmem:[#allocation3 + $0x59] sm:$0xff] }
 0x236   : > { %v3468_v22 = vld [vmem:[#allocation3 + $0xff] sm:$0xff]  ;;  %v9913_v26 = vpack.c.bf16 %v3991_v49, %v3990_v3  ;;  %v8254_v56 = vld [vmem:[%s10892_s3 + $0x168] sm:$0xff]   ;;  %v4000_v3 = vld [vmem:[#allocation3 + $0x91] sm:$0xff] }
 0x237   : > { %7738 = vmatmul.mubr.bf16.gmra.mxu0 %v9887_v34  ;;  %v8255_v42 = vld [vmem:[%s10892_s3 + $0x120] sm:$0xff]   ;;  %v3995_v1 = vld [vmem:[#allocation3 + $0x69] sm:$0xff] }
 0x238   : > { %7741 = vmatprep.mubr.bf16.mxu0 %v9889_v60  ;;  %7694 = vmatmul.mubr.bf16.gmra.mxu1 %v9891_v61  ;;  %v8260_v49 = vld [vmem:[%s10892_s3 + $0x150] sm:$0xff]   ;;  %v5839_v27 = vld [vmem:[#allocation3 + $0xf9] sm:$0xff] }
 0x239   : > { %7761 = vmatprep.mubr.bf16.mxu1 %v4016_v36  ;;  %v8257_v36 = vld [vmem:[%s10892_s3 + $0x118] sm:$0xff]  }
 0x23a   : > { %v3469_v55 = vld [vmem:[#allocation3 + $0x107] sm:$0xff] }
 0x23b   : > { %v9896_v46 = vpack.c.bf16 %v3469_v55, %v3468_v22  ;;  %v8259_v55 = vld [vmem:[%s10892_s3 + $0x110] sm:$0xff]  }
 0x23f   : > { %7742 = vmatmul.mubr.bf16.gmra.mxu0 %v9896_v46 }
 0x240   : > { %7809 = vmatprep.mubr.bf16.mxu0 %v9598_v2  ;;  %7762 = vmatmul.mubr.bf16.vlgmr.msra.gmra.mxu1 %v9898_v47  ;;  %v8252_v2 = vld [vmem:[%s10892_s3 + $0x170] sm:$0xff]  }
 0x241   : > { %7765 = vmatprep.mubr.bf16.mxu1 %v9904_v54  ;;  %7842 = vmatpush3.bf16.msra.mxu1 %v9775_v53  ;;  %v9919_v53 = vpack.c.bf16 %v3993_v37, %v3992_v45  ;;  %v8263_v45 = vld [vmem:[%s10892_s3 + $0x100] sm:$0xff]  }
 0x242   : > { %7843 = vmatprep.subr.bf16.mxu1 %v8251_v40 }
 0x245   : > { %7844 = vmatpush3.bf16.msra.mxu1 %v8251_v40  ;;  %v8261_v40 = vld [vmem:[%s10892_s3 + $0x108] sm:$0xff]  }
 0x246   : > { %7845 = vmatprep.subr.bf16.mxu1 %v8253_v44 }
 0x247   : > { %7810 = vmatmul.mubr.bf16.vlgmr.msra.gmra.mxu0 %v9607_v25  ;;  %v3994_v25 = vld [vmem:[#allocation3 + $0x61] sm:$0xff] }
 0x248   : > { %7813 = vmatprep.mubr.bf16.mxu0 %v9667_v7  ;;  %7766 = vmatmul.mubr.bf16.gmra.mxu1 %v9913_v26  ;;  %v3997_v7 = vld [vmem:[#allocation3 + $0x79] sm:$0xff]  ;;  %v9934_v5 = vpack.c.bf16 %v3995_v1, %v3994_v25  ;;  %v4004_v1 = vld [vmem:[#allocation3 + $0xb1] sm:$0xff] }
 0x249   : > { %7769 = vmatprep.mubr.bf16.mxu1 %v9919_v53  ;;  %7890 = vmatpush3.bf16.msra.mxu0 %v9823_v8  ;;  %v8256_v8 = vld [vmem:[%s10892_s3 + $0x160] sm:$0xff]   ;;  %v9940_v22 = vpack.c.bf16 %v3997_v7, %v3996_v16  ;;  %v9988_v16 = vld [vmem:[%s10892_s3 + $0x1f8] sm:$0xff]  }
 0x24a   : > { %7891 = vmatprep.subr.bf16.mxu0 %v8252_v2  ;;  %7846 = vmatpush3.bf16.msra.mxu1 %v8253_v44  ;;  %v4001_v44 = vld [vmem:[#allocation3 + $0x99] sm:$0xff] }
 0x24b   : > { %7847 = vmatprep.subr.bf16.mxu1 %v8255_v42  ;;  %v9960_v37 = vpack.c.bf16 %v4001_v44, %v4000_v3  ;;  %v4005_v25 = vld [vmem:[#allocation3 + $0xb9] sm:$0xff] }
 0x24c   : > { %v9980_v7 = vpack.c.bf16 %v4005_v25, %v4004_v1  ;;  %v4013_v44 = vld [vmem:[#allocation3 + $0xf9] sm:$0xff] }
 0x24d   : > { %7892 = vmatpush3.bf16.msra.mxu0 %v8252_v2  ;;  %v8262_v2 = vld [vmem:[%s10892_s3 + $0x148] sm:$0xff]   ;;  %v4320_v1 = vld [vmem:[#allocation3 + $0x117] sm:$0xff] }
 0x24e   : > { %7893 = vmatprep.subr.bf16.mxu0 %v8254_v56  ;;  %7848 = vmatpush3.bf16.msra.mxu1 %v8255_v42  ;;  %v4003_v42 = vld [vmem:[#allocation3 + $0xa9] sm:$0xff] }
 0x24f   : > { %7814 = vmatmul.mubr.bf16.gmra.mxu0 %v9673_v11  ;;  %7849 = vmatprep.subr.bf16.mxu1 %v8257_v36  ;;  %v3998_v11 = vld [vmem:[#allocation3 + $0x81] sm:$0xff] }
 0x250   : > { %7817 = vmatprep.mubr.bf16.mxu0 %v9732_v21  ;;  %7770 = vmatmul.mubr.bf16.gmra.mxu1 %v9934_v5  ;;  %v9954_v21 = vpack.c.bf16 %v3999_v0, %v3998_v11  ;;  %v4008_v11 = vld [vmem:[#allocation3 + $0xd1] sm:$0xff]  ;;  %v4010_v0 = vld [vmem:[#allocation3 + $0xe1] sm:$0xff] }
 0x251   : > { %7773 = vmatprep.mubr.bf16.mxu1 %v9940_v22  ;;  %7894 = vmatpush3.bf16.msra.mxu0 %v8254_v56  ;;  %v8265_v56 = vld [vmem:[%s10892_s3 + $0x1b8] sm:$0xff]  }
 0x252   : > { %7895 = vmatprep.subr.bf16.mxu0 %v8256_v8  ;;  %7850 = vmatpush3.bf16.msra.mxu1 %v8257_v36  ;;  %v8264_v36 = vld [vmem:[%s10892_s3 + $0x140] sm:$0xff]  }
 0x253   : > { %7851 = vmatprep.subr.bf16.mxu1 %v8259_v55 }
 0x255   : > { %7896 = vmatpush3.bf16.msra.mxu0 %v8256_v8  ;;  %v4006_v8 = vld [vmem:[#allocation3 + $0xc1] sm:$0xff] }
 0x256   : > { %7897 = vmatprep.subr.bf16.mxu0 %v8258_v48  ;;  %7852 = vmatpush3.bf16.msra.mxu1 %v8259_v55  ;;  %v4007_v55 = vld [vmem:[#allocation3 + $0xc9] sm:$0xff] }
 0x257   : > { %7818 = vmatmul.mubr.bf16.gmra.mxu0 %v9736_v14  ;;  %7853 = vmatprep.subr.bf16.mxu1 %v8261_v40  ;;  %v4002_v14 = vld [vmem:[#allocation3 + $0xa1] sm:$0xff] }
 0x258   : > { %7821 = vmatprep.mubr.bf16.mxu0 %v9787_v15  ;;  %7774 = vmatmul.mubr.bf16.gmra.mxu1 %v9954_v21  ;;  %v9974_v15 = vpack.c.bf16 %v4003_v42, %v4002_v14  ;;  %v4594_v42 = vld [vmem:[#allocation3 + $0x20] sm:$0xff] }
 0x259   : > { %7777 = vmatprep.mubr.bf16.mxu1 %v9960_v37  ;;  %7898 = vmatpush3.bf16.msra.mxu0 %v8258_v48  ;;  %v4009_v48 = vld [vmem:[#allocation3 + $0xd9] sm:$0xff] }
 0x25a   : > { %7899 = vmatprep.subr.bf16.mxu0 %v8260_v49  ;;  %7854 = vmatpush3.bf16.msra.mxu1 %v8261_v40  ;;  %v4011_v40 = vld [vmem:[#allocation3 + $0xe9] sm:$0xff] }
 0x25b   : > { %7855 = vmatprep.subr.bf16.mxu1 %v8263_v45  ;;  %v9999_v3 = vpack.c.bf16 %v4011_v40, %v4010_v0  ;;  %v8269_v0 = vld [vmem:[%s10892_s3 + $0x1a8] sm:$0xff]   ;;  %v4601_v40 = vld [vmem:[#allocation3 + $0x58] sm:$0xff] }
 0x25d   : > { %7900 = vmatpush3.bf16.msra.mxu0 %v8260_v49  ;;  %v4012_v49 = vld [vmem:[#allocation3 + $0xf1] sm:$0xff] }
 0x25e   : > { %7901 = vmatprep.subr.bf16.mxu0 %v8262_v2  ;;  %7856 = vmatpush3.bf16.msra.mxu1 %v8263_v45  ;;  %v10002_v45 = vpack.c.bf16 %v4013_v44, %v4012_v49  ;;  %v4603_v44 = vld [vmem:[#allocation3 + $0x68] sm:$0xff]  ;;  %v4600_v49 = vld [vmem:[#allocation3 + $0x50] sm:$0xff] }
 0x25f   : > { %7822 = vmatmul.mubr.bf16.gmra.mxu0 %v9792_v20  ;;  %7937 = vmatprep.subr.bf16.mxu1 %v8265_v56  ;;  %v9990_v20 = vpack.c.bf16 %v4007_v55, %v4006_v8  ;;  %v4596_v55 = vld [vmem:[#allocation3 + $0x30] sm:$0xff] }
 0x260   : > { %7825 = vmatprep.mubr.bf16.mxu0 %v9838_v18  ;;  %7778 = vmatmul.mubr.bf16.gmra.mxu1 %v9974_v15  ;;  %v9994_v18 = vpack.c.bf16 %v4009_v48, %v4008_v11  ;;  %v4598_v11 = vld [vmem:[#allocation3 + $0x40] sm:$0xff] }
 0x261   : > { %7781 = vmatprep.mubr.bf16.mxu1 %v9980_v7  ;;  %7902 = vmatpush3.bf16.msra.mxu0 %v8262_v2  ;;  %v4595_v2 = vld [vmem:[#allocation3 + $0x28] sm:$0xff] }
 0x262   : > { %7903 = vmatprep.subr.bf16.mxu0 %v8264_v36  ;;  %v4626_v25 = vpack.c.bf16 %v4595_v2, %v4594_v42  ;;  %v8271_v2 = vld [vmem:[%s10892_s3 + $0x1a0] sm:$0xff]   ;;  %v8270_v42 = vld [vmem:[%s10892_s3 + $0x1e8] sm:$0xff]  }
 0x265   : > { %7904 = vmatpush3.bf16.msra.mxu0 %v8264_v36  ;;  %v4599_v36 = vld [vmem:[#allocation3 + $0x48] sm:$0xff] }
 0x266   : > { %7985 = vmatprep.subr.bf16.mxu0 %v9988_v16 }
 0x267   : > { %7826 = vmatmul.mubr.bf16.gmra.mxu0 %v9844_v52  ;;  %v4014_v52 = vld [vmem:[#allocation3 + $0x101] sm:$0xff] }
 0x268   : > { %7829 = vmatprep.mubr.bf16.mxu0 %v9868_v63  ;;  %7782 = vmatmul.mubr.bf16.gmra.mxu1 %v9990_v20  ;;  %v4015_v63 = vld [vmem:[#allocation3 + $0x109] sm:$0xff] }
 0x269   : > { %7785 = vmatprep.mubr.bf16.mxu1 %v9994_v18  ;;  %v10007_v14 = vpack.c.bf16 %v4015_v63, %v4014_v52  ;;  %v10028_v52 = vpack.c.bf16 %v4601_v40, %v4600_v49  ;;  %v4602_v63 = vld [vmem:[#allocation3 + $0x60] sm:$0xff]  ;;  %v8276_v40 = vld [vmem:[%s10892_s3 + $0x1d0] sm:$0xff]   ;;  %v8278_v49 = vld [vmem:[%s10892_s3 + $0x1c8] sm:$0xff]  }
 0x26f   : > { %7830 = vmatmul.mubr.bf16.gmra.mxu0 %v9870_v28  ;;  %v4319_v28 = vld [vmem:[#allocation3 + $0x10f] sm:$0xff] }
 0x270   : > { %7833 = vmatprep.mubr.bf16.mxu0 %v9887_v34  ;;  %7786 = vmatmul.mubr.bf16.gmra.mxu1 %v9999_v3  ;;  %v4597_v34 = vld [vmem:[#allocation3 + $0x38] sm:$0xff]  ;;  %v10012_v8 = vpack.c.bf16 %v4320_v1, %v4319_v28  ;;  %v4607_v28 = vld [vmem:[#allocation3 + $0x88] sm:$0xff]  ;;  %v4606_v1 = vld [vmem:[#allocation3 + $0x80] sm:$0xff] }
 0x271   : > { %7789 = vmatprep.mubr.bf16.mxu1 %v10002_v45  ;;  %v10014_v48 = vpack.c.bf16 %v4597_v34, %v4596_v55  ;;  %v8275_v55 = vld [vmem:[%s10892_s3 + $0x190] sm:$0xff]  }
 0x277   : > { %7834 = vmatmul.mubr.bf16.gmra.mxu0 %v9889_v60  ;;  %v8267_v60 = vld [vmem:[%s10892_s3 + $0x1b0] sm:$0xff]  }
 0x278   : > { %7837 = vmatprep.mubr.bf16.mxu0 %v9896_v46  ;;  %7790 = vmatmul.mubr.bf16.gmra.mxu1 %v10007_v14  ;;  %v10020_v46 = vpack.c.bf16 %v4599_v36, %v4598_v11  ;;  %v10055_v36 = vpack.c.bf16 %v4607_v28, %v4606_v1  ;;  %v8274_v11 = vld [vmem:[%s10892_s3 + $0x1d8] sm:$0xff]   ;;  %v5208_v1 = vld [vmem:[#allocation3 + $0x4f] sm:$0xff] }
 0x279   : > { %7857 = vmatprep.mubr.bf16.mxu1 %v4626_v25  ;;  %v8273_v25 = vld [vmem:[%s10892_s3 + $0x198] sm:$0xff]  }
 0x27a   : > { %v5205_v28 = vld [vmem:[#allocation3 + $0x37] sm:$0xff] }
 0x27f   : > { %7838 = vmatmul.mubr.bf16.gmra.mxu0 %v10012_v8 }
 0x280   : > { %7905 = vmatprep.mubr.bf16.mxu0 %v9898_v47  ;;  %7858 = vmatmul.mubr.bf16.vlgmr.msra.gmra.mxu1 %v10014_v48  ;;  %v8268_v47 = vld [vmem:[%s10892_s3 + $0x1f0] sm:$0xff]  }
 0x281   : > { %7861 = vmatprep.mubr.bf16.mxu1 %v10020_v46  ;;  %7938 = vmatpush3.bf16.msra.mxu1 %v8265_v56  ;;  %v10034_v56 = vpack.c.bf16 %v4603_v44, %v4602_v63  ;;  %v8279_v44 = vld [vmem:[%s10892_s3 + $0x180] sm:$0xff]   ;;  %v4613_v63 = vld [vmem:[#allocation3 + $0xb8] sm:$0xff] }
 0x282   : > { %7939 = vmatprep.subr.bf16.mxu1 %v8267_v60 }
 0x285   : > { %7940 = vmatpush3.bf16.msra.mxu1 %v8267_v60  ;;  %v8277_v60 = vld [vmem:[%s10892_s3 + $0x188] sm:$0xff]  }
 0x286   : > { %7941 = vmatprep.subr.bf16.mxu1 %v8269_v0 }
 0x287   : > { %7906 = vmatmul.mubr.bf16.vlgmr.msra.gmra.mxu0 %v9904_v54  ;;  %v4605_v54 = vld [vmem:[#allocation3 + $0x78] sm:$0xff] }
 0x288   : > { %7909 = vmatprep.mubr.bf16.mxu0 %v9913_v26  ;;  %7862 = vmatmul.mubr.bf16.gmra.mxu1 %v10028_v52  ;;  %v4604_v26 = vld [vmem:[#allocation3 + $0x70] sm:$0xff] }
 0x289   : > { %7865 = vmatprep.mubr.bf16.mxu1 %v10034_v56  ;;  %7986 = vmatpush3.bf16.msra.mxu0 %v9988_v16  ;;  %v10049_v34 = vpack.c.bf16 %v4605_v54, %v4604_v26  ;;  %v8272_v16 = vld [vmem:[%s10892_s3 + $0x1e0] sm:$0xff]  }
 0x28a   : > { %7987 = vmatprep.subr.bf16.mxu0 %v8268_v47  ;;  %7942 = vmatpush3.bf16.msra.mxu1 %v8269_v0  ;;  %v4608_v0 = vld [vmem:[#allocation3 + $0x90] sm:$0xff]  ;;  %v5207_v26 = vld [vmem:[#allocation3 + $0x47] sm:$0xff] }
 0x28b   : > { %7943 = vmatprep.subr.bf16.mxu1 %v8271_v2 }
 0x28d   : > { %7988 = vmatpush3.bf16.msra.mxu0 %v8268_v47  ;;  %v4612_v47 = vld [vmem:[#allocation3 + $0xb0] sm:$0xff] }
 0x28e   : > { %7989 = vmatprep.subr.bf16.mxu0 %v8270_v42  ;;  %7944 = vmatpush3.bf16.msra.mxu1 %v8271_v2  ;;  %v4617_v2 = vld [vmem:[#allocation3 + $0xd8] sm:$0xff] }
 0x28f   : > { %7910 = vmatmul.mubr.bf16.gmra.mxu0 %v9919_v53  ;;  %7945 = vmatprep.subr.bf16.mxu1 %v8273_v25  ;;  %v4609_v53 = vld [vmem:[#allocation3 + $0x98] sm:$0xff] }
 0x290   : > { %7913 = vmatprep.mubr.bf16.mxu0 %v9934_v5  ;;  %7866 = vmatmul.mubr.bf16.gmra.mxu1 %v10049_v34  ;;  %v10069_v5 = vpack.c.bf16 %v4609_v53, %v4608_v0 }
 0x291   : > { %7869 = vmatprep.mubr.bf16.mxu1 %v10055_v36  ;;  %7990 = vmatpush3.bf16.msra.mxu0 %v8270_v42  ;;  %v4616_v42 = vld [vmem:[#allocation3 + $0xd0] sm:$0xff] }
 0x292   : > { %7991 = vmatprep.subr.bf16.mxu0 %v8272_v16  ;;  %7946 = vmatpush3.bf16.msra.mxu1 %v8273_v25  ;;  %v10096_v54 = vpack.c.bf16 %v4617_v2, %v4616_v42 }
 0x293   : > { %7947 = vmatprep.subr.bf16.mxu1 %v8275_v55 }
 0x295   : > { %7992 = vmatpush3.bf16.msra.mxu0 %v8272_v16 }
 0x296   : > { %7993 = vmatprep.subr.bf16.mxu0 %v8274_v11  ;;  %7948 = vmatpush3.bf16.msra.mxu1 %v8275_v55 }
 0x297   : > { %7914 = vmatmul.mubr.bf16.gmra.mxu0 %v9940_v22  ;;  %7949 = vmatprep.subr.bf16.mxu1 %v8277_v60  ;;  %v8281_v22 = vld [vmem:[%s10892_s3 + $0x238] sm:$0xff]  }
 0x298   : > { %7917 = vmatprep.mubr.bf16.mxu0 %v9954_v21  ;;  %7870 = vmatmul.mubr.bf16.gmra.mxu1 %v10069_v5  ;;  %v10087_v21 = vpack.c.bf16 %v4613_v63, %v4612_v47  ;;  %v5210_v63 = vld [vmem:[#allocation3 + $0x5f] sm:$0xff] }
 0x299   : > { %7873 = vmatprep.mubr.bf16.mxu1 %v9794_v23  ;;  %7994 = vmatpush3.bf16.msra.mxu0 %v8274_v11  ;;  %v8280_v23 = vld [vmem:[%s10892_s3 + $0x1c0] sm:$0xff]   ;;  %v5209_v11 = vld [vmem:[#allocation3 + $0x57] sm:$0xff] }
 0x29a   : > { %7995 = vmatprep.subr.bf16.mxu0 %v8276_v40  ;;  %7950 = vmatpush3.bf16.msra.mxu1 %v8277_v60  ;;  %v5238_v53 = vpack.c.bf16 %v5209_v11, %v5208_v1  ;;  %v8283_v60 = vld [vmem:[%s10892_s3 + $0x228] sm:$0xff]   ;;  %v5214_v1 = vld [vmem:[#allocation3 + $0x7f] sm:$0xff] }
 0x29b   : > { %7951 = vmatprep.subr.bf16.mxu1 %v8279_v44 }
 0x29d   : > { %7996 = vmatpush3.bf16.msra.mxu0 %v8276_v40  ;;  %v5211_v40 = vld [vmem:[#allocation3 + $0x67] sm:$0xff] }
 0x29e   : > { %7997 = vmatprep.subr.bf16.mxu0 %v8278_v49  ;;  %7952 = vmatpush3.bf16.msra.mxu1 %v8279_v44  ;;  %v5212_v44 = vld [vmem:[#allocation3 + $0x6f] sm:$0xff]  ;;  %v5239_v47 = vpack.c.bf16 %v5211_v40, %v5210_v63 }
 0x29f   : > { %7918 = vmatmul.mubr.bf16.gmra.mxu0 %v9960_v37  ;;  %8033 = vmatprep.subr.bf16.mxu1 %v8281_v22  ;;  %v4621_v37 = vld [vmem:[#allocation3 + $0xf8] sm:$0xff]  ;;  %v8287_v63 = vld [vmem:[%s10892_s3 + $0x208] sm:$0xff]  }
 0x2a0   : > { %7921 = vmatprep.mubr.bf16.mxu0 %v9974_v15  ;;  %7874 = vmatmul.mubr.bf16.gmra.mxu1 %v10087_v21  ;;  %v4620_v15 = vld [vmem:[#allocation3 + $0xf0] sm:$0xff] }
 0x2a1   : > { %7877 = vmatprep.mubr.bf16.mxu1 %v9846_v51  ;;  %7998 = vmatpush3.bf16.msra.mxu0 %v8278_v49  ;;  %v10102_v25 = vpack.c.bf16 %v4621_v37, %v4620_v15  ;;  %v10108_v51 = vld [vmem:[#allocation3 + $0x110] sm:$0xff] }
 0x2a2   : > { %7999 = vmatprep.subr.bf16.mxu0 %v8280_v23 }
 0x2a5   : > { %8000 = vmatpush3.bf16.msra.mxu0 %v8280_v23  ;;  %v5213_v23 = vld [vmem:[#allocation3 + $0x77] sm:$0xff] }
 0x2a7   : > { %7922 = vmatmul.mubr.bf16.gmra.mxu0 %v9980_v7  ;;  %v5204_v7 = vld [vmem:[#allocation3 + $0x2f] sm:$0xff] }
 0x2a8   : > { %7925 = vmatprep.mubr.bf16.mxu0 %v9990_v20  ;;  %7878 = vmatmul.mubr.bf16.gmra.mxu1 %v10096_v54  ;;  %v4641_v20 = vpack.c.bf16 %v9882_v17, %v10108_v51  ;;  %v8282_v17 = vld [vmem:[%s10892_s3 + $0x230] sm:$0xff]  }
 0x2a9   : > { %7881 = vmatprep.mubr.bf16.mxu1 %v9872_v10  ;;  %v5236_v10 = vpack.c.bf16 %v5205_v28, %v5204_v7  ;;  %v8285_v28 = vld [vmem:[%s10892_s3 + $0x218] sm:$0xff]  }
 0x2af   : > { %7926 = vmatmul.mubr.bf16.gmra.mxu0 %v9994_v18  ;;  %v4929_v18 = vld [vmem:[#allocation3 + $0x111] sm:$0xff] }
 0x2b0   : > { %7929 = vmatprep.mubr.bf16.mxu0 %v9999_v3  ;;  %7882 = vmatmul.mubr.bf16.gmra.mxu1 %v10102_v25  ;;  %v4930_v3 = vld [vmem:[#allocation3 + $0x119] sm:$0xff] }
 0x2b1   : > { %7885 = vmatprep.mubr.bf16.mxu1 %v9891_v61  ;;  %v10114_v16 = vpack.c.bf16 %v4930_v3, %v4929_v18  ;;  %v5206_v61 = vld [vmem:[#allocation3 + $0x3f] sm:$0xff] }
 0x2b2   : > { %v5237_v55 = vpack.c.bf16 %v5207_v26, %v5206_v61  ;;  %v5216_v26 = vld [vmem:[#allocation3 + $0x8f] sm:$0xff] }
 0x2b7   : > { %7930 = vmatmul.mubr.bf16.gmra.mxu0 %v10002_v45 }
 0x2b8   : > { %7933 = vmatprep.mubr.bf16.mxu0 %v10007_v14  ;;  %7886 = vmatmul.mubr.bf16.gmra.mxu1 %v4641_v20 }
 0x2b9   : > { %7953 = vmatprep.mubr.bf16.mxu1 %v5236_v10 }
 0x2bb   : > { %v7667_v45 = vpop.f32.mrf.mxu1 }
 0x2bd   : > { %v3648_v14 = vpop.f32.mrf.mxu1 }
 0x2bf   : > { %7934 = vmatmul.mubr.bf16.gmra.mxu0 %v10114_v16  ;;  %v7668_v0 = vpop.f32.mrf.mxu1 }
 0x2c0   : > { %8001 = vmatprep.mubr.bf16.mxu0 %v10014_v48  ;;  %7954 = vmatmul.mubr.bf16.vlgmr.msra.gmra.mxu1 %v5237_v55  ;;  %v8284_v48 = vld [vmem:[%s10892_s3 + $0x220] sm:$0xff]  }
 0x2c1   : > { %7957 = vmatprep.mubr.bf16.mxu1 %v5238_v53  ;;  %8034 = vmatpush3.bf16.msra.mxu1 %v8281_v22  ;;  %v3651_v49 = vpop.f32.mrf.mxu1  ;;  %v5240_v22 = vpack.c.bf16 %v5213_v23, %v5212_v44 }
 0x2c2   : > { %8035 = vmatprep.subr.bf16.mxu1 %v8282_v17 }
 0x2c4   : > { %v7715_v2 = vpop.f32.mrf.mxu0 }
 0x2c5   : > { %8036 = vmatpush3.bf16.msra.mxu1 %v8282_v17  ;;  %v10128_v42 = vadd.f32 %v7715_v2, %v7667_v45  ;;  %v7671_v37 = vpop.f32.mrf.mxu1  ;;  %v5217_v17 = vld [vmem:[#allocation3 + $0x97] sm:$0xff]  ;;  %v5220_v2 = vld [vmem:[#allocation3 + $0xaf] sm:$0xff] }
 0x2c6   : > { %8037 = vmatprep.subr.bf16.mxu1 %v8283_v60  ;;  %v3857_v15 = vpop.f32.mrf.mxu0  ;;  %v8286_v45 = vld [vmem:[%s10892_s3 + $0x210] sm:$0xff]  }
 0x2c7   : > { %8002 = vmatmul.mubr.bf16.vlgmr.msra.gmra.mxu0 %v10020_v46  ;;  %v10131_v7 = vadd.f32 %v3857_v15, %v3648_v14  ;;  %v3664_v20 = vpop.f32.mrf.mxu1  ;;  %v5215_v46 = vld [vmem:[#allocation3 + $0x87] sm:$0xff]  ;;  %v5242_v14 = vpack.c.bf16 %v5217_v17, %v5216_v26 }
 0x2c8   : > { %8005 = vmatprep.mubr.bf16.mxu0 %v10028_v52  ;;  %7958 = vmatmul.mubr.bf16.gmra.mxu1 %v5239_v47  ;;  %v7716_v10 = vpop.f32.mrf.mxu0  ;;  %v5241_v11 = vpack.c.bf16 %v5215_v46, %v5214_v1 }
 0x2c9   : > { %7961 = vmatprep.mubr.bf16.mxu1 %v5240_v22  ;;  %8038 = vmatpush3.bf16.msra.mxu1 %v8283_v60  ;;  %v10136_v18 = vadd.f32 %v7716_v10, %v7668_v0  ;;  %v7672_v3 = vpop.f32.mrf.mxu1  ;;  %v5218_v22 = vld [vmem:[#allocation3 + $0x9f] sm:$0xff] }
 0x2ca   : > { %8039 = vmatprep.subr.bf16.mxu1 %v8284_v48  ;;  %v3860_v52 = vpop.f32.mrf.mxu0  ;;  %v8288_v10 = vld [vmem:[%s10892_s3 + $0x200] sm:$0xff]  }
 0x2cb   : > { %v10138_v61 = vadd.f32 %v3860_v52, %v3651_v49  ;;  %v3667_v55 = vpop.f32.mrf.mxu1 }
 0x2cc   : > { %v7719_v53 = vpop.f32.mrf.mxu0 }
 0x2cd   : > { %8040 = vmatpush3.bf16.msra.mxu1 %v8284_v48  ;;  %v10144_v60 = vadd.f32 %v7719_v53, %v7671_v37  ;;  %v5223_v53 = vld [vmem:[#allocation3 + $0xc7] sm:$0xff] }
 0x2ce   : > { %8041 = vmatprep.subr.bf16.mxu1 %v8285_v28  ;;  %v7675_v0 = vpop.f32.mrf.mxu1  ;;  %v3873_v40 = vpop.f32.mrf.mxu0 }
 0x2cf   : > { %8006 = vmatmul.mubr.bf16.gmra.mxu0 %v10034_v56  ;;  %v10147_v44 = vadd.f32 %v3873_v40, %v3664_v20  ;;  %v5219_v56 = vld [vmem:[#allocation3 + $0xa7] sm:$0xff] }
 0x2d0   : > { %8009 = vmatprep.mubr.bf16.mxu0 %v10049_v34  ;;  %7962 = vmatmul.mubr.bf16.gmra.mxu1 %v5241_v11  ;;  %v3680_v49 = vpop.f32.mrf.mxu1  ;;  %v7720_v47 = vpop.f32.mrf.mxu0  ;;  %v5243_v20 = vpack.c.bf16 %v5219_v56, %v5218_v22  ;;  %v5524_v11 = vld [vmem:[#allocation3 + $0xa8] sm:$0xff] }
 0x2d1   : > { %7965 = vmatprep.mubr.bf16.mxu1 %v5242_v14  ;;  %8042 = vmatpush3.bf16.msra.mxu1 %v8285_v28  ;;  %v10152_v23 = vadd.f32 %v7720_v47, %v7672_v3  ;;  %v5221_v28 = vld [vmem:[#allocation3 + $0xb7] sm:$0xff] }
 0x2d2   : > { %8043 = vmatprep.subr.bf16.mxu1 %v8286_v45  ;;  %v7676_v48 = vpop.f32.mrf.mxu1  ;;  %v3876_v34 = vpop.f32.mrf.mxu0  ;;  %v5244_v3 = vpack.c.bf16 %v5221_v28, %v5220_v2 }
 0x2d3   : > { %v10154_v37 = vadd.f32 %v3876_v34, %v3667_v55 }
 0x2d4   : > { %v3683_v15 = vpop.f32.mrf.mxu1 }
 0x2d5   : > { %8044 = vmatpush3.bf16.msra.mxu1 %v8286_v45  ;;  %v7723_v46 = vpop.f32.mrf.mxu0 }
 0x2d6   : > { %8045 = vmatprep.subr.bf16.mxu1 %v8287_v63  ;;  %v10160_v26 = vadd.f32 %v7723_v46, %v7675_v0  ;;  %v5224_v0 = vld [vmem:[#allocation3 + $0xcf] sm:$0xff] }
 0x2d7   : > { %8010 = vmatmul.mubr.bf16.gmra.mxu0 %v10055_v36  ;;  %v7679_v52 = vpop.f32.mrf.mxu1  ;;  %v3889_v1 = vpop.f32.mrf.mxu0  ;;  %v5523_v36 = vld [vmem:[#allocation3 + $0xa0] sm:$0xff] }
 0x2d8   : > { %8013 = vmatprep.mubr.bf16.mxu0 %v10069_v5  ;;  %7966 = vmatmul.mubr.bf16.gmra.mxu1 %v5243_v20  ;;  %v10163_v55 = vadd.f32 %v3889_v1, %v3680_v49  ;;  %v5548_v56 = vpack.c.bf16 %v5524_v11, %v5523_v36  ;;  %v5222_v5 = vld [vmem:[#allocation3 + $0xbf] sm:$0xff]  ;;  %v5225_v49 = vld [vmem:[#allocation3 + $0xd7] sm:$0xff]  ;;  %v5528_v1 = vld [vmem:[#allocation3 + $0xc8] sm:$0xff] }
 0x2d9   : > { %7969 = vmatprep.mubr.bf16.mxu1 %v5244_v3  ;;  %8046 = vmatpush3.bf16.msra.mxu1 %v8287_v63  ;;  %v3696_v17 = vpop.f32.mrf.mxu1  ;;  %v7724_v45 = vpop.f32.mrf.mxu0  ;;  %v5245_v63 = vpack.c.bf16 %v5223_v53, %v5222_v5  ;;  %v5246_v20 = vpack.c.bf16 %v5225_v49, %v5224_v0  ;;  %v5227_v11 = vld [vmem:[#allocation3 + $0xe7] sm:$0xff]  ;;  %v5228_v0 = vld [vmem:[#allocation3 + $0xef] sm:$0xff] }
 0x2da   : > { %8047 = vmatprep.subr.bf16.mxu1 %v8288_v10  ;;  %v10165_v14 = vadd.f32 %v7724_v45, %v7676_v48  ;;  %v5527_v53 = vld [vmem:[#allocation3 + $0xc0] sm:$0xff] }
 0x2db   : > { %v7680_v40 = vpop.f32.mrf.mxu1  ;;  %v3892_v47 = vpop.f32.mrf.mxu0 }
 0x2dc   : > { %v10167_v2 = vadd.f32 %v3892_v47, %v3683_v15  ;;  %v5550_v47 = vpack.c.bf16 %v5528_v1, %v5527_v53  ;;  %v5532_v1 = vld [vmem:[#allocation3 + $0xe8] sm:$0xff] }
 0x2dd   : > { %8048 = vmatpush3.bf16.msra.mxu1 %v8288_v10  ;;  %v3699_v34 = vpop.f32.mrf.mxu1  ;;  %v5231_v53 = vld [vmem:[#allocation3 + $0x107] sm:$0xff] }
 0x2de   : > { %v7727_v22 = vpop.f32.mrf.mxu0 }
 0x2df   : > { %8014 = vmatmul.mubr.bf16.gmra.mxu0 %v5548_v56  ;;  %v10169_v28 = vadd.f32 %v7727_v22, %v7679_v52  ;;  %v5226_v56 = vld [vmem:[#allocation3 + $0xdf] sm:$0xff] }
 0x2e0   : > { %8017 = vmatprep.mubr.bf16.mxu0 %v10087_v21  ;;  %v7683_v48 = vpop.f32.mrf.mxu1  ;;  %7970 = vmatmul.mubr.bf16.gmra.mxu1 %v5245_v63  ;;  %v3905_v46 = vpop.f32.mrf.mxu0  ;;  %v5247_v63 = vpack.c.bf16 %v5227_v11, %v5226_v56  ;;  %v5531_v11 = vld [vmem:[#allocation3 + $0xe0] sm:$0xff] }
 0x2e1   : > { %7973 = vmatprep.mubr.bf16.mxu1 %v5246_v20  ;;  %v10172_v3 = vadd.f32 %v3905_v46, %v3696_v17  ;;  %v5229_v17 = vld [vmem:[#allocation3 + $0xf7] sm:$0xff] }
 0x2e2   : > { %v10174_v10 = vpop.f32.mrf.mxu1  ;;  %v7728_v15 = vpop.f32.mrf.mxu0  ;;  %v5248_v22 = vpack.c.bf16 %v5229_v17, %v5228_v0  ;;  %v5230_v0 = vld [vmem:[#allocation3 + $0xff] sm:$0xff] }
 0x2e3   : > { %v10176_v45 = vadd.f32 %v7728_v15, %v7680_v40 }
 0x2e4   : > { %v7684_v36 = vpop.f32.mrf.mxu1  ;;  %v3908_v52 = vpop.f32.mrf.mxu0 }
 0x2e5   : > { %v10178_v21 = vadd.f32 %v3908_v52, %v3699_v34 }
 0x2e6   : > { %v10180_v5 = vpop.f32.mrf.mxu1 }
 0x2e7   : > { %v7731_v49 = vpop.f32.mrf.mxu0  ;;  %8018 = vmatmul.mubr.bf16.gmra.mxu0 %v5550_v47 }
 0x2e8   : > { %v10182_v20 = vadd.f32 %v7731_v49, %v7683_v48  ;;  %8021 = vmatprep.mubr.bf16.mxu0 %v10096_v54  ;;  %v7687_v40 = vpop.f32.mrf.mxu1  ;;  %7974 = vmatmul.mubr.bf16.gmra.mxu1 %v5247_v63  ;;  %v5552_v48 = vpack.c.bf16 %v5532_v1, %v5531_v11  ;;  %v5249_v54 = vpack.c.bf16 %v5231_v53, %v5230_v0  ;;  %v5538_v1 = vld [vmem:[#allocation3 + $0x118] sm:$0xff]  ;;  %v5535_v53 = vld [vmem:[#allocation3 + $0x100] sm:$0xff] }
 0x2e9   : > { %v10185_v46 = vpop.f32.mrf.mxu0  ;;  %7977 = vmatprep.mubr.bf16.mxu1 %v5248_v22  ;;  %v5234_v11 = vld [vmem:[#allocation3 + $0x11f] sm:$0xff] }
 0x2ea   : > { %v10187_v15 = vpop.f32.mrf.mxu1  ;;  %v5251_v12 = vpack.c.bf16 %v5235_v32, %v5234_v11 }
 0x2eb   : > { %v7732_v34 = vpop.f32.mrf.mxu0 }
 0x2ec   : > { %v10189_v52 = vadd.f32 %v7732_v34, %v7684_v36  ;;  %v7688_v56 = vpop.f32.mrf.mxu1  ;;  %v5536_v36 = vld [vmem:[#allocation3 + $0x108] sm:$0xff] }
 0x2ed   : > { %v10191_v47 = vpop.f32.mrf.mxu0 }
 0x2ee   : > { %v10193_v17 = vpop.f32.mrf.mxu1 }
 0x2ef   : > { %v7735_v63 = vpop.f32.mrf.mxu0  ;;  %8022 = vmatmul.mubr.bf16.gmra.mxu0 %v5552_v48 }
 0x2f0   : > { %v10195_v49 = vadd.f32 %v7735_v63, %v7687_v40  ;;  %8025 = vmatprep.mubr.bf16.mxu0 %v10102_v25  ;;  %v7691_v22 = vpop.f32.mrf.mxu1  ;;  %7978 = vmatmul.mubr.bf16.gmra.mxu1 %v5249_v54  ;;  %v5815_v40 = vld [vmem:[#allocation3 + $0x39] sm:$0xff]  ;;  %v5554_v25 = vpack.c.bf16 %v5536_v36, %v5535_v53  ;;  %v5555_v54 = vpack.c.bf16 %v5538_v1, %v10108_v51  ;;  %v5816_v51 = vld [vmem:[#allocation3 + $0x41] sm:$0xff]  ;;  %v5817_v1 = vld [vmem:[#allocation3 + $0x49] sm:$0xff] }
 0x2f1   : > { %v10198_v4 = vpop.f32.mrf.mxu0  ;;  %7981 = vmatprep.mubr.bf16.mxu1 %v10012_v8  ;;  %v5846_v43 = vpack.c.bf16 %v5815_v40, %v5814_v13  ;;  %v8290_v36 = vld [vmem:[#allocation3] sm:$0xff] }
 0x2f2   : > { %v3744_v34 = vpop.f32.mrf.mxu1  ;;  %v5556_v53 = vpack.c.bf16 %v8290_v36, %v8290_v36 }
 0x2f3   : > { %v7736_v38 = vpop.f32.mrf.mxu0 }
 0x2f4   : > { %v10201_v24 = vadd.f32 %v7736_v38, %v7688_v56  ;;  %v7692_v48 = vpop.f32.mrf.mxu1 }
 0x2f5   : > { %v10203_v0 = vpop.f32.mrf.mxu0 }
 0x2f6   : > { %v3747_v63 = vpop.f32.mrf.mxu1 }
 0x2f7   : > { %v7739_v8 = vpop.f32.mrf.mxu0  ;;  %8026 = vmatmul.mubr.bf16.gmra.mxu0 %v5554_v25  ;;  %v5819_v25 = vld [vmem:[#allocation3 + $0x59] sm:$0xff] }
 0x2f8   : > { %v10206_v6 = vadd.f32 %v7739_v8, %v7691_v22  ;;  %8029 = vmatprep.mubr.bf16.mxu0 %v5555_v54  ;;  %v7695_v31 = vpop.f32.mrf.mxu1  ;;  %7982 = vmatmul.mubr.bf16.gmra.mxu1 %v5251_v12  ;;  %v5847_v54 = vpack.c.bf16 %v5817_v1, %v5816_v51  ;;  %v5818_v12 = vld [vmem:[#allocation3 + $0x51] sm:$0xff]  ;;  %v5821_v51 = vld [vmem:[#allocation3 + $0x69] sm:$0xff] }
 0x2f9   : > { %v3953_v38 = vpop.f32.mrf.mxu0  ;;  %8049 = vmatprep.mubr.bf16.mxu1 %v5846_v43  ;;  %v5848_v43 = vpack.c.bf16 %v5819_v25, %v5818_v12  ;;  %v5823_v25 = vld [vmem:[#allocation3 + $0x79] sm:$0xff] }
 0x2fa   : > { %v10208_v56 = vadd.f32 %v3953_v38, %v3744_v34  ;;  %v3760_v41 = vpop.f32.mrf.mxu1 }
 0x2fb   : > { %v7740_v62 = vpop.f32.mrf.mxu0 }
 0x2fc   : > { %v10210_v32 = vadd.f32 %v7740_v62, %v7692_v48  ;;  %v7696_v11 = vpop.f32.mrf.mxu1 }
 0x2fd   : > { %v3956_v13 = vpop.f32.mrf.mxu0 }
 0x2fe   : > { %v10212_v22 = vadd.f32 %v3956_v13, %v3747_v63  ;;  %v3763_v40 = vpop.f32.mrf.mxu1  ;;  %v5820_v13 = vld [vmem:[#allocation3 + $0x61] sm:$0xff] }
 0x2ff   : > { %v7743_v8 = vpop.f32.mrf.mxu0  ;;  %8030 = vmatmul.mubr.bf16.gmra.mxu0 %v5556_v53 }
 0x300   : > { %v10214_v34 = vadd.f32 %v7743_v8, %v7695_v31  ;;  %v7763_v38 = vpop.f32.mrf.mxu1  ;;  %8050 = vmatmul.mubr.bf16.vlgmr.msra.gmra.mxu1 %v5847_v54 }
 0x301   : > { %v3969_v36 = vpop.f32.mrf.mxu0  ;;  %v4259_v57 = vadd.f32 %v7763_v38, %v10128_v42  ;;  %8053 = vmatprep.mubr.bf16.mxu1 %v5848_v43  ;;  %v5849_v42 = vpack.c.bf16 %v5821_v51, %v5820_v13  ;;  %v5822_v43 = vld [vmem:[#allocation3 + $0x71] sm:$0xff]  ;;  %v5824_v13 = vld [vmem:[#allocation3 + $0x81] sm:$0xff]  ;;  %v5825_v51 = vld [vmem:[#allocation3 + $0x89] sm:$0xff] }
 0x302   : > { %v10217_v62 = vadd.f32 %v3969_v36, %v3760_v41  ;;  %v4130_v48 = vpop.f32.mrf.mxu1  ;;  %v5850_v36 = vpack.c.bf16 %v5823_v25, %v5822_v43  ;;  %v5827_v25 = vld [vmem:[#allocation3 + $0x99] sm:$0xff] }
 0x303   : > { %v7744_v33 = vpop.f32.mrf.mxu0  ;;  %v4257_v63 = vadd.f32 %v4130_v48, %v10131_v7 }
 0x304   : > { %v10220_v1 = vadd.f32 %v7744_v33, %v7696_v11  ;;  %v7764_v53 = vpop.f32.mrf.mxu1 }
 0x305   : > { %v3972_v31 = vpop.f32.mrf.mxu0  ;;  %v4260_v12 = vadd.f32 %v7764_v53, %v10136_v18 }
 0x306   : > { %v10223_v54 = vadd.f32 %v3972_v31, %v3763_v40  ;;  %v4133_v8 = vpop.f32.mrf.mxu1 }
 0x307   : > { %v7811_v41 = vpop.f32.mrf.mxu0  ;;  %v4258_v38 = vadd.f32 %v4133_v8, %v10138_v61 }
 0x308   : > { %v10226_v39 = vadd.f32 %v7811_v41, %v4259_v57  ;;  %v7767_v7 = vpop.f32.mrf.mxu1  ;;  %8054 = vmatmul.mubr.bf16.gmra.mxu1 %v5849_v42  ;;  %v5826_v41 = vld [vmem:[#allocation3 + $0x91] sm:$0xff] }
 0x309   : > { %v4435_v33 = vpop.f32.mrf.mxu0  ;;  %v4263_v11 = vadd.f32 %v7767_v7, %v10144_v60  ;;  %8057 = vmatprep.mubr.bf16.mxu1 %v5850_v36  ;;  %v5851_v60 = vpack.c.bf16 %v5825_v51, %v5824_v13  ;;  %v5852_v7 = vpack.c.bf16 %v5827_v25, %v5826_v41  ;;  %v5828_v13 = vld [vmem:[#allocation3 + $0xa1] sm:$0xff]  ;;  %v5829_v51 = vld [vmem:[#allocation3 + $0xa9] sm:$0xff]  ;;  %v5831_v25 = vld [vmem:[#allocation3 + $0xb9] sm:$0xff] }
 0x30a   : > { %v10229_v48 = vadd.f32 %v4435_v33, %v4257_v63  ;;  %v4146_v18 = vpop.f32.mrf.mxu1 }
 0x30b   : > { %v7812_v40 = vpop.f32.mrf.mxu0  ;;  %v4261_v53 = vadd.f32 %v4146_v18, %v10147_v44 }
 0x30c   : > { %v10232_v31 = vadd.f32 %v7812_v40, %v4260_v12  ;;  %v7768_v61 = vpop.f32.mrf.mxu1 }
 0x30d   : > { %v4438_v57 = vpop.f32.mrf.mxu0  ;;  %v4264_v8 = vadd.f32 %v7768_v61, %v10152_v23 }
 0x30e   : > { %v10235_v42 = vadd.f32 %v4438_v57, %v4258_v38  ;;  %v4149_v43 = vpop.f32.mrf.mxu1 }
 0x30f   : > { %v7815_v63 = vpop.f32.mrf.mxu0  ;;  %v4262_v36 = vadd.f32 %v4149_v43, %v10154_v37 }
 0x310   : > { %v10238_v33 = vadd.f32 %v7815_v63, %v4263_v11  ;;  %v7771_v44 = vpop.f32.mrf.mxu1  ;;  %8058 = vmatmul.mubr.bf16.gmra.mxu1 %v5851_v60  ;;  %v5830_v63 = vld [vmem:[#allocation3 + $0xb1] sm:$0xff] }
 0x311   : > { %v4451_v12 = vpop.f32.mrf.mxu0  ;;  %v4267_v18 = vadd.f32 %v7771_v44, %v10160_v26  ;;  %8061 = vmatprep.mubr.bf16.mxu1 %v5852_v7  ;;  %v5853_v26 = vpack.c.bf16 %v5829_v51, %v5828_v13  ;;  %v5854_v44 = vpack.c.bf16 %v5831_v25, %v5830_v63  ;;  %v5832_v13 = vld [vmem:[#allocation3 + $0xc1] sm:$0xff]  ;;  %v5833_v51 = vld [vmem:[#allocation3 + $0xc9] sm:$0xff]  ;;  %v5835_v25 = vld [vmem:[#allocation3 + $0xd9] sm:$0xff] }
 0x312   : > { %v10241_v40 = vadd.f32 %v4451_v12, %v4261_v53  ;;  %v4162_v23 = vpop.f32.mrf.mxu1 }
 0x313   : > { %v7816_v38 = vpop.f32.mrf.mxu0  ;;  %v4265_v61 = vadd.f32 %v4162_v23, %v10163_v55 }
 0x314   : > { %v10244_v57 = vadd.f32 %v7816_v38, %v4264_v8  ;;  %v7772_v37 = vpop.f32.mrf.mxu1 }
 0x315   : > { %v4454_v11 = vpop.f32.mrf.mxu0  ;;  %v4268_v43 = vadd.f32 %v7772_v37, %v10165_v14 }
 0x316   : > { %v10247_v60 = vadd.f32 %v4454_v11, %v4262_v36  ;;  %v4165_v41 = vpop.f32.mrf.mxu1 }
 0x317   : > { %v7819_v53 = vpop.f32.mrf.mxu0  ;;  %v4266_v7 = vadd.f32 %v4165_v41, %v10167_v2 }
 0x318   : > { %v10250_v12 = vadd.f32 %v7819_v53, %v4267_v18  ;;  %v7775_v55 = vpop.f32.mrf.mxu1  ;;  %8062 = vmatmul.mubr.bf16.gmra.mxu1 %v5853_v26  ;;  %v5834_v53 = vld [vmem:[#allocation3 + $0xd1] sm:$0xff] }
 0x319   : > { %v4467_v8 = vpop.f32.mrf.mxu0  ;;  %v4271_v23 = vadd.f32 %v7775_v55, %v10169_v28  ;;  %8065 = vmatprep.mubr.bf16.mxu1 %v5854_v44  ;;  %v5855_v28 = vpack.c.bf16 %v5833_v51, %v5832_v13  ;;  %v5856_v55 = vpack.c.bf16 %v5835_v25, %v5834_v53  ;;  %v3922_v25 = vadd.f32 %v10185_v46, %v10174_v10 }
 0x31a   : > { %v10253_v38 = vadd.f32 %v4467_v8, %v4265_v61  ;;  %v4178_v14 = vpop.f32.mrf.mxu1 }
 0x31b   : > { %v7820_v36 = vpop.f32.mrf.mxu0  ;;  %v4269_v37 = vadd.f32 %v4178_v14, %v10172_v3 }
 0x31c   : > { %v10256_v11 = vadd.f32 %v7820_v36, %v4268_v43  ;;  %v7776_v2 = vpop.f32.mrf.mxu1 }
 0x31d   : > { %v4470_v18 = vpop.f32.mrf.mxu0  ;;  %v4272_v41 = vadd.f32 %v7776_v2, %v10176_v45  ;;  %v5836_v2 = vld [vmem:[#allocation3 + $0xe1] sm:$0xff] }
 0x31e   : > { %v10259_v26 = vadd.f32 %v4470_v18, %v4266_v7  ;;  %v4181_v63 = vpop.f32.mrf.mxu1  ;;  %v5837_v18 = vld [vmem:[#allocation3 + $0xe9] sm:$0xff] }
 0x31f   : > { %v7823_v61 = vpop.f32.mrf.mxu0  ;;  %v4270_v44 = vadd.f32 %v4181_v63, %v10178_v21 }
 0x320   : > { %v10262_v8 = vadd.f32 %v7823_v61, %v4271_v23  ;;  %v7779_v3 = vpop.f32.mrf.mxu1  ;;  %8066 = vmatmul.mubr.bf16.gmra.mxu1 %v5855_v28  ;;  %v5857_v28 = vpack.c.bf16 %v5837_v18, %v5836_v2  ;;  %v5840_v2 = vld [vmem:[#allocation3 + $0x101] sm:$0xff]  ;;  %v5841_v18 = vld [vmem:[#allocation3 + $0x109] sm:$0xff] }
 0x321   : > { %v4483_v43 = vpop.f32.mrf.mxu0  ;;  %v4275_v14 = vadd.f32 %v7779_v3, %v10182_v20  ;;  %8069 = vmatprep.mubr.bf16.mxu1 %v5856_v55 }
 0x322   : > { %v10265_v36 = vadd.f32 %v4483_v43, %v4269_v37  ;;  %v4194_v45 = vpop.f32.mrf.mxu1  ;;  %v5838_v37 = vld [vmem:[#allocation3 + $0xf1] sm:$0xff] }
 0x323   : > { %v7824_v7 = vpop.f32.mrf.mxu0  ;;  %v5858_v61 = vpack.c.bf16 %v5839_v27, %v5838_v37  ;;  %v4273_v3 = vadd.f32 %v4194_v45, %v3922_v25  ;;  %v3941_v45 = vadd.f32 %v10203_v0, %v10193_v17  ;;  %v3938_v25 = vadd.f32 %v10198_v4, %v10187_v15  ;;  %v5845_v0 = vld [vmem:[#allocation3 + $0x129] sm:$0xff] }
 0x324   : > { %v10267_v13 = vadd.f32 %v7824_v7, %v4272_v41  ;;  %v7780_v51 = vpop.f32.mrf.mxu1 }
 0x325   : > { %v4486_v21 = vpop.f32.mrf.mxu0  ;;  %v4276_v23 = vadd.f32 %v7780_v51, %v10189_v52  ;;  %v3925_v52 = vadd.f32 %v10191_v47, %v10180_v5 }
 0x326   : > { %v10272_v63 = vadd.f32 %v4486_v21, %v4270_v44  ;;  %v4197_v20 = vpop.f32.mrf.mxu1 }
 0x327   : > { %v7827_v53 = vpop.f32.mrf.mxu0  ;;  %v4274_v27 = vadd.f32 %v4197_v20, %v3925_v52 }
 0x328   : > { %v10274_v55 = vadd.f32 %v7827_v53, %v4275_v14  ;;  %v7783_v41 = vpop.f32.mrf.mxu1  ;;  %8070 = vmatmul.mubr.bf16.gmra.mxu1 %v5857_v28  ;;  %v5859_v28 = vpack.c.bf16 %v5841_v18, %v5840_v2 }
 0x329   : > { %v4499_v43 = vpop.f32.mrf.mxu0  ;;  %v4279_v7 = vadd.f32 %v7783_v41, %v10195_v49  ;;  %8073 = vmatprep.mubr.bf16.mxu1 %v5858_v61 }
 0x32a   : > { %v10279_v10 = vadd.f32 %v4499_v43, %v4273_v3  ;;  %v4210_v46 = vpop.f32.mrf.mxu1 }
 0x32b   : > { %v7828_v44 = vpop.f32.mrf.mxu0 }
 0x32c   : > { %v10281_v51 = vadd.f32 %v7828_v44, %v4276_v23  ;;  %v7784_v14 = vpop.f32.mrf.mxu1  ;;  %v4277_v23 = vadd.f32 %v4210_v46, %v3938_v25 }
 0x32d   : > { %v4502_v21 = vpop.f32.mrf.mxu0  ;;  %v4280_v49 = vadd.f32 %v7784_v14, %v10201_v24  ;;  %v5844_v24 = vld [vmem:[#allocation3 + $0x121] sm:$0xff] }
 0x32e   : > { %v10288_v5 = vadd.f32 %v4502_v21, %v4274_v27  ;;  %v4213_v47 = vpop.f32.mrf.mxu1  ;;  %v5861_v44 = vpack.c.bf16 %v5845_v0, %v5844_v24 }
 0x32f   : > { %v7831_v37 = vpop.f32.mrf.mxu0  ;;  %v4278_v53 = vadd.f32 %v4213_v47, %v3941_v45 }
 0x330   : > { %v10290_v61 = vadd.f32 %v7831_v37, %v4279_v7  ;;  %v7787_v20 = vpop.f32.mrf.mxu1  ;;  %8074 = vmatmul.mubr.bf16.gmra.mxu1 %v5859_v28 }
 0x331   : > { %v4515_v3 = vpop.f32.mrf.mxu0  ;;  %v4283_v17 = vadd.f32 %v7787_v20, %v10206_v6  ;;  %8077 = vmatprep.mubr.bf16.mxu1 %v10114_v16 }
 0x332   : > { %v10294_v41 = vadd.f32 %v4515_v3, %v4277_v23  ;;  %v4226_v4 = vpop.f32.mrf.mxu1 }
 0x333   : > { %v7832_v15 = vpop.f32.mrf.mxu0  ;;  %v4281_v43 = vadd.f32 %v4226_v4, %v10208_v56 }
 0x334   : > { %v10297_v52 = vadd.f32 %v7832_v15, %v4280_v49  ;;  %v7788_v7 = vpop.f32.mrf.mxu1 }
 0x335   : > { %v4518_v46 = vpop.f32.mrf.mxu0  ;;  %v4284_v2 = vadd.f32 %v7788_v7, %v10210_v32 }
 0x336   : > { %v10300_v18 = vadd.f32 %v4518_v46, %v4278_v53  ;;  %v4229_v6 = vpop.f32.mrf.mxu1 }
 0x337   : > { %v7835_v27 = vpop.f32.mrf.mxu0  ;;  %v4282_v16 = vadd.f32 %v4229_v6, %v10212_v22 }
 0x338   : > { %v10303_v14 = vadd.f32 %v7835_v27, %v4283_v17  ;;  %v7791_v45 = vpop.f32.mrf.mxu1  ;;  %8078 = vmatmul.mubr.bf16.gmra.mxu1 %v5861_v44 }
 0x339   : > { %v4531_v21 = vpop.f32.mrf.mxu0  ;;  %v4287_v56 = vadd.f32 %v7791_v45, %v10214_v34 }
 0x33a   : > { %v10306_v49 = vadd.f32 %v4531_v21, %v4281_v43  ;;  %v4242_v25 = vpop.f32.mrf.mxu1 }
 0x33b   : > { %v7836_v47 = vpop.f32.mrf.mxu0  ;;  %v4285_v28 = vadd.f32 %v4242_v25, %v10217_v62 }
 0x33c   : > { %v10309_v32 = vadd.f32 %v7836_v47, %v4284_v2  ;;  %v7792_v37 = vpop.f32.mrf.mxu1 }
 0x33d   : > { %v4534_v53 = vpop.f32.mrf.mxu0  ;;  %v4288_v23 = vadd.f32 %v7792_v37, %v10220_v1 }
 0x33e   : > { %v10312_v22 = vadd.f32 %v4534_v53, %v4282_v16  ;;  %v4245_v20 = vpop.f32.mrf.mxu1 }
 0x33f   : > { %v7839_v3 = vpop.f32.mrf.mxu0  ;;  %v4286_v17 = vadd.f32 %v4245_v20, %v10223_v54 }
 0x340   : > { %v10315_v24 = vadd.f32 %v7839_v3, %v4287_v56  ;;  %v7859_v34 = vpop.f32.mrf.mxu1 }
 0x341   : > { %v4547_v0 = vpop.f32.mrf.mxu0  ;;  %v4869_v4 = vadd.f32 %v7859_v34, %v10226_v39 }
 0x342   : > { %v10318_v15 = vadd.f32 %v4547_v0, %v4285_v28  ;;  %v4740_v62 = vpop.f32.mrf.mxu1 }
 0x343   : > { %v7840_v43 = vpop.f32.mrf.mxu0  ;;  %v4867_v7 = vadd.f32 %v4740_v62, %v10229_v48 }
 0x344   : > { %v10321_v44 = vadd.f32 %v7840_v43, %v4288_v23  ;;  %v7860_v1 = vpop.f32.mrf.mxu1 }
 0x345   : > { %v4550_v46 = vpop.f32.mrf.mxu0  ;;  %v4870_v2 = vadd.f32 %v7860_v1, %v10232_v31 }
 0x346   : > { %v10324_v6 = vadd.f32 %v4550_v46, %v4286_v17  ;;  %v4743_v54 = vpop.f32.mrf.mxu1 }
 0x347   : > { %v7907_v27 = vpop.f32.mrf.mxu0  ;;  %v4868_v16 = vadd.f32 %v4743_v54, %v10235_v42 }
 0x348   : > { %v10327_v45 = vadd.f32 %v7907_v27, %v4869_v4  ;;  %v7863_v39 = vpop.f32.mrf.mxu1 }
 0x349   : > { %v5045_v21 = vpop.f32.mrf.mxu0  ;;  %v4873_v56 = vadd.f32 %v7863_v39, %v10238_v33 }
 0x34a   : > { %v10330_v25 = vadd.f32 %v5045_v21, %v4867_v7  ;;  %v4756_v48 = vpop.f32.mrf.mxu1 }
 0x34b   : > { %v7908_v47 = vpop.f32.mrf.mxu0  ;;  %v4871_v28 = vadd.f32 %v4756_v48, %v10241_v40 }
 0x34c   : > { %v10333_v37 = vadd.f32 %v7908_v47, %v4870_v2  ;;  %v7864_v31 = vpop.f32.mrf.mxu1 }
 0x34d   : > { %v5048_v53 = vpop.f32.mrf.mxu0  ;;  %v4874_v23 = vadd.f32 %v7864_v31, %v10244_v57 }
 0x34e   : > { %v10336_v20 = vadd.f32 %v5048_v53, %v4868_v16  ;;  %v4759_v42 = vpop.f32.mrf.mxu1 }
 0x34f   : > { %v7911_v3 = vpop.f32.mrf.mxu0  ;;  %v4872_v17 = vadd.f32 %v4759_v42, %v10247_v60 }
 0x350   : > { %v10339_v34 = vadd.f32 %v7911_v3, %v4873_v56  ;;  %v7867_v33 = vpop.f32.mrf.mxu1 }
 0x351   : > { %v5061_v0 = vpop.f32.mrf.mxu0  ;;  %v4877_v4 = vadd.f32 %v7867_v33, %v10250_v12 }
 0x352   : > { %v10342_v62 = vadd.f32 %v5061_v0, %v4871_v28  ;;  %v4772_v40 = vpop.f32.mrf.mxu1 }
 0x353   : > { %v7912_v43 = vpop.f32.mrf.mxu0  ;;  %v4875_v7 = vadd.f32 %v4772_v40, %v10253_v38 }
 0x354   : > { %v10345_v1 = vadd.f32 %v7912_v43, %v4874_v23  ;;  %v7868_v57 = vpop.f32.mrf.mxu1 }
 0x355   : > { %v5064_v46 = vpop.f32.mrf.mxu0  ;;  %v4878_v2 = vadd.f32 %v7868_v57, %v10256_v11 }
 0x356   : > { %v10348_v54 = vadd.f32 %v5064_v46, %v4872_v17  ;;  %v4775_v60 = vpop.f32.mrf.mxu1 }
 0x357   : > { %v7915_v27 = vpop.f32.mrf.mxu0  ;;  %v4876_v16 = vadd.f32 %v4775_v60, %v10259_v26 }
 0x358   : > { %v10351_v39 = vadd.f32 %v7915_v27, %v4877_v4  ;;  %v7871_v12 = vpop.f32.mrf.mxu1 }
 0x359   : > { %v5077_v21 = vpop.f32.mrf.mxu0  ;;  %v4881_v56 = vadd.f32 %v7871_v12, %v10262_v8 }
 0x35a   : > { %v10354_v48 = vadd.f32 %v5077_v21, %v4875_v7  ;;  %v4788_v38 = vpop.f32.mrf.mxu1 }
 0x35b   : > { %v7916_v47 = vpop.f32.mrf.mxu0  ;;  %v4879_v28 = vadd.f32 %v4788_v38, %v10265_v36 }
 0x35c   : > { %v10357_v31 = vadd.f32 %v7916_v47, %v4878_v2  ;;  %v7872_v11 = vpop.f32.mrf.mxu1 }
 0x35d   : > { %v5080_v53 = vpop.f32.mrf.mxu0  ;;  %v4882_v23 = vadd.f32 %v7872_v11, %v10267_v13 }
 0x35e   : > { %v10360_v42 = vadd.f32 %v5080_v53, %v4876_v16  ;;  %v4791_v26 = vpop.f32.mrf.mxu1 }
 0x35f   : > { %v7919_v3 = vpop.f32.mrf.mxu0  ;;  %v4880_v17 = vadd.f32 %v4791_v26, %v10272_v63 }
 0x360   : > { %v10363_v33 = vadd.f32 %v7919_v3, %v4881_v56  ;;  %v7875_v8 = vpop.f32.mrf.mxu1 }
 0x361   : > { %v5093_v0 = vpop.f32.mrf.mxu0  ;;  %v4885_v4 = vadd.f32 %v7875_v8, %v10274_v55 }
 0x362   : > { %v10366_v40 = vadd.f32 %v5093_v0, %v4879_v28  ;;  %v4804_v36 = vpop.f32.mrf.mxu1 }
 0x363   : > { %v7920_v43 = vpop.f32.mrf.mxu0  ;;  %v4883_v7 = vadd.f32 %v4804_v36, %v10279_v10 }
 0x364   : > { %v10369_v57 = vadd.f32 %v7920_v43, %v4882_v23  ;;  %v7876_v13 = vpop.f32.mrf.mxu1 }
 0x365   : > { %v5096_v46 = vpop.f32.mrf.mxu0  ;;  %v4886_v2 = vadd.f32 %v7876_v13, %v10281_v51 }
 0x366   : > { %v10372_v60 = vadd.f32 %v5096_v46, %v4880_v17  ;;  %v4807_v63 = vpop.f32.mrf.mxu1 }
 0x367   : > { %v7923_v27 = vpop.f32.mrf.mxu0  ;;  %v4884_v16 = vadd.f32 %v4807_v63, %v10288_v5 }
 0x368   : > { %v10375_v12 = vadd.f32 %v7923_v27, %v4885_v4  ;;  %v7879_v55 = vpop.f32.mrf.mxu1 }
 0x369   : > { %v5109_v21 = vpop.f32.mrf.mxu0  ;;  %v4889_v56 = vadd.f32 %v7879_v55, %v10290_v61 }
 0x36a   : > { %v10378_v38 = vadd.f32 %v5109_v21, %v4883_v7  ;;  %v4820_v10 = vpop.f32.mrf.mxu1 }
 0x36b   : > { %v7924_v47 = vpop.f32.mrf.mxu0  ;;  %v4887_v28 = vadd.f32 %v4820_v10, %v10294_v41 }
 0x36c   : > { %v10381_v11 = vadd.f32 %v7924_v47, %v4886_v2  ;;  %v7880_v51 = vpop.f32.mrf.mxu1 }
 0x36d   : > { %v5112_v53 = vpop.f32.mrf.mxu0  ;;  %v4890_v23 = vadd.f32 %v7880_v51, %v10297_v52 }
 0x36e   : > { %v10384_v26 = vadd.f32 %v5112_v53, %v4884_v16  ;;  %v4823_v5 = vpop.f32.mrf.mxu1 }
 0x36f   : > { %v7927_v3 = vpop.f32.mrf.mxu0  ;;  %v4888_v17 = vadd.f32 %v4823_v5, %v10300_v18 }
 0x370   : > { %v10387_v8 = vadd.f32 %v7927_v3, %v4889_v56  ;;  %v7883_v61 = vpop.f32.mrf.mxu1 }
 0x371   : > { %v5125_v0 = vpop.f32.mrf.mxu0  ;;  %v4893_v4 = vadd.f32 %v7883_v61, %v10303_v14 }
 0x372   : > { %v10390_v36 = vadd.f32 %v5125_v0, %v4887_v28  ;;  %v4836_v41 = vpop.f32.mrf.mxu1 }
 0x373   : > { %v7928_v43 = vpop.f32.mrf.mxu0  ;;  %v4891_v7 = vadd.f32 %v4836_v41, %v10306_v49 }
 0x374   : > { %v10393_v13 = vadd.f32 %v7928_v43, %v4890_v23  ;;  %v7884_v52 = vpop.f32.mrf.mxu1 }
 0x375   : > { %v5128_v46 = vpop.f32.mrf.mxu0  ;;  %v4894_v2 = vadd.f32 %v7884_v52, %v10309_v32 }
 0x376   : > { %v10396_v63 = vadd.f32 %v5128_v46, %v4888_v17  ;;  %v4839_v18 = vpop.f32.mrf.mxu1 }
 0x377   : > { %v7931_v27 = vpop.f32.mrf.mxu0  ;;  %v4892_v16 = vadd.f32 %v4839_v18, %v10312_v22 }
 0x378   : > { %v10399_v55 = vadd.f32 %v7931_v27, %v4893_v4  ;;  %v7887_v14 = vpop.f32.mrf.mxu1 }
 0x379   : > { %v5141_v21 = vpop.f32.mrf.mxu0  ;;  %v4897_v56 = vadd.f32 %v7887_v14, %v10315_v24 }
 0x37a   : > { %v10402_v10 = vadd.f32 %v5141_v21, %v4891_v7  ;;  %v4852_v49 = vpop.f32.mrf.mxu1 }
 0x37b   : > { %v7932_v47 = vpop.f32.mrf.mxu0  ;;  %v4895_v28 = vadd.f32 %v4852_v49, %v10318_v15 }
 0x37c   : > { %v10405_v51 = vadd.f32 %v7932_v47, %v4894_v2  ;;  %v7888_v32 = vpop.f32.mrf.mxu1 }
 0x37d   : > { %v5144_v53 = vpop.f32.mrf.mxu0  ;;  %v10408_v23 = vadd.f32 %v7888_v32, %v10321_v44 }
 0x37e   : > { %v10410_v22 = vadd.f32 %v5144_v53, %v4892_v16  ;;  %v4855_v5 = vpop.f32.mrf.mxu1 }
 0x37f   : > { %v7935_v3 = vpop.f32.mrf.mxu0  ;;  %v10413_v17 = vadd.f32 %v4855_v5, %v10324_v6 }
 0x380   : > { %v10415_v24 = vadd.f32 %v7935_v3, %v4897_v56  ;;  %v7955_v61 = vpop.f32.mrf.mxu1 }
 0x381   : > { %v5157_v0 = vpop.f32.mrf.mxu0  ;;  %v5479_v15 = vadd.f32 %v7955_v61, %v10327_v45 }
 0x382   : > { %v10418_v4 = vadd.f32 %v5157_v0, %v4895_v28  ;;  %v5350_v41 = vpop.f32.mrf.mxu1 }
 0x383   : > { %v10420_v43 = vpop.f32.mrf.mxu0  ;;  %v5477_v44 = vadd.f32 %v5350_v41, %v10330_v25 }
 0x384   : > { %v7956_v7 = vpop.f32.mrf.mxu1 }
 0x385   : > { %v10423_v52 = vpop.f32.mrf.mxu0  ;;  %v5480_v46 = vadd.f32 %v7956_v7, %v10333_v37 }
 0x386   : > { %v5353_v6 = vpop.f32.mrf.mxu1 }
 0x387   : > { %v8003_v2 = vpop.f32.mrf.mxu0  ;;  %v5478_v18 = vadd.f32 %v5353_v6, %v10336_v20 }
 0x388   : > { %v10427_v27 = vadd.f32 %v8003_v2, %v5479_v15  ;;  %v7959_v16 = vpop.f32.mrf.mxu1 }
 0x389   : > { %v5655_v45 = vpop.f32.mrf.mxu0  ;;  %v5483_v14 = vadd.f32 %v7959_v16, %v10339_v34 }
 0x38a   : > { %v10430_v21 = vadd.f32 %v5655_v45, %v5477_v44  ;;  %v5366_v56 = vpop.f32.mrf.mxu1 }
 0x38b   : > { %v8004_v49 = vpop.f32.mrf.mxu0  ;;  %v5481_v25 = vadd.f32 %v5366_v56, %v10342_v62 }
 0x38c   : > { %v10433_v47 = vadd.f32 %v8004_v49, %v5480_v46  ;;  %v7960_v28 = vpop.f32.mrf.mxu1 }
 0x38d   : > { %v5658_v37 = vpop.f32.mrf.mxu0  ;;  %v5484_v32 = vadd.f32 %v7960_v28, %v10345_v1 }
 0x38e   : > { %v10436_v53 = vadd.f32 %v5658_v37, %v5478_v18  ;;  %v5369_v20 = vpop.f32.mrf.mxu1 }
 0x38f   : > { %v8007_v5 = vpop.f32.mrf.mxu0  ;;  %v5482_v3 = vadd.f32 %v5369_v20, %v10348_v54 }
 0x390   : > { %v10439_v61 = vadd.f32 %v8007_v5, %v5483_v14  ;;  %v7963_v34 = vpop.f32.mrf.mxu1 }
 0x391   : > { %v5671_v0 = vpop.f32.mrf.mxu0  ;;  %v10442_v15 = vadd.f32 %v7963_v34, %v10351_v39 }
 0x392   : > { %v10444_v62 = vadd.f32 %v5671_v0, %v5481_v25  ;;  %v5382_v41 = vpop.f32.mrf.mxu1 }
 0x393   : > { %v8008_v44 = vpop.f32.mrf.mxu0  ;;  %v10447_v7 = vadd.f32 %v5382_v41, %v10354_v48 }
 0x394   : > { %v10449_v1 = vadd.f32 %v8008_v44, %v5484_v32  ;;  %v7964_v46 = vpop.f32.mrf.mxu1 }
 0x395   : > { %v5674_v6 = vpop.f32.mrf.mxu0  ;;  %v10452_v54 = vadd.f32 %v7964_v46, %v10357_v31 }
 0x396   : > { %v10454_v2 = vadd.f32 %v5674_v6, %v5482_v3  ;;  %v5385_v18 = vpop.f32.mrf.mxu1 }
 0x397   : > { %v10457_v39 = vadd.f32 %v5385_v18, %v10360_v42  ;;  %v10459_v16 = vpop.f32.mrf.mxu0 }
 0x398   : > { %v7967_v45 = vpop.f32.mrf.mxu1 }
 0x399   : > { %v10462_v14 = vadd.f32 %v7967_v45, %v10363_v33  ;;  %v10467_v49 = vpop.f32.mrf.mxu0 }
 0x39a   : > { %v5398_v48 = vpop.f32.mrf.mxu1 }
 0x39b   : > { %v10465_v56 = vadd.f32 %v5398_v48, %v10366_v40  ;;  %v10475_v37 = vpop.f32.mrf.mxu0 }
 0x39c   : > { %v7968_v31 = vpop.f32.mrf.mxu1 }
 0x39d   : > { %v10470_v25 = vadd.f32 %v7968_v31, %v10369_v57  ;;  %v10483_v5 = vpop.f32.mrf.mxu0 }
 0x39e   : > { %v5401_v28 = vpop.f32.mrf.mxu1 }
 0x39f   : > { %v10473_v42 = vadd.f32 %v5401_v28, %v10372_v60  ;;  %v10491_v0 = vpop.f32.mrf.mxu0 }
 0x3a0   : > { %v7971_v32 = vpop.f32.mrf.mxu1 }
 0x3a1   : > { %v10478_v33 = vadd.f32 %v7971_v32, %v10375_v12  ;;  %v6301_v12 = vld [vmem:[%s10897_s8 + $0x8] sm:$0xff] }
 0x3a2   : > { %v5414_v20 = vpop.f32.mrf.mxu1  ;;  %6378 = vmatprep.mubr.f32.mxu0 %v6301_v12 }
 0x3a3   : > { %v10481_v40 = vadd.f32 %v5414_v20, %v10378_v38 }
 0x3a4   : > { %v7972_v3 = vpop.f32.mrf.mxu1 }
 0x3a5   : > { %v10486_v57 = vadd.f32 %v7972_v3, %v10381_v11  ;;  %v6309_v11 = vld [vmem:[%s10897_s8 + $0x48] sm:$0xff] }
 0x3a6   : > { %v5417_v34 = vpop.f32.mrf.mxu1  ;;  %6398 = vmatprep.mubr.f32.mxu1 %v6309_v11 }
 0x3a7   : > { %v10489_v60 = vadd.f32 %v5417_v34, %v10384_v26  ;;  %v10505_v26 = vpop.f32.mrf.mxu0 }
 0x3a8   : > { %v7975_v41 = vpop.f32.mrf.mxu1 }
 0x3a9   : > { %v10497_v38 = vadd.f32 %v7975_v41, %v10387_v8  ;;  %v10513_v48 = vpop.f32.mrf.mxu0 }
 0x3aa   : > { %v5430_v44 = vpop.f32.mrf.mxu1 }
 0x3ab   : > { %v10503_v46 = vadd.f32 %v5430_v44, %v10390_v36  ;;  %v10521_v20 = vpop.f32.mrf.mxu0 }
 0x3ac   : > { %v7976_v6 = vpop.f32.mrf.mxu1 }
 0x3ad   : > { %v10508_v18 = vadd.f32 %v7976_v6, %v10393_v13  ;;  %v8019_v41 = vpop.f32.mrf.mxu0 }
 0x3ae   : > { %v5433_v45 = vpop.f32.mrf.mxu1 }
 0x3af   : > { %v10511_v8 = vadd.f32 %v5433_v45, %v10396_v63 }
 0x3b0   : > { %v7979_v31 = vpop.f32.mrf.mxu1 }
 0x3b1   : > { %v10516_v28 = vadd.f32 %v7979_v31, %v10399_v55 }
 0x3b2   : > { %v5446_v32 = vpop.f32.mrf.mxu1 }
 0x3b3   : > { %v10519_v36 = vadd.f32 %v5446_v32, %v10402_v10  ;;  %v5719_v10 = vpop.f32.mrf.mxu0 }
 0x3b4   : > { %v7980_v3 = vpop.f32.mrf.mxu1 }
 0x3b5   : > { %v10524_v13 = vadd.f32 %v7980_v3, %v10405_v51  ;;  %v8020_v51 = vpop.f32.mrf.mxu0 }
 0x3b6   : > { %v5449_v34 = vpop.f32.mrf.mxu1 }
 0x3b7   : > { %v10527_v63 = vadd.f32 %v5449_v34, %v10410_v22 }
 0x3b8   : > { %v7983_v12 = vpop.f32.mrf.mxu1 }
 0x3b9   : > { %v10530_v44 = vadd.f32 %v7983_v12, %v10415_v24  ;;  %v5722_v24 = vpop.f32.mrf.mxu0 }
 0x3ba   : > { %v5462_v55 = vpop.f32.mrf.mxu1 }
 0x3bb   : > { %v10533_v11 = vadd.f32 %v5462_v55, %v10418_v4  ;;  %v8023_v58 = vpop.f32.mrf.mxu0 }
 0x3bc   : > { %v10535_v6 = vpop.f32.mrf.mxu1 }
 0x3be   : > { %v10537_v45 = vpop.f32.mrf.mxu1 }
 0x3bf   : > { %11137 = vst [vmem:[#allocation20_spill] sm:$0xff] %v10537_v45 }
 0x3c0   : > { %v8051_v31 = vpop.f32.mrf.mxu1 }
 0x3c1   : > { %v10540_v32 = vadd.f32 %v8051_v31, %v10427_v27 }
 0x3c2   : > { %v5960_v22 = vpop.f32.mrf.mxu1 }
 0x3c3   : > { %v10543_v3 = vadd.f32 %v5960_v22, %v10430_v21  ;;  %v5735_v21 = vpop.f32.mrf.mxu0 }
 0x3c4   : > { %v8052_v34 = vpop.f32.mrf.mxu1 }
 0x3c5   : > { %11138 = vst [vmem:[#allocation21_spill] sm:$0xff] %v10543_v3  ;;  %v10546_v12 = vadd.f32 %v8052_v34, %v10433_v47  ;;  %v8024_v34 = vpop.f32.mrf.mxu0 }
 0x3c6   : > { %v5963_v4 = vpop.f32.mrf.mxu1 }
 0x3c7   : > { %11139 = vst [vmem:[#allocation60_spill] sm:$0xff] %v10546_v12  ;;  %v10549_v55 = vadd.f32 %v5963_v4, %v10436_v53  ;;  %v5738_v30 = vpop.f32.mrf.mxu0 }
 0x3c8   : > { %v8055_v19 = vpop.f32.mrf.mxu1 }
 0x3c9   : > { %11140 = vst [vmem:[#allocation67_spill] sm:$0xff] %v10549_v55  ;;  %v10552_v35 = vadd.f32 %v8055_v19, %v10439_v61  ;;  %v8027_v19 = vpop.f32.mrf.mxu0 }
 0x3ca   : > { %v5976_v27 = vpop.f32.mrf.mxu1 }
 0x3cb   : > { %11141 = vst [vmem:[#allocation23_spill] sm:$0xff] %v10552_v35  ;;  %v10555_v31 = vadd.f32 %v5976_v27, %v10444_v62  ;;  %v5751_v62 = vpop.f32.mrf.mxu0 }
 0x3cc   : > { %v8056_v22 = vpop.f32.mrf.mxu1 }
 0x3cd   : > { %11142 = vst [vmem:[#allocation30_spill] sm:$0xff] %v10555_v31  ;;  %v6094_v3 = vadd.f32 %v8056_v22, %v10449_v1  ;;  %v8028_v1 = vpop.f32.mrf.mxu0 }
 0x3ce   : > { %v5979_v29 = vpop.f32.mrf.mxu1 }
 0x3cf   : > { %v10559_v47 = vadd.f32 %v5979_v29, %v10454_v2  ;;  %v5754_v2 = vpop.f32.mrf.mxu0 }
 0x3d0   : > { %v8059_v53 = vpop.f32.mrf.mxu1 }
 0x3d1   : > { %11143 = vst [vmem:[#allocation62_spill] sm:$0xff] %v10559_v47  ;;  %v8031_v35 = vpop.f32.mrf.mxu0 }
 0x3d2   : > { %v5992_v4 = vpop.f32.mrf.mxu1 }
 0x3d4   : > { %v8060_v50 = vpop.f32.mrf.mxu1 }
 0x3d6   : > { %v5995_v59 = vpop.f32.mrf.mxu1 }
 0x3d8   : > { %v10561_v61 = vpop.f32.mrf.mxu1 }
 0x3d9   : > { %11144 = vst [vmem:[#allocation39_spill] sm:$0xff] %v10561_v61 }
 0x3da   : > { %v10563_v9 = vpop.f32.mrf.mxu1 }
 0x3db   : > { %11145 = vst [vmem:[#allocation70_spill] sm:$0xff] %v10563_v9  ;;  %v5203_v9 = vadd.f32 %v10420_v43, %v10408_v23  ;;  %v5796_v23 = vadd.f32 %v10491_v0, %v10462_v14  ;;  %v5797_v43 = vadd.f32 %v10513_v48, %v10470_v25  ;;  %v10616_v14 = vadd.f32 %v8023_v58, %v10497_v38 }
 0x3dc   : > { %v8064_v27 = vpop.f32.mrf.mxu1  ;;  %v10627_v25 = vadd.f32 %v8024_v34, %v10508_v18  ;;  %v10639_v38 = vadd.f32 %v5754_v2, %v10527_v63 }
 0x3de   : > { %v10565_v55 = vpop.f32.mrf.mxu1 }
 0x3df   : > { %11146 = vst [vmem:[#allocation24_spill] sm:$0xff] %v10565_v55  ;;  %v5201_v55 = vadd.f32 %v10423_v52, %v10413_v17  ;;  %v5794_v17 = vadd.f32 %v10505_v26, %v10465_v56  ;;  %v5795_v52 = vadd.f32 %v10521_v20, %v10473_v42  ;;  %v10619_v56 = vadd.f32 %v5735_v21, %v10503_v46  ;;  %v10652_v20 = vld [vmem:[%s10894_s5] ss:$0 sm:$0xff] }
 0x3e0   : > { %v10567_v22 = vpop.f32.mrf.mxu1  ;;  %v10630_v42 = vadd.f32 %v5738_v30, %v10511_v8  ;;  %v5508_v46 = vadd.f32 %v10535_v6, %v5203_v9  ;;  %v5812_v8 = vadd.f32 %v8031_v35, %v10530_v44  ;;  %v6102_v35 = vadd.f32 %v8064_v27, %v5797_v43  ;;  %v11156_v21 = vld [vmem:[#allocation39_spill] sm:$0xff]  ;;  %v11159_v27 = vld [vmem:[#allocation62_spill] sm:$0xff] }
 0x3e1   : > { %11147 = vst [vmem:[#allocation25_spill] sm:$0xff] %v10567_v22  ;;  %v5792_v22 = vadd.f32 %v10459_v16, %v10442_v15  ;;  %v10602_v15 = vadd.f32 %v8019_v41, %v10478_v33  ;;  %v10613_v16 = vadd.f32 %v5722_v24, %v10489_v60  ;;  %v11154_v41 = vld [vmem:[#allocation23_spill] sm:$0xff] }
 0x3e2   : > { %v10569_v29 = vpop.f32.mrf.mxu1 }
 0x3e3   : > { %11148 = vst [vmem:[#allocation26_spill] sm:$0xff] %v10569_v29  ;;  %v5790_v29 = vadd.f32 %v10467_v49, %v10447_v7  ;;  %v10605_v7 = vadd.f32 %v5719_v10, %v10481_v40  ;;  %v10624_v49 = vld [vmem:[%s10893_s4] ss:$0 sm:$0xff]  ;;  %v6097_v40 = vadd.f32 %v8059_v53, %v5792_v22 }
 0x3e4   : > { %v10571_v47 = vpop.f32.mrf.mxu1  ;;  %v6133_v60 = vadd.f32 %v10624_v49, %v6094_v3  ;;  %v6128_v30 = vadd.f32 %v10624_v49, %v10540_v32  ;;  %v10681_v22 = vld [vmem:[%s10895_s6] ss:$0 sm:$0xff]  ;;  %v6141_v43 = vadd.f32 %v10624_v49, %v6102_v35 }
 0x3e5   : > { %11149 = vst [vmem:[#allocation27_spill] sm:$0xff] %v10571_v47  ;;  %v5767_v47 = vpop.f32.mrf.mxu0  ;;  %v6095_v0 = vadd.f32 %v5992_v4, %v5790_v29  ;;  %v6136_v10 = vadd.f32 %v10624_v49, %v6097_v40 }
 0x3e6   : > { %v10573_v31 = vpop.f32.mrf.mxu1  ;;  %v5810_v48 = vadd.f32 %v5767_v47, %v10533_v11  ;;  %v6172_v3 = vmul.f32 %v10652_v20, %v6133_v60  ;;  %v6101_v47 = vadd.f32 %v11156_v21, %v5796_v23  ;;  %v11157_v34 = vld [vmem:[#allocation24_spill] sm:$0xff] }
 0x3e7   : > { %11150 = vst [vmem:[#allocation74_spill] sm:$0xff] %v10573_v31  ;;  %v5793_v31 = vadd.f32 %v10475_v37, %v10452_v54  ;;  %v5808_v37 = vadd.f32 %v8027_v19, %v10516_v28  ;;  %v8032_v33 = vpop.f32.mrf.mxu0  ;;  %v11152_v28 = vld [vmem:[#allocation20_spill] sm:$0xff]  ;;  %v6134_v24 = vadd.f32 %v10624_v49, %v6095_v0  ;;  %v6100_v53 = vadd.f32 %v11157_v34, %v5795_v52 }
 0x3e8   : > { %v10575_v12 = vpop.f32.mrf.mxu1  ;;  %v5813_v11 = vadd.f32 %v8032_v33, %v5508_v46  ;;  %v6175_v2 = vmul.f32 %v10652_v20, %v6136_v10  ;;  %v10693_v40 = vadd.f32 %v10681_v22, %v6172_v3 }
 0x3e9   : > { %v6098_v26 = vadd.f32 %v8060_v50, %v5793_v31  ;;  %v5770_v63 = vpop.f32.mrf.mxu0  ;;  %v6132_v50 = vadd.f32 %v10624_v49, %v11154_v41  ;;  %v6173_v60 = vmul.f32 %v10652_v20, %v6134_v24 }
 0x3ea   : > { %v10577_v61 = vpop.f32.mrf.mxu1  ;;  %v10705_v10 = vadd.f32 %v10681_v22, %v6175_v2 }
 0x3eb   : > { %11151 = vst [vmem:[#allocation63_spill] sm:$0xff] %v10577_v61  ;;  %v5791_v61 = vadd.f32 %v10483_v5, %v10457_v39  ;;  %v10610_v39 = vadd.f32 %v8020_v51, %v10486_v57  ;;  %v10634_v5 = vadd.f32 %v5751_v62, %v10519_v36  ;;  %v5809_v57 = vadd.f32 %v8028_v1, %v10524_v13  ;;  %v11153_v13 = vld [vmem:[#allocation60_spill] sm:$0xff]  ;;  %v11155_v51 = vld [vmem:[#allocation30_spill] sm:$0xff] }
 0x3ec   : > { %v10587_v45 = vpop.f32.mrf.mxu1  ;;  %v5506_v36 = vadd.f32 %v11152_v28, %v5201_v55  ;;  %v6129_v9 = vadd.f32 %v10624_v49, %v11153_v13  ;;  %v6130_v32 = vadd.f32 %v10624_v49, %v11155_v51  ;;  %v10664_v55 = vmul.f32 %v10652_v20, %v6128_v30 }
 0x3ed   : > { %v6096_v6 = vadd.f32 %v5995_v59, %v5791_v61  ;;  %v6137_v31 = vadd.f32 %v10624_v49, %v6098_v26  ;;  %v11158_v61 = vld [vmem:[#allocation67_spill] sm:$0xff]  ;;  %v6131_v1 = vadd.f32 %v10624_v49, %v11159_v27  ;;  %v10684_v29 = vmul.f32 %v10652_v20, %v6132_v50  ;;  %v11160_v26 = vld [vmem:[#allocation70_spill] sm:$0xff] }
 0x3ee   : > { %v10607_v54 = vpop.f32.mrf.mxu1  ;;  %v5811_v4 = vadd.f32 %v5770_v63, %v5506_v36  ;;  %v10670_v19 = vmul.f32 %v10652_v20, %v6129_v9  ;;  %v10674_v62 = vadd.f32 %v10624_v49, %v11158_v61  ;;  %v10690_v33 = vmul.f32 %v10652_v20, %v6130_v32 }
 0x3ef   : > { %v6135_v23 = vadd.f32 %v10624_v49, %v6096_v6  ;;  %v6176_v46 = vmul.f32 %v10652_v20, %v6137_v31  ;;  %v6140_v30 = vadd.f32 %v10624_v49, %v6101_v47  ;;  %v6099_v28 = vadd.f32 %v11160_v26, %v5794_v17 }
 0x3f0   : > { %v8075_v58 = vpop.f32.mrf.mxu1  ;;  %v6139_v36 = vadd.f32 %v10624_v49, %v6100_v53  ;;  %v10701_v9 = vmul.f32 %v10652_v20, %v6131_v1  ;;  %v6180_v6 = vmul.f32 %v10652_v20, %v6141_v43  ;;  %v10710_v17 = vadd.f32 %v10681_v22, %v6173_v60 }
 0x3f1   : > { %v6113_v35 = vadd.f32 %v8075_v58, %v5808_v37  ;;  %v6138_v24 = vadd.f32 %v10624_v49, %v6099_v28 }
 0x3f2   : > { %v10644_v18 = vpop.f32.mrf.mxu1  ;;  %v6178_v31 = vmul.f32 %v10652_v20, %v6139_v36 }
 0x3f3   : > { %v6152_v61 = vadd.f32 %v10624_v49, %v6113_v35  ;;  %v6111_v27 = vadd.f32 %v10644_v18, %v10634_v5 }
 0x3f4   : > { %v8076_v44 = vpop.f32.mrf.mxu1  ;;  %v6217_v43 = vadd.f32 %v10681_v22, %v6178_v31 }
 0x3f5   : > { %v6114_v63 = vadd.f32 %v8076_v44, %v5809_v57  ;;  %v10715_v44 = vadd.f32 %v10681_v22, %v6176_v46  ;;  %v6191_v26 = vmul.f32 %v10652_v20, %v6152_v61  ;;  %v6150_v28 = vadd.f32 %v10624_v49, %v6111_v27 }
 0x3f6   : > { %v6059_v59 = vpop.f32.mrf.mxu1 }
 0x3f7   : > { %v6153_v37 = vadd.f32 %v10624_v49, %v6114_v63  ;;  %v6112_v58 = vadd.f32 %v6059_v59, %v10639_v38 }
 0x3f8   : > { %v8079_v52 = vpop.f32.mrf.mxu1 }
 0x3f9   : > { %v6117_v0 = vadd.f32 %v8079_v52, %v5812_v8  ;;  %v6174_v8 = vmul.f32 %v10652_v20, %v6135_v23  ;;  %v6110_v52 = vadd.f32 %v10587_v45, %v10627_v25  ;;  %v6192_v60 = vmul.f32 %v10652_v20, %v6153_v37 }
 0x3fa   : > { %v6072_v13 = vpop.f32.mrf.mxu1  ;;  %v6151_v5 = vadd.f32 %v10624_v49, %v6112_v58  ;;  %v6230_v58 = vadd.f32 %v10681_v22, %v6191_v26 }
 0x3fb   : > { %v6156_v41 = vadd.f32 %v10624_v49, %v6117_v0  ;;  %v6115_v50 = vadd.f32 %v6072_v13, %v5810_v48  ;;  %v6179_v48 = vmul.f32 %v10652_v20, %v6140_v30  ;;  %v10724_v53 = vadd.f32 %v10681_v22, %v6174_v8 }
 0x3fc   : > { %v8080_v51 = vpop.f32.mrf.mxu1  ;;  %v6109_v30 = vadd.f32 %v10575_v12, %v10616_v14  ;;  %v6108_v8 = vadd.f32 %v10607_v54, %v10630_v42  ;;  %v6190_v12 = vmul.f32 %v10652_v20, %v6151_v5  ;;  %v11161_v14 = vld [vmem:[#allocation19_spill] sm:$0xff]  ;;  %v11164_v54 = vld [vmem:[#allocation18_spill] sm:$0xff] }
 0x3fd   : > { %v6195_v32 = vmul.f32 %v10652_v20, %v6156_v41  ;;  %v6154_v3 = vadd.f32 %v10624_v49, %v6115_v50  ;;  %v6118_v57 = vadd.f32 %v8080_v51, %v5813_v11  ;;  %v6219_v11 = vadd.f32 %v10681_v22, %v6180_v6 }
 0x3fe   : > { %v6075_v21 = vpop.f32.mrf.mxu1  ;;  %v6218_v59 = vadd.f32 %v10681_v22, %v6179_v48  ;;  %v6149_v50 = vadd.f32 %v10624_v49, %v6110_v52  ;;  %v6231_v51 = vadd.f32 %v10681_v22, %v6192_v60  ;;  %v11169_v60 = vld [vmem:[#allocation4_spill] sm:$0xff] }
 0x3ff   : > { %v6157_v47 = vadd.f32 %v10624_v49, %v6118_v57  ;;  %v6116_v34 = vadd.f32 %v6075_v21, %v5811_v4  ;;  %v6193_v1 = vmul.f32 %v10652_v20, %v6154_v3  ;;  %v6234_v38 = vadd.f32 %v10681_v22, %v6195_v32  ;;  %v11162_v57 = vld [vmem:[#allocation63_spill] sm:$0xff] }
 0x400   : > { %v6177_v4 = vmul.f32 %v10652_v20, %v6138_v24  ;;  %v6251_v46 = vmax.f32 %v6219_v11, 0.0  ;;  %v6250_v63 = vmax.f32 %v6218_v59, 0.0  ;;  %v6249_v32 = vmax.f32 %v6217_v43, 0.0  ;;  %v11163_v24 = vld [vmem:[#allocation9_spill] sm:$0xff] }
 0x401   : > { %v6196_v2 = vmul.f32 %v10652_v20, %v6157_v47  ;;  %v6155_v23 = vadd.f32 %v10624_v49, %v6116_v34  ;;  %v6266_v13 = vmax.f32 %v6234_v38, 0.0  ;;  %v6232_v25 = vadd.f32 %v10681_v22, %v6193_v1  ;;  %v11165_v34 = vld [vmem:[#allocation27_spill] sm:$0xff]  ;;  %v11168_v43 = vld [vmem:[#allocation25_spill] sm:$0xff] }
 0x402   : > { %v6216_v41 = vadd.f32 %v10681_v22, %v6177_v4  ;;  %v6148_v3 = vadd.f32 %v10624_v49, %v6109_v30  ;;  %v6107_v48 = vadd.f32 %v11162_v57, %v10619_v56  ;;  %v6283_v31 = vmul.f32 %v6251_v46, %v11163_v24  ;;  %v11166_v56 = vld [vmem:[#allocation5_spill] sm:$0xff] }
 0x403   : > { %v6194_v18 = vmul.f32 %v10652_v20, %v6155_v23  ;;  %v6235_v0 = vadd.f32 %v10681_v22, %v6196_v2  ;;  %v6189_v21 = vmul.f32 %v10652_v20, %v6150_v28  ;;  %v6298_v42 = vmul.f32 %v6266_v13, %v11164_v54  ;;  %v11167_v2 = vld [vmem:[#allocation17_spill] sm:$0xff]  ;;  %v11172_v13 = vld [vmem:[#allocation8_spill] sm:$0xff] }
 0x404   : > { %v6264_v37 = vmax.f32 %v6232_v25, 0.0  ;;  %v6248_v47 = vmax.f32 %v6216_v41, 0.0  ;;  %v6106_v11 = vadd.f32 %v11165_v34, %v10610_v39  ;;  %v6188_v61 = vmul.f32 %v10652_v20, %v6149_v50 }
 0x405   : > { %v6267_v36 = vmax.f32 %v6235_v0, 0.0  ;;  %v6233_v45 = vadd.f32 %v10681_v22, %v6194_v18  ;;  %v6282_v27 = vmul.f32 %v6250_v63, %v11166_v56  ;;  %v6147_v1 = vadd.f32 %v10624_v49, %v6108_v8  ;;  %v11170_v0 = vld [vmem:[#allocation16_spill] sm:$0xff]  ;;  %v11173_v63 = vld [vmem:[#allocation59_spill] sm:$0xff] }
 0x406   : > { %v6263_v38 = vmax.f32 %v6231_v51, 0.0  ;;  %v6229_v59 = vadd.f32 %v10681_v22, %v6190_v12  ;;  %v6247_v4 = vmax.f32 %v10715_v44, 0.0  ;;  %v6105_v39 = vadd.f32 %v11168_v43, %v10602_v15  ;;  %v11171_v15 = vld [vmem:[#allocation74_spill] sm:$0xff] }
 0x407   : > { %v6299_v6 = vmul.f32 %v6267_v36, %v11161_v14  ;;  %v6265_v35 = vmax.f32 %v6233_v45, 0.0  ;;  %v6187_v52 = vmul.f32 %v10652_v20, %v6148_v3  ;;  %v6281_v5 = vmul.f32 %v6249_v32, %v11169_v60  ;;  %v11174_v14 = vld [vmem:[#allocation26_spill] sm:$0xff]  ;;  %v11176_v32 = vld [vmem:[#allocation64_spill] sm:$0xff] }
 0x408   : > { %v6146_v18 = vadd.f32 %v10624_v49, %v6107_v48  ;;  %v6296_v46 = vmul.f32 %v6264_v37, %v11170_v0  ;;  %v6262_v30 = vmax.f32 %v6230_v58, 0.0  ;;  %v6228_v26 = vadd.f32 %v10681_v22, %v6189_v21 }
 0x409   : > { %7164 = vmatprep.subr.mxu0 %v6299_v6  ;;  %8081 = vmatprep.subr.mxu1 %v6299_v6  ;;  %v6297_v23 = vmul.f32 %v6265_v35, %v11167_v2  ;;  %v6246_v44 = vmax.f32 %v10705_v10, 0.0  ;;  %v6145_v28 = vadd.f32 %v10624_v49, %v6106_v11  ;;  %v6104_v36 = vadd.f32 %v11171_v15, %v10613_v16  ;;  %v11175_v6 = vld [vmem:[#allocation7_spill] sm:$0xff]  ;;  %v11179_v11 = vld [vmem:[#allocation97_spill] sm:$0xff] }
 0x40a   : > { %7165 = vmatpush3.msra.mxu0 %v6283_v31  ;;  %8097 = vmatpush3.msra.mxu1 %v6283_v31  ;;  %v6280_v45 = vmul.f32 %v6248_v47, %v11172_v13  ;;  %v6186_v25 = vmul.f32 %v10652_v20, %v6147_v1  ;;  %v6295_v41 = vmul.f32 %v6263_v38, %v11173_v63  ;;  %v6261_v50 = vmax.f32 %v6229_v59, 0.0  ;;  %v11177_v31 = vld [vmem:[#allocation98_spill] sm:$0xff]  ;;  %v11181_v38 = vld [vmem:[#allocation21_spill] sm:$0xff] }
 0x40b   : > { %7166 = vmatprep.subr.mxu0 %v6298_v42  ;;  %8082 = vmatprep.subr.mxu1 %v6298_v42  ;;  %v6227_v8 = vadd.f32 %v10681_v22, %v6188_v61  ;;  %v6245_v10 = vmax.f32 %v10724_v53, 0.0  ;;  %v6144_v12 = vadd.f32 %v10624_v49, %v6105_v39  ;;  %v6103_v16 = vadd.f32 %v11174_v14, %v10605_v7  ;;  %v11178_v42 = vld [vmem:[#allocation22_spill] sm:$0xff] }
 0x40c   : > { %7167 = vmatpush3.msra.mxu0 %v6282_v27  ;;  %8098 = vmatpush3.msra.mxu1 %v6282_v27  ;;  %v6279_v35 = vmul.f32 %v6247_v4, %v11175_v6  ;;  %v6185_v51 = vmul.f32 %v10652_v20, %v6146_v18  ;;  %v6294_v3 = vmul.f32 %v6262_v30, %v11176_v32  ;;  %v6260_v57 = vmax.f32 %v6228_v26, 0.0  ;;  %v11180_v27 = vld [vmem:[#allocation15_spill] sm:$0xff]  ;;  %v11182_v4 = vld [vmem:[#allocation96_spill] sm:$0xff]  ;;  %v11187_v63 = vld [vmem:[#allocation14_spill] sm:$0xff] }
 0x40d   : > { %7168 = vmatprep.subr.mxu0 %v6297_v23  ;;  %8083 = vmatprep.subr.mxu1 %v6297_v23  ;;  %v6226_v48 = vadd.f32 %v10681_v22, %v6187_v52  ;;  %v6210_v53 = vadd.f32 %v10681_v22, %v10684_v29  ;;  %v6244_v24 = vmax.f32 %v10710_v17, 0.0  ;;  %v6184_v7 = vmul.f32 %v10652_v20, %v6145_v28  ;;  %v11183_v52 = vld [vmem:[#allocation58_spill] sm:$0xff] }
 0x40e   : > { %7169 = vmatpush3.msra.mxu0 %v6281_v5  ;;  %8099 = vmatpush3.msra.mxu1 %v6281_v5  ;;  %v6278_v21 = vmul.f32 %v6246_v44, %v11177_v31  ;;  %v6143_v54 = vadd.f32 %v10624_v49, %v6104_v36  ;;  %v6293_v37 = vmul.f32 %v6261_v50, %v11178_v42  ;;  %v6259_v58 = vmax.f32 %v6227_v8, 0.0  ;;  %v11185_v44 = vld [vmem:[#allocation61_spill] sm:$0xff] }
 0x40f   : > { %7170 = vmatprep.subr.mxu0 %v6296_v46  ;;  %8084 = vmatprep.subr.mxu1 %v6296_v46  ;;  %v6225_v47 = vadd.f32 %v10681_v22, %v6186_v25  ;;  %v6243_v34 = vmax.f32 %v10693_v40, 0.0  ;;  %v6209_v29 = vadd.f32 %v10681_v22, %v10701_v9  ;;  %v6183_v17 = vmul.f32 %v10652_v20, %v6144_v12  ;;  %v11184_v46 = vld [vmem:[#allocation94_spill] sm:$0xff]  ;;  %v11192_v31 = vld [vmem:[#allocation81_spill] sm:$0xff] }
 0x410   : > { %7171 = vmatpush3.msra.mxu0 %v6280_v45  ;;  %8100 = vmatpush3.msra.mxu1 %v6280_v45  ;;  %v6277_v61 = vmul.f32 %v6245_v10, %v11179_v11  ;;  %v6142_v56 = vadd.f32 %v10624_v49, %v6103_v16  ;;  %v6292_v1 = vmul.f32 %v6260_v57, %v11180_v27  ;;  %v6258_v2 = vmax.f32 %v6226_v48, 0.0  ;;  %v11186_v45 = vld [vmem:[#allocation90_spill] sm:$0xff]  ;;  %v11191_v48 = vld [vmem:[#allocation12_spill] sm:$0xff]  ;;  %v11198_v27 = vld [vmem:[#allocation71_spill] sm:$0xff] }
 0x411   : > { %7172 = vmatprep.subr.mxu0 %v6295_v41  ;;  %8085 = vmatprep.subr.mxu1 %v6295_v41  ;;  %v6224_v23 = vadd.f32 %v10681_v22, %v6185_v51  ;;  %v6126_v40 = vadd.f32 %v10624_v49, %v11181_v38  ;;  %v6242_v59 = vmax.f32 %v6210_v53, 0.0  ;;  %v6208_v9 = vadd.f32 %v10681_v22, %v10690_v33  ;;  %v6303_v38 = vld [vmem:[%s10897_s8 + $0x18] sm:$0xff] }
 0x412   : > { %7173 = vmatpush3.msra.mxu0 %v6279_v35  ;;  %8101 = vmatpush3.msra.mxu1 %v6279_v35  ;;  %v6276_v43 = vmul.f32 %v6244_v24, %v11182_v4  ;;  %v6182_v39 = vmul.f32 %v10652_v20, %v6143_v54  ;;  %v6291_v60 = vmul.f32 %v6259_v58, %v11183_v52  ;;  %v6257_v5 = vmax.f32 %v6225_v47, 0.0  ;;  %v11193_v54 = vld [vmem:[#allocation11_spill] sm:$0xff]  ;;  %v6305_v4 = vld [vmem:[%s10897_s8 + $0x28] sm:$0xff]  ;;  %v6312_v52 = vld [vmem:[%s10897_s8 + $0x60] sm:$0x1] }
 0x413   : > { %7174 = vmatprep.subr.mxu0 %v6294_v3  ;;  %8086 = vmatprep.subr.mxu1 %v6294_v3  ;;  %v6223_v18 = vadd.f32 %v10681_v22, %v6184_v7  ;;  %v6207_v49 = vadd.f32 %v10681_v22, %v10670_v19  ;;  %v6166_v0 = vmul.f32 %v10652_v20, %v10674_v62  ;;  %v6241_v33 = vmax.f32 %v6209_v29, 0.0  ;;  %v11190_v3 = vld [vmem:[#allocation84_spill] sm:$0xff]  ;;  %v11194_v58 = vld [vmem:[#allocation75_spill] sm:$0xff] }
 0x414   : > { %7175 = vmatpush3.msra.mxu0 %v6278_v21  ;;  %8102 = vmatpush3.msra.mxu1 %v6278_v21  ;;  %v6275_v30 = vmul.f32 %v6243_v34, %v11184_v46  ;;  %v6181_v26 = vmul.f32 %v10652_v20, %v6142_v56  ;;  %v6290_v28 = vmul.f32 %v6258_v2, %v11185_v44  ;;  %v6256_v15 = vmax.f32 %v6224_v23, 0.0  ;;  %v11195_v34 = vld [vmem:[#allocation10_spill] sm:$0xff]  ;;  %v6300_v2 = vld [vmem:[%s10897_s8] sm:$0xff] }
 0x415   : > { %7176 = vmatprep.subr.mxu0 %v6293_v37  ;;  %8087 = vmatprep.subr.mxu1 %v6293_v37  ;;  %v6222_v36 = vadd.f32 %v10681_v22, %v6183_v17  ;;  %v6206_v19 = vadd.f32 %v10681_v22, %v10664_v55  ;;  %v6165_v13 = vmul.f32 %v10652_v20, %v6126_v40  ;;  %v6240_v62 = vmax.f32 %v6208_v9, 0.0  ;;  %v11188_v55 = vld [vmem:[#allocation88_spill] sm:$0xff]  ;;  %v11189_v20 = vld [vmem:[#allocation13_spill] sm:$0xff]  ;;  %v6311_v40 = vld [vmem:[%s10897_s8 + $0x58] sm:$0xff] }
 0x416   : > { %7177 = vmatpush3.msra.mxu0 %v6277_v61  ;;  %8103 = vmatpush3.msra.mxu1 %v6277_v61  ;;  %v6274_v25 = vmul.f32 %v6242_v59, %v11186_v45  ;;  %v6289_v41 = vmul.f32 %v6257_v5, %v11187_v63  ;;  %v6255_v50 = vmax.f32 %v6223_v18, 0.0  ;;  %v6221_v8 = vadd.f32 %v10681_v22, %v6182_v39  ;;  %v11196_v17 = vld [vmem:[#allocation77_spill] sm:$0xff]  ;;  %v11197_v61 = vld [vmem:[#allocation6_spill] sm:$0xff]  ;;  %v6308_v23 = vld [vmem:[%s10897_s8 + $0x40] sm:$0xff] }
 0x417   : > { %7178 = vmatprep.subr.mxu0 %v6292_v1  ;;  %8088 = vmatprep.subr.mxu1 %v6292_v1  ;;  %v6239_v10 = vmax.f32 %v6207_v49, 0.0  ;;  %v6205_v12 = vadd.f32 %v10681_v22, %v6166_v0  ;;  %v6273_v14 = vmul.f32 %v6241_v33, %v11188_v55  ;;  %v6288_v16 = vmul.f32 %v6256_v15, %v11189_v20  ;;  %v6302_v59 = vld [vmem:[%s10897_s8 + $0x10] sm:$0xff]  ;;  %v6304_v39 = vld [vmem:[%s10897_s8 + $0x20] sm:$0xff] }
 0x418   : > { %7179 = vmatpush3.msra.mxu0 %v6276_v43  ;;  %8104 = vmatpush3.msra.mxu1 %v6276_v43  ;;  %v6254_v6 = vmax.f32 %v6222_v36, 0.0  ;;  %v6220_v35 = vadd.f32 %v10681_v22, %v6181_v26  ;;  %v6238_v51 = vmax.f32 %v6206_v19, 0.0  ;;  %v6204_v32 = vadd.f32 %v10681_v22, %v6165_v13  ;;  %v6310_v9 = vld [vmem:[%s10897_s8 + $0x50] sm:$0xff]  ;;  %v6313_v43 = vld [vmem:[%s10897_s8 + $0x68] sm:$0x1] }
 0x419   : > { %7180 = vmatprep.subr.mxu0 %v6291_v60  ;;  %8089 = vmatprep.subr.mxu1 %v6291_v60  ;;  %v6272_v57 = vmul.f32 %v6240_v62, %v11190_v3  ;;  %v6287_v53 = vmul.f32 %v6255_v50, %v11191_v48  ;;  %v6253_v24 = vmax.f32 %v6221_v8, 0.0  ;;  %v6237_v7 = vmax.f32 %v6205_v12, 0.0  ;;  %v6307_v60 = vld [vmem:[%s10897_s8 + $0x38] sm:$0xff]  ;;  %v6306_v5 = vld [vmem:[%s10897_s8 + $0x30] sm:$0xff] }
 0x41a   : > { %7181 = vmatpush3.msra.mxu0 %v6275_v30  ;;  %8105 = vmatpush3.msra.mxu1 %v6275_v30  ;;  %v6271_v21 = vmul.f32 %v6239_v10, %v11192_v31  ;;  %v6286_v42 = vmul.f32 %v6254_v6, %v11193_v54  ;;  %v6252_v37 = vmax.f32 %v6220_v35, 0.0  ;;  %v6236_v22 = vmax.f32 %v6204_v32, 0.0 }
 0x41b   : > { %7182 = vmatprep.subr.mxu0 %v6290_v28  ;;  %8090 = vmatprep.subr.mxu1 %v6290_v28  ;;  %v6270_v47 = vmul.f32 %v6238_v51, %v11194_v58  ;;  %v6285_v29 = vmul.f32 %v6253_v24, %v11195_v34  ;;  %v6269_v11 = vmul.f32 %v6237_v7, %v11196_v17 }
 0x41c   : > { %7183 = vmatpush3.msra.mxu0 %v6274_v25  ;;  %8106 = vmatpush3.msra.mxu1 %v6274_v25  ;;  %v6284_v56 = vmul.f32 %v6252_v37, %v11197_v61  ;;  %v6268_v1 = vmul.f32 %v6236_v22, %v11198_v27 }
 0x41d   : > { %7184 = vmatprep.subr.mxu0 %v6289_v41  ;;  %8091 = vmatprep.subr.mxu1 %v6289_v41 }
 0x41e   : > { %7185 = vmatpush3.msra.mxu0 %v6273_v14  ;;  %8107 = vmatpush3.msra.mxu1 %v6273_v14 }
 0x41f   : > { %7186 = vmatprep.subr.mxu0 %v6288_v16  ;;  %8092 = vmatprep.subr.mxu1 %v6288_v16 }
 0x420   : > { %7187 = vmatpush3.msra.mxu0 %v6272_v57  ;;  %8108 = vmatpush3.msra.mxu1 %v6272_v57 }
 0x421   : > { %7188 = vmatprep.subr.mxu0 %v6287_v53  ;;  %8093 = vmatprep.subr.mxu1 %v6287_v53 }
 0x422   : > { %7189 = vmatpush3.msra.mxu0 %v6271_v21  ;;  %8109 = vmatpush3.msra.mxu1 %v6271_v21 }
 0x423   : > { %7190 = vmatprep.subr.mxu0 %v6286_v42  ;;  %8094 = vmatprep.subr.mxu1 %v6286_v42 }
 0x424   : > { %7191 = vmatpush3.msra.mxu0 %v6270_v47  ;;  %8110 = vmatpush3.msra.mxu1 %v6270_v47 }
 0x425   : > { %7192 = vmatprep.subr.mxu0 %v6285_v29  ;;  %8095 = vmatprep.subr.mxu1 %v6285_v29 }
 0x426   : > { %7193 = vmatpush3.msra.mxu0 %v6269_v11  ;;  %8111 = vmatpush3.msra.mxu1 %v6269_v11 }
 0x427   : > { %7194 = vmatprep.subr.mxu0 %v6284_v56  ;;  %8096 = vmatprep.subr.mxu1 %v6284_v56 }
 0x428   : > { %7195 = vmatpush3.msra.mxu0 %v6268_v1  ;;  %8112 = vmatpush3.msra.mxu1 %v6268_v1 }
 0x429   : > { %6379 = vmatmul.mubr.f32.vlgmr.msra.gmra.mxu0 %v6300_v2  ;;  %6399 = vmatmul.mubr.f32.vlgmr.msra.gmra.mxu1 %v6308_v23 }
 0x42a   : > { %6383 = vmatprep.mubr.f32.mxu0 %v6303_v38  ;;  %6403 = vmatprep.mubr.f32.mxu1 %v6311_v40 }
 0x42d   : > { %6384 = vmatmul.mubr.f32.gmra.mxu0 %v6302_v59  ;;  %6404 = vmatmul.mubr.f32.gmra.mxu1 %v6310_v9 }
 0x42e   : > { %6388 = vmatprep.mubr.f32.mxu0 %v6305_v4  ;;  %6408 = vmatprep.mubr.f32.mxu1 %v6313_v43 }
 0x431   : > { %6389 = vmatmul.mubr.f32.gmra.mxu0 %v6304_v39  ;;  %6409 = vmatmul.mubr.f32.gmra.mxu1 %v6312_v52 }
 0x432   : > { %6393 = vmatprep.mubr.f32.mxu0 %v6307_v60 }
 0x435   : > { %6394 = vmatmul.mubr.f32.gmra.mxu0 %v6306_v5 }
 0x4e9   : > { %v7196_v18 = vpop.f32.mrf.mxu0  ;;  %v7208_v49 = vpop.f32.mrf.mxu1 }
 0x4eb   : > { %v7197_v0 = vpop.f32.mrf.mxu0  ;;  %v7209_v33 = vpop.f32.mrf.mxu1 }
 0x4ec   : > { %v7198_v46 = vadd.f32 %v7197_v0, %v7196_v18  ;;  %v7210_v30 = vadd.f32 %v7209_v33, %v7208_v49 }
 0x4ed   : > { %v7199_v26 = vpop.f32.mrf.mxu0  ;;  %v7211_v44 = vpop.f32.mrf.mxu1 }
 0x4ee   : > { %6414 = vst [vmem:[%s332_s17] sm:$0xff] %v7198_v46  ;;  %6418 = vst [vmem:[%s332_s17 + $0x20] sm:$0xff] %v7210_v30 }
 0x4ef   : > { %v7200_v28 = vpop.f32.mrf.mxu0  ;;  %v7212_v15 = vpop.f32.mrf.mxu1 }
 0x4f0   : > { %v7201_v36 = vadd.f32 %v7200_v28, %v7199_v26  ;;  %v7213_v19 = vadd.f32 %v7212_v15, %v7211_v44 }
 0x4f1   : > { %v7202_v13 = vpop.f32.mrf.mxu0  ;;  %v7214_v62 = vpop.f32.mrf.mxu1 }
 0x4f2   : > { %6415 = vst [vmem:[%s332_s17 + $0x8] sm:$0xff] %v7201_v36  ;;  %6419 = vst [vmem:[%s332_s17 + $0x28] sm:$0xff] %v7213_v19 }
 0x4f3   : > { %v7203_v45 = vpop.f32.mrf.mxu0  ;;  %v7215_v25 = vpop.f32.mrf.mxu1 }
 0x4f4   : > { %v7204_v63 = vadd.f32 %v7203_v45, %v7202_v13  ;;  %v7216_v41 = vadd.f32 %v7215_v25, %v7214_v62 }
 0x4f5   : > { %v7205_v50 = vpop.f32.mrf.mxu0 }
 0x4f6   : > { %6416 = vst [vmem:[%s332_s17 + $0x10] sm:$0xff] %v7204_v63  ;;  %6420 = vst [vmem:[%s332_s17 + $0x30] sm:$0x1] %v7216_v41 }
 0x4f7   : > { %v7206_v8 = vpop.f32.mrf.mxu0 }
 0x4f8   : > { %v7207_v10 = vadd.f32 %v7206_v8, %v7205_v50 }
 0x4fa   : > { %6417 = vst [vmem:[%s332_s17 + $0x18] sm:$0xff] %v7207_v10 }
 0x4fb PF: > { %s19_s30 = sadd.s32 1, %s8297_s30  }
 0x4fc   : > { %p16_p4 = scmp.ge.s32.totalorder %s19_s30, 4  }
 0x4fe   :  { %18 = sbr.rel (!%p16_p4) target bundleno = 1 (0x1), region = 86 }

</bundles_post_ra>
